<compile_context>
chip_gen: v5e
topology: v5e:2x2
jax: 0.10.0
libtpu: 0.0.40
codegen_flags: <defaults>
</compile_context>

<pallas_src>
import jax
import jax.numpy as jnp
from jax import lax
from jax.experimental import pallas as pl
from jax.experimental.pallas import tpu as pltpu


def _vmem_capacity_bytes():
    """Physical per-core VMEM (128 MiB on v5e/v6e, 64 MiB on v7x); safe fallback."""
    try:
        info = pltpu.get_tpu_info()
        cap = int(getattr(info, "vmem_capacity_bytes", 0))
        if cap > 0:
            return cap
    except Exception:
        pass
    return 64 * 2 ** 20


def layernorm_conv_lstm_cell(x, h_cur, c_cur, weight, kernel_size, eps=1e-5,
                             matmul_dtype=jnp.bfloat16, gate_dtype=jnp.float32,
                             tile_rows=512):
    """Forward pass of LayernormConvLSTMCell.

    x:      (B, Cin, D, H, W) f32
    h_cur:  (B, hd,  D, H, W) f32
    c_cur:  (B, hd,  D, H, W) f32
    weight: (4*hd, Cin+hd, kD, kH, kW)   torch Conv3d layout, bias=False
    Returns (h_next, c_next), both (B, hd, D, H, W) f32.

    matmul_dtype: operand dtype for the MXU matmul (bf16 recommended on all gens).
    gate_dtype:   dtype for sigmoid/tanh/gate products (bf16 recommended on v6e/v7x,
                  f32 on v5e); LN statistic accumulation always stays f32.
    """
    B, Cin, D, H, W = x.shape
    hd = h_cur.shape[1]
    assert hd % 8 == 0, "hidden_dim must be a multiple of 8 (sublane alignment)"
    Ct = Cin + hd
    kD, kH, kW = kernel_size
    assert kD % 2 == 1 and kH % 2 == 1 and kW % 2 == 1, "odd kernel sizes only"
    pd, ph, pw = kD // 2, kH // 2, kW // 2
    Dp, Hp, Wp = D + 2 * pd, H + 2 * ph, W + 2 * pw
    n_rows = Dp * Hp * Wp                  # flattened padded spatial grid
    n_valid = D * H * W                    # voxels participating in the layernorms
    n_taps = kD * kH * kW
    Cout = 4 * hd

    # tap (kd,kh,kw) reads padded-grid row (r + kd*Hp*Wp + kh*Wp + kw) when producing
    # output row r; output voxel (d,h,w) lives at row r = d*Hp*Wp + h*Wp + w.
    max_off = (kD - 1) * Hp * Wp + (kH - 1) * Wp + (kW - 1)

    # Row tiling; rows padded to a multiple of 2*TILE_R so the tile loop can always
    # run in statically slot-alternating pairs (double-buffered slab).
    TILE_R = max(128, (int(tile_rows) // 128) * 128)
    num_tiles = 2 * (-(-n_rows // (2 * TILE_R)))
    R_pad = num_tiles * TILE_R
    S = R_pad + max_off                    # comb rows incl. shift tail

    # Pad channels to a sublane multiple so every slab band store is aligned.
    Ct_pad = -(-Ct // 8) * 8
    KK = n_taps * Ct_pad

    # ------------------------- glue (plain JAX) -------------------------------
    comb = jnp.concatenate([x, h_cur], axis=1)                       # (B, Ct, D, H, W)
    comb = jnp.pad(comb, ((0, 0), (0, Ct_pad - Ct),
                          (pd, pd), (ph, ph), (pw, pw)))
    comb = comb.reshape(B, Ct_pad, n_rows)
    comb = jnp.pad(comb, ((0, 0), (0, 0), (0, S - n_rows)))
    comb = comb.astype(matmul_dtype)                                 # (B, Ct_pad, S)

    # c_cur voxel (d,h,w) must land at row d*Hp*Wp + h*Wp + w (the row holding that
    # voxel's conv output): pad the spatial dims on the HIGH side only.
    c_flat = jnp.pad(c_cur, ((0, 0), (0, 0),
                             (0, Dp - D), (0, Hp - H), (0, Wp - W)))
    c_flat = c_flat.reshape(B, hd, n_rows)
    c_flat = jnp.pad(c_flat, ((0, 0), (0, 0), (0, R_pad - n_rows)))
    c_flat = c_flat.astype(jnp.float32)                              # (B, hd, R_pad)

    # weight (Cout, Ct, kD, kH, kW) -> (Cout, n_taps*Ct_pad); column = tap*Ct_pad + c
    w_flat = jnp.transpose(weight, (0, 2, 3, 4, 1)).reshape(Cout, n_taps, Ct)
    w_flat = jnp.pad(w_flat, ((0, 0), (0, 0), (0, Ct_pad - Ct)))
    w_flat = w_flat.reshape(Cout, KK).astype(matmul_dtype)

    # interior mask over padded-grid rows [0:D, 0:H, 0:W)  (lane-dense (1, R_pad))
    rr = jnp.arange(R_pad, dtype=jnp.int32)
    dpi = rr // (Hp * Wp)
    rem = rr % (Hp * Wp)
    hpi = rem // Wp
    wpi = rem % Wp
    mask = ((dpi < D) & (hpi < H) & (wpi < W)).astype(jnp.float32)[None, :]

    inv_n = 1.0 / float(n_valid)

    # ------------------------------ kernel ------------------------------------
    def kernel(comb_ref, w_ref, c_ref, mask_ref, h_out_ref, c_out_ref,
               slab_ref, conv_ref):
        # -- phase 1: conv as K-folded MXU matmuls over row tiles ---------------
        def conv_tile(r0, slot):
            # One wide lane-unaligned band per (kd, kh); the kW taps are static
            # lane-shift slices of it (27 unaligned copies -> 9 wide loads + shifts).
            for kd in range(kD):
                for kh in range(kH):
                    off0 = kd * Hp * Wp + kh * Wp
                    wide = comb_ref[0, :, pl.ds(r0 + off0, TILE_R + kW - 1)]
                    for kw in range(kW):
                        tap = (kd * kH + kh) * kW + kw
                        slab_ref[slot, tap * Ct_pad:(tap + 1) * Ct_pad, :] = (
                            wide[:, kw:kw + TILE_R])
            conv_ref[:, pl.ds(r0, TILE_R)] = jnp.dot(
                w_ref[...], slab_ref[slot], preferred_element_type=jnp.float32)

        if num_tiles <= 16:
            # Static unroll: slot alternation (double-buffered slab) lets the
            # scheduler overlap tile t+1's slab build with tile t's matmul.
            for t in range(num_tiles):
                conv_tile(t * TILE_R, t % 2)
        else:
            # Production row counts: bounded live ranges, still slot-alternating.
            def pair_body(p, carry):
                base = pl.multiple_of(p * (2 * TILE_R), 128)
                conv_tile(base, 0)
                conv_tile(base + TILE_R, 1)
                return carry
            lax.fori_loop(0, num_tiles // 2, pair_body, 0)

        # -- phase 2: gates + layernorms (rows on the lane axis) ----------------
        acc = conv_ref[...]                            # (Cout, R_pad) f32
        m = mask_ref[...]                              # (1, R_pad)  f32
        gd = gate_dtype

        ifo = jax.nn.sigmoid(acc[: 3 * hd, :].astype(gd))   # one lane-dense sigmoid
        i_g = ifo[0 * hd: 1 * hd, :]
        f_g = ifo[1 * hd: 2 * hd, :]
        o_g = ifo[2 * hd: 3 * hd, :]
        cc_g = acc[3 * hd:, :]                          # f32

        def layer_norm_dhw(t):
            # fused single-pass masked statistics (f32 accumulation), biased var.
            tf = t.astype(jnp.float32)
            tm = tf * m
            s1 = jnp.sum(tm, axis=1, keepdims=True)
            s2 = jnp.sum(tm * tf, axis=1, keepdims=True)
            mean = s1 * inv_n
            var = s2 * inv_n - mean * mean
            return (tf - mean) * lax.rsqrt(var + eps)   # f32 out

        g = jnp.tanh(layer_norm_dhw(cc_g).astype(gd))
        c_prev = c_ref[0].astype(gd)                    # (hd, R_pad)
        c_next = layer_norm_dhw(f_g * c_prev + i_g * g)            # f32
        h_next = o_g * jnp.tanh(c_next.astype(gd))

        h_out_ref[0] = h_next.astype(h_out_ref.dtype)
        c_out_ref[0] = c_next.astype(c_out_ref.dtype)

    # --------------------------- pallas_call ----------------------------------
    mm_bytes = jnp.dtype(matmul_dtype).itemsize
    vmem_bytes = (
        2 * Ct_pad * S * mm_bytes            # comb block (double buffered)
        + 2 * Cout * KK * mm_bytes           # weight block
        + 2 * hd * R_pad * 4                 # c_prev block
        + 2 * R_pad * 4                      # mask block
        + 2 * 2 * hd * R_pad * 4             # h/c output blocks
        + 2 * KK * TILE_R * mm_bytes         # double-buffered im2col slab scratch
        + Cout * R_pad * 4                   # conv accumulator scratch
    )
    cap = _vmem_capacity_bytes()
    vmem_limit = int(min(max(32 * 2 ** 20, 2 * vmem_bytes), int(0.85 * cap)))

    out_shape = (jax.ShapeDtypeStruct((B, hd, R_pad), jnp.float32),
                 jax.ShapeDtypeStruct((B, hd, R_pad), jnp.float32))

    h_flat, c_next_flat = pl.pallas_call(
        kernel,
        out_shape=out_shape,
        grid_spec=pltpu.PrefetchScalarGridSpec(
            num_scalar_prefetch=0,
            grid=(B,),
            in_specs=[
                pl.BlockSpec((1, Ct_pad, S), lambda b: (b, 0, 0)),
                pl.BlockSpec((Cout, KK), lambda b: (0, 0)),
                pl.BlockSpec((1, hd, R_pad), lambda b: (b, 0, 0)),
                pl.BlockSpec((1, R_pad), lambda b: (0, 0)),
            ],
            out_specs=[
                pl.BlockSpec((1, hd, R_pad), lambda b: (b, 0, 0)),
                pl.BlockSpec((1, hd, R_pad), lambda b: (b, 0, 0)),
            ],
            scratch_shapes=[
                pltpu.VMEM((2, KK, TILE_R), matmul_dtype),   # double-buffered slab
                pltpu.VMEM((Cout, R_pad), jnp.float32),      # conv accumulator
            ],
        ),
        compiler_params=pltpu.CompilerParams(
            dimension_semantics=("parallel",),   # batches may split across TCs (v7x)
            vmem_limit_bytes=vmem_limit,
        ),
    )(comb, w_flat, c_flat, mask)

    def unflatten(t):
        # output voxel (d,h,w) lives at padded-grid row (d,h,w): take [0:D,0:H,0:W)
        t = t[:, :, :n_rows].reshape(B, hd, Dp, Hp, Wp)
        return t[:, :, :D, :H, :W]                               # already NCDHW

    return unflatten(h_flat), unflatten(c_next_flat)


def reference(x, h_cur, c_cur, weight, eps=1e-5):
    """Plain-JAX reference matching the torch module (activation = tanh)."""
    hd = h_cur.shape[1]
    comb = jnp.concatenate([x, h_cur], axis=1)                     # (B, Ct, D, H, W)
    comb_l = jnp.transpose(comb, (0, 2, 3, 4, 1))                  # NDHWC
    w = jnp.transpose(weight, (2, 3, 4, 1, 0))                     # DHWIO
    conv = lax.conv_general_dilated(
        comb_l, w, window_strides=(1, 1, 1), padding="SAME",
        dimension_numbers=("NDHWC", "DHWIO", "NDHWC"),
        precision=lax.Precision.HIGHEST)
    conv = jnp.transpose(conv, (0, 4, 1, 2, 3))                    # (B, 4hd, D, H, W)
    cc_i, cc_f, cc_o, cc_g = jnp.split(conv, 4, axis=1)

    def ln(t):
        mean = jnp.mean(t, axis=(2, 3, 4), keepdims=True)
        var = jnp.mean((t - mean) ** 2, axis=(2, 3, 4), keepdims=True)
        return (t - mean) / jnp.sqrt(var + eps)

    i = jax.nn.sigmoid(cc_i)
    f = jax.nn.sigmoid(cc_f)
    o = jax.nn.sigmoid(cc_o)
    g = jnp.tanh(ln(cc_g))
    c_next = ln(f * c_cur + i * g)
    h_next = o * jnp.tanh(c_next)
    return h_next, c_next


if __name__ == "__main__":
    B, Cin, hd = 2, 4, 8
    D, H, W = 4, 8, 8
    ks = (3, 3, 3)
    Ct = Cin + hd

    key = jax.random.PRNGKey(0)
    kx, kh, kc, kw = jax.random.split(key, 4)
    x = jax.random.normal(kx, (B, Cin, D, H, W), jnp.float32)
    h0 = jax.random.normal(kh, (B, hd, D, H, W), jnp.float32)
    c0 = jax.random.normal(kc, (B, hd, D, H, W), jnp.float32)
    # deterministic synthetic conv weight, torch Conv3d layout (Cout, Cin_total, kD, kH, kW)
    weight = 0.1 * jax.random.normal(kw, (4 * hd, Ct, *ks), jnp.float32)

    h_expect, c_expect = reference(x, h0, c0, weight)

    # f32 matmul operands + f32 gate math (tolerance covers the MXU's default
    # bf16 operand rounding of f32 dots).
    h_next, c_next = layernorm_conv_lstm_cell(
        x, h0, c0, weight, ks, matmul_dtype=jnp.float32, gate_dtype=jnp.float32)
    jax.block_until_ready((h_next, c_next))
    assert jnp.allclose(h_next, h_expect, rtol=4e-2, atol=4e-2), "h_next mismatch (f32)"
    assert jnp.allclose(c_next, c_expect, rtol=4e-2, atol=4e-2), "c_next mismatch (f32)"

    # bf16 matmul operands + bf16 gate/activation math (recommended on v6e/v7x);
    # looser smoke-test tolerance for the compounded bf16 rounding.
    h_bf, c_bf = layernorm_conv_lstm_cell(
        x, h0, c0, weight, ks, matmul_dtype=jnp.bfloat16, gate_dtype=jnp.bfloat16)
    jax.block_until_ready((h_bf, c_bf))
    assert jnp.allclose(h_bf, h_expect, rtol=1e-1, atol=1e-1), "h_next mismatch (bf16)"
    assert jnp.allclose(c_bf, c_expect, rtol=1e-1, atol=1e-1), "c_next mismatch (bf16)"

    print("KERNEL_OK")
</pallas_src>

<mosaic_0001>
module attributes {stable_mosaic.version = 11 : i64} {
  func.func @kernel(%arg0: i32, %arg1: memref<1x16x1246xf32, #tpu.memory_space<vmem>>, %arg2: memref<32x432xf32, #tpu.memory_space<vmem>>, %arg3: memref<1x8x1024xf32, #tpu.memory_space<vmem>>, %arg4: memref<1x1024xf32, #tpu.memory_space<vmem>>, %arg5: memref<1x8x1024xf32, #tpu.memory_space<vmem>>, %arg6: memref<1x8x1024xf32, #tpu.memory_space<vmem>>, %arg7: memref<2x432x512xf32, #tpu.memory_space<vmem>>, %arg8: memref<32x1024xf32, #tpu.memory_space<vmem>>) attributes {dimension_semantics = [#tpu.dimension_semantics<parallel>], iteration_bounds = array<i64: 2>, scalar_prefetch = 0 : i64, scratch_operands = 2 : i64, tpu.core_type = #tpu.core_type<tc>, window_params = [{transform_indices = @transform_0, window_bounds = array<i64: 1, 16, 1246>}, {pipeline_mode = #tpu.pipeline_mode<synchronous>, transform_indices = @transform_1, window_bounds = array<i64: 32, 432>}, {transform_indices = @transform_2, window_bounds = array<i64: 1, 8, 1024>}, {pipeline_mode = #tpu.pipeline_mode<synchronous>, transform_indices = @transform_3, window_bounds = array<i64: 1, 1024>}, {transform_indices = @transform_4, window_bounds = array<i64: 1, 8, 1024>}, {transform_indices = @transform_5, window_bounds = array<i64: 1, 8, 1024>}]} {
    %c0 = arith.constant 0 : index
    %c0_0 = arith.constant 0 : index
    %c0_1 = arith.constant 0 : index
    %0 = vector.load %arg1[%c0, %c0_0, %c0_1] : memref<1x16x1246xf32, #tpu.memory_space<vmem>>, vector<1x16x514xf32>
    %1 = vector.shape_cast %0 : vector<1x16x514xf32> to vector<16x514xf32>
    %2 = vector.extract_strided_slice %1 {offsets = [0, 0], sizes = [16, 512], strides = [1, 1]} : vector<16x514xf32> to vector<16x512xf32>
    %c0_2 = arith.constant 0 : index
    %c0_3 = arith.constant 0 : index
    %c0_4 = arith.constant 0 : index
    %3 = vector.load %arg7[%c0_2, %c0_3, %c0_4] : memref<2x432x512xf32, #tpu.memory_space<vmem>>, vector<1x16x512xf32>
    %4 = vector.shape_cast %3 : vector<1x16x512xf32> to vector<16x512xf32>
    %5 = vector.shape_cast %2 : vector<16x512xf32> to vector<1x16x512xf32>
    tpu.vector_store %arg7[%c0_2, %c0_3, %c0_4], %5 {strides = array<i32>} : memref<2x432x512xf32, #tpu.memory_space<vmem>>, vector<1x16x512xf32>,
    %6 = vector.extract_strided_slice %1 {offsets = [0, 1], sizes = [16, 512], strides = [1, 1]} : vector<16x514xf32> to vector<16x512xf32>
    %c0_5 = arith.constant 0 : index
    %c16 = arith.constant 16 : index
    %c0_6 = arith.constant 0 : index
    %7 = vector.load %arg7[%c0_5, %c16, %c0_6] : memref<2x432x512xf32, #tpu.memory_space<vmem>>, vector<1x16x512xf32>
    %8 = vector.shape_cast %7 : vector<1x16x512xf32> to vector<16x512xf32>
    %9 = vector.shape_cast %6 : vector<16x512xf32> to vector<1x16x512xf32>
    tpu.vector_store %arg7[%c0_5, %c16, %c0_6], %9 {strides = array<i32>} : memref<2x432x512xf32, #tpu.memory_space<vmem>>, vector<1x16x512xf32>,
    %10 = vector.extract_strided_slice %1 {offsets = [0, 2], sizes = [16, 512], strides = [1, 1]} : vector<16x514xf32> to vector<16x512xf32>
    %c0_7 = arith.constant 0 : index
    %c32 = arith.constant 32 : index
    %c0_8 = arith.constant 0 : index
    %11 = vector.load %arg7[%c0_7, %c32, %c0_8] : memref<2x432x512xf32, #tpu.memory_space<vmem>>, vector<1x16x512xf32>
    %12 = vector.shape_cast %11 : vector<1x16x512xf32> to vector<16x512xf32>
    %13 = vector.shape_cast %10 : vector<16x512xf32> to vector<1x16x512xf32>
    tpu.vector_store %arg7[%c0_7, %c32, %c0_8], %13 {strides = array<i32>} : memref<2x432x512xf32, #tpu.memory_space<vmem>>, vector<1x16x512xf32>,
    %c0_9 = arith.constant 0 : index
    %c0_10 = arith.constant 0 : index
    %c10 = arith.constant 10 : index
    %14 = vector.load %arg1[%c0_9, %c0_10, %c10] : memref<1x16x1246xf32, #tpu.memory_space<vmem>>, vector<1x16x514xf32>
    %15 = vector.shape_cast %14 : vector<1x16x514xf32> to vector<16x514xf32>
    %16 = vector.extract_strided_slice %15 {offsets = [0, 0], sizes = [16, 512], strides = [1, 1]} : vector<16x514xf32> to vector<16x512xf32>
    %c0_11 = arith.constant 0 : index
    %c48 = arith.constant 48 : index
    %c0_12 = arith.constant 0 : index
    %17 = vector.load %arg7[%c0_11, %c48, %c0_12] : memref<2x432x512xf32, #tpu.memory_space<vmem>>, vector<1x16x512xf32>
    %18 = vector.shape_cast %17 : vector<1x16x512xf32> to vector<16x512xf32>
    %19 = vector.shape_cast %16 : vector<16x512xf32> to vector<1x16x512xf32>
    tpu.vector_store %arg7[%c0_11, %c48, %c0_12], %19 {strides = array<i32>} : memref<2x432x512xf32, #tpu.memory_space<vmem>>, vector<1x16x512xf32>,
    %20 = vector.extract_strided_slice %15 {offsets = [0, 1], sizes = [16, 512], strides = [1, 1]} : vector<16x514xf32> to vector<16x512xf32>
    %c0_13 = arith.constant 0 : index
    %c64 = arith.constant 64 : index
    %c0_14 = arith.constant 0 : index
    %21 = vector.load %arg7[%c0_13, %c64, %c0_14] : memref<2x432x512xf32, #tpu.memory_space<vmem>>, vector<1x16x512xf32>
    %22 = vector.shape_cast %21 : vector<1x16x512xf32> to vector<16x512xf32>
    %23 = vector.shape_cast %20 : vector<16x512xf32> to vector<1x16x512xf32>
    tpu.vector_store %arg7[%c0_13, %c64, %c0_14], %23 {strides = array<i32>} : memref<2x432x512xf32, #tpu.memory_space<vmem>>, vector<1x16x512xf32>,
    %24 = vector.extract_strided_slice %15 {offsets = [0, 2], sizes = [16, 512], strides = [1, 1]} : vector<16x514xf32> to vector<16x512xf32>
    %c0_15 = arith.constant 0 : index
    %c80 = arith.constant 80 : index
    %c0_16 = arith.constant 0 : index
    %25 = vector.load %arg7[%c0_15, %c80, %c0_16] : memref<2x432x512xf32, #tpu.memory_space<vmem>>, vector<1x16x512xf32>
    %26 = vector.shape_cast %25 : vector<1x16x512xf32> to vector<16x512xf32>
    %27 = vector.shape_cast %24 : vector<16x512xf32> to vector<1x16x512xf32>
    tpu.vector_store %arg7[%c0_15, %c80, %c0_16], %27 {strides = array<i32>} : memref<2x432x512xf32, #tpu.memory_space<vmem>>, vector<1x16x512xf32>,
    %c0_17 = arith.constant 0 : index
    %c0_18 = arith.constant 0 : index
    %c20 = arith.constant 20 : index
    %28 = vector.load %arg1[%c0_17, %c0_18, %c20] : memref<1x16x1246xf32, #tpu.memory_space<vmem>>, vector<1x16x514xf32>
    %29 = vector.shape_cast %28 : vector<1x16x514xf32> to vector<16x514xf32>
    %30 = vector.extract_strided_slice %29 {offsets = [0, 0], sizes = [16, 512], strides = [1, 1]} : vector<16x514xf32> to vector<16x512xf32>
    %c0_19 = arith.constant 0 : index
    %c96 = arith.constant 96 : index
    %c0_20 = arith.constant 0 : index
    %31 = vector.load %arg7[%c0_19, %c96, %c0_20] : memref<2x432x512xf32, #tpu.memory_space<vmem>>, vector<1x16x512xf32>
    %32 = vector.shape_cast %31 : vector<1x16x512xf32> to vector<16x512xf32>
    %33 = vector.shape_cast %30 : vector<16x512xf32> to vector<1x16x512xf32>
    tpu.vector_store %arg7[%c0_19, %c96, %c0_20], %33 {strides = array<i32>} : memref<2x432x512xf32, #tpu.memory_space<vmem>>, vector<1x16x512xf32>,
    %34 = vector.extract_strided_slice %29 {offsets = [0, 1], sizes = [16, 512], strides = [1, 1]} : vector<16x514xf32> to vector<16x512xf32>
    %c0_21 = arith.constant 0 : index
    %c112 = arith.constant 112 : index
    %c0_22 = arith.constant 0 : index
    %35 = vector.load %arg7[%c0_21, %c112, %c0_22] : memref<2x432x512xf32, #tpu.memory_space<vmem>>, vector<1x16x512xf32>
    %36 = vector.shape_cast %35 : vector<1x16x512xf32> to vector<16x512xf32>
    %37 = vector.shape_cast %34 : vector<16x512xf32> to vector<1x16x512xf32>
    tpu.vector_store %arg7[%c0_21, %c112, %c0_22], %37 {strides = array<i32>} : memref<2x432x512xf32, #tpu.memory_space<vmem>>, vector<1x16x512xf32>,
    %38 = vector.extract_strided_slice %29 {offsets = [0, 2], sizes = [16, 512], strides = [1, 1]} : vector<16x514xf32> to vector<16x512xf32>
    %c0_23 = arith.constant 0 : index
    %c128 = arith.constant 128 : index
    %c0_24 = arith.constant 0 : index
    %39 = vector.load %arg7[%c0_23, %c128, %c0_24] : memref<2x432x512xf32, #tpu.memory_space<vmem>>, vector<1x16x512xf32>
    %40 = vector.shape_cast %39 : vector<1x16x512xf32> to vector<16x512xf32>
    %41 = vector.shape_cast %38 : vector<16x512xf32> to vector<1x16x512xf32>
    tpu.vector_store %arg7[%c0_23, %c128, %c0_24], %41 {strides = array<i32>} : memref<2x432x512xf32, #tpu.memory_space<vmem>>, vector<1x16x512xf32>,
    %c0_25 = arith.constant 0 : index
    %c0_26 = arith.constant 0 : index
    %c100 = arith.constant 100 : index
    %42 = vector.load %arg1[%c0_25, %c0_26, %c100] : memref<1x16x1246xf32, #tpu.memory_space<vmem>>, vector<1x16x514xf32>
    %43 = vector.shape_cast %42 : vector<1x16x514xf32> to vector<16x514xf32>
    %44 = vector.extract_strided_slice %43 {offsets = [0, 0], sizes = [16, 512], strides = [1, 1]} : vector<16x514xf32> to vector<16x512xf32>
    %c0_27 = arith.constant 0 : index
    %c144 = arith.constant 144 : index
    %c0_28 = arith.constant 0 : index
    %45 = vector.load %arg7[%c0_27, %c144, %c0_28] : memref<2x432x512xf32, #tpu.memory_space<vmem>>, vector<1x16x512xf32>
    %46 = vector.shape_cast %45 : vector<1x16x512xf32> to vector<16x512xf32>
    %47 = vector.shape_cast %44 : vector<16x512xf32> to vector<1x16x512xf32>
    tpu.vector_store %arg7[%c0_27, %c144, %c0_28], %47 {strides = array<i32>} : memref<2x432x512xf32, #tpu.memory_space<vmem>>, vector<1x16x512xf32>,
    %48 = vector.extract_strided_slice %43 {offsets = [0, 1], sizes = [16, 512], strides = [1, 1]} : vector<16x514xf32> to vector<16x512xf32>
    %c0_29 = arith.constant 0 : index
    %c160 = arith.constant 160 : index
    %c0_30 = arith.constant 0 : index
    %49 = vector.load %arg7[%c0_29, %c160, %c0_30] : memref<2x432x512xf32, #tpu.memory_space<vmem>>, vector<1x16x512xf32>
    %50 = vector.shape_cast %49 : vector<1x16x512xf32> to vector<16x512xf32>
    %51 = vector.shape_cast %48 : vector<16x512xf32> to vector<1x16x512xf32>
    tpu.vector_store %arg7[%c0_29, %c160, %c0_30], %51 {strides = array<i32>} : memref<2x432x512xf32, #tpu.memory_space<vmem>>, vector<1x16x512xf32>,
    %52 = vector.extract_strided_slice %43 {offsets = [0, 2], sizes = [16, 512], strides = [1, 1]} : vector<16x514xf32> to vector<16x512xf32>
    %c0_31 = arith.constant 0 : index
    %c176 = arith.constant 176 : index
    %c0_32 = arith.constant 0 : index
    %53 = vector.load %arg7[%c0_31, %c176, %c0_32] : memref<2x432x512xf32, #tpu.memory_space<vmem>>, vector<1x16x512xf32>
    %54 = vector.shape_cast %53 : vector<1x16x512xf32> to vector<16x512xf32>
    %55 = vector.shape_cast %52 : vector<16x512xf32> to vector<1x16x512xf32>
    tpu.vector_store %arg7[%c0_31, %c176, %c0_32], %55 {strides = array<i32>} : memref<2x432x512xf32, #tpu.memory_space<vmem>>, vector<1x16x512xf32>,
    %c0_33 = arith.constant 0 : index
    %c0_34 = arith.constant 0 : index
    %c110 = arith.constant 110 : index
    %56 = vector.load %arg1[%c0_33, %c0_34, %c110] : memref<1x16x1246xf32, #tpu.memory_space<vmem>>, vector<1x16x514xf32>
    %57 = vector.shape_cast %56 : vector<1x16x514xf32> to vector<16x514xf32>
    %58 = vector.extract_strided_slice %57 {offsets = [0, 0], sizes = [16, 512], strides = [1, 1]} : vector<16x514xf32> to vector<16x512xf32>
    %c0_35 = arith.constant 0 : index
    %c192 = arith.constant 192 : index
    %c0_36 = arith.constant 0 : index
    %59 = vector.load %arg7[%c0_35, %c192, %c0_36] : memref<2x432x512xf32, #tpu.memory_space<vmem>>, vector<1x16x512xf32>
    %60 = vector.shape_cast %59 : vector<1x16x512xf32> to vector<16x512xf32>
    %61 = vector.shape_cast %58 : vector<16x512xf32> to vector<1x16x512xf32>
    tpu.vector_store %arg7[%c0_35, %c192, %c0_36], %61 {strides = array<i32>} : memref<2x432x512xf32, #tpu.memory_space<vmem>>, vector<1x16x512xf32>,
    %62 = vector.extract_strided_slice %57 {offsets = [0, 1], sizes = [16, 512], strides = [1, 1]} : vector<16x514xf32> to vector<16x512xf32>
    %c0_37 = arith.constant 0 : index
    %c208 = arith.constant 208 : index
    %c0_38 = arith.constant 0 : index
    %63 = vector.load %arg7[%c0_37, %c208, %c0_38] : memref<2x432x512xf32, #tpu.memory_space<vmem>>, vector<1x16x512xf32>
    %64 = vector.shape_cast %63 : vector<1x16x512xf32> to vector<16x512xf32>
    %65 = vector.shape_cast %62 : vector<16x512xf32> to vector<1x16x512xf32>
    tpu.vector_store %arg7[%c0_37, %c208, %c0_38], %65 {strides = array<i32>} : memref<2x432x512xf32, #tpu.memory_space<vmem>>, vector<1x16x512xf32>,
    %66 = vector.extract_strided_slice %57 {offsets = [0, 2], sizes = [16, 512], strides = [1, 1]} : vector<16x514xf32> to vector<16x512xf32>
    %c0_39 = arith.constant 0 : index
    %c224 = arith.constant 224 : index
    %c0_40 = arith.constant 0 : index
    %67 = vector.load %arg7[%c0_39, %c224, %c0_40] : memref<2x432x512xf32, #tpu.memory_space<vmem>>, vector<1x16x512xf32>
    %68 = vector.shape_cast %67 : vector<1x16x512xf32> to vector<16x512xf32>
    %69 = vector.shape_cast %66 : vector<16x512xf32> to vector<1x16x512xf32>
    tpu.vector_store %arg7[%c0_39, %c224, %c0_40], %69 {strides = array<i32>} : memref<2x432x512xf32, #tpu.memory_space<vmem>>, vector<1x16x512xf32>,
    %c0_41 = arith.constant 0 : index
    %c0_42 = arith.constant 0 : index
    %c120 = arith.constant 120 : index
    %70 = vector.load %arg1[%c0_41, %c0_42, %c120] : memref<1x16x1246xf32, #tpu.memory_space<vmem>>, vector<1x16x514xf32>
    %71 = vector.shape_cast %70 : vector<1x16x514xf32> to vector<16x514xf32>
    %72 = vector.extract_strided_slice %71 {offsets = [0, 0], sizes = [16, 512], strides = [1, 1]} : vector<16x514xf32> to vector<16x512xf32>
    %c0_43 = arith.constant 0 : index
    %c240 = arith.constant 240 : index
    %c0_44 = arith.constant 0 : index
    %73 = vector.load %arg7[%c0_43, %c240, %c0_44] : memref<2x432x512xf32, #tpu.memory_space<vmem>>, vector<1x16x512xf32>
    %74 = vector.shape_cast %73 : vector<1x16x512xf32> to vector<16x512xf32>
    %75 = vector.shape_cast %72 : vector<16x512xf32> to vector<1x16x512xf32>
    tpu.vector_store %arg7[%c0_43, %c240, %c0_44], %75 {strides = array<i32>} : memref<2x432x512xf32, #tpu.memory_space<vmem>>, vector<1x16x512xf32>,
    %76 = vector.extract_strided_slice %71 {offsets = [0, 1], sizes = [16, 512], strides = [1, 1]} : vector<16x514xf32> to vector<16x512xf32>
    %c0_45 = arith.constant 0 : index
    %c256 = arith.constant 256 : index
    %c0_46 = arith.constant 0 : index
    %77 = vector.load %arg7[%c0_45, %c256, %c0_46] : memref<2x432x512xf32, #tpu.memory_space<vmem>>, vector<1x16x512xf32>
    %78 = vector.shape_cast %77 : vector<1x16x512xf32> to vector<16x512xf32>
    %79 = vector.shape_cast %76 : vector<16x512xf32> to vector<1x16x512xf32>
    tpu.vector_store %arg7[%c0_45, %c256, %c0_46], %79 {strides = array<i32>} : memref<2x432x512xf32, #tpu.memory_space<vmem>>, vector<1x16x512xf32>,
    %80 = vector.extract_strided_slice %71 {offsets = [0, 2], sizes = [16, 512], strides = [1, 1]} : vector<16x514xf32> to vector<16x512xf32>
    %c0_47 = arith.constant 0 : index
    %c272 = arith.constant 272 : index
    %c0_48 = arith.constant 0 : index
    %81 = vector.load %arg7[%c0_47, %c272, %c0_48] : memref<2x432x512xf32, #tpu.memory_space<vmem>>, vector<1x16x512xf32>
    %82 = vector.shape_cast %81 : vector<1x16x512xf32> to vector<16x512xf32>
    %83 = vector.shape_cast %80 : vector<16x512xf32> to vector<1x16x512xf32>
    tpu.vector_store %arg7[%c0_47, %c272, %c0_48], %83 {strides = array<i32>} : memref<2x432x512xf32, #tpu.memory_space<vmem>>, vector<1x16x512xf32>,
    %c0_49 = arith.constant 0 : index
    %c0_50 = arith.constant 0 : index
    %c200 = arith.constant 200 : index
    %84 = vector.load %arg1[%c0_49, %c0_50, %c200] : memref<1x16x1246xf32, #tpu.memory_space<vmem>>, vector<1x16x514xf32>
    %85 = vector.shape_cast %84 : vector<1x16x514xf32> to vector<16x514xf32>
    %86 = vector.extract_strided_slice %85 {offsets = [0, 0], sizes = [16, 512], strides = [1, 1]} : vector<16x514xf32> to vector<16x512xf32>
    %c0_51 = arith.constant 0 : index
    %c288 = arith.constant 288 : index
    %c0_52 = arith.constant 0 : index
    %87 = vector.load %arg7[%c0_51, %c288, %c0_52] : memref<2x432x512xf32, #tpu.memory_space<vmem>>, vector<1x16x512xf32>
    %88 = vector.shape_cast %87 : vector<1x16x512xf32> to vector<16x512xf32>
    %89 = vector.shape_cast %86 : vector<16x512xf32> to vector<1x16x512xf32>
    tpu.vector_store %arg7[%c0_51, %c288, %c0_52], %89 {strides = array<i32>} : memref<2x432x512xf32, #tpu.memory_space<vmem>>, vector<1x16x512xf32>,
    %90 = vector.extract_strided_slice %85 {offsets = [0, 1], sizes = [16, 512], strides = [1, 1]} : vector<16x514xf32> to vector<16x512xf32>
    %c0_53 = arith.constant 0 : index
    %c304 = arith.constant 304 : index
    %c0_54 = arith.constant 0 : index
    %91 = vector.load %arg7[%c0_53, %c304, %c0_54] : memref<2x432x512xf32, #tpu.memory_space<vmem>>, vector<1x16x512xf32>
    %92 = vector.shape_cast %91 : vector<1x16x512xf32> to vector<16x512xf32>
    %93 = vector.shape_cast %90 : vector<16x512xf32> to vector<1x16x512xf32>
    tpu.vector_store %arg7[%c0_53, %c304, %c0_54], %93 {strides = array<i32>} : memref<2x432x512xf32, #tpu.memory_space<vmem>>, vector<1x16x512xf32>,
    %94 = vector.extract_strided_slice %85 {offsets = [0, 2], sizes = [16, 512], strides = [1, 1]} : vector<16x514xf32> to vector<16x512xf32>
    %c0_55 = arith.constant 0 : index
    %c320 = arith.constant 320 : index
    %c0_56 = arith.constant 0 : index
    %95 = vector.load %arg7[%c0_55, %c320, %c0_56] : memref<2x432x512xf32, #tpu.memory_space<vmem>>, vector<1x16x512xf32>
    %96 = vector.shape_cast %95 : vector<1x16x512xf32> to vector<16x512xf32>
    %97 = vector.shape_cast %94 : vector<16x512xf32> to vector<1x16x512xf32>
    tpu.vector_store %arg7[%c0_55, %c320, %c0_56], %97 {strides = array<i32>} : memref<2x432x512xf32, #tpu.memory_space<vmem>>, vector<1x16x512xf32>,
    %c0_57 = arith.constant 0 : index
    %c0_58 = arith.constant 0 : index
    %c210 = arith.constant 210 : index
    %98 = vector.load %arg1[%c0_57, %c0_58, %c210] : memref<1x16x1246xf32, #tpu.memory_space<vmem>>, vector<1x16x514xf32>
    %99 = vector.shape_cast %98 : vector<1x16x514xf32> to vector<16x514xf32>
    %100 = vector.extract_strided_slice %99 {offsets = [0, 0], sizes = [16, 512], strides = [1, 1]} : vector<16x514xf32> to vector<16x512xf32>
    %c0_59 = arith.constant 0 : index
    %c336 = arith.constant 336 : index
    %c0_60 = arith.constant 0 : index
    %101 = vector.load %arg7[%c0_59, %c336, %c0_60] : memref<2x432x512xf32, #tpu.memory_space<vmem>>, vector<1x16x512xf32>
    %102 = vector.shape_cast %101 : vector<1x16x512xf32> to vector<16x512xf32>
    %103 = vector.shape_cast %100 : vector<16x512xf32> to vector<1x16x512xf32>
    tpu.vector_store %arg7[%c0_59, %c336, %c0_60], %103 {strides = array<i32>} : memref<2x432x512xf32, #tpu.memory_space<vmem>>, vector<1x16x512xf32>,
    %104 = vector.extract_strided_slice %99 {offsets = [0, 1], sizes = [16, 512], strides = [1, 1]} : vector<16x514xf32> to vector<16x512xf32>
    %c0_61 = arith.constant 0 : index
    %c352 = arith.constant 352 : index
    %c0_62 = arith.constant 0 : index
    %105 = vector.load %arg7[%c0_61, %c352, %c0_62] : memref<2x432x512xf32, #tpu.memory_space<vmem>>, vector<1x16x512xf32>
    %106 = vector.shape_cast %105 : vector<1x16x512xf32> to vector<16x512xf32>
    %107 = vector.shape_cast %104 : vector<16x512xf32> to vector<1x16x512xf32>
    tpu.vector_store %arg7[%c0_61, %c352, %c0_62], %107 {strides = array<i32>} : memref<2x432x512xf32, #tpu.memory_space<vmem>>, vector<1x16x512xf32>,
    %108 = vector.extract_strided_slice %99 {offsets = [0, 2], sizes = [16, 512], strides = [1, 1]} : vector<16x514xf32> to vector<16x512xf32>
    %c0_63 = arith.constant 0 : index
    %c368 = arith.constant 368 : index
    %c0_64 = arith.constant 0 : index
    %109 = vector.load %arg7[%c0_63, %c368, %c0_64] : memref<2x432x512xf32, #tpu.memory_space<vmem>>, vector<1x16x512xf32>
    %110 = vector.shape_cast %109 : vector<1x16x512xf32> to vector<16x512xf32>
    %111 = vector.shape_cast %108 : vector<16x512xf32> to vector<1x16x512xf32>
    tpu.vector_store %arg7[%c0_63, %c368, %c0_64], %111 {strides = array<i32>} : memref<2x432x512xf32, #tpu.memory_space<vmem>>, vector<1x16x512xf32>,
    %c0_65 = arith.constant 0 : index
    %c0_66 = arith.constant 0 : index
    %c220 = arith.constant 220 : index
    %112 = vector.load %arg1[%c0_65, %c0_66, %c220] : memref<1x16x1246xf32, #tpu.memory_space<vmem>>, vector<1x16x514xf32>
    %113 = vector.shape_cast %112 : vector<1x16x514xf32> to vector<16x514xf32>
    %114 = vector.extract_strided_slice %113 {offsets = [0, 0], sizes = [16, 512], strides = [1, 1]} : vector<16x514xf32> to vector<16x512xf32>
    %c0_67 = arith.constant 0 : index
    %c384 = arith.constant 384 : index
    %c0_68 = arith.constant 0 : index
    %115 = vector.load %arg7[%c0_67, %c384, %c0_68] : memref<2x432x512xf32, #tpu.memory_space<vmem>>, vector<1x16x512xf32>
    %116 = vector.shape_cast %115 : vector<1x16x512xf32> to vector<16x512xf32>
    %117 = vector.shape_cast %114 : vector<16x512xf32> to vector<1x16x512xf32>
    tpu.vector_store %arg7[%c0_67, %c384, %c0_68], %117 {strides = array<i32>} : memref<2x432x512xf32, #tpu.memory_space<vmem>>, vector<1x16x512xf32>,
    %118 = vector.extract_strided_slice %113 {offsets = [0, 1], sizes = [16, 512], strides = [1, 1]} : vector<16x514xf32> to vector<16x512xf32>
    %c0_69 = arith.constant 0 : index
    %c400 = arith.constant 400 : index
    %c0_70 = arith.constant 0 : index
    %119 = vector.load %arg7[%c0_69, %c400, %c0_70] : memref<2x432x512xf32, #tpu.memory_space<vmem>>, vector<1x16x512xf32>
    %120 = vector.shape_cast %119 : vector<1x16x512xf32> to vector<16x512xf32>
    %121 = vector.shape_cast %118 : vector<16x512xf32> to vector<1x16x512xf32>
    tpu.vector_store %arg7[%c0_69, %c400, %c0_70], %121 {strides = array<i32>} : memref<2x432x512xf32, #tpu.memory_space<vmem>>, vector<1x16x512xf32>,
    %122 = vector.extract_strided_slice %113 {offsets = [0, 2], sizes = [16, 512], strides = [1, 1]} : vector<16x514xf32> to vector<16x512xf32>
    %c0_71 = arith.constant 0 : index
    %c416 = arith.constant 416 : index
    %c0_72 = arith.constant 0 : index
    %123 = vector.load %arg7[%c0_71, %c416, %c0_72] : memref<2x432x512xf32, #tpu.memory_space<vmem>>, vector<1x16x512xf32>
    %124 = vector.shape_cast %123 : vector<1x16x512xf32> to vector<16x512xf32>
    %125 = vector.shape_cast %122 : vector<16x512xf32> to vector<1x16x512xf32>
    tpu.vector_store %arg7[%c0_71, %c416, %c0_72], %125 {strides = array<i32>} : memref<2x432x512xf32, #tpu.memory_space<vmem>>, vector<1x16x512xf32>,
    %c0_73 = arith.constant 0 : index
    %c0_74 = arith.constant 0 : index
    %126 = vector.load %arg2[%c0_73, %c0_74] : memref<32x432xf32, #tpu.memory_space<vmem>>, vector<32x432xf32>
    %c0_75 = arith.constant 0 : index
    %c0_76 = arith.constant 0 : index
    %c0_77 = arith.constant 0 : index
    %127 = vector.load %arg7[%c0_75, %c0_76, %c0_77] : memref<2x432x512xf32, #tpu.memory_space<vmem>>, vector<1x432x512xf32>
    %128 = vector.shape_cast %127 : vector<1x432x512xf32> to vector<432x512xf32>
    %cst = arith.constant dense<0.000000e+00> : vector<32x512xf32>
    %129 = tpu.matmul %126, %128, %cst {dimension_numbers = #tpu.dot_dimension_numbers<[1], [0], [0], [1], [0, 0, 1, 1], [], []>} : vector<32x432xf32>, vector<432x512xf32>, vector<32x512xf32> -> vector<32x512xf32>
    %c0_78 = arith.constant 0 : index
    %c0_79 = arith.constant 0 : index
    %130 = vector.load %arg8[%c0_78, %c0_79] : memref<32x1024xf32, #tpu.memory_space<vmem>>, vector<32x512xf32>
    tpu.vector_store %arg8[%c0_78, %c0_79], %129 {strides = array<i32>} : memref<32x1024xf32, #tpu.memory_space<vmem>>, vector<32x512xf32>,
    %c0_80 = arith.constant 0 : index
    %c0_81 = arith.constant 0 : index
    %c512 = arith.constant 512 : index
    %131 = vector.load %arg1[%c0_80, %c0_81, %c512] : memref<1x16x1246xf32, #tpu.memory_space<vmem>>, vector<1x16x514xf32>
    %132 = vector.shape_cast %131 : vector<1x16x514xf32> to vector<16x514xf32>
    %133 = vector.extract_strided_slice %132 {offsets = [0, 0], sizes = [16, 512], strides = [1, 1]} : vector<16x514xf32> to vector<16x512xf32>
    %c1 = arith.constant 1 : index
    %c0_82 = arith.constant 0 : index
    %c0_83 = arith.constant 0 : index
    %134 = vector.load %arg7[%c1, %c0_82, %c0_83] : memref<2x432x512xf32, #tpu.memory_space<vmem>>, vector<1x16x512xf32>
    %135 = vector.shape_cast %134 : vector<1x16x512xf32> to vector<16x512xf32>
    %136 = vector.shape_cast %133 : vector<16x512xf32> to vector<1x16x512xf32>
    tpu.vector_store %arg7[%c1, %c0_82, %c0_83], %136 {strides = array<i32>} : memref<2x432x512xf32, #tpu.memory_space<vmem>>, vector<1x16x512xf32>,
    %137 = vector.extract_strided_slice %132 {offsets = [0, 1], sizes = [16, 512], strides = [1, 1]} : vector<16x514xf32> to vector<16x512xf32>
    %c1_84 = arith.constant 1 : index
    %c16_85 = arith.constant 16 : index
    %c0_86 = arith.constant 0 : index
    %138 = vector.load %arg7[%c1_84, %c16_85, %c0_86] : memref<2x432x512xf32, #tpu.memory_space<vmem>>, vector<1x16x512xf32>
    %139 = vector.shape_cast %138 : vector<1x16x512xf32> to vector<16x512xf32>
    %140 = vector.shape_cast %137 : vector<16x512xf32> to vector<1x16x512xf32>
    tpu.vector_store %arg7[%c1_84, %c16_85, %c0_86], %140 {strides = array<i32>} : memref<2x432x512xf32, #tpu.memory_space<vmem>>, vector<1x16x512xf32>,
    %141 = vector.extract_strided_slice %132 {offsets = [0, 2], sizes = [16, 512], strides = [1, 1]} : vector<16x514xf32> to vector<16x512xf32>
    %c1_87 = arith.constant 1 : index
    %c32_88 = arith.constant 32 : index
    %c0_89 = arith.constant 0 : index
    %142 = vector.load %arg7[%c1_87, %c32_88, %c0_89] : memref<2x432x512xf32, #tpu.memory_space<vmem>>, vector<1x16x512xf32>
    %143 = vector.shape_cast %142 : vector<1x16x512xf32> to vector<16x512xf32>
    %144 = vector.shape_cast %141 : vector<16x512xf32> to vector<1x16x512xf32>
    tpu.vector_store %arg7[%c1_87, %c32_88, %c0_89], %144 {strides = array<i32>} : memref<2x432x512xf32, #tpu.memory_space<vmem>>, vector<1x16x512xf32>,
    %c0_90 = arith.constant 0 : index
    %c0_91 = arith.constant 0 : index
    %c522 = arith.constant 522 : index
    %145 = vector.load %arg1[%c0_90, %c0_91, %c522] : memref<1x16x1246xf32, #tpu.memory_space<vmem>>, vector<1x16x514xf32>
    %146 = vector.shape_cast %145 : vector<1x16x514xf32> to vector<16x514xf32>
    %147 = vector.extract_strided_slice %146 {offsets = [0, 0], sizes = [16, 512], strides = [1, 1]} : vector<16x514xf32> to vector<16x512xf32>
    %c1_92 = arith.constant 1 : index
    %c48_93 = arith.constant 48 : index
    %c0_94 = arith.constant 0 : index
    %148 = vector.load %arg7[%c1_92, %c48_93, %c0_94] : memref<2x432x512xf32, #tpu.memory_space<vmem>>, vector<1x16x512xf32>
    %149 = vector.shape_cast %148 : vector<1x16x512xf32> to vector<16x512xf32>
    %150 = vector.shape_cast %147 : vector<16x512xf32> to vector<1x16x512xf32>
    tpu.vector_store %arg7[%c1_92, %c48_93, %c0_94], %150 {strides = array<i32>} : memref<2x432x512xf32, #tpu.memory_space<vmem>>, vector<1x16x512xf32>,
    %151 = vector.extract_strided_slice %146 {offsets = [0, 1], sizes = [16, 512], strides = [1, 1]} : vector<16x514xf32> to vector<16x512xf32>
    %c1_95 = arith.constant 1 : index
    %c64_96 = arith.constant 64 : index
    %c0_97 = arith.constant 0 : index
    %152 = vector.load %arg7[%c1_95, %c64_96, %c0_97] : memref<2x432x512xf32, #tpu.memory_space<vmem>>, vector<1x16x512xf32>
    %153 = vector.shape_cast %152 : vector<1x16x512xf32> to vector<16x512xf32>
    %154 = vector.shape_cast %151 : vector<16x512xf32> to vector<1x16x512xf32>
    tpu.vector_store %arg7[%c1_95, %c64_96, %c0_97], %154 {strides = array<i32>} : memref<2x432x512xf32, #tpu.memory_space<vmem>>, vector<1x16x512xf32>,
    %155 = vector.extract_strided_slice %146 {offsets = [0, 2], sizes = [16, 512], strides = [1, 1]} : vector<16x514xf32> to vector<16x512xf32>
    %c1_98 = arith.constant 1 : index
    %c80_99 = arith.constant 80 : index
    %c0_100 = arith.constant 0 : index
    %156 = vector.load %arg7[%c1_98, %c80_99, %c0_100] : memref<2x432x512xf32, #tpu.memory_space<vmem>>, vector<1x16x512xf32>
    %157 = vector.shape_cast %156 : vector<1x16x512xf32> to vector<16x512xf32>
    %158 = vector.shape_cast %155 : vector<16x512xf32> to vector<1x16x512xf32>
    tpu.vector_store %arg7[%c1_98, %c80_99, %c0_100], %158 {strides = array<i32>} : memref<2x432x512xf32, #tpu.memory_space<vmem>>, vector<1x16x512xf32>,
    %c0_101 = arith.constant 0 : index
    %c0_102 = arith.constant 0 : index
    %c532 = arith.constant 532 : index
    %159 = vector.load %arg1[%c0_101, %c0_102, %c532] : memref<1x16x1246xf32, #tpu.memory_space<vmem>>, vector<1x16x514xf32>
    %160 = vector.shape_cast %159 : vector<1x16x514xf32> to vector<16x514xf32>
    %161 = vector.extract_strided_slice %160 {offsets = [0, 0], sizes = [16, 512], strides = [1, 1]} : vector<16x514xf32> to vector<16x512xf32>
    %c1_103 = arith.constant 1 : index
    %c96_104 = arith.constant 96 : index
    %c0_105 = arith.constant 0 : index
    %162 = vector.load %arg7[%c1_103, %c96_104, %c0_105] : memref<2x432x512xf32, #tpu.memory_space<vmem>>, vector<1x16x512xf32>
    %163 = vector.shape_cast %162 : vector<1x16x512xf32> to vector<16x512xf32>
    %164 = vector.shape_cast %161 : vector<16x512xf32> to vector<1x16x512xf32>
    tpu.vector_store %arg7[%c1_103, %c96_104, %c0_105], %164 {strides = array<i32>} : memref<2x432x512xf32, #tpu.memory_space<vmem>>, vector<1x16x512xf32>,
    %165 = vector.extract_strided_slice %160 {offsets = [0, 1], sizes = [16, 512], strides = [1, 1]} : vector<16x514xf32> to vector<16x512xf32>
    %c1_106 = arith.constant 1 : index
    %c112_107 = arith.constant 112 : index
    %c0_108 = arith.constant 0 : index
    %166 = vector.load %arg7[%c1_106, %c112_107, %c0_108] : memref<2x432x512xf32, #tpu.memory_space<vmem>>, vector<1x16x512xf32>
    %167 = vector.shape_cast %166 : vector<1x16x512xf32> to vector<16x512xf32>
    %168 = vector.shape_cast %165 : vector<16x512xf32> to vector<1x16x512xf32>
    tpu.vector_store %arg7[%c1_106, %c112_107, %c0_108], %168 {strides = array<i32>} : memref<2x432x512xf32, #tpu.memory_space<vmem>>, vector<1x16x512xf32>,
    %169 = vector.extract_strided_slice %160 {offsets = [0, 2], sizes = [16, 512], strides = [1, 1]} : vector<16x514xf32> to vector<16x512xf32>
    %c1_109 = arith.constant 1 : index
    %c128_110 = arith.constant 128 : index
    %c0_111 = arith.constant 0 : index
    %170 = vector.load %arg7[%c1_109, %c128_110, %c0_111] : memref<2x432x512xf32, #tpu.memory_space<vmem>>, vector<1x16x512xf32>
    %171 = vector.shape_cast %170 : vector<1x16x512xf32> to vector<16x512xf32>
    %172 = vector.shape_cast %169 : vector<16x512xf32> to vector<1x16x512xf32>
    tpu.vector_store %arg7[%c1_109, %c128_110, %c0_111], %172 {strides = array<i32>} : memref<2x432x512xf32, #tpu.memory_space<vmem>>, vector<1x16x512xf32>,
    %c0_112 = arith.constant 0 : index
    %c0_113 = arith.constant 0 : index
    %c612 = arith.constant 612 : index
    %173 = vector.load %arg1[%c0_112, %c0_113, %c612] : memref<1x16x1246xf32, #tpu.memory_space<vmem>>, vector<1x16x514xf32>
    %174 = vector.shape_cast %173 : vector<1x16x514xf32> to vector<16x514xf32>
    %175 = vector.extract_strided_slice %174 {offsets = [0, 0], sizes = [16, 512], strides = [1, 1]} : vector<16x514xf32> to vector<16x512xf32>
    %c1_114 = arith.constant 1 : index
    %c144_115 = arith.constant 144 : index
    %c0_116 = arith.constant 0 : index
    %176 = vector.load %arg7[%c1_114, %c144_115, %c0_116] : memref<2x432x512xf32, #tpu.memory_space<vmem>>, vector<1x16x512xf32>
    %177 = vector.shape_cast %176 : vector<1x16x512xf32> to vector<16x512xf32>
    %178 = vector.shape_cast %175 : vector<16x512xf32> to vector<1x16x512xf32>
    tpu.vector_store %arg7[%c1_114, %c144_115, %c0_116], %178 {strides = array<i32>} : memref<2x432x512xf32, #tpu.memory_space<vmem>>, vector<1x16x512xf32>,
    %179 = vector.extract_strided_slice %174 {offsets = [0, 1], sizes = [16, 512], strides = [1, 1]} : vector<16x514xf32> to vector<16x512xf32>
    %c1_117 = arith.constant 1 : index
    %c160_118 = arith.constant 160 : index
    %c0_119 = arith.constant 0 : index
    %180 = vector.load %arg7[%c1_117, %c160_118, %c0_119] : memref<2x432x512xf32, #tpu.memory_space<vmem>>, vector<1x16x512xf32>
    %181 = vector.shape_cast %180 : vector<1x16x512xf32> to vector<16x512xf32>
    %182 = vector.shape_cast %179 : vector<16x512xf32> to vector<1x16x512xf32>
    tpu.vector_store %arg7[%c1_117, %c160_118, %c0_119], %182 {strides = array<i32>} : memref<2x432x512xf32, #tpu.memory_space<vmem>>, vector<1x16x512xf32>,
    %183 = vector.extract_strided_slice %174 {offsets = [0, 2], sizes = [16, 512], strides = [1, 1]} : vector<16x514xf32> to vector<16x512xf32>
    %c1_120 = arith.constant 1 : index
    %c176_121 = arith.constant 176 : index
    %c0_122 = arith.constant 0 : index
    %184 = vector.load %arg7[%c1_120, %c176_121, %c0_122] : memref<2x432x512xf32, #tpu.memory_space<vmem>>, vector<1x16x512xf32>
    %185 = vector.shape_cast %184 : vector<1x16x512xf32> to vector<16x512xf32>
    %186 = vector.shape_cast %183 : vector<16x512xf32> to vector<1x16x512xf32>
    tpu.vector_store %arg7[%c1_120, %c176_121, %c0_122], %186 {strides = array<i32>} : memref<2x432x512xf32, #tpu.memory_space<vmem>>, vector<1x16x512xf32>,
    %c0_123 = arith.constant 0 : index
    %c0_124 = arith.constant 0 : index
    %c622 = arith.constant 622 : index
    %187 = vector.load %arg1[%c0_123, %c0_124, %c622] : memref<1x16x1246xf32, #tpu.memory_space<vmem>>, vector<1x16x514xf32>
    %188 = vector.shape_cast %187 : vector<1x16x514xf32> to vector<16x514xf32>
    %189 = vector.extract_strided_slice %188 {offsets = [0, 0], sizes = [16, 512], strides = [1, 1]} : vector<16x514xf32> to vector<16x512xf32>
    %c1_125 = arith.constant 1 : index
    %c192_126 = arith.constant 192 : index
    %c0_127 = arith.constant 0 : index
    %190 = vector.load %arg7[%c1_125, %c192_126, %c0_127] : memref<2x432x512xf32, #tpu.memory_space<vmem>>, vector<1x16x512xf32>
    %191 = vector.shape_cast %190 : vector<1x16x512xf32> to vector<16x512xf32>
    %192 = vector.shape_cast %189 : vector<16x512xf32> to vector<1x16x512xf32>
    tpu.vector_store %arg7[%c1_125, %c192_126, %c0_127], %192 {strides = array<i32>} : memref<2x432x512xf32, #tpu.memory_space<vmem>>, vector<1x16x512xf32>,
    %193 = vector.extract_strided_slice %188 {offsets = [0, 1], sizes = [16, 512], strides = [1, 1]} : vector<16x514xf32> to vector<16x512xf32>
    %c1_128 = arith.constant 1 : index
    %c208_129 = arith.constant 208 : index
    %c0_130 = arith.constant 0 : index
    %194 = vector.load %arg7[%c1_128, %c208_129, %c0_130] : memref<2x432x512xf32, #tpu.memory_space<vmem>>, vector<1x16x512xf32>
    %195 = vector.shape_cast %194 : vector<1x16x512xf32> to vector<16x512xf32>
    %196 = vector.shape_cast %193 : vector<16x512xf32> to vector<1x16x512xf32>
    tpu.vector_store %arg7[%c1_128, %c208_129, %c0_130], %196 {strides = array<i32>} : memref<2x432x512xf32, #tpu.memory_space<vmem>>, vector<1x16x512xf32>,
    %197 = vector.extract_strided_slice %188 {offsets = [0, 2], sizes = [16, 512], strides = [1, 1]} : vector<16x514xf32> to vector<16x512xf32>
    %c1_131 = arith.constant 1 : index
    %c224_132 = arith.constant 224 : index
    %c0_133 = arith.constant 0 : index
    %198 = vector.load %arg7[%c1_131, %c224_132, %c0_133] : memref<2x432x512xf32, #tpu.memory_space<vmem>>, vector<1x16x512xf32>
    %199 = vector.shape_cast %198 : vector<1x16x512xf32> to vector<16x512xf32>
    %200 = vector.shape_cast %197 : vector<16x512xf32> to vector<1x16x512xf32>
    tpu.vector_store %arg7[%c1_131, %c224_132, %c0_133], %200 {strides = array<i32>} : memref<2x432x512xf32, #tpu.memory_space<vmem>>, vector<1x16x512xf32>,
    %c0_134 = arith.constant 0 : index
    %c0_135 = arith.constant 0 : index
    %c632 = arith.constant 632 : index
    %201 = vector.load %arg1[%c0_134, %c0_135, %c632] : memref<1x16x1246xf32, #tpu.memory_space<vmem>>, vector<1x16x514xf32>
    %202 = vector.shape_cast %201 : vector<1x16x514xf32> to vector<16x514xf32>
    %203 = vector.extract_strided_slice %202 {offsets = [0, 0], sizes = [16, 512], strides = [1, 1]} : vector<16x514xf32> to vector<16x512xf32>
    %c1_136 = arith.constant 1 : index
    %c240_137 = arith.constant 240 : index
    %c0_138 = arith.constant 0 : index
    %204 = vector.load %arg7[%c1_136, %c240_137, %c0_138] : memref<2x432x512xf32, #tpu.memory_space<vmem>>, vector<1x16x512xf32>
    %205 = vector.shape_cast %204 : vector<1x16x512xf32> to vector<16x512xf32>
    %206 = vector.shape_cast %203 : vector<16x512xf32> to vector<1x16x512xf32>
    tpu.vector_store %arg7[%c1_136, %c240_137, %c0_138], %206 {strides = array<i32>} : memref<2x432x512xf32, #tpu.memory_space<vmem>>, vector<1x16x512xf32>,
    %207 = vector.extract_strided_slice %202 {offsets = [0, 1], sizes = [16, 512], strides = [1, 1]} : vector<16x514xf32> to vector<16x512xf32>
    %c1_139 = arith.constant 1 : index
    %c256_140 = arith.constant 256 : index
    %c0_141 = arith.constant 0 : index
    %208 = vector.load %arg7[%c1_139, %c256_140, %c0_141] : memref<2x432x512xf32, #tpu.memory_space<vmem>>, vector<1x16x512xf32>
    %209 = vector.shape_cast %208 : vector<1x16x512xf32> to vector<16x512xf32>
    %210 = vector.shape_cast %207 : vector<16x512xf32> to vector<1x16x512xf32>
    tpu.vector_store %arg7[%c1_139, %c256_140, %c0_141], %210 {strides = array<i32>} : memref<2x432x512xf32, #tpu.memory_space<vmem>>, vector<1x16x512xf32>,
    %211 = vector.extract_strided_slice %202 {offsets = [0, 2], sizes = [16, 512], strides = [1, 1]} : vector<16x514xf32> to vector<16x512xf32>
    %c1_142 = arith.constant 1 : index
    %c272_143 = arith.constant 272 : index
    %c0_144 = arith.constant 0 : index
    %212 = vector.load %arg7[%c1_142, %c272_143, %c0_144] : memref<2x432x512xf32, #tpu.memory_space<vmem>>, vector<1x16x512xf32>
    %213 = vector.shape_cast %212 : vector<1x16x512xf32> to vector<16x512xf32>
    %214 = vector.shape_cast %211 : vector<16x512xf32> to vector<1x16x512xf32>
    tpu.vector_store %arg7[%c1_142, %c272_143, %c0_144], %214 {strides = array<i32>} : memref<2x432x512xf32, #tpu.memory_space<vmem>>, vector<1x16x512xf32>,
    %c0_145 = arith.constant 0 : index
    %c0_146 = arith.constant 0 : index
    %c712 = arith.constant 712 : index
    %215 = vector.load %arg1[%c0_145, %c0_146, %c712] : memref<1x16x1246xf32, #tpu.memory_space<vmem>>, vector<1x16x514xf32>
    %216 = vector.shape_cast %215 : vector<1x16x514xf32> to vector<16x514xf32>
    %217 = vector.extract_strided_slice %216 {offsets = [0, 0], sizes = [16, 512], strides = [1, 1]} : vector<16x514xf32> to vector<16x512xf32>
    %c1_147 = arith.constant 1 : index
    %c288_148 = arith.constant 288 : index
    %c0_149 = arith.constant 0 : index
    %218 = vector.load %arg7[%c1_147, %c288_148, %c0_149] : memref<2x432x512xf32, #tpu.memory_space<vmem>>, vector<1x16x512xf32>
    %219 = vector.shape_cast %218 : vector<1x16x512xf32> to vector<16x512xf32>
    %220 = vector.shape_cast %217 : vector<16x512xf32> to vector<1x16x512xf32>
    tpu.vector_store %arg7[%c1_147, %c288_148, %c0_149], %220 {strides = array<i32>} : memref<2x432x512xf32, #tpu.memory_space<vmem>>, vector<1x16x512xf32>,
    %221 = vector.extract_strided_slice %216 {offsets = [0, 1], sizes = [16, 512], strides = [1, 1]} : vector<16x514xf32> to vector<16x512xf32>
    %c1_150 = arith.constant 1 : index
    %c304_151 = arith.constant 304 : index
    %c0_152 = arith.constant 0 : index
    %222 = vector.load %arg7[%c1_150, %c304_151, %c0_152] : memref<2x432x512xf32, #tpu.memory_space<vmem>>, vector<1x16x512xf32>
    %223 = vector.shape_cast %222 : vector<1x16x512xf32> to vector<16x512xf32>
    %224 = vector.shape_cast %221 : vector<16x512xf32> to vector<1x16x512xf32>
    tpu.vector_store %arg7[%c1_150, %c304_151, %c0_152], %224 {strides = array<i32>} : memref<2x432x512xf32, #tpu.memory_space<vmem>>, vector<1x16x512xf32>,
    %225 = vector.extract_strided_slice %216 {offsets = [0, 2], sizes = [16, 512], strides = [1, 1]} : vector<16x514xf32> to vector<16x512xf32>
    %c1_153 = arith.constant 1 : index
    %c320_154 = arith.constant 320 : index
    %c0_155 = arith.constant 0 : index
    %226 = vector.load %arg7[%c1_153, %c320_154, %c0_155] : memref<2x432x512xf32, #tpu.memory_space<vmem>>, vector<1x16x512xf32>
    %227 = vector.shape_cast %226 : vector<1x16x512xf32> to vector<16x512xf32>
    %228 = vector.shape_cast %225 : vector<16x512xf32> to vector<1x16x512xf32>
    tpu.vector_store %arg7[%c1_153, %c320_154, %c0_155], %228 {strides = array<i32>} : memref<2x432x512xf32, #tpu.memory_space<vmem>>, vector<1x16x512xf32>,
    %c0_156 = arith.constant 0 : index
    %c0_157 = arith.constant 0 : index
    %c722 = arith.constant 722 : index
    %229 = vector.load %arg1[%c0_156, %c0_157, %c722] : memref<1x16x1246xf32, #tpu.memory_space<vmem>>, vector<1x16x514xf32>
    %230 = vector.shape_cast %229 : vector<1x16x514xf32> to vector<16x514xf32>
    %231 = vector.extract_strided_slice %230 {offsets = [0, 0], sizes = [16, 512], strides = [1, 1]} : vector<16x514xf32> to vector<16x512xf32>
    %c1_158 = arith.constant 1 : index
    %c336_159 = arith.constant 336 : index
    %c0_160 = arith.constant 0 : index
    %232 = vector.load %arg7[%c1_158, %c336_159, %c0_160] : memref<2x432x512xf32, #tpu.memory_space<vmem>>, vector<1x16x512xf32>
    %233 = vector.shape_cast %232 : vector<1x16x512xf32> to vector<16x512xf32>
    %234 = vector.shape_cast %231 : vector<16x512xf32> to vector<1x16x512xf32>
    tpu.vector_store %arg7[%c1_158, %c336_159, %c0_160], %234 {strides = array<i32>} : memref<2x432x512xf32, #tpu.memory_space<vmem>>, vector<1x16x512xf32>,
    %235 = vector.extract_strided_slice %230 {offsets = [0, 1], sizes = [16, 512], strides = [1, 1]} : vector<16x514xf32> to vector<16x512xf32>
    %c1_161 = arith.constant 1 : index
    %c352_162 = arith.constant 352 : index
    %c0_163 = arith.constant 0 : index
    %236 = vector.load %arg7[%c1_161, %c352_162, %c0_163] : memref<2x432x512xf32, #tpu.memory_space<vmem>>, vector<1x16x512xf32>
    %237 = vector.shape_cast %236 : vector<1x16x512xf32> to vector<16x512xf32>
    %238 = vector.shape_cast %235 : vector<16x512xf32> to vector<1x16x512xf32>
    tpu.vector_store %arg7[%c1_161, %c352_162, %c0_163], %238 {strides = array<i32>} : memref<2x432x512xf32, #tpu.memory_space<vmem>>, vector<1x16x512xf32>,
    %239 = vector.extract_strided_slice %230 {offsets = [0, 2], sizes = [16, 512], strides = [1, 1]} : vector<16x514xf32> to vector<16x512xf32>
    %c1_164 = arith.constant 1 : index
    %c368_165 = arith.constant 368 : index
    %c0_166 = arith.constant 0 : index
    %240 = vector.load %arg7[%c1_164, %c368_165, %c0_166] : memref<2x432x512xf32, #tpu.memory_space<vmem>>, vector<1x16x512xf32>
    %241 = vector.shape_cast %240 : vector<1x16x512xf32> to vector<16x512xf32>
    %242 = vector.shape_cast %239 : vector<16x512xf32> to vector<1x16x512xf32>
    tpu.vector_store %arg7[%c1_164, %c368_165, %c0_166], %242 {strides = array<i32>} : memref<2x432x512xf32, #tpu.memory_space<vmem>>, vector<1x16x512xf32>,
    %c0_167 = arith.constant 0 : index
    %c0_168 = arith.constant 0 : index
    %c732 = arith.constant 732 : index
    %243 = vector.load %arg1[%c0_167, %c0_168, %c732] : memref<1x16x1246xf32, #tpu.memory_space<vmem>>, vector<1x16x514xf32>
    %244 = vector.shape_cast %243 : vector<1x16x514xf32> to vector<16x514xf32>
    %245 = vector.extract_strided_slice %244 {offsets = [0, 0], sizes = [16, 512], strides = [1, 1]} : vector<16x514xf32> to vector<16x512xf32>
    %c1_169 = arith.constant 1 : index
    %c384_170 = arith.constant 384 : index
    %c0_171 = arith.constant 0 : index
    %246 = vector.load %arg7[%c1_169, %c384_170, %c0_171] : memref<2x432x512xf32, #tpu.memory_space<vmem>>, vector<1x16x512xf32>
    %247 = vector.shape_cast %246 : vector<1x16x512xf32> to vector<16x512xf32>
    %248 = vector.shape_cast %245 : vector<16x512xf32> to vector<1x16x512xf32>
    tpu.vector_store %arg7[%c1_169, %c384_170, %c0_171], %248 {strides = array<i32>} : memref<2x432x512xf32, #tpu.memory_space<vmem>>, vector<1x16x512xf32>,
    %249 = vector.extract_strided_slice %244 {offsets = [0, 1], sizes = [16, 512], strides = [1, 1]} : vector<16x514xf32> to vector<16x512xf32>
    %c1_172 = arith.constant 1 : index
    %c400_173 = arith.constant 400 : index
    %c0_174 = arith.constant 0 : index
    %250 = vector.load %arg7[%c1_172, %c400_173, %c0_174] : memref<2x432x512xf32, #tpu.memory_space<vmem>>, vector<1x16x512xf32>
    %251 = vector.shape_cast %250 : vector<1x16x512xf32> to vector<16x512xf32>
    %252 = vector.shape_cast %249 : vector<16x512xf32> to vector<1x16x512xf32>
    tpu.vector_store %arg7[%c1_172, %c400_173, %c0_174], %252 {strides = array<i32>} : memref<2x432x512xf32, #tpu.memory_space<vmem>>, vector<1x16x512xf32>,
    %253 = vector.extract_strided_slice %244 {offsets = [0, 2], sizes = [16, 512], strides = [1, 1]} : vector<16x514xf32> to vector<16x512xf32>
    %c1_175 = arith.constant 1 : index
    %c416_176 = arith.constant 416 : index
    %c0_177 = arith.constant 0 : index
    %254 = vector.load %arg7[%c1_175, %c416_176, %c0_177] : memref<2x432x512xf32, #tpu.memory_space<vmem>>, vector<1x16x512xf32>
    %255 = vector.shape_cast %254 : vector<1x16x512xf32> to vector<16x512xf32>
    %256 = vector.shape_cast %253 : vector<16x512xf32> to vector<1x16x512xf32>
    tpu.vector_store %arg7[%c1_175, %c416_176, %c0_177], %256 {strides = array<i32>} : memref<2x432x512xf32, #tpu.memory_space<vmem>>, vector<1x16x512xf32>,
    %c0_178 = arith.constant 0 : index
    %c0_179 = arith.constant 0 : index
    %257 = vector.load %arg2[%c0_178, %c0_179] : memref<32x432xf32, #tpu.memory_space<vmem>>, vector<32x432xf32>
    %c1_180 = arith.constant 1 : index
    %c0_181 = arith.constant 0 : index
    %c0_182 = arith.constant 0 : index
    %258 = vector.load %arg7[%c1_180, %c0_181, %c0_182] : memref<2x432x512xf32, #tpu.memory_space<vmem>>, vector<1x432x512xf32>
    %259 = vector.shape_cast %258 : vector<1x432x512xf32> to vector<432x512xf32>
    %cst_183 = arith.constant dense<0.000000e+00> : vector<32x512xf32>
    %260 = tpu.matmul %257, %259, %cst_183 {dimension_numbers = #tpu.dot_dimension_numbers<[1], [0], [0], [1], [0, 0, 1, 1], [], []>} : vector<32x432xf32>, vector<432x512xf32>, vector<32x512xf32> -> vector<32x512xf32>
    %c0_184 = arith.constant 0 : index
    %c512_185 = arith.constant 512 : index
    %261 = vector.load %arg8[%c0_184, %c512_185] : memref<32x1024xf32, #tpu.memory_space<vmem>>, vector<32x512xf32>
    tpu.vector_store %arg8[%c0_184, %c512_185], %260 {strides = array<i32>} : memref<32x1024xf32, #tpu.memory_space<vmem>>, vector<32x512xf32>,
    %c0_186 = arith.constant 0 : index
    %c0_187 = arith.constant 0 : index
    %262 = vector.load %arg8[%c0_186, %c0_187] : memref<32x1024xf32, #tpu.memory_space<vmem>>, vector<32x1024xf32>
    %c0_188 = arith.constant 0 : index
    %c0_189 = arith.constant 0 : index
    %263 = vector.load %arg4[%c0_188, %c0_189] : memref<1x1024xf32, #tpu.memory_space<vmem>>, vector<1x1024xf32>
    %264 = vector.extract_strided_slice %262 {offsets = [0, 0], sizes = [24, 1024], strides = [1, 1]} : vector<32x1024xf32> to vector<24x1024xf32>
    %265 = arith.negf %264 : vector<24x1024xf32>
    %266 = math.exp %265 : vector<24x1024xf32>
    %cst_190 = arith.constant 1.000000e+00 : f32
    %267 = vector.broadcast %cst_190 : f32 to vector<24x1024xf32>
    %268 = arith.addf %267, %266 : vector<24x1024xf32>
    %269 = arith.divf %267, %268 : vector<24x1024xf32>
    %270 = vector.extract_strided_slice %269 {offsets = [0, 0], sizes = [8, 1024], strides = [1, 1]} : vector<24x1024xf32> to vector<8x1024xf32>
    %271 = vector.extract_strided_slice %269 {offsets = [8, 0], sizes = [8, 1024], strides = [1, 1]} : vector<24x1024xf32> to vector<8x1024xf32>
    %272 = vector.extract_strided_slice %269 {offsets = [16, 0], sizes = [8, 1024], strides = [1, 1]} : vector<24x1024xf32> to vector<8x1024xf32>
    %273 = vector.extract_strided_slice %262 {offsets = [24, 0], sizes = [8, 1024], strides = [1, 1]} : vector<32x1024xf32> to vector<8x1024xf32>
    %274 = vector.broadcast %263 : vector<1x1024xf32> to vector<8x1024xf32>
    %275 = arith.mulf %273, %274 : vector<8x1024xf32>
    %cst_191 = arith.constant dense<0.000000e+00> : vector<8xf32>
    %276 = vector.multi_reduction <add>, %275, %cst_191 [1] : vector<8x1024xf32> to vector<8xf32>
    %277 = vector.shape_cast %276 : vector<8xf32> to vector<8x1xf32>
    %278 = arith.mulf %275, %273 : vector<8x1024xf32>
    %cst_192 = arith.constant dense<0.000000e+00> : vector<8xf32>
    %279 = vector.multi_reduction <add>, %278, %cst_192 [1] : vector<8x1024xf32> to vector<8xf32>
    %280 = vector.shape_cast %279 : vector<8xf32> to vector<8x1xf32>
    %cst_193 = arith.constant 3.906250e-03 : f32
    %281 = vector.broadcast %cst_193 : f32 to vector<8x1xf32>
    %282 = arith.mulf %277, %281 : vector<8x1xf32>
    %cst_194 = arith.constant 3.906250e-03 : f32
    %283 = vector.broadcast %cst_194 : f32 to vector<8x1xf32>
    %284 = arith.mulf %280, %283 : vector<8x1xf32>
    %285 = arith.mulf %282, %282 : vector<8x1xf32>
    %286 = arith.subf %284, %285 : vector<8x1xf32>
    %287 = vector.broadcast %282 : vector<8x1xf32> to vector<8x1024xf32>
    %288 = arith.subf %273, %287 : vector<8x1024xf32>
    %cst_195 = arith.constant 9.99999974E-6 : f32
    %289 = vector.broadcast %cst_195 : f32 to vector<8x1xf32>
    %290 = arith.addf %286, %289 : vector<8x1xf32>
    %291 = math.rsqrt %290 : vector<8x1xf32>
    %292 = vector.broadcast %291 : vector<8x1xf32> to vector<8x1024xf32>
    %293 = arith.mulf %288, %292 : vector<8x1024xf32>
    %294 = math.tanh %293 : vector<8x1024xf32>
    %c0_196 = arith.constant 0 : index
    %c0_197 = arith.constant 0 : index
    %c0_198 = arith.constant 0 : index
    %295 = vector.load %arg3[%c0_196, %c0_197, %c0_198] : memref<1x8x1024xf32, #tpu.memory_space<vmem>>, vector<1x8x1024xf32>
    %296 = vector.shape_cast %295 : vector<1x8x1024xf32> to vector<8x1024xf32>
    %297 = arith.mulf %271, %296 : vector<8x1024xf32>
    %298 = arith.mulf %270, %294 : vector<8x1024xf32>
    %299 = arith.addf %297, %298 : vector<8x1024xf32>
    %300 = vector.broadcast %263 : vector<1x1024xf32> to vector<8x1024xf32>
    %301 = arith.mulf %299, %300 : vector<8x1024xf32>
    %cst_199 = arith.constant dense<0.000000e+00> : vector<8xf32>
    %302 = vector.multi_reduction <add>, %301, %cst_199 [1] : vector<8x1024xf32> to vector<8xf32>
    %303 = vector.shape_cast %302 : vector<8xf32> to vector<8x1xf32>
    %304 = arith.mulf %301, %299 : vector<8x1024xf32>
    %cst_200 = arith.constant dense<0.000000e+00> : vector<8xf32>
    %305 = vector.multi_reduction <add>, %304, %cst_200 [1] : vector<8x1024xf32> to vector<8xf32>
    %306 = vector.shape_cast %305 : vector<8xf32> to vector<8x1xf32>
    %cst_201 = arith.constant 3.906250e-03 : f32
    %307 = vector.broadcast %cst_201 : f32 to vector<8x1xf32>
    %308 = arith.mulf %303, %307 : vector<8x1xf32>
    %cst_202 = arith.constant 3.906250e-03 : f32
    %309 = vector.broadcast %cst_202 : f32 to vector<8x1xf32>
    %310 = arith.mulf %306, %309 : vector<8x1xf32>
    %311 = arith.mulf %308, %308 : vector<8x1xf32>
    %312 = arith.subf %310, %311 : vector<8x1xf32>
    %313 = vector.broadcast %308 : vector<8x1xf32> to vector<8x1024xf32>
    %314 = arith.subf %299, %313 : vector<8x1024xf32>
    %cst_203 = arith.constant 9.99999974E-6 : f32
    %315 = vector.broadcast %cst_203 : f32 to vector<8x1xf32>
    %316 = arith.addf %312, %315 : vector<8x1xf32>
    %317 = math.rsqrt %316 : vector<8x1xf32>
    %318 = vector.broadcast %317 : vector<8x1xf32> to vector<8x1024xf32>
    %319 = arith.mulf %314, %318 : vector<8x1024xf32>
    %320 = math.tanh %319 : vector<8x1024xf32>
    %321 = arith.mulf %272, %320 : vector<8x1024xf32>
    %c0_204 = arith.constant 0 : index
    %c0_205 = arith.constant 0 : index
    %c0_206 = arith.constant 0 : index
    %322 = vector.load %arg5[%c0_204, %c0_205, %c0_206] : memref<1x8x1024xf32, #tpu.memory_space<vmem>>, vector<1x8x1024xf32>
    %323 = vector.shape_cast %322 : vector<1x8x1024xf32> to vector<8x1024xf32>
    %324 = vector.shape_cast %321 : vector<8x1024xf32> to vector<1x8x1024xf32>
    tpu.vector_store %arg5[%c0_204, %c0_205, %c0_206], %324 {strides = array<i32>} : memref<1x8x1024xf32, #tpu.memory_space<vmem>>, vector<1x8x1024xf32>,
    %c0_207 = arith.constant 0 : index
    %c0_208 = arith.constant 0 : index
    %c0_209 = arith.constant 0 : index
    %325 = vector.load %arg6[%c0_207, %c0_208, %c0_209] : memref<1x8x1024xf32, #tpu.memory_space<vmem>>, vector<1x8x1024xf32>
    %326 = vector.shape_cast %325 : vector<1x8x1024xf32> to vector<8x1024xf32>
    %327 = vector.shape_cast %319 : vector<8x1024xf32> to vector<1x8x1024xf32>
    tpu.vector_store %arg6[%c0_207, %c0_208, %c0_209], %327 {strides = array<i32>} : memref<1x8x1024xf32, #tpu.memory_space<vmem>>, vector<1x8x1024xf32>,
    return
  }
  func.func @transform_0(%arg0: i32) -> (i32, i32, i32) {
    %c0_i32 = arith.constant 0 : i32
    %c0_i32_0 = arith.constant 0 : i32
    %c0_i32_1 = arith.constant 0 : i32
    return %arg0, %c0_i32, %c0_i32_0 : i32, i32, i32
  }
  func.func @transform_1(%arg0: i32) -> (i32, i32) {
    %c0_i32 = arith.constant 0 : i32
    %c0_i32_0 = arith.constant 0 : i32
    %c0_i32_1 = arith.constant 0 : i32
    return %c0_i32, %c0_i32_0 : i32, i32
  }
  func.func @transform_2(%arg0: i32) -> (i32, i32, i32) {
    %c0_i32 = arith.constant 0 : i32
    %c0_i32_0 = arith.constant 0 : i32
    %c0_i32_1 = arith.constant 0 : i32
    return %arg0, %c0_i32, %c0_i32_0 : i32, i32, i32
  }
  func.func @transform_3(%arg0: i32) -> (i32, i32) {
    %c0_i32 = arith.constant 0 : i32
    %c0_i32_0 = arith.constant 0 : i32
    %c0_i32_1 = arith.constant 0 : i32
    return %c0_i32, %c0_i32_0 : i32, i32
  }
  func.func @transform_4(%arg0: i32) -> (i32, i32, i32) {
    %c0_i32 = arith.constant 0 : i32
    %c0_i32_0 = arith.constant 0 : i32
    %c0_i32_1 = arith.constant 0 : i32
    return %arg0, %c0_i32, %c0_i32_0 : i32, i32, i32
  }
  func.func @transform_5(%arg0: i32) -> (i32, i32, i32) {
    %c0_i32 = arith.constant 0 : i32
    %c0_i32_0 = arith.constant 0 : i32
    %c0_i32_1 = arith.constant 0 : i32
    return %arg0, %c0_i32, %c0_i32_0 : i32, i32, i32
  }
}

</mosaic_0001>

<bundles_post_ra>
// kernel: tpu_custom_call.1
= control target key start
LH: loop header
LB: loop body
LE: loop exit
PB: predicated region body
PF: predicated region fallthrough
CT: control target
= control target key end

     0   :  { %s12153_s0 = inlined_call_operand.hbm [shape: f32[2,16,1246], index: 0, kind: input, shape index: {}]   ;;  %s12154_s1 = inlined_call_operand.hbm [shape: f32[32,432], index: 1, kind: input, shape index: {}]   ;;  %s12155_s2 = inlined_call_operand.hbm [shape: f32[2,8,1024], index: 2, kind: input, shape index: {}]   ;;  %s12156_s3 = inlined_call_operand.hbm [shape: f32[1,1024], index: 3, kind: input, shape index: {}]   ;;  %s12157_s4 = inlined_call_operand.hbm [shape: f32[2,8,1024], index: 4, kind: output, shape index: {0}]   ;;  %s12158_s5 = inlined_call_operand.hbm [shape: f32[2,8,1024], index: 5, kind: output, shape index: {1}]  }
   0x1   :  { %12461 = sst [smem:[#allocation78_spill]] %s12153_s0 }
   0x2   :  { %12462 = sst [smem:[#allocation79_spill]] %s12154_s1 }
   0x3   :  { %12463 = sst [smem:[#allocation80_spill]] %s12156_s3 }
   0x4   :  { %11 = vsyncpa [#allocation5], 0 }
   0x5   :  { %13 = vsyncpa [#allocation5 + $0x1], 0 }
   0x6   :  { %14 = vsyncpa [#allocation8], 0 }
   0x7   :  { %15 = vsyncpa [#allocation6], 0 }
   0x8   :  { %17 = vsyncpa [#allocation6 + $0x1], 0 }
   0x9   :  { %18 = vsyncpa [#allocation13], 0 }
   0xa   :  { %20 = vsyncpa [#allocation13 + $0x1], 0  ;;  %s7296_s18 = smov 0   ;;  %s7298_s19 = smov 0  }
   0xb   :  { %s7300_s20 = smov 0   ;;  %s7302_s21 = smov 0  }
   0xc LB: > { %s7317_s22 = sadd.s32 4294967295, %s7232_s21   ;;  %s5351_s23 = sadd.s32 4294967294, %s7232_s21   ;;  %s7232_s21 = sphi %s7302_s21, %s13324_s21   ;;  %s7228_s20 = sphi %s7300_s20, %s13328_s20   ;;  %s7224_s19 = sphi %s7298_s19, %s13327_s19   ;;  %s7220_s18 = sphi %s7296_s18, %s13326_s18  }
   0xd   : > { %p46_p0 = scmp.ne.s32.totalorder %s7224_s19, %s7220_s18  ;;  %p12162_p1 = scmp.eq.s32.totalorder %s7317_s22, 0 }
   0xe   : > { %p138_p2 = scmp.eq.s32.totalorder %s7317_s22, 1  ;;  %p144_p3 = scmp.eq.s32.totalorder %s5351_s23, 1 }
   0xf   : > { %p7326_p4 = por %p12162_p1, %p46_p0  ;;  %p5352_p5 = scmp.ge.s32.totalorder %s7232_s21, 1 }
  0x10   : > { %p7331_p6 = por %p144_p3, %p46_p0  ;;  %p177_p7 = scmp.lt.s32.totalorder %s7232_s21, 3 }
  0x11   : > { %s12466_s1 = sld [smem:[#allocation79_spill]]  ;;  %s7234_s30 = smov [#allocation7]  }
  0x12   : > { %p7339_p8 = pnand %p5352_p5, %p177_p7  ;;  %s190_s6 = sshll.u32 %s7234_s30, 4  ;;  %s191_s6 = int_to_ptr.vmem [resolvable:$true] %s190_s6 }
  0x13   : > { %s7353_s8 = sadd.s32 1, %s7232_s21   ;;  %s7235_s9 = smov 512  }
  0x14   : > { %p5452_p9 = pneg %p7339_p8  ;;  %12469 = sst [smem:[#allocation20_spill]] %s7353_s8 }
  0x15   : > { %s7236_s10 = smov 32   ;;  %s30_s11 = ssub.s32 %s7232_s21, %s7353_s8 }
  0x16   : > { %p7347_p10 = pnand %p5452_p9, %p12162_p1  ;;  %s33_s12 = sadd.s32 1, %s7228_s20 }
  0x17   : > { %s188_s28 = sshll.u32 %s12466_s1, 4  ;;  %p31_p12 = scmp.eq.s32.totalorder %s30_s11, 0  ;;  %s189_s28 = int_to_ptr.hbm [resolvable:$true] %s188_s28 }
  0x18   : > { %5455 = dma.hbm_to_vmem [thread:$0]  (!%p7347_p10), %s189_s28, 2048, %s191_s6, [#allocation8], %s7235_s9, %s7235_s9, %s7236_s10  }
  0x19   : > { %p40_p13 = scmp.ne.s32.totalorder %s7228_s20, %s7224_s19  ;;  %p41_p0 = scmp.eq.s32.totalorder %s7232_s21, 0 }
  0x1a   : > { %p5475_p3 = scmp.lt.s32.totalorder %s7232_s21, 2  ;;  %s216_s15 = sand.u32 1, %s7232_s21  }
  0x1b   : > { %s7365_s13 = scalar_select %p31_p12, %s7228_s20, %s33_s12  }
  0x1c   : > { %p42_p5 = por %p41_p0, %p40_p13  ;;  %p7369_p7 = por %p138_p2, %p40_p13 }
  0x1d   : > { %12470 = sst [smem:[#allocation21_spill]] %s7365_s13  ;;  %s12159_s16 = sand.u32 1, %s7228_s20  }
  0x1e   : > { %s5433_s17 = smul.u32 160, %s12159_s16  ;;  %p7378_p9 = pnand %p5475_p3, %p42_p5 }
  0x1f   : > { %s5434_s23 = smul.u32 160, %s7232_s21  ;;  %s12473_s0 = sld [smem:[#allocation78_spill]] }
  0x20   : > { %s220_s6 = scalar_lea.vmem [#allocation4], %s5433_s17  ;;  %s12474_s3 = sld [smem:[#allocation80_spill]] }
  0x21   : > { %s228_s9 = sshll.u32 %s220_s6, 4  ;;  %s7388_s1 = scalar_lea.sflag [#allocation5], %s216_s15  ;;  %s229_s9 = int_to_ptr.vmem [resolvable:$true] %s228_s9 }
  0x22   : > { %p7036_p12 = pneg %p7378_p9 }
  0x25   : > { %s225_s30 = scalar_lea.hbm %s12473_s0, %s5434_s23  ;;  %s7039_s27 = scalar_lea.hbm %s12473_s0, 320 }
  0x26   : > { %s226_s10 = sshll.u32 %s225_s30, 4  ;;  %s203_s16 = sshll.u32 %s12474_s3, 4  ;;  %s227_s10 = int_to_ptr.hbm [resolvable:$true] %s226_s10  ;;  %s204_s16 = int_to_ptr.hbm [resolvable:$true] %s203_s16 }
  0x27   : > { %s7032_s13 = sshra.s32 %s227_s10, 4  ;;  %s7033_s13 = int_to_ptr.hbm [resolvable:$true] %s7032_s13 }
  0x28   : > { %s7034_s8 = scalar_lea.hbm %s7033_s13, 160  ;;  %p7040_p3 = scmp.lt.s32.totalorder %s7033_s13, %s12473_s0 }
  0x29   : > { %p7035_p2 = scmp.ne.s32.totalorder %s7033_s13, %s7034_s8  ;;  %p7041_p5 = scmp.lt.s32.totalorder %s7039_s27, %s7034_s8 }
  0x2b   : > { %p7037_p13 = pnand %p7036_p12, %p7035_p2  ;;  %p7042_p11 = por %p7041_p5, %p7040_p3 }
  0x2d   : > { %p7038_p0 = pneg %p7037_p13 }
  0x2f   : > { %p7043_p1 = pnand %p7042_p11, %p7038_p0 }
  0x31   : > { %7046 = shalt.err (!%p7043_p1)
}
  0x32   : > { %s7237_s15 = smov 1280   ;;  %s7238_s6 = smov 80  }
  0x33   : > { %5462 = dma.hbm_to_vmem [thread:$0]  (!%p7378_p9), %s227_s10, 2560, %s229_s9, %s7388_s1, %s7237_s15, %s7237_s15, %s7238_s6  }
  0x34   : > { %s7239_s11 = smov [#allocation10]   ;;  %s12475_s17 = sand.u32 1, %s7228_s20  }
  0x35   : > { %s205_s12 = sshll.u32 %s7239_s11, 4  ;;  %s5357_s23 = sshll.u32 %s12475_s17, 6  ;;  %s206_s12 = int_to_ptr.vmem [resolvable:$true] %s205_s12 }
  0x36   : > { %5458 = dma.hbm_to_vmem [thread:$0]  (!%p7347_p10), %s204_s16, 128, %s206_s12, [#allocation8]  }
  0x37   : > { %s5430_s8 = sshll.u32 %s7232_s21, 6  ;;  %s242_s13 = scalar_lea.vmem [#allocation9], %s5357_s23 }
  0x38   : > { %s251_s27 = sshll.u32 %s242_s13, 4  ;;  %s247_s0 = scalar_lea.hbm %s12155_s2, %s5430_s8  ;;  %s252_s27 = int_to_ptr.vmem [resolvable:$true] %s251_s27 }
  0x39   : > { %s249_s3 = sshll.u32 %s247_s0, 4  ;;  %s7099_s15 = scalar_lea.hbm %s12155_s2, 128  ;;  %s250_s3 = int_to_ptr.hbm [resolvable:$true] %s249_s3 }
  0x3a   : > { %s7092_s9 = sshra.s32 %s250_s3, 4  ;;  %s7093_s9 = int_to_ptr.hbm [resolvable:$true] %s7092_s9 }
  0x3b   : > { %s7094_s10 = scalar_lea.hbm %s7093_s9, 64  ;;  %p7100_p10 = scmp.lt.s32.totalorder %s7093_s9, %s12155_s2 }
  0x3c   : > { %p7095_p1 = scmp.ne.s32.totalorder %s7093_s9, %s7094_s10  ;;  %p7101_p13 = scmp.lt.s32.totalorder %s7099_s15, %s7094_s10 }
  0x3e   : > { %p7097_p11 = pnand %p7095_p1, %p7036_p12  ;;  %p7102_p0 = por %p7101_p13, %p7100_p10 }
  0x40   : > { %p7098_p2 = pneg %p7097_p11 }
  0x42   : > { %p7103_p3 = pnand %p7102_p0, %p7098_p2 }
  0x44   : > { %7106 = shalt.err (!%p7103_p3)
}
  0x45   : > { %5465 = dma.hbm_to_vmem [thread:$0]  (!%p7378_p9), %s250_s3, 1024, %s252_s27, %s7388_s1  }
  0x46   : > { %260 = sbr.rel (%p7339_p8) target bundleno = 1430 (0x596), region = 36 }
  0x4b   : > { %s262_s0 = sand.u32 1, %s7317_s22   ;;  %s7428_s12 = sand.u32 1, %s7224_s19  }
  0x4c   : > { %s5435_s17 = smul.u32 160, %s7428_s12  ;;  %s263_s23 = scalar_lea.sflag [#allocation5], %s262_s0 }
  0x4e   : > { %s7431_s8 = scalar_lea.vmem [#allocation4], %s5435_s17 }
  0x4f   : > { %7195 = dma.done.wait (%p7326_p4), %s263_s23, 2560  }
  0x50   : > { %7197 = vsyncadd (%p7326_p4), %s263_s23, 4294964736  ;;  %p12476_p9 = scmp.eq.s32.totalorder %s7317_s22, 0 }
  0x52   : > { %7199 = dma.done.wait (%p12476_p9), [#allocation8], 2048   ;;  %p12477_p8 = pmov %p12476_p9 }
  0x53   : > { %s7442_s1 = sshll.u32 %s7428_s12, 6 }
  0x54   : > { %7201 = vsyncadd (%p12477_p8), [#allocation8], 4294965248  ;;  %s7445_s3 = scalar_lea.vmem [#allocation9], %s7442_s1 }
  0x55   : > { %7203 = dma.done.wait (%p7326_p4), %s263_s23, 1024  }
  0x56   : > { %7205 = vsyncadd (%p7326_p4), %s263_s23, 4294966272  ;;  %p12478_p12 = pmov %p12477_p8 }
  0x57   : > { %p12479_p5 = pmov %p12477_p8 }
  0x58   : > { %7207 = dma.done.wait (%p12478_p12), [#allocation8], 128  }
  0x59   : > { %7209 = vsyncadd (%p12479_p5), [#allocation8], 4294967168  ;;  %v7456_v0 = vld [vmem:[%s7431_s8 + $0x68] sm:$0xff]  ;;  %v7459_v1 = vld [vmem:[%s7431_s8 + $0x70] sm:$0xff]  ;;  %s7240_s24 = smov 127   ;;  %s7241_s29 = smov 126  }
  0x5a   : > { %v7462_v2 = vld [vmem:[%s7431_s8 + $0x20] sm:$0xff]  ;;  %v7466_v3 = vpack.i.bf16 %v7459_v1, %v7456_v0  ;;  %v7469_v4 = vld [vmem:[%s7431_s8 + $0x50] sm:$0xff]  ;;  %v7475_v6 = vld [vmem:[%s7431_s8 + $0x8] sm:$0xff]  ;;  %s7242_s26 = smov 118   ;;  %s7243_s13 = smov 117   ;;  %vm12304_vm0 = vcmask 875520  }
  0x5b   : > { %v7472_v5 = vld [vmem:[%s7431_s8] sm:$0xff]  ;;  %v7479_v7 = vpack.i.bf16 %v7469_v4, %v7462_v2  ;;  %v7492_v9 = vld [vmem:[%s7431_s8 + $0x58] sm:$0xff]  ;;  %v7498_v11 = vld [vmem:[%s7431_s8 + $0x10] sm:$0xff]  ;;  %s7244_s27 = smov 116   ;;  %s7245_s28 = smov 108   ;;  %vm637_vm1 = vcmask 883712  }
  0x5c   : > { %v7483_v8 = vpack.i.bf16 %v7475_v6, %v7472_v5  ;;  %5564 = vrot.lane.b32.xlu2 %v7466_v3, %s7240_s24  ;;  %v7495_v10 = vld [vmem:[%s7431_s8 + $0x60] sm:$0xff]  ;;  %v7501_v12 = vld [vmem:[%s7431_s8 + $0x18] sm:$0xff]  ;;  %s7246_s30 = smov 107   ;;  %s7247_s9 = smov 106   ;;  %vm572_vm2 = vcmask 949248   ;;  %vm527_vm3 = vcmask 957440  }
  0x5d   : > { %5554 = vrot.lane.b32.xlu1 %v7479_v7, %s7240_s24  ;;  %v7505_v13 = vpack.i.bf16 %v7495_v10, %v7492_v9  ;;  %v7509_v14 = vpack.i.bf16 %v7501_v12, %v7498_v11  ;;  %s7248_s10 = smov 28   ;;  %s7249_s7 = smov 27   ;;  %vm482_vm4 = vcmask 965632   ;;  %vm417_vm5 = vcmask 1031168  }
  0x5e   : > { %5544 = vrot.lane.b32.xlu0 %v7483_v8, %s7240_s24  ;;  %s7250_s16 = smov 26   ;;  %s12198_s15 = smov 18   ;;  %vm372_vm6 = vcmask 1039360   ;;  %vm12273_vm7 = vcmask 64512   ;;  %vm12271_vm8 = vcmask 130048   ;;  %vm12267_vm9 = vcmask 138240  }
  0x5f   : > { %s12240_s6 = smov 17   ;;  %s7253_s11 = smov 16   ;;  %vm12266_vm10 = vcmask 146432   ;;  %vm12265_vm11 = vcmask 211968   ;;  %vm12280_vm12 = vcmask 220160   ;;  %vm12286_vm13 = vcmask 228352  }
  0x60   : > { %s7254_s0 = smov 8   ;;  %s12171_s17 = smov 7   ;;  %vm12285_vm14 = vcmask 867328   ;;  %vm1502_vm15 = vcmask 359424  }
  0x61   : > { %s12179_s23 = smov 6  }
  0x64   : > { %5569 = vrot.lane.b32.xlu2 %v7483_v8, %s7241_s29 }
  0x65   : > { %5559 = vrot.lane.b32.xlu1 %v7505_v13, %s7240_s24 }
  0x66   : > { %5549 = vrot.lane.b32.xlu0 %v7509_v14, %s7240_s24 }
  0x6c   : > { %5584 = vrot.lane.b32.xlu2 %v7505_v13, %s7241_s29 }
  0x6d   : > { %5579 = vrot.lane.b32.xlu1 %v7479_v7, %s7241_s29 }
  0x6e   : > { %5574 = vrot.lane.b32.xlu0 %v7509_v14, %s7241_s29 }
  0x74   : > { %5599 = vrot.lane.b32.xlu2 %v7509_v14, %s7242_s26 }
  0x75   : > { %5594 = vrot.lane.b32.xlu1 %v7483_v8, %s7242_s26 }
  0x76   : > { %5589 = vrot.lane.b32.xlu0 %v7466_v3, %s7241_s29 }
  0x7c   : > { %5614 = vrot.lane.b32.xlu2 %v7466_v3, %s7242_s26 }
  0x7d   : > { %5609 = vrot.lane.b32.xlu1 %v7505_v13, %s7242_s26 }
  0x7e   : > { %5604 = vrot.lane.b32.xlu0 %v7479_v7, %s7242_s26 }
  0x84   : > { %5629 = vrot.lane.b32.xlu2 %v7479_v7, %s7243_s13 }
  0x85   : > { %5624 = vrot.lane.b32.xlu1 %v7509_v14, %s7243_s13 }
  0x86   : > { %5619 = vrot.lane.b32.xlu0 %v7483_v8, %s7243_s13 }
  0x8c   : > { %5644 = vrot.lane.b32.xlu2 %v7483_v8, %s7244_s27 }
  0x8d   : > { %5639 = vrot.lane.b32.xlu1 %v7466_v3, %s7243_s13 }
  0x8e   : > { %5634 = vrot.lane.b32.xlu0 %v7505_v13, %s7243_s13 }
  0x94   : > { %5659 = vrot.lane.b32.xlu2 %v7505_v13, %s7244_s27 }
  0x95   : > { %5654 = vrot.lane.b32.xlu1 %v7479_v7, %s7244_s27 }
  0x96   : > { %5649 = vrot.lane.b32.xlu0 %v7509_v14, %s7244_s27 }
  0x9c   : > { %5674 = vrot.lane.b32.xlu2 %v7509_v14, %s7245_s28 }
  0x9d   : > { %5669 = vrot.lane.b32.xlu1 %v7483_v8, %s7245_s28 }
  0x9e   : > { %5664 = vrot.lane.b32.xlu0 %v7466_v3, %s7244_s27 }
  0xa4   : > { %5689 = vrot.lane.b32.xlu2 %v7466_v3, %s7245_s28 }
  0xa5   : > { %5684 = vrot.lane.b32.xlu1 %v7505_v13, %s7245_s28 }
  0xa6   : > { %5679 = vrot.lane.b32.xlu0 %v7479_v7, %s7245_s28 }
  0xac   : > { %5704 = vrot.lane.b32.xlu2 %v7479_v7, %s7246_s30 }
  0xad   : > { %5699 = vrot.lane.b32.xlu1 %v7509_v14, %s7246_s30 }
  0xae   : > { %5694 = vrot.lane.b32.xlu0 %v7483_v8, %s7246_s30 }
  0xb4   : > { %5719 = vrot.lane.b32.xlu2 %v7483_v8, %s7247_s9 }
  0xb5   : > { %5714 = vrot.lane.b32.xlu1 %v7466_v3, %s7246_s30 }
  0xb6   : > { %5709 = vrot.lane.b32.xlu0 %v7505_v13, %s7246_s30  ;;  %v7577_v15 = vpop.permute.xlu2 %5564 }
  0xb7   : > { %12480 = vst [vmem:[#allocation22_spill] sm:$0xff] %v7577_v15 }
  0xbc   : > { %5734 = vrot.lane.b32.xlu2 %v7505_v13, %s7247_s9 }
  0xbd   : > { %5729 = vrot.lane.b32.xlu1 %v7479_v7, %s7247_s9 }
  0xbe   : > { %5724 = vrot.lane.b32.xlu0 %v7509_v14, %s7247_s9  ;;  %v7585_v16 = vpop.permute.xlu2 %5569 }
  0xbf   : > { %12481 = vst [vmem:[#allocation23_spill] sm:$0xff] %v7585_v16 }
  0xc4   : > { %5749 = vrot.lane.b32.xlu2 %v7509_v14, %s7248_s10 }
  0xc5   : > { %5744 = vrot.lane.b32.xlu1 %v7483_v8, %s7248_s10 }
  0xc6   : > { %5739 = vrot.lane.b32.xlu0 %v7466_v3, %s7247_s9  ;;  %v7593_v17 = vpop.permute.xlu2 %5584 }
  0xc7   : > { %12482 = vst [vmem:[#allocation24_spill] sm:$0xff] %v7593_v17 }
  0xcc   : > { %5764 = vrot.lane.b32.xlu2 %v7466_v3, %s7248_s10 }
  0xcd   : > { %5759 = vrot.lane.b32.xlu1 %v7505_v13, %s7248_s10 }
  0xce   : > { %5754 = vrot.lane.b32.xlu0 %v7479_v7, %s7248_s10  ;;  %v7601_v18 = vpop.permute.xlu2 %5599 }
  0xcf   : > { %12483 = vst [vmem:[#allocation25_spill] sm:$0xff] %v7601_v18  ;;  %v7603_v19 = vpop.permute.xlu1 %5554 }
  0xd0   : > { %12484 = vst [vmem:[#allocation26_spill] sm:$0xff] %v7603_v19  ;;  %v7605_v20 = vpop.permute.xlu0 %5544 }
  0xd1   : > { %12485 = vst [vmem:[#allocation27_spill] sm:$0xff] %v7605_v20 }
  0xd4   : > { %5779 = vrot.lane.b32.xlu2 %v7479_v7, %s7249_s7 }
  0xd5   : > { %5774 = vrot.lane.b32.xlu1 %v7509_v14, %s7249_s7 }
  0xd6   : > { %5769 = vrot.lane.b32.xlu0 %v7483_v8, %s7249_s7  ;;  %v7613_v21 = vpop.permute.xlu2 %5614 }
  0xd7   : > { %12486 = vst [vmem:[#allocation28_spill] sm:$0xff] %v7613_v21  ;;  %v7615_v22 = vpop.permute.xlu1 %5559 }
  0xd8   : > { %12487 = vst [vmem:[#allocation29_spill] sm:$0xff] %v7615_v22  ;;  %v7617_v23 = vpop.permute.xlu0 %5549 }
  0xd9   : > { %12488 = vst [vmem:[#allocation30_spill] sm:$0xff] %v7617_v23 }
  0xdc   : > { %5794 = vrot.lane.b32.xlu2 %v7483_v8, %s7250_s16 }
  0xdd   : > { %5789 = vrot.lane.b32.xlu1 %v7466_v3, %s7249_s7 }
  0xde   : > { %5784 = vrot.lane.b32.xlu0 %v7505_v13, %s7249_s7  ;;  %v7625_v24 = vpop.permute.xlu2 %5629 }
  0xdf   : > { %12489 = vst [vmem:[#allocation31_spill] sm:$0xff] %v7625_v24  ;;  %v7627_v25 = vpop.permute.xlu1 %5579 }
  0xe0   : > { %12490 = vst [vmem:[#allocation32_spill] sm:$0xff] %v7627_v25  ;;  %v7629_v26 = vpop.permute.xlu0 %5574 }
  0xe1   : > { %12491 = vst [vmem:[#allocation33_spill] sm:$0xff] %v7629_v26  ;;  %v1527_v26 = vld [vmem:[%s7431_s8 + $0x8] sm:$0xff] }
  0xe4   : > { %5809 = vrot.lane.b32.xlu2 %v7505_v13, %s7250_s16 }
  0xe5   : > { %5804 = vrot.lane.b32.xlu1 %v7479_v7, %s7250_s16 }
  0xe6   : > { %5799 = vrot.lane.b32.xlu0 %v7509_v14, %s7250_s16  ;;  %v7637_v27 = vpop.permute.xlu2 %5644 }
  0xe7   : > { %12492 = vst [vmem:[#allocation34_spill] sm:$0xff] %v7637_v27  ;;  %v7639_v28 = vpop.permute.xlu1 %5594 }
  0xe8   : > { %12493 = vst [vmem:[#allocation35_spill] sm:$0xff] %v7639_v28  ;;  %v7641_v29 = vpop.permute.xlu0 %5589 }
  0xe9   : > { %12494 = vst [vmem:[#allocation36_spill] sm:$0xff] %v7641_v29 }
  0xec   : > { %5824 = vrot.lane.b32.xlu2 %v7509_v14, %s12198_s15 }
  0xed   : > { %5819 = vrot.lane.b32.xlu1 %v7483_v8, %s12198_s15 }
  0xee   : > { %5814 = vrot.lane.b32.xlu0 %v7466_v3, %s7250_s16  ;;  %v7649_v30 = vpop.permute.xlu2 %5659 }
  0xef   : > { %12495 = vst [vmem:[#allocation37_spill] sm:$0xff] %v7649_v30  ;;  %v7651_v31 = vpop.permute.xlu1 %5609  ;;  %v12516_v15 = vunpack.i.l.bf16 %v7649_v30 }
  0xf0   : > { %12496 = vst [vmem:[#allocation38_spill] sm:$0xff] %v7651_v31  ;;  %v7653_v32 = vpop.permute.xlu0 %5604 }
  0xf1   : > { %12497 = vst [vmem:[#allocation39_spill] sm:$0xff] %v7653_v32 }
  0xf4   : > { %5839 = vrot.lane.b32.xlu2 %v7466_v3, %s12198_s15 }
  0xf5   : > { %5834 = vrot.lane.b32.xlu1 %v7505_v13, %s12198_s15 }
  0xf6   : > { %5829 = vrot.lane.b32.xlu0 %v7479_v7, %s12198_s15  ;;  %v7661_v33 = vpop.permute.xlu2 %5674  ;;  %s7262_s15 = smov 44  }
  0xf7   : > { %12498 = vst [vmem:[#allocation40_spill] sm:$0xff] %v7661_v33  ;;  %v7663_v34 = vpop.permute.xlu1 %5624 }
  0xf8   : > { %12499 = vst [vmem:[#allocation41_spill] sm:$0xff] %v7663_v34  ;;  %v7665_v35 = vpop.permute.xlu0 %5619 }
  0xf9   : > { %12500 = vst [vmem:[#allocation42_spill] sm:$0xff] %v7665_v35 }
  0xfc   : > { %5854 = vrot.lane.b32.xlu2 %v7479_v7, %s12240_s6 }
  0xfd   : > { %5849 = vrot.lane.b32.xlu1 %v7509_v14, %s12240_s6 }
  0xfe   : > { %5844 = vrot.lane.b32.xlu0 %v7483_v8, %s12240_s6  ;;  %v7673_v36 = vpop.permute.xlu2 %5689 }
  0xff   : > { %12501 = vst [vmem:[#allocation43_spill] sm:$0xff] %v7673_v36  ;;  %v7675_v37 = vpop.permute.xlu1 %5639 }
 0x100   : > { %12502 = vst [vmem:[#allocation44_spill] sm:$0xff] %v7675_v37  ;;  %v7677_v38 = vpop.permute.xlu0 %5634 }
 0x101   : > { %12503 = vst [vmem:[#allocation45_spill] sm:$0xff] %v7677_v38 }
 0x104   : > { %5869 = vrot.lane.b32.xlu2 %v7483_v8, %s7253_s11 }
 0x105   : > { %5864 = vrot.lane.b32.xlu1 %v7466_v3, %s12240_s6 }
 0x106   : > { %5859 = vrot.lane.b32.xlu0 %v7505_v13, %s12240_s6  ;;  %v7685_v39 = vpop.permute.xlu2 %5704  ;;  %s7265_s6 = smov 34  }
 0x107   : > { %12504 = vst [vmem:[#allocation46_spill] sm:$0xff] %v7685_v39  ;;  %v7687_v40 = vpop.permute.xlu1 %5654  ;;  %v5707_v51 = vunpack.i.h.bf16 %v7685_v39  ;;  %v12170_v39 = vunpack.i.h.bf16 %v7637_v27 }
 0x108   : > { %12505 = vst [vmem:[#allocation47_spill] sm:$0xff] %v7687_v40  ;;  %v7689_v41 = vpop.permute.xlu0 %5649 }
 0x109   : > { %12506 = vst [vmem:[#allocation48_spill] sm:$0xff] %v7689_v41 }
 0x10c   : > { %5884 = vrot.lane.b32.xlu2 %v7505_v13, %s7253_s11 }
 0x10d   : > { %5879 = vrot.lane.b32.xlu1 %v7479_v7, %s7253_s11 }
 0x10e   : > { %5874 = vrot.lane.b32.xlu0 %v7509_v14, %s7253_s11  ;;  %v7697_v42 = vpop.permute.xlu2 %5719 }
 0x10f   : > { %v7699_v43 = vpop.permute.xlu1 %5669 }
 0x110   : > { %12507 = vst [vmem:[#allocation49_spill] sm:$0xff] %v7699_v43  ;;  %v7701_v44 = vpop.permute.xlu0 %5664  ;;  %v5671_v62 = vunpack.i.l.bf16 %v7699_v43 }
 0x111   : > { %12508 = vst [vmem:[#allocation50_spill] sm:$0xff] %v7701_v44 }
 0x114   : > { %5899 = vrot.lane.b32.xlu2 %v7509_v14, %s7254_s0 }
 0x115   : > { %5894 = vrot.lane.b32.xlu1 %v7483_v8, %s7254_s0 }
 0x116   : > { %5889 = vrot.lane.b32.xlu0 %v7466_v3, %s7253_s11  ;;  %v7709_v45 = vpop.permute.xlu2 %5734 }
 0x117   : > { %v7711_v46 = vpop.permute.xlu1 %5684 }
 0x118   : > { %12509 = vst [vmem:[#allocation51_spill] sm:$0xff] %v7711_v46  ;;  %v7713_v47 = vpop.permute.xlu0 %5679  ;;  %v12177_v59 = vunpack.i.l.bf16 %v7711_v46 }
 0x119   : > { %12510 = vst [vmem:[#allocation52_spill] sm:$0xff] %v7713_v47  ;;  %v5682_v60 = vunpack.i.h.bf16 %v7713_v47 }
 0x11b   : > { %v642_v47 = vsel %vm637_vm1, %v5682_v60, %v12177_v59  ;;  %v5621_v60 = vunpack.i.l.bf16 %v7665_v35  ;;  %v5546_v59 = vunpack.i.l.bf16 %v7605_v20 }
 0x11c   : > { %5914 = vrot.lane.b32.xlu2 %v7466_v3, %s7254_s0 }
 0x11d   : > { %5909 = vrot.lane.b32.xlu1 %v7505_v13, %s7254_s0 }
 0x11e   : > { %5904 = vrot.lane.b32.xlu0 %v7479_v7, %s7254_s0  ;;  %v7721_v48 = vpop.permute.xlu2 %5749 }
 0x11f   : > { %v7723_v49 = vpop.permute.xlu1 %5699 }
 0x120   : > { %12511 = vst [vmem:[#allocation53_spill] sm:$0xff] %v7723_v49  ;;  %v7725_v50 = vpop.permute.xlu0 %5694 }
 0x121   : > { %12512 = vst [vmem:[#allocation54_spill] sm:$0xff] %v7725_v50  ;;  %v12166_v56 = vunpack.i.h.bf16 %v7725_v50  ;;  %v5696_v57 = vunpack.i.l.bf16 %v7725_v50 }
 0x123   : > { %v683_v63 = vsel %vm12304_vm0, %v5696_v57, %v12166_v56  ;;  %v5646_v57 = vunpack.i.l.bf16 %v7637_v27  ;;  %v1533_v27 = vld [vmem:[%s7431_s8 + $0x60] sm:$0xff] }
 0x124   : > { %5929 = vrot.lane.b32.xlu2 %v7479_v7, %s12171_s17 }
 0x125   : > { %5924 = vrot.lane.b32.xlu1 %v7509_v14, %s12171_s17 }
 0x126   : > { %5919 = vrot.lane.b32.xlu0 %v7483_v8, %s12171_s17  ;;  %v7734_v52 = vpop.permute.xlu2 %5764 }
 0x127   : > { %v7736_v53 = vpop.permute.xlu1 %5714 }
 0x128   : > { %12513 = vst [vmem:[#allocation55_spill] sm:$0xff] %v7736_v53  ;;  %v7738_v54 = vpop.permute.xlu0 %5709 }
 0x129   : > { %12514 = vst [vmem:[#allocation56_spill] sm:$0xff] %v7738_v54  ;;  %v12163_v55 = vunpack.i.l.bf16 %v7738_v54  ;;  %v1682_v54 = vld [vmem:[#allocation7] sm:$0xff] }
 0x12b   : > { %v687_v58 = vsel %vm12304_vm0, %v5707_v51, %v12163_v55 }
 0x12c   : > { %1927 = vmatpush.msra.mxu0 %v687_v58  ;;  %5944 = vrot.lane.b32.xlu2 %v7483_v8, %s12179_s23  ;;  %v5657_v58 = vunpack.i.h.bf16 %v7687_v40  ;;  %v5632_v8 = vunpack.i.h.bf16 %v7625_v24  ;;  %v12176_v40 = vunpack.i.l.bf16 %v7677_v38 }
 0x12d   : > { %5939 = vrot.lane.b32.xlu1 %v7466_v3, %s12171_s17 }
 0x12e   : > { %5934 = vrot.lane.b32.xlu0 %v7505_v13, %s12171_s17  ;;  %1928 = vmatpush.msra.mxu0 %v683_v63  ;;  %v7759_v51 = vpop.permute.xlu2 %5779  ;;  %v12515_v63 = vunpack.i.h.bf16 %v7699_v43  ;;  %v577_v29 = vsel %vm572_vm2, %v5657_v58, %v12516_v15  ;;  %s12181_s17 = smov 56  }
 0x12f   : > { %v7763_v55 = vpop.permute.xlu1 %5729 }
 0x130   : > { %v7765_v61 = vpop.permute.xlu0 %5724  ;;  %1929 = vmatpush.msra.mxu0 %v642_v47  ;;  %v638_v56 = vsel %vm637_vm1, %v5671_v62, %v12515_v63  ;;  %v12174_v47 = vunpack.i.h.bf16 %v7665_v35  ;;  %v5596_v63 = vunpack.i.l.bf16 %v7639_v28 }
 0x132   : > { %1930 = vmatpush.msra.mxu0 %v638_v56  ;;  %v573_v56 = vsel %vm572_vm2, %v5646_v57, %v12170_v39  ;;  %v12175_v57 = vunpack.i.h.bf16 %v7639_v28  ;;  %v7813_v39 = vpack.i.bf16 %v7498_v11, %v7475_v6  ;;  %v7832_v11 = vld [vmem:[%s7431_s8 + $0x78] sm:$0xff] }
 0x134   : > { %1931 = vmatpush.msra.mxu0 %v577_v29  ;;  %5959 = vrot.lane.b32.xlu2 %v7505_v13, %s12179_s23  ;;  %v12173_v13 = vunpack.i.l.bf16 %v7651_v31  ;;  %v5607_v29 = vunpack.i.h.bf16 %v7653_v32  ;;  %v483_v6 = vsel %vm482_vm4, %v5596_v63, %v12175_v57  ;;  %v5557_v63 = vunpack.i.h.bf16 %v7603_v19  ;;  %v1377_v19 = vld [vmem:[%s7431_s8 + $0x58] sm:$0xff] }
 0x135   : > { %5954 = vrot.lane.b32.xlu1 %v7479_v7, %s12179_s23  ;;  %v532_v7 = vsel %vm527_vm3, %v5632_v8, %v12176_v40  ;;  %v12178_v8 = vunpack.i.l.bf16 %v7593_v17  ;;  %v5988_v57 = vpack.i.bf16 %v7832_v11, %v7459_v1  ;;  %v12183_v40 = vunpack.i.h.bf16 %v7605_v20  ;;  %v1528_v17 = vld [vmem:[%s7431_s8 + $0x10] sm:$0xff] }
 0x136   : > { %5949 = vrot.lane.b32.xlu0 %v7509_v14, %s12179_s23  ;;  %1932 = vmatpush.msra.mxu0 %v573_v56  ;;  %v7791_v15 = vpop.permute.xlu2 %5794  ;;  %v7804_v14 = vpack.i.bf16 %v7462_v2, %v7501_v12  ;;  %v528_v56 = vsel %vm527_vm3, %v5621_v60, %v12174_v47  ;;  %v5582_v2 = vunpack.i.h.bf16 %v7627_v25  ;;  %v487_v12 = vsel %vm482_vm4, %v5607_v29, %v12173_v13 }
 0x137   : > { %v7795_v62 = vpop.permute.xlu1 %5744  ;;  %v5571_v60 = vunpack.i.l.bf16 %v7585_v16 }
 0x138   : > { %v7797_v58 = vpop.permute.xlu0 %5739  ;;  %1933 = vmatpush.msra.mxu0 %v532_v7  ;;  %v12186_v7 = vunpack.i.h.bf16 %v7585_v16 }
 0x13a   : > { %1934 = vmatpush.msra.mxu0 %v528_v56  ;;  %v7837_v56 = vld [vmem:[%s7431_s8 + $0x28] sm:$0xff] }
 0x13b   : > { %v7929_v37 = vpack.i.bf16 %v1377_v19, %v7837_v56 }
 0x13c   : > { %1935 = vmatpush.msra.mxu0 %v487_v12  ;;  %5974 = vrot.lane.b32.xlu2 %v7804_v14, %s12181_s17  ;;  %v5983_v12 = vpack.i.bf16 %v7456_v0, %v7495_v10  ;;  %v373_v0 = vsel %vm372_vm6, %v5546_v59, %v12183_v40 }
 0x13d   : > { %5969 = vrot.lane.b32.xlu1 %v7813_v39, %s12181_s17 }
 0x13e   : > { %5964 = vrot.lane.b32.xlu0 %v7466_v3, %s12179_s23  ;;  %1936 = vmatpush.msra.mxu0 %v483_v6  ;;  %v7834_v29 = vpop.permute.xlu2 %5809  ;;  %v422_v3 = vsel %vm417_vm5, %v5582_v2, %v12178_v8  ;;  %v418_v6 = vsel %vm417_vm5, %v5571_v60, %v12186_v7  ;;  %v5978_v2 = vpack.i.bf16 %v7492_v9, %v7837_v56  ;;  %s12184_s23 = smov 55   ;;  %v1379_v7 = vld [vmem:[%s7431_s8 + $0x68] sm:$0xff] }
 0x13f   : > { %v7840_v13 = vpop.permute.xlu1 %5759  ;;  %v6058_v21 = vpack.i.bf16 %v1379_v7, %v7495_v10  ;;  %v8002_v33 = vpack.i.bf16 %v1379_v7, %v1533_v27 }
 0x140   : > { %v7842_v47 = vpop.permute.xlu0 %5754  ;;  %1937 = vmatpush.msra.mxu0 %v422_v3  ;;  %v12517_v3 = vunpack.i.l.bf16 %v7615_v22  ;;  %v7972_v22 = vld [vmem:[%s7431_s8 + $0x20] sm:$0xff] }
 0x142   : > { %1938 = vmatpush.msra.mxu0 %v418_v6  ;;  %v377_v8 = vsel %vm372_vm6, %v5557_v63, %v12517_v3 }
 0x144   : > { %1939 = vmatpush.msra.mxu0 %v377_v8  ;;  %5989 = vrot.lane.b32.xlu2 %v5988_v57, %s12181_s17 }
 0x145   : > { %5984 = vrot.lane.b32.xlu1 %v5983_v12, %s12181_s17 }
 0x146   : > { %5979 = vrot.lane.b32.xlu0 %v5978_v2, %s12181_s17  ;;  %1940 = vmatpush.msra.mxu0 %v373_v0  ;;  %v7868_v1 = vpop.permute.xlu2 %5824  ;;  %s12195_s17 = smov 54  }
 0x147   : > { %v7870_v9 = vpop.permute.xlu1 %5774 }
 0x148   : > { %v7872_v60 = vpop.permute.xlu0 %5769  ;;  %1941 = vmatpush.msra.mxu0 %v7469_v4 }
 0x14a   : > { %1942 = vmatpush.msra.mxu0 %v7472_v5 }
 0x14b   : > { %1943 = vmatmul.f32.vlgmr.msra.gmra.mxu0 %v1682_v54 }
 0x14c   : > { %6004 = vrot.lane.b32.xlu2 %v5978_v2, %s12184_s23 }
 0x14d   : > { %5999 = vrot.lane.b32.xlu1 %v7804_v14, %s12184_s23 }
 0x14e   : > { %5994 = vrot.lane.b32.xlu0 %v7813_v39, %s12184_s23  ;;  %v7881_v59 = vpop.permute.xlu2 %5839 }
 0x14f   : > { %v7883_v8 = vpop.permute.xlu1 %5789 }
 0x150   : > { %v7885_v63 = vpop.permute.xlu0 %5784 }
 0x154   : > { %6019 = vrot.lane.b32.xlu2 %v7813_v39, %s12195_s17 }
 0x155   : > { %6014 = vrot.lane.b32.xlu1 %v5988_v57, %s12184_s23 }
 0x156   : > { %6009 = vrot.lane.b32.xlu0 %v5983_v12, %s12184_s23  ;;  %v7891_v4 = vpop.permute.xlu2 %5854  ;;  %s12213_s23 = smov 46  }
 0x157   : > { %v7893_v5 = vpop.permute.xlu1 %5804 }
 0x158   : > { %v7895_v6 = vpop.permute.xlu0 %5799 }
 0x15c   : > { %6034 = vrot.lane.b32.xlu2 %v5983_v12, %s12195_s17  ;;  %v7913_v12 = vld [vmem:[%s7431_s8 + $0x70] sm:$0xff] }
 0x15d   : > { %6029 = vrot.lane.b32.xlu1 %v5978_v2, %s12195_s17  ;;  %v7925_v24 = vpack.i.bf16 %v7832_v11, %v7913_v12 }
 0x15e   : > { %6024 = vrot.lane.b32.xlu0 %v7804_v14, %s12195_s17  ;;  %v7901_v3 = vpop.permute.xlu2 %5869 }
 0x15f   : > { %v7903_v0 = vpop.permute.xlu1 %5819  ;;  %v5872_v43 = vunpack.i.h.bf16 %v7901_v3  ;;  %v5871_v27 = vunpack.i.l.bf16 %v7901_v3 }
 0x160   : > { %v7905_v40 = vpop.permute.xlu0 %5814 }
 0x164   : > { %6049 = vrot.lane.b32.xlu2 %v7804_v14, %s12213_s23 }
 0x165   : > { %6044 = vrot.lane.b32.xlu1 %v7813_v39, %s12213_s23 }
 0x166   : > { %6039 = vrot.lane.b32.xlu0 %v5988_v57, %s12195_s17  ;;  %v7915_v2 = vpop.permute.xlu2 %5884  ;;  %s7261_s17 = smov 45  }
 0x167   : > { %v7919_v25 = vpop.permute.xlu1 %5834  ;;  %v12237_v49 = vunpack.i.h.bf16 %v7915_v2 }
 0x168   : > { %v7921_v32 = vpop.permute.xlu0 %5829 }
 0x16c   : > { %6064 = vrot.lane.b32.xlu2 %v7925_v24, %s12213_s23 }
 0x16d   : > { %6059 = vrot.lane.b32.xlu1 %v6058_v21, %s12213_s23 }
 0x16e   : > { %6054 = vrot.lane.b32.xlu0 %v7929_v37, %s12213_s23  ;;  %v7936_v57 = vpop.permute.xlu2 %5899  ;;  %s12235_s23 = smov 36  }
 0x16f   : > { %v7938_v44 = vpop.permute.xlu1 %5849 }
 0x170   : > { %v7940_v36 = vpop.permute.xlu0 %5844 }
 0x174   : > { %6079 = vrot.lane.b32.xlu2 %v7929_v37, %s7261_s17 }
 0x175   : > { %6074 = vrot.lane.b32.xlu1 %v7804_v14, %s7261_s17 }
 0x176   : > { %6069 = vrot.lane.b32.xlu0 %v7813_v39, %s7261_s17  ;;  %v7948_v10 = vpop.permute.xlu2 %5914 }
 0x177   : > { %v7950_v19 = vpop.permute.xlu1 %5864 }
 0x178   : > { %v7952_v53 = vpop.permute.xlu0 %5859 }
 0x17c   : > { %6094 = vrot.lane.b32.xlu2 %v7813_v39, %s7262_s15  ;;  %v1529_v39 = vld [vmem:[%s7431_s8 + $0x18] sm:$0xff] }
 0x17d   : > { %6089 = vrot.lane.b32.xlu1 %v7925_v24, %s7261_s17  ;;  %v7981_v31 = vpack.i.bf16 %v7972_v22, %v1529_v39 }
 0x17e   : > { %6084 = vrot.lane.b32.xlu0 %v6058_v21, %s7261_s17  ;;  %v7959_v20 = vpop.permute.xlu2 %5929 }
 0x17f   : > { %12518 = vst [vmem:[#allocation57_spill] sm:$0xff] %v7959_v20  ;;  %v7961_v23 = vpop.permute.xlu1 %5879  ;;  %v5886_v20 = vunpack.i.l.bf16 %v7915_v2 }
 0x180   : > { %v7963_v16 = vpop.permute.xlu0 %5874 }
 0x181   : > { %v12523_v3 = vunpack.i.l.bf16 %v7963_v16 }
 0x184   : > { %6109 = vrot.lane.b32.xlu2 %v6058_v21, %s7262_s15  ;;  %v7983_v21 = vpack.i.bf16 %v1528_v17, %v1527_v26 }
 0x185   : > { %6104 = vrot.lane.b32.xlu1 %v7929_v37, %s7262_s15 }
 0x186   : > { %6099 = vrot.lane.b32.xlu0 %v7804_v14, %s7262_s15  ;;  %v7974_v28 = vpop.permute.xlu2 %5944 }
 0x187   : > { %12519 = vst [vmem:[#allocation58_spill] sm:$0xff] %v7974_v28  ;;  %v5895_v35 = vpop.permute.xlu1 %5894  ;;  %v5882_v28 = vunpack.i.h.bf16 %v7961_v23 }
 0x188   : > { %v7978_v18 = vpop.permute.xlu0 %5889  ;;  %v5897_v41 = vunpack.i.h.bf16 %v5895_v35  ;;  %v5896_v30 = vunpack.i.l.bf16 %v5895_v35 }
 0x18a   : > { %v1103_v7 = vsel %vm12273_vm7, %v5896_v30, %v5897_v41  ;;  %v1042_v30 = vsel %vm12271_vm8, %v5882_v28, %v5886_v20  ;;  %v5836_v28 = vunpack.i.l.bf16 %v7919_v25 }
 0x18c   : > { %6124 = vrot.lane.b32.xlu2 %v7981_v31, %s12235_s23 }
 0x18d   : > { %6119 = vrot.lane.b32.xlu1 %v7983_v21, %s12235_s23 }
 0x18e   : > { %6114 = vrot.lane.b32.xlu0 %v7925_v24, %s7262_s15  ;;  %v7991_v14 = vpop.permute.xlu2 %5959 }
 0x18f   : > { %v7994_v34 = vpop.permute.xlu1 %5909 }
 0x190   : > { %v7996_v38 = vpop.permute.xlu0 %5904  ;;  %v12232_v17 = vunpack.i.h.bf16 %v7994_v34  ;;  %v5911_v26 = vunpack.i.l.bf16 %v7994_v34 }
 0x191   : > { %v5907_v39 = vunpack.i.h.bf16 %v7996_v38 }
 0x192   : > { %v1108_v46 = vsel %vm12273_vm7, %v5911_v26, %v12232_v17 }
 0x193   : > { %v1107_v50 = vsel %vm12273_vm7, %v5907_v39, %v5911_v26  ;;  %2072 = vmatpush.msrb.mxu0 %v1108_v46  ;;  %v12520_v46 = vunpack.i.l.bf16 %v7936_v57  ;;  %v5857_v26 = vunpack.i.h.bf16 %v7891_v4  ;;  %v5861_v39 = vunpack.i.l.bf16 %v7952_v53 }
 0x194   : > { %1956 = vmatpush.msra.mxu1 %v1107_v50  ;;  %6139 = vrot.lane.b32.xlu2 %v7925_v24, %s12235_s23 }
 0x195   : > { %6134 = vrot.lane.b32.xlu1 %v8002_v33, %s12235_s23  ;;  %v1104_v50 = vsel %vm12273_vm7, %v5897_v41, %v12520_v46  ;;  %v1043_v41 = vsel %vm12271_vm8, %v5886_v20, %v12237_v49  ;;  %v5846_v46 = vunpack.i.l.bf16 %v7940_v36  ;;  %v5832_v20 = vunpack.i.h.bf16 %v7921_v32 }
 0x196   : > { %6129 = vrot.lane.b32.xlu0 %v7929_v37, %s12235_s23  ;;  %1957 = vmatpush.msra.mxu1 %v1103_v7  ;;  %v8025_v54 = vpop.permute.xlu2 %5974  ;;  %v5847_v7 = vunpack.i.h.bf16 %v7940_v36  ;;  %s7264_s23 = smov 35  }
 0x197   : > { %2073 = vmatpush.msrb.mxu0 %v1104_v50  ;;  %v8029_v17 = vpop.permute.xlu1 %5924  ;;  %v1038_v50 = vsel %vm12271_vm8, %v5871_v27, %v5872_v43  ;;  %v12242_v27 = vunpack.i.h.bf16 %v7919_v25  ;;  %v952_v49 = vsel %vm12266_vm10, %v5832_v20, %v5836_v28  ;;  %v12527_v20 = vunpack.i.l.bf16 %v7868_v1 }
 0x198   : > { %12521 = vst [vmem:[#allocation59_spill] sm:$0xff] %v8029_v17  ;;  %v8031_v35 = vpop.permute.xlu0 %5919  ;;  %1958 = vmatpush.msra.mxu1 %v1042_v30  ;;  %v1039_v17 = vsel %vm12271_vm8, %v5872_v43, %v12523_v3  ;;  %v997_v30 = vsel %vm12267_vm9, %v5857_v26, %v5861_v39  ;;  %v5822_v43 = vunpack.i.h.bf16 %v7903_v0  ;;  %v5821_v3 = vunpack.i.l.bf16 %v7903_v0  ;;  %v1686_v26 = vld [vmem:[#allocation7 + $0x20] sm:$0xff] }
 0x199   : > { %12522 = vst [vmem:[#allocation60_spill] sm:$0xff] %v8031_v35  ;;  %2074 = vmatpush.msrb.mxu0 %v1043_v41  ;;  %v12238_v35 = vunpack.i.l.bf16 %v7938_v44  ;;  %v12524_v41 = vunpack.i.h.bf16 %v7952_v53 }
 0x19a   : > { %1959 = vmatpush.msra.mxu1 %v1038_v50  ;;  %1946 = vmatmul.f32.gmra.mxu0 %v1686_v26  ;;  %v5787_v26 = vunpack.i.h.bf16 %v7885_v63 }
 0x19b   : > { %2075 = vmatpush.msrb.mxu0 %v1039_v17  ;;  %v998_v36 = vsel %vm12267_vm9, %v5861_v39, %v12524_v41  ;;  %v993_v17 = vsel %vm12267_vm9, %v5846_v46, %v5847_v7  ;;  %v994_v0 = vsel %vm12267_vm9, %v5847_v7, %v12238_v35  ;;  %v5807_v41 = vunpack.i.h.bf16 %v7893_v5 }
 0x19c   : > { %1960 = vmatpush.msra.mxu1 %v997_v30  ;;  %6154 = vrot.lane.b32.xlu2 %v7929_v37, %s7264_s23  ;;  %v5811_v30 = vunpack.i.l.bf16 %v7834_v29  ;;  %v953_v7 = vsel %vm12266_vm10, %v5836_v28, %v12242_v27  ;;  %v5797_v35 = vunpack.i.h.bf16 %v7791_v15  ;;  %v5796_v39 = vunpack.i.l.bf16 %v7791_v15 }
 0x19d   : > { %2076 = vmatpush.msrb.mxu0 %v998_v36  ;;  %6149 = vrot.lane.b32.xlu1 %v7981_v31, %s7264_s23  ;;  %v5782_v28 = vunpack.i.h.bf16 %v7759_v51  ;;  %v5786_v15 = vunpack.i.l.bf16 %v7885_v63 }
 0x19e   : > { %6144 = vrot.lane.b32.xlu0 %v7983_v21, %s7264_s23  ;;  %1961 = vmatpush.msra.mxu1 %v993_v17  ;;  %v8064_v50 = vpop.permute.xlu2 %5989  ;;  %v949_v17 = vsel %vm12266_vm10, %v5822_v43, %v12527_v20  ;;  %v5771_v20 = vunpack.i.l.bf16 %v7872_v60 }
 0x19f   : > { %12525 = vst [vmem:[#allocation61_spill] sm:$0xff] %v8064_v50  ;;  %2077 = vmatpush.msrb.mxu0 %v994_v0  ;;  %v8068_v46 = vpop.permute.xlu1 %5939  ;;  %v948_v0 = vsel %vm12266_vm10, %v5821_v3, %v5822_v43  ;;  %v12528_v3 = vunpack.i.h.bf16 %v7834_v29  ;;  %v883_v43 = vsel %vm12265_vm11, %v5796_v39, %v5797_v35  ;;  %v842_v27 = vsel %vm12280_vm12, %v5782_v28, %v5786_v15 }
 0x1a0   : > { %12526 = vst [vmem:[#allocation62_spill] sm:$0xff] %v8068_v46  ;;  %v8070_v36 = vpop.permute.xlu0 %5934  ;;  %1962 = vmatpush.msra.mxu1 %v952_v49  ;;  %v12243_v46 = vunpack.i.l.bf16 %v7895_v6  ;;  %v887_v49 = vsel %vm12265_vm11, %v5807_v41, %v5811_v30  ;;  %v12246_v41 = vunpack.i.l.bf16 %v7870_v9  ;;  %v12245_v50 = vunpack.i.l.bf16 %v7721_v48 }
 0x1a1   : > { %2078 = vmatpush.msrb.mxu0 %v953_v7  ;;  %v888_v7 = vsel %vm12265_vm11, %v5811_v30, %v12528_v3  ;;  %v5736_v28 = vunpack.i.l.bf16 %v7709_v45 }
 0x1a2   : > { %1963 = vmatpush.msra.mxu1 %v948_v0  ;;  %v5772_v0 = vunpack.i.h.bf16 %v7872_v60  ;;  %v884_v30 = vsel %vm12265_vm11, %v5797_v35, %v12243_v46  ;;  %v843_v35 = vsel %vm12280_vm12, %v5786_v15, %v5787_v26 }
 0x1a3   : > { %2079 = vmatpush.msrb.mxu0 %v949_v17  ;;  %v1690_v17 = vld [vmem:[#allocation7 + $0x40] sm:$0xff] }
 0x1a4   : > { %1964 = vmatpush.msra.mxu1 %v887_v49  ;;  %6169 = vrot.lane.b32.xlu2 %v7983_v21, %s7265_s6  ;;  %v5761_v21 = vunpack.i.l.bf16 %v7840_v13  ;;  %v838_v46 = vsel %vm12280_vm12, %v5771_v20, %v5772_v0  ;;  %v839_v39 = vsel %vm12280_vm12, %v5772_v0, %v12246_v41  ;;  %v12250_v20 = vunpack.i.h.bf16 %v7709_v45 }
 0x1a5   : > { %2080 = vmatpush.msrb.mxu0 %v888_v7  ;;  %6164 = vrot.lane.b32.xlu1 %v7925_v24, %s7264_s23  ;;  %v5757_v7 = vunpack.i.h.bf16 %v7842_v47  ;;  %v5721_v0 = vunpack.i.l.bf16 %v7697_v42 }
 0x1a6   : > { %6159 = vrot.lane.b32.xlu0 %v8002_v33, %s7264_s23  ;;  %v8104_v49 = vpop.permute.xlu2 %6004  ;;  %1965 = vmatpush.msra.mxu1 %v883_v43  ;;  %v5747_v43 = vunpack.i.h.bf16 %v7795_v62 }
 0x1a7   : > { %12529 = vst [vmem:[#allocation63_spill] sm:$0xff] %v8104_v49  ;;  %2081 = vmatpush.msrb.mxu0 %v884_v30  ;;  %v8107_v3 = vpop.permute.xlu1 %5954  ;;  %v5746_v30 = vunpack.i.l.bf16 %v7795_v62  ;;  %v797_v15 = vsel %vm12286_vm13, %v5757_v7, %v5761_v21 }
 0x1a8   : > { %12530 = vst [vmem:[#allocation64_spill] sm:$0xff] %v8107_v3  ;;  %v8109_v60 = vpop.permute.xlu0 %5949  ;;  %1949 = vmatmul.f32.gmra.mxu0 %v1690_v17  ;;  %1966 = vmatpush.msra.mxu1 %v842_v27  ;;  %v5732_v27 = vunpack.i.h.bf16 %v7763_v55  ;;  %v12531_v17 = vunpack.i.h.bf16 %v7840_v13 }
 0x1a9   : > { %2082 = vmatpush.msrb.mxu0 %v843_v35  ;;  %v12249_v35 = vunpack.i.l.bf16 %v7765_v61 }
 0x1aa   : > { %1967 = vmatpush.msra.mxu1 %v838_v46  ;;  %v798_v62 = vsel %vm12286_vm13, %v5761_v21, %v12531_v17  ;;  %v5722_v46 = vunpack.i.h.bf16 %v7697_v42  ;;  %v1694_v21 = vld [vmem:[#allocation7 + $0x60] sm:$0xff]  ;;  %v794_v42 = vsel %vm12286_vm13, %v5747_v43, %v12245_v50  ;;  %v12248_v17 = vunpack.i.l.bf16 %v7948_v10 }
 0x1ab   : > { %2083 = vmatpush.msrb.mxu0 %v839_v39  ;;  %v793_v39 = vsel %vm12286_vm13, %v5746_v30, %v5747_v43  ;;  %v2410_v30 = vld [vmem:[%s7431_s8 + $0x38] sm:$0xff]  ;;  %v12247_v43 = vunpack.i.h.bf16 %v7936_v57  ;;  %v8161_v50 = vpack.i.bf16 %v7837_v56, %v7972_v22  ;;  %v12533_v56 = vunpack.i.h.bf16 %v7994_v34 }
 0x1ac   : > { %1968 = vmatpush.msra.mxu1 %v797_v15  ;;  %6184 = vrot.lane.b32.xlu2 %v8002_v33, %s7265_s6  ;;  %v2409_v33 = vld [vmem:[%s7431_s8 + $0x30] sm:$0xff] }
 0x1ad   : > { %2084 = vmatpush.msrb.mxu0 %v798_v62  ;;  %6179 = vrot.lane.b32.xlu1 %v7929_v37, %s7265_s6  ;;  %v732_v62 = vsel %vm12285_vm14, %v5732_v27, %v5736_v28  ;;  %v8163_v41 = vpack.i.bf16 %v2410_v30, %v2409_v33  ;;  %v729_v27 = vsel %vm12285_vm14, %v5722_v46, %v12249_v35 }
 0x1ae   : > { %v8138_v7 = vpop.permute.xlu2 %6019  ;;  %6174 = vrot.lane.b32.xlu0 %v7981_v31, %s7265_s6  ;;  %1969 = vmatpush.msra.mxu1 %v793_v39  ;;  %v733_v31 = vsel %vm12285_vm14, %v5736_v28, %v12250_v20  ;;  %v728_v39 = vsel %vm12285_vm14, %v5721_v0, %v5722_v46  ;;  %v12254_v28 = vunpack.i.l.bf16 %v7978_v18  ;;  %v1109_v0 = vsel %vm12273_vm7, %v12533_v56, %v12248_v17 }
 0x1af   : > { %v8146_v15 = vpop.permute.xlu1 %5969  ;;  %2085 = vmatpush.msrb.mxu0 %v794_v42  ;;  %v8168_v42 = vld [vmem:[#allocation7 + $0x8] sm:$0xff]  ;;  %v12253_v46 = vunpack.i.h.bf16 %v7963_v16  ;;  %v12252_v56 = vunpack.i.l.bf16 %v7950_v19 }
 0x1b0   : > { %v8148_v37 = vpop.permute.xlu0 %5964  ;;  %1970 = vmatpush.msra.mxu1 %v732_v62  ;;  %1952 = vmatmul.f32.gmra.mxu0 %v1694_v21  ;;  %v12534_v21 = vunpack.i.l.bf16 %v7936_v57 }
 0x1b1   : > { %12532 = vst [vmem:[#allocation65_spill] sm:$0xff] %v8148_v37  ;;  %2086 = vmatpush.msrb.mxu0 %v733_v31  ;;  %v8196_v31 = vld [vmem:[%s7431_s8 + $0x80] sm:$0xff]  ;;  %v12552_v37 = vunpack.i.l.bf16 %v7948_v10 }
 0x1b2   : > { %1971 = vmatpush.msra.mxu1 %v728_v39  ;;  %v1105_v33 = vsel %vm12273_vm7, %v12534_v21, %v12247_v43  ;;  %v2415_v39 = vld [vmem:[%s7431_s8 + $0x88] sm:$0xff]  ;;  %v12537_v43 = vunpack.i.l.bf16 %v7963_v16  ;;  %v8217_v35 = vpack.i.bf16 %v8196_v31, %v7832_v11  ;;  %v12258_v11 = vunpack.i.h.bf16 %v7868_v1 }
 0x1b3   : > { %2087 = vmatpush.msrb.mxu0 %v729_v27  ;;  %1972 = vmatmul.f32.vlgmr.msra.gmra.mxu1 %v8168_v42  ;;  %v2416_v27 = vld [vmem:[%s7431_s8 + $0x90] sm:$0xff] }
 0x1b4   : > { %6199 = vrot.lane.b32.xlu2 %v8163_v41, %s7240_s24  ;;  %v1040_v17 = vsel %vm12271_vm8, %v12537_v43, %v12253_v46  ;;  %v8219_v20 = vpack.i.bf16 %v2416_v27, %v2415_v39  ;;  %v12539_v39 = vunpack.i.l.bf16 %v7938_v44  ;;  %v12259_v46 = vunpack.i.l.bf16 %v7883_v8 }
 0x1b5   : > { %2188 = vmatpush.msra.mxu0 %v1109_v0  ;;  %6194 = vrot.lane.b32.xlu1 %v8161_v50, %s7240_s24  ;;  %v12536_v0 = vunpack.i.h.bf16 %v7915_v2 }
 0x1b6   : > { %v8187_v34 = vpop.permute.xlu2 %6034  ;;  %6189 = vrot.lane.b32.xlu0 %v7925_v24, %s7265_s6  ;;  %v12251_v24 = vunpack.i.h.bf16 %v7938_v44 }
 0x1b7   : > { %2189 = vmatpush.msra.mxu0 %v1105_v33  ;;  %v8191_v30 = vpop.permute.xlu1 %5984  ;;  %v1044_v21 = vsel %vm12271_vm8, %v12536_v0, %v12254_v28  ;;  %v8207_v33 = vld [vmem:[%s7431_s8 + $0x40] sm:$0xff]  ;;  %v12255_v0 = vunpack.i.l.bf16 %v7881_v59  ;;  %v12543_v28 = vunpack.i.h.bf16 %v7834_v29 }
 0x1b8   : > { %v8193_v62 = vpop.permute.xlu0 %5979  ;;  %2088 = vmatmul.f32.vlgmr.msrb.gmra.mxu0 %v8168_v42  ;;  %v8224_v2 = vpack.i.bf16 %v7913_v12, %v8207_v33 }
 0x1b9   : > { %12535 = vst [vmem:[#allocation66_spill] sm:$0xff] %v8193_v62  ;;  %2190 = vmatpush.msra.mxu0 %v1044_v21  ;;  %v12538_v21 = vunpack.i.h.bf16 %v7952_v53 }
 0x1bb   : > { %2191 = vmatpush.msra.mxu0 %v1040_v17  ;;  %v999_v43 = vsel %vm12267_vm9, %v12538_v21, %v12252_v56  ;;  %v995_v17 = vsel %vm12267_vm9, %v12539_v39, %v12251_v24  ;;  %v12257_v21 = vunpack.i.l.bf16 %v7905_v40  ;;  %v12256_v24 = vunpack.i.h.bf16 %v7895_v6 }
 0x1bc   : > { %6214 = vrot.lane.b32.xlu2 %v8219_v20, %s7240_s24 }
 0x1bd   : > { %2192 = vmatpush.msra.mxu0 %v999_v43  ;;  %6209 = vrot.lane.b32.xlu1 %v8217_v35, %s7240_s24  ;;  %v12541_v43 = vunpack.i.h.bf16 %v7919_v25  ;;  %v889_v25 = vsel %vm12265_vm11, %v12543_v28, %v12257_v21  ;;  %v5741_v21 = vunpack.i.l.bf16 %v7797_v58 }
 0x1be   : > { %v8242_v12 = vpop.permute.xlu2 %6049  ;;  %6204 = vrot.lane.b32.xlu0 %v8224_v2, %s7240_s24  ;;  %s12727_s24 = smov 17  }
 0x1bf   : > { %12540 = vst [vmem:[#allocation67_spill] sm:$0xff] %v8242_v12  ;;  %2193 = vmatpush.msra.mxu0 %v995_v17  ;;  %v8246_v53 = vpop.permute.xlu1 %5999  ;;  %v954_v39 = vsel %vm12266_vm10, %v12541_v43, %v12255_v0  ;;  %v12542_v17 = vunpack.i.l.bf16 %v7868_v1  ;;  %v12262_v43 = vunpack.i.h.bf16 %v7870_v9 }
 0x1c0   : > { %v8248_v27 = vpop.permute.xlu0 %5994 }
 0x1c1   : > { %2194 = vmatpush.msra.mxu0 %v954_v39  ;;  %v950_v56 = vsel %vm12266_vm10, %v12542_v17, %v12258_v11  ;;  %v12544_v39 = vunpack.i.l.bf16 %v7895_v6  ;;  %v12261_v17 = vunpack.i.l.bf16 %v7734_v52  ;;  %v12547_v11 = vunpack.i.h.bf16 %v7840_v13 }
 0x1c2   : > { %v5917_v13 = vunpack.i.h.bf16 %v7948_v10 }
 0x1c3   : > { %2195 = vmatpush.msra.mxu0 %v950_v56  ;;  %v885_v0 = vsel %vm12265_vm11, %v12544_v39, %v12256_v24  ;;  %v12260_v39 = vunpack.i.h.bf16 %v7721_v48  ;;  %v799_v63 = vsel %vm12286_vm13, %v12547_v11, %v12261_v17 }
 0x1c4   : > { %6229 = vrot.lane.b32.xlu2 %v8224_v2, %s7241_s29 }
 0x1c5   : > { %2196 = vmatpush.msra.mxu0 %v889_v25  ;;  %6224 = vrot.lane.b32.xlu1 %v8163_v41, %s7241_s29  ;;  %v844_v25 = vsel %vm12280_vm12, %v5787_v26, %v12259_v46  ;;  %v5727_v26 = vunpack.i.h.bf16 %v7765_v61 }
 0x1c6   : > { %v8278_v56 = vpop.permute.xlu2 %6064  ;;  %6219 = vrot.lane.b32.xlu0 %v8161_v50, %s7241_s29 }
 0x1c7   : > { %2197 = vmatpush.msra.mxu0 %v885_v0  ;;  %v8282_v29 = vpop.permute.xlu1 %6014  ;;  %v12546_v0 = vunpack.i.l.bf16 %v7870_v9 }
 0x1c8   : > { %12545 = vst [vmem:[#allocation68_spill] sm:$0xff] %v8282_v29  ;;  %v8284_v28 = vpop.permute.xlu0 %6009  ;;  %v1110_v29 = vsel %vm12273_vm7, %v12552_v37, %v5917_v13  ;;  %v5842_v13 = vunpack.i.h.bf16 %v7881_v59 }
 0x1c9   : > { %2198 = vmatpush.msra.mxu0 %v844_v25  ;;  %v840_v24 = vsel %vm12280_vm12, %v12546_v0, %v12262_v43  ;;  %v12548_v25 = vunpack.i.l.bf16 %v7721_v48  ;;  %v5892_v43 = vunpack.i.h.bf16 %v7978_v18 }
 0x1cb   : > { %2199 = vmatpush.msra.mxu0 %v840_v24  ;;  %v795_v46 = vsel %vm12286_vm13, %v12548_v25, %v12260_v39  ;;  %v5906_v39 = vunpack.i.l.bf16 %v7996_v38 }
 0x1cc   : > { %6244 = vrot.lane.b32.xlu2 %v8161_v50, %s7242_s26 }
 0x1cd   : > { %2200 = vmatpush.msra.mxu0 %v799_v63  ;;  %6239 = vrot.lane.b32.xlu1 %v8219_v20, %s7241_s29  ;;  %v12550_v63 = vunpack.i.h.bf16 %v7709_v45  ;;  %v5881_v45 = vunpack.i.l.bf16 %v7961_v23  ;;  %v12554_v23 = vunpack.i.l.bf16 %v7978_v18 }
 0x1ce   : > { %v8314_v24 = vpop.permute.xlu2 %6079  ;;  %6234 = vrot.lane.b32.xlu0 %v8217_v35, %s7241_s29  ;;  %s12751_s29 = smov 46  }
 0x1cf   : > { %2201 = vmatpush.msra.mxu0 %v795_v46  ;;  %v8319_v11 = vpop.permute.xlu1 %6029  ;;  %v734_v25 = vsel %vm12285_vm14, %v12550_v63, %v5741_v21  ;;  %v12551_v46 = vunpack.i.l.bf16 %v7765_v61  ;;  %v12553_v63 = vunpack.i.h.bf16 %v7936_v57  ;;  %v1045_v57 = vsel %vm12271_vm8, %v12554_v23, %v5892_v43 }
 0x1d0   : > { %v8321_v0 = vpop.permute.xlu0 %6024  ;;  %v5831_v43 = vunpack.i.l.bf16 %v7921_v32  ;;  %v12558_v32 = vunpack.i.l.bf16 %v7881_v59 }
 0x1d1   : > { %12549 = vst [vmem:[#allocation69_spill] sm:$0xff] %v8321_v0  ;;  %2202 = vmatpush.msra.mxu0 %v734_v25  ;;  %v730_v17 = vsel %vm12285_vm14, %v12551_v46, %v5727_v26  ;;  %v1106_v38 = vsel %vm12273_vm7, %v12553_v63, %v5906_v39  ;;  %v5867_v46 = vunpack.i.h.bf16 %v7950_v19  ;;  %v12556_v63 = vunpack.i.l.bf16 %v7950_v19 }
 0x1d2   : > { %vm1257_vm7 = vcmask 457728  }
 0x1d3   : > { %2203 = vmatpush.msra.mxu0 %v730_v17  ;;  %v12555_v17 = vunpack.i.h.bf16 %v7963_v16  ;;  %v1000_v18 = vsel %vm12267_vm9, %v12556_v63, %v5867_v46  ;;  %v12560_v63 = vunpack.i.l.bf16 %v7905_v40 }
 0x1d4   : > { %6259 = vrot.lane.b32.xlu2 %v8217_v35, %s7242_s26 }
 0x1d5   : > { %2304 = vmatpush.msrb.mxu0 %v1110_v29  ;;  %6254 = vrot.lane.b32.xlu1 %v8224_v2, %s7242_s26  ;;  %v5856_v29 = vunpack.i.l.bf16 %v7891_v4  ;;  %v1041_v39 = vsel %vm12271_vm8, %v12555_v17, %v5881_v45  ;;  %v5817_v4 = vunpack.i.h.bf16 %v7905_v40  ;;  %v12559_v17 = vunpack.i.h.bf16 %v7868_v1 }
 0x1d6   : > { %v8344_v25 = vpop.permute.xlu2 %6094  ;;  %6249 = vrot.lane.b32.xlu0 %v8163_v41, %s7242_s26  ;;  %v12562_v40 = vunpack.i.l.bf16 %v7883_v8  ;;  %vm1302_vm8 = vcmask 449536  }
 0x1d7   : > { %2305 = vmatpush.msrb.mxu0 %v1106_v38  ;;  %v8354_v10 = vpop.permute.xlu1 %6044  ;;  %v12557_v38 = vunpack.i.h.bf16 %v7938_v44  ;;  %v955_v44 = vsel %vm12266_vm10, %v12558_v32, %v5842_v13  ;;  %v5792_v13 = vunpack.i.h.bf16 %v7883_v8  ;;  %v5756_v32 = vunpack.i.l.bf16 %v7842_v47 }
 0x1d8   : > { %v8356_v37 = vpop.permute.xlu0 %6039 }
 0x1d9   : > { %2306 = vmatpush.msrb.mxu0 %v1045_v57  ;;  %v996_v23 = vsel %vm12267_vm9, %v12557_v38, %v5856_v29  ;;  %v5806_v29 = vunpack.i.l.bf16 %v7893_v5  ;;  %v5781_v38 = vunpack.i.l.bf16 %v7759_v51  ;;  %v12561_v5 = vunpack.i.h.bf16 %v7895_v6 }
 0x1da   : > { %v845_v51 = vsel %vm12280_vm12, %v12562_v40, %v5792_v13  ;;  %v12565_v13 = vunpack.i.h.bf16 %v7721_v48  ;;  %vm12301_vm9 = vcmask 441344  }
 0x1db   : > { %2307 = vmatpush.msrb.mxu0 %v1041_v39  ;;  %v951_v39 = vsel %vm12266_vm10, %v12559_v17, %v5831_v43  ;;  %v886_v1 = vsel %vm12265_vm11, %v12561_v5, %v5806_v29  ;;  %v5742_v17 = vunpack.i.h.bf16 %v7797_v58  ;;  %v6097_v58 = vunpack.i.h.bf16 %v8344_v25  ;;  %v8472_v5 = vld [vmem:[%s7431_s8 + $0x78] sm:$0xff] }
 0x1dc   : > { %6274 = vrot.lane.b32.xlu2 %v8163_v41, %s7243_s13  ;;  %vm12299_vm10 = vcmask 375808  }
 0x1dd   : > { %2308 = vmatpush.msrb.mxu0 %v1000_v18  ;;  %6269 = vrot.lane.b32.xlu1 %v8161_v50, %s7243_s13  ;;  %v890_v18 = vsel %vm12265_vm11, %v12560_v63, %v5817_v4  ;;  %v796_v63 = vsel %vm12286_vm13, %v12565_v13, %v5756_v32  ;;  %vm1457_vm11 = vcmask 367616   ;;  %v6047_v13 = vunpack.i.h.bf16 %v8354_v10 }
 0x1de   : > { %v8372_v16 = vpop.permute.xlu2 %6109  ;;  %6264 = vrot.lane.b32.xlu0 %v8219_v20, %s7242_s26  ;;  %s12767_s26 = smov 18  }
 0x1df   : > { %2309 = vmatpush.msrb.mxu0 %v996_v23  ;;  %v8382_v19 = vpop.permute.xlu1 %6059  ;;  %v12281_v45 = vunpack.i.h.bf16 %v8372_v16  ;;  %v6111_v46 = vunpack.i.l.bf16 %v8372_v16  ;;  %v5767_v23 = vunpack.i.h.bf16 %v7734_v52 }
 0x1e0   : > { %v8386_v57 = vpop.permute.xlu0 %6054 }
 0x1e1   : > { %2310 = vmatpush.msrb.mxu0 %v955_v44  ;;  %v1508_v59 = vsel %vm1502_vm15, %v6111_v46, %v12281_v45  ;;  %v12563_v44 = vunpack.i.h.bf16 %v7870_v9  ;;  %v8447_v9 = vld [vmem:[%s7431_s8 + $0x28] sm:$0xff] }
 0x1e2   : > { %2101 = vmatpush.msrb.mxu1 %v1508_v59  ;;  %v5731_v59 = vunpack.i.l.bf16 %v7763_v55  ;;  %12566 = vst [vmem:[#allocation70_spill] sm:$0xff] %v8447_v9 }
 0x1e3   : > { %2311 = vmatpush.msrb.mxu0 %v951_v39  ;;  %v841_v29 = vsel %vm12280_vm12, %v12563_v44, %v5781_v38  ;;  %v12564_v39 = vunpack.i.l.bf16 %v7734_v52  ;;  %v735_v52 = vsel %vm12285_vm14, %v5741_v21, %v5742_v17  ;;  %vm1192_vm12 = vcmask 48128  }
 0x1e4   : > { %6289 = vrot.lane.b32.xlu2 %v8219_v20, %s7243_s13 }
 0x1e5   : > { %2312 = vmatpush.msrb.mxu0 %v890_v18  ;;  %6284 = vrot.lane.b32.xlu1 %v8217_v35, %s7243_s13  ;;  %v800_v8 = vsel %vm12286_vm13, %v12564_v39, %v5767_v23  ;;  %v731_v18 = vsel %vm12285_vm14, %v5727_v26, %v5731_v59  ;;  %v6096_v26 = vunpack.i.l.bf16 %v8344_v25  ;;  %v12269_v39 = vunpack.i.h.bf16 %v8382_v19 }
 0x1e6   : > { %v8405_v43 = vpop.permute.xlu2 %6124  ;;  %6279 = vrot.lane.b32.xlu0 %v8224_v2, %s7243_s13  ;;  %v12268_v59 = vunpack.i.l.bf16 %v8242_v12  ;;  %vm12341_vm14 = vcmask 56320   ;;  %vm12316_vm13 = vcmask 277504   ;;  %s12780_s13 = smov 54  }
 0x1e7   : > { %2313 = vmatpush.msrb.mxu0 %v886_v1  ;;  %v8415_v6 = vpop.permute.xlu1 %6074  ;;  %v1503_v17 = vsel %vm1502_vm15, %v6096_v26, %v6097_v58 }
 0x1e8   : > { %v8417_v4 = vpop.permute.xlu0 %6069  ;;  %v12272_v32 = vunpack.i.l.bf16 %v8415_v6 }
 0x1e9   : > { %2314 = vmatpush.msrb.mxu0 %v845_v51  ;;  %v6072_v25 = vunpack.i.h.bf16 %v8417_v4 }
 0x1eb   : > { %2315 = vmatpush.msrb.mxu0 %v841_v29  ;;  %v8486_v29 = vpack.i.bf16 %v8196_v31, %v8472_v5  ;;  %v6061_v31 = vunpack.i.l.bf16 %v8382_v19 }
 0x1ec   : > { %6304 = vrot.lane.b32.xlu2 %v8224_v2, %s7244_s27 }
 0x1ed   : > { %2316 = vmatpush.msrb.mxu0 %v800_v8  ;;  %6299 = vrot.lane.b32.xlu1 %v8163_v41, %s7244_s27 }
 0x1ee   : > { %v8433_v47 = vpop.permute.xlu2 %6139  ;;  %6294 = vrot.lane.b32.xlu0 %v8161_v50, %s7244_s27  ;;  %v8454_v50 = vpack.i.bf16 %v8447_v9, %v7972_v22 }
 0x1ef   : > { %2317 = vmatpush.msrb.mxu0 %v796_v63  ;;  %v8442_v55 = vpop.permute.xlu1 %6089  ;;  %v6057_v63 = vunpack.i.h.bf16 %v8386_v57 }
 0x1f0   : > { %v8444_v48 = vpop.permute.xlu0 %6084 }
 0x1f1   : > { %2318 = vmatpush.msrb.mxu0 %v735_v52  ;;  %v12277_v1 = vunpack.i.h.bf16 %v8444_v48  ;;  %v6086_v23 = vunpack.i.l.bf16 %v8444_v48 }
 0x1f3   : > { %2319 = vmatpush.msrb.mxu0 %v731_v18  ;;  %v1463_v8 = vsel %vm1457_vm11, %v6086_v23, %v12277_v1  ;;  %v1459_v18 = vsel %vm1457_vm11, %v6072_v25, %v12272_v32 }
 0x1f4   : > { %6319 = vrot.lane.b32.xlu2 %v8454_v50, %s7245_s28 }
 0x1f5   : > { %6314 = vrot.lane.b32.xlu1 %v8219_v20, %s7244_s27 }
 0x1f6   : > { %6309 = vrot.lane.b32.xlu0 %v8217_v35, %s7244_s27  ;;  %v8465_v61 = vpop.permute.xlu2 %6154  ;;  %v6082_v35 = vunpack.i.h.bf16 %v8314_v24  ;;  %s12786_s27 = smov 55  }
 0x1f7   : > { %v8463_v21 = vpop.permute.xlu1 %6104 }
 0x1f8   : > { %v6107_v22 = vunpack.i.h.bf16 %v8463_v21  ;;  %v8469_v38 = vpop.permute.xlu0 %6099  ;;  %v1462_v52 = vsel %vm1457_vm11, %v6082_v35, %v6086_v23  ;;  %v12270_v23 = vunpack.i.h.bf16 %v8187_v34  ;;  %v8520_v35 = vld [vmem:[#allocation7 + $0x28] sm:$0xff] }
 0x1f9   : > { %v12278_v40 = vunpack.i.l.bf16 %v8469_v38  ;;  %1975 = vmatmul.f32.gmra.mxu1 %v8520_v35  ;;  %2091 = vmatmul.f32.gmra.mxu0 %v8520_v35 }
 0x1fa   : > { %v1507_v51 = vsel %vm1502_vm15, %v6107_v22, %v6111_v46  ;;  %v6071_v46 = vunpack.i.l.bf16 %v8417_v4  ;;  %v6046_v22 = vunpack.i.l.bf16 %v8354_v10  ;;  %v1414_v10 = vsel %vm12299_vm10, %v6047_v13, %v12268_v59 }
 0x1fb   : > { %1985 = vmatpush.msra.mxu2 %v1507_v51  ;;  %v1504_v44 = vsel %vm1502_vm15, %v6097_v58, %v12278_v40  ;;  %v5997_v59 = vunpack.i.h.bf16 %v8248_v27  ;;  %v5957_v40 = vunpack.i.h.bf16 %v8107_v3 }
 0x1fc   : > { %2102 = vmatpush.msrb.mxu1 %v1504_v44  ;;  %6334 = vrot.lane.b32.xlu2 %v8486_v29, %s7245_s28  ;;  %v1458_v51 = vsel %vm1457_vm11, %v6071_v46, %v6072_v25  ;;  %v1418_v44 = vsel %vm12299_vm10, %v6061_v31, %v12269_v39  ;;  %v6022_v25 = vunpack.i.h.bf16 %v8138_v7  ;;  %v6021_v46 = vunpack.i.l.bf16 %v8138_v7 }
 0x1fd   : > { %1986 = vmatpush.msra.mxu2 %v1503_v17  ;;  %6329 = vrot.lane.b32.xlu1 %v8224_v2, %s7245_s28  ;;  %v6036_v17 = vunpack.i.l.bf16 %v8187_v34 }
 0x1fe   : > { %2103 = vmatpush.msrb.mxu1 %v1463_v8  ;;  %6324 = vrot.lane.b32.xlu0 %v8163_v41, %s7245_s28  ;;  %v8510_v58 = vpop.permute.xlu2 %6169  ;;  %v6032_v8 = vunpack.i.h.bf16 %v8319_v11 }
 0x1ff   : > { %v8504_v4 = vpop.permute.xlu1 %6119  ;;  %1987 = vmatpush.msra.mxu2 %v1462_v52  ;;  %v1417_v52 = vsel %vm12299_vm10, %v6057_v63, %v6061_v31  ;;  %v6007_v31 = vunpack.i.h.bf16 %v8104_v49  ;;  %v12275_v63 = vunpack.i.h.bf16 %v8284_v28  ;;  %v1353_v7 = vsel %vm12301_vm9, %v6036_v17, %v12270_v23  ;;  %v12586_v49 = vld [vmem:[#allocation61_spill] sm:$0xff] }
 0x200   : > { %v8512_v26 = vpop.permute.xlu0 %6114  ;;  %2104 = vmatpush.msrb.mxu1 %v1459_v18  ;;  %v12276_v18 = vunpack.i.l.bf16 %v8321_v0  ;;  %v1348_v23 = vsel %vm12301_vm9, %v6021_v46, %v6022_v25 }
 0x201   : > { %1988 = vmatpush.msra.mxu2 %v1458_v51  ;;  %v1413_v51 = vsel %vm12299_vm10, %v6046_v22, %v6047_v13  ;;  %v1352_v22 = vsel %vm12301_vm9, %v6032_v8, %v6036_v17  ;;  %v8559_v17 = vld [vmem:[#allocation7 + $0x48] sm:$0xff]  ;;  %v12279_v8 = vunpack.i.h.bf16 %v8191_v30 }
 0x202   : > { %2105 = vmatpush.msrb.mxu1 %v1418_v44  ;;  %v6011_v44 = vunpack.i.l.bf16 %v8284_v28  ;;  %v1349_v39 = vsel %vm12301_vm9, %v6022_v25, %v12276_v18  ;;  %12567 = vst [vmem:[#allocation71_spill] sm:$0xff] %v8559_v17  ;;  %2094 = vmatmul.f32.gmra.mxu0 %v8559_v17  ;;  %v5986_v25 = vunpack.i.l.bf16 %v8191_v30  ;;  %v5961_v18 = vunpack.i.l.bf16 %v7991_v14 }
 0x203   : > { %1989 = vmatpush.msra.mxu2 %v1417_v52  ;;  %1978 = vmatmul.f32.gmra.mxu1 %v8559_v17  ;;  %v12584_v17 = vunpack.i.h.bf16 %v8382_v19 }
 0x204   : > { %2106 = vmatpush.msrb.mxu1 %v1414_v10  ;;  %6349 = vrot.lane.b32.xlu2 %v8163_v41, %s7246_s30  ;;  %v1307_v32 = vsel %vm1302_vm8, %v6007_v31, %v6011_v44  ;;  %v12283_v31 = vunpack.i.h.bf16 %v7991_v14 }
 0x205   : > { %6344 = vrot.lane.b32.xlu1 %v8454_v50, %s7246_s30  ;;  %1990 = vmatpush.msra.mxu2 %v1413_v51  ;;  %v12274_v51 = vunpack.i.l.bf16 %v8246_v53 }
 0x206   : > { %6339 = vrot.lane.b32.xlu0 %v8219_v20, %s7245_s28  ;;  %2107 = vmatpush.msrb.mxu1 %v1353_v7  ;;  %v8549_v52 = vpop.permute.xlu2 %6184  ;;  %v5996_v7 = vunpack.i.l.bf16 %v8248_v27  ;;  %v5982_v27 = vunpack.i.h.bf16 %v8193_v62  ;;  %v1198_v45 = vsel %vm1192_vm12, %v5961_v18, %v12283_v31  ;;  %v12579_v62 = vunpack.i.h.bf16 %v8372_v16  ;;  %s12794_s28 = smov 56  }
 0x207   : > { %v8546_v13 = vpop.permute.xlu1 %6134  ;;  %1991 = vmatpush.msra.mxu2 %v1352_v22  ;;  %v1308_v22 = vsel %vm1302_vm8, %v6011_v44, %v12275_v63  ;;  %v1304_v46 = vsel %vm1302_vm8, %v5997_v59, %v12274_v51  ;;  %v5971_v44 = vunpack.i.l.bf16 %v8146_v15  ;;  %v12568_v51 = vld [vmem:[#allocation58_spill] sm:$0xff]  ;;  %v12581_v16 = vunpack.i.l.bf16 %v8469_v38 }
 0x208   : > { %v8551_v10 = vpop.permute.xlu0 %6129  ;;  %2108 = vmatpush.msrb.mxu1 %v1349_v39  ;;  %v12284_v39 = vunpack.i.l.bf16 %v8025_v54  ;;  %v5947_v63 = vunpack.i.h.bf16 %v12568_v51 }
 0x209   : > { %1992 = vmatpush.msra.mxu2 %v1348_v23  ;;  %v5972_v23 = vunpack.i.h.bf16 %v8146_v15 }
 0x20a   : > { %2109 = vmatpush.msrb.mxu1 %v1308_v22  ;;  %v1263_v22 = vsel %vm1257_vm7, %v5986_v25, %v12279_v8 }
 0x20b   : > { %1993 = vmatpush.msra.mxu2 %v1307_v32  ;;  %v1303_v32 = vsel %vm1302_vm8, %v5996_v7, %v5997_v59  ;;  %v1262_v7 = vsel %vm1257_vm7, %v5982_v27, %v5986_v25  ;;  %v1259_v8 = vsel %vm1257_vm7, %v5972_v23, %v12284_v39  ;;  %v5936_v59 = vunpack.i.l.bf16 %v8070_v36  ;;  %v8609_v25 = vld [vmem:[#allocation7 + $0x68] sm:$0xff]  ;;  %v12571_v27 = vld [vmem:[#allocation57_spill] sm:$0xff]  ;;  %v12574_v39 = vld [vmem:[#allocation60_spill] sm:$0xff] }
 0x20c   : > { %2110 = vmatpush.msrb.mxu1 %v1304_v46  ;;  %6364 = vrot.lane.b32.xlu2 %v8219_v20, %s7246_s30  ;;  %12570 = vst [vmem:[#allocation72_spill] sm:$0xff] %v8609_v25  ;;  %v5922_v3 = vunpack.i.h.bf16 %v12574_v39 }
 0x20d   : > { %6359 = vrot.lane.b32.xlu1 %v8486_v29, %s7246_s30  ;;  %1994 = vmatpush.msra.mxu2 %v1303_v32  ;;  %v5946_v32 = vunpack.i.l.bf16 %v12568_v51  ;;  %v12572_v51 = vunpack.i.l.bf16 %v8109_v60 }
 0x20e   : > { %6354 = vrot.lane.b32.xlu0 %v8224_v2, %s7246_s30  ;;  %2111 = vmatpush.msrb.mxu1 %v1263_v22  ;;  %v8592_v15 = vpop.permute.xlu2 %6199  ;;  %v1258_v22 = vsel %vm1257_vm7, %v5971_v44, %v5972_v23  ;;  %v12573_v44 = vld [vmem:[#allocation59_spill] sm:$0xff]  ;;  %s12802_s30 = smov 6  }
 0x20f   : > { %v8588_v46 = vpop.permute.xlu1 %6149  ;;  %12569 = vst [vmem:[#allocation58_spill] sm:$0xff] %v8592_v15  ;;  %1995 = vmatpush.msra.mxu2 %v1262_v7  ;;  %v5932_v7 = vunpack.i.h.bf16 %v12571_v27  ;;  %v1194_v23 = vsel %vm1192_vm12, %v5947_v63, %v12572_v51  ;;  %1981 = vmatmul.f32.gmra.mxu1 %v8609_v25  ;;  %v1193_v51 = vsel %vm1192_vm12, %v5946_v32, %v5947_v63  ;;  %v12578_v27 = vunpack.i.l.bf16 %v8512_v26 }
 0x210   : > { %v8594_v1 = vpop.permute.xlu0 %6144  ;;  %2112 = vmatpush.msrb.mxu1 %v1259_v8  ;;  %v1197_v8 = vsel %vm1192_vm12, %v5957_v40, %v5961_v18  ;;  %2097 = vmatmul.f32.gmra.mxu0 %v8609_v25  ;;  %v8641_v40 = vld [vmem:[%s7431_s8 + $0x20] sm:$0xff]  ;;  %v12290_v25 = vunpack.i.l.bf16 %v8442_v55 }
 0x211   : > { %1996 = vmatpush.msra.mxu2 %v1258_v22  ;;  %v6186_v22 = vunpack.i.l.bf16 %v8549_v52  ;;  %v1152_v63 = vsel %vm12341_vm14, %v5932_v7, %v5936_v59  ;;  %v12580_v7 = vunpack.i.h.bf16 %v8549_v52 }
 0x212   : > { %2113 = vmatpush.msrb.mxu1 %v1198_v45  ;;  %v5921_v45 = vunpack.i.l.bf16 %v12574_v39  ;;  %v12575_v39 = vunpack.i.h.bf16 %v8070_v36 }
 0x213   : > { %1997 = vmatpush.msra.mxu2 %v1197_v8 }
 0x214   : > { %2114 = vmatpush.msrb.mxu1 %v1194_v23  ;;  %6379 = vrot.lane.b32.xlu2 %v8224_v2, %s7247_s9  ;;  %v1153_v8 = vsel %vm12341_vm14, %v5936_v59, %v12575_v39  ;;  %v12291_v2 = vunpack.i.h.bf16 %v8469_v38  ;;  %v8649_v39 = vld [vmem:[#allocation7 + $0x10] sm:$0xff]  ;;  %v8659_v59 = vpack.i.bf16 %v8447_v9, %v8641_v40 }
 0x215   : > { %6374 = vrot.lane.b32.xlu1 %v8163_v41, %s7247_s9  ;;  %1998 = vmatpush.msra.mxu2 %v1193_v51  ;;  %v1148_v51 = vsel %vm12341_vm14, %v5921_v45, %v5922_v3  ;;  %v12582_v45 = vunpack.i.h.bf16 %v8444_v48  ;;  %v6171_v48 = vunpack.i.l.bf16 %v8510_v58 }
 0x216   : > { %6369 = vrot.lane.b32.xlu0 %v8454_v50, %s7247_s9  ;;  %v8636_v23 = vpop.permute.xlu2 %6214  ;;  %2115 = vmatpush.msrb.mxu1 %v1153_v8  ;;  %v12577_v50 = vunpack.i.l.bf16 %v12573_v44  ;;  %v1509_v8 = vsel %vm1502_vm15, %v12579_v62, %v12578_v27  ;;  %v1505_v62 = vsel %vm1502_vm15, %v12581_v16, %v12291_v2  ;;  %v12296_v27 = vunpack.i.l.bf16 %v8278_v56  ;;  %v8704_v2 = vld [vmem:[#allocation7 + $0x30] sm:$0xff] }
 0x217   : > { %v8629_v31 = vpop.permute.xlu1 %6164  ;;  %12576 = vst [vmem:[#allocation59_spill] sm:$0xff] %v8636_v23  ;;  %1999 = vmatpush.msra.mxu2 %v1152_v63  ;;  %v1663_v63 = vsel %vm12316_vm13, %v6186_v22, %v12580_v7  ;;  %v8690_v7 = vld [vmem:[%s7431_s8 + $0x70] sm:$0xff] }
 0x218   : > { %v8638_v18 = vpop.permute.xlu0 %6159  ;;  %v1149_v32 = vsel %vm12341_vm14, %v5922_v3, %v12577_v50  ;;  %v12294_v3 = vunpack.i.h.bf16 %v8415_v6  ;;  %v1464_v50 = vsel %vm1457_vm11, %v12582_v45, %v12290_v25  ;;  %2204 = vmatmul.f32.vlgmr.msra.gmra.mxu0 %v8168_v42  ;;  %v8715_v42 = vpack.i.bf16 %v8690_v7, %v8207_v33 }
 0x219   : > { %2116 = vmatpush.msrb.mxu1 %v1149_v32  ;;  %2000 = vmatpush.msra.mxu2 %v1148_v51  ;;  %v6172_v32 = vunpack.i.h.bf16 %v8510_v58  ;;  %v6161_v25 = vunpack.i.l.bf16 %v8638_v18  ;;  %v12587_v33 = vunpack.i.h.bf16 %v8242_v12 }
 0x21a   : > { %2001 = vmatmul.f32.vlgmr.msra.gmra.mxu2 %v8649_v39  ;;  %2117 = vmatmul.f32.vlgmr.msrb.gmra.mxu1 %v8649_v39 }
 0x21b   : > { %2217 = vmatpush.msra.mxu1 %v1509_v8  ;;  %2140 = vmatpush.msrb.mxu2 %v1663_v63  ;;  %v12583_v63 = vunpack.i.l.bf16 %v8415_v6 }
 0x21c   : > { %6394 = vrot.lane.b32.xlu2 %v8659_v59, %s7248_s10 }
 0x21d   : > { %2218 = vmatpush.msra.mxu1 %v1505_v62  ;;  %6389 = vrot.lane.b32.xlu1 %v8219_v20, %s7247_s9  ;;  %v1460_v16 = vsel %vm1457_vm11, %v12583_v63, %v12294_v3  ;;  %v1419_v63 = vsel %vm12299_vm10, %v12584_v17, %v12296_v27  ;;  %v12590_v17 = vunpack.i.l.bf16 %v8356_v37 }
 0x21e   : > { %6384 = vrot.lane.b32.xlu0 %v8486_v29, %s7247_s9  ;;  %v8687_v8 = vpop.permute.xlu2 %6229  ;;  %s12812_s9 = smov 36  }
 0x21f   : > { %2219 = vmatpush.msra.mxu1 %v1464_v50  ;;  %v8685_v51 = vpop.permute.xlu1 %6179  ;;  %v12591_v50 = vunpack.i.h.bf16 %v8187_v34  ;;  %v12592_v34 = vunpack.i.h.bf16 %v8638_v18 }
 0x220   : > { %v6182_v62 = vunpack.i.h.bf16 %v8685_v51  ;;  %v8699_v45 = vpop.permute.xlu0 %6174  ;;  %2207 = vmatmul.f32.gmra.mxu0 %v8520_v35  ;;  %v12603_v35 = vunpack.i.h.bf16 %v8246_v53 }
 0x221   : > { %2220 = vmatpush.msra.mxu1 %v1460_v16  ;;  %v12585_v58 = vunpack.i.l.bf16 %v8699_v45  ;;  %v12302_v16 = vunpack.i.l.bf16 %v8588_v46  ;;  %v1354_v9 = vsel %vm12301_vm9, %v12591_v50, %v12590_v17  ;;  %v12594_v17 = vunpack.i.l.bf16 %v8321_v0 }
 0x222   : > { %v1662_v3 = vsel %vm12316_vm13, %v6182_v62, %v6186_v22  ;;  %v6157_v22 = vunpack.i.h.bf16 %v8465_v61  ;;  %2004 = vmatmul.f32.gmra.mxu2 %v8704_v2  ;;  %v12588_v62 = vunpack.i.l.bf16 %v8242_v12  ;;  %2120 = vmatmul.f32.gmra.mxu1 %v8704_v2 }
 0x223   : > { %2221 = vmatpush.msra.mxu1 %v1419_v63  ;;  %2024 = vmatpush.msra.mxu3 %v1662_v3  ;;  %v1659_v19 = vsel %vm12316_vm13, %v6172_v32, %v12585_v58  ;;  %v12589_v63 = vld [vmem:[#allocation68_spill] sm:$0xff]  ;;  %v6147_v58 = vunpack.i.h.bf16 %v8594_v1 }
 0x224   : > { %v1415_v27 = vsel %vm12299_vm10, %v12588_v62, %v12587_v33  ;;  %2141 = vmatpush.msrb.mxu2 %v1659_v19  ;;  %v6146_v33 = vunpack.i.l.bf16 %v8594_v1  ;;  %6409 = vrot.lane.b32.xlu2 %v8486_v29, %s7248_s10  ;;  %v1658_v62 = vsel %vm12316_vm13, %v6171_v48, %v6172_v32  ;;  %vm1612_vm10 = vcmask 285696  }
 0x225   : > { %2222 = vmatpush.msra.mxu1 %v1415_v27  ;;  %6404 = vrot.lane.b32.xlu1 %v8715_v42, %s7248_s10  ;;  %v1618_v50 = vsel %vm1612_vm10, %v6161_v25, %v12592_v34  ;;  %v12593_v1 = vunpack.i.h.bf16 %v8321_v0  ;;  %v6122_v27 = vunpack.i.h.bf16 %v8504_v4  ;;  %v1617_v34 = vsel %vm1612_vm10, %v6157_v22, %v6161_v25  ;;  %v8781_v22 = vld [vmem:[#allocation7 + $0x50] sm:$0xff] }
 0x226   : > { %2025 = vmatpush.msra.mxu3 %v1658_v62  ;;  %v8759_v32 = vpop.permute.xlu2 %6244  ;;  %6399 = vrot.lane.b32.xlu0 %v8163_v41, %s7248_s10  ;;  %v1614_v48 = vsel %vm1612_vm10, %v6147_v58, %v12302_v16  ;;  %v1613_v25 = vsel %vm1612_vm10, %v6146_v33, %v6147_v58  ;;  %v12602_v58 = vunpack.i.h.bf16 %v8546_v13  ;;  %v12606_v19 = vunpack.i.h.bf16 %v8549_v52  ;;  %v12616_v52 = vld [vmem:[#allocation54_spill] sm:$0xff] }
 0x227   : > { %2223 = vmatpush.msra.mxu1 %v1354_v9  ;;  %v1350_v12 = vsel %vm12301_vm9, %v12594_v17, %v12593_v1  ;;  %v8757_v3 = vpop.permute.xlu1 %6194  ;;  %2142 = vmatpush.msrb.mxu2 %v1618_v50  ;;  %v6136_v1 = vunpack.i.l.bf16 %v8546_v13  ;;  %v6132_v17 = vunpack.i.h.bf16 %v8551_v10  ;;  %v12595_v50 = vunpack.i.l.bf16 %v12589_v63  ;;  %v12601_v63 = vld [vmem:[#allocation56_spill] sm:$0xff] }
 0x228   : > { %v8766_v62 = vpop.permute.xlu0 %6189  ;;  %2026 = vmatpush.msra.mxu3 %v1617_v34  ;;  %v12596_v9 = vunpack.i.h.bf16 %v8284_v28  ;;  %vm12348_vm9 = vcmask 293888   ;;  %v12598_v34 = vunpack.i.h.bf16 %v8757_v3 }
 0x229   : > { %2224 = vmatpush.msra.mxu1 %v1350_v12  ;;  %2143 = vmatpush.msrb.mxu2 %v1614_v48  ;;  %v12597_v12 = vunpack.i.l.bf16 %v8592_v15  ;;  %v12600_v48 = vld [vmem:[#allocation53_spill] sm:$0xff]  ;;  %v1573_v33 = vsel %vm12348_vm9, %v6136_v1, %v12602_v58  ;;  %v12607_v58 = vunpack.i.l.bf16 %v8405_v43 }
 0x22a   : > { %v1309_v0 = vsel %vm1302_vm8, %v12596_v9, %v12595_v50  ;;  %2027 = vmatpush.msra.mxu3 %v1613_v25  ;;  %v6121_v9 = vunpack.i.l.bf16 %v8504_v4  ;;  %v12604_v50 = vunpack.i.l.bf16 %v8246_v53  ;;  %2123 = vmatmul.f32.gmra.mxu1 %v8781_v22  ;;  %v1572_v4 = vsel %vm12348_vm9, %v6132_v17, %v6136_v1  ;;  %v12611_v25 = vld [vmem:[#allocation65_spill] sm:$0xff] }
 0x22b   : > { %v8789_v16 = vsel %vm372_vm6, %v12598_v34, %v12597_v12  ;;  %2225 = vmatpush.msra.mxu1 %v1309_v0  ;;  %2144 = vmatpush.msrb.mxu2 %v1573_v33  ;;  %v12605_v34 = vunpack.i.l.bf16 %v8766_v62  ;;  %v1569_v33 = vsel %vm12348_vm9, %v6122_v27, %v12607_v58  ;;  %v12612_v58 = vunpack.i.h.bf16 %v12601_v63 }
 0x22c   : > { %12599 = vst [vmem:[#allocation60_spill] sm:$0xff] %v8789_v16  ;;  %v1305_v12 = vsel %vm1302_vm8, %v12604_v50, %v12603_v35  ;;  %2007 = vmatmul.f32.gmra.mxu2 %v8781_v22  ;;  %v12608_v35 = vld [vmem:[#allocation51_spill] sm:$0xff]  ;;  %2028 = vmatpush.msra.mxu3 %v1572_v4  ;;  %v12613_v50 = vunpack.i.l.bf16 %v12601_v63 }
 0x22d   : > { %v1664_v0 = vsel %vm12316_vm13, %v12606_v19, %v12605_v34  ;;  %2226 = vmatpush.msra.mxu1 %v1305_v12  ;;  %2145 = vmatpush.msrb.mxu2 %v1569_v33  ;;  %v12609_v19 = vunpack.i.l.bf16 %v12586_v49  ;;  %v12610_v34 = vunpack.i.h.bf16 %v8191_v30  ;;  %v12615_v33 = vunpack.i.l.bf16 %v12600_v48 }
 0x22e   : > { %v688_v28 = vsel %vm12304_vm0, %v12613_v50, %v12612_v58  ;;  %v12617_v30 = vunpack.i.h.bf16 %v12616_v52  ;;  %6419 = vrot.lane.b32.xlu1 %v8659_v59, %s7249_s7  ;;  %6424 = vrot.lane.b32.xlu2 %v8163_v41, %s7249_s7  ;;  %v8844_v58 = vpop.permute.xlu2 %6259  ;;  %v12621_v52 = vunpack.i.l.bf16 %v8699_v45  ;;  %v8860_v50 = vld [vmem:[#allocation7 + $0x18] sm:$0xff] }
 0x22f   : > { %v1264_v12 = vsel %vm1257_vm7, %v12610_v34, %v12609_v19  ;;  %2256 = vmatpush.msra.mxu2 %v1664_v0  ;;  %v8829_v4 = vpop.permute.xlu1 %6209  ;;  %v1568_v0 = vsel %vm12348_vm9, %v6121_v9, %v6122_v27  ;;  %6414 = vrot.lane.b32.xlu0 %v8219_v20, %s7248_s10  ;;  %s12820_s10 = smov 7  }
 0x230   : > { %2227 = vmatpush.msra.mxu1 %v1264_v12  ;;  %12614 = vst [vmem:[#allocation61_spill] sm:$0xff] %v8829_v4  ;;  %v684_v19 = vsel %vm12304_vm0, %v12617_v30, %v12615_v33  ;;  %v6205_v17 = vpop.permute.xlu0 %6204  ;;  %2029 = vmatpush.msra.mxu3 %v1568_v0  ;;  %v12618_v33 = vunpack.i.h.bf16 %v8025_v54  ;;  %v12619_v30 = vunpack.i.l.bf16 %v8025_v54  ;;  %v12620_v12 = vunpack.i.h.bf16 %v8699_v45 }
 0x231   : > { %v6207_v27 = vunpack.i.h.bf16 %v6205_v17  ;;  %v6206_v9 = vunpack.i.l.bf16 %v6205_v17  ;;  %vm12362_vm0 = vcmask 392192   ;;  %v12622_v0 = vunpack.i.l.bf16 %v8636_v23  ;;  %v12625_v17 = vld [vmem:[#allocation40_spill] sm:$0xff] }
 0x232   : > { %v1260_v41 = vsel %vm1257_vm7, %v12619_v30, %v12618_v33  ;;  %2043 = vmatpush.msrb.mxu3 %v688_v28  ;;  %v1660_v1 = vsel %vm12316_vm13, %v12621_v52, %v12620_v12  ;;  %v12623_v16 = vunpack.i.h.bf16 %v8829_v4  ;;  %v12626_v28 = vunpack.i.l.bf16 %v12611_v25  ;;  %v8875_v12 = vld [vmem:[#allocation7 + $0x70] sm:$0xff] }
 0x233   : > { %2228 = vmatpush.msra.mxu1 %v1260_v41  ;;  %2257 = vmatpush.msra.mxu2 %v1660_v1  ;;  %v12627_v41 = vunpack.i.h.bf16 %v7991_v14  ;;  %v12628_v52 = vunpack.i.l.bf16 %v8829_v4  ;;  %v12635_v4 = vld [vmem:[#allocation37_spill] sm:$0xff]  ;;  %v6117_v30 = vunpack.i.h.bf16 %v8512_v26  ;;  %v12649_v14 = vunpack.i.l.bf16 %v8433_v47 }
 0x234   : > { %v8867_v33 = vsel %vm372_vm6, %v12623_v16, %v12622_v0  ;;  %5366 = vmatmul.msk.f32.vlgmr.msra.gmra.mxu3 %vm12362_vm0, %v8860_v50  ;;  %v12630_v16 = vunpack.i.h.bf16 %v8592_v15  ;;  %v12632_v0 = vld [vmem:[#allocation62_spill] sm:$0xff]  ;;  %2126 = vmatmul.f32.gmra.mxu1 %v8875_v12 }
 0x235   : > { %12624 = vst [vmem:[#allocation53_spill] sm:$0xff] %v8867_v33  ;;  %v1199_v34 = vsel %vm1192_vm12, %v12627_v41, %v12626_v28  ;;  %v8882_v23 = vsel %vm372_vm6, %v6207_v27, %v12628_v52  ;;  %2044 = vmatpush.msrb.mxu3 %v684_v19  ;;  %v12633_v28 = vunpack.i.l.bf16 %v8629_v31  ;;  %v12634_v41 = vunpack.i.h.bf16 %v8638_v18  ;;  %2010 = vmatmul.f32.gmra.mxu2 %v8875_v12 }
 0x236   : > { %12629 = vst [vmem:[#allocation56_spill] sm:$0xff] %v8882_v23  ;;  %v8887_v1 = vsel %vm372_vm6, %v12630_v16, %v6206_v9  ;;  %2229 = vmatpush.msra.mxu1 %v1199_v34  ;;  %v12636_v52 = vunpack.i.h.bf16 %v12608_v35  ;;  %v12637_v9 = vunpack.i.l.bf16 %v12608_v35  ;;  %v6231_v34 = vunpack.i.l.bf16 %v8687_v8  ;;  %6434 = vrot.lane.b32.xlu1 %v8486_v29, %s7249_s7 }
 0x237   : > { %12631 = vst [vmem:[#allocation51_spill] sm:$0xff] %v8887_v1  ;;  %v1619_v33 = vsel %vm1612_vm10, %v12634_v41, %v12633_v28  ;;  %v12638_v18 = vunpack.i.h.bf16 %v8109_v60  ;;  %v12639_v28 = vunpack.i.l.bf16 %v8109_v60  ;;  %v12640_v41 = vunpack.i.h.bf16 %v8588_v46  ;;  %v12644_v1 = vld [vmem:[#allocation49_spill] sm:$0xff]  ;;  %6439 = vrot.lane.b32.xlu2 %v8219_v20, %s7249_s7  ;;  %6429 = vrot.lane.b32.xlu0 %v8715_v42, %s7249_s7 }
 0x238   : > { %2258 = vmatpush.msra.mxu2 %v1619_v33  ;;  %v643_v16 = vsel %vm637_vm1, %v12637_v9, %v12636_v52  ;;  %v12641_v27 = vunpack.i.l.bf16 %v8588_v46  ;;  %v12642_v9 = vld [vmem:[#allocation48_spill] sm:$0xff]  ;;  %v12312_v19 = vunpack.i.h.bf16 %v8405_v43  ;;  %v12645_v15 = vunpack.i.h.bf16 %v12644_v1 }
 0x239   : > { %2045 = vmatpush.msrb.mxu3 %v643_v16  ;;  %v1195_v33 = vsel %vm1192_vm12, %v12639_v28, %v12638_v18  ;;  %v12643_v16 = vunpack.i.l.bf16 %v12625_v17  ;;  %v8924_v28 = vpop.permute.xlu1 %6224  ;;  %v12647_v23 = vunpack.i.l.bf16 %v12632_v0  ;;  %v6192_v1 = vunpack.i.h.bf16 %v8766_v62 }
 0x23a   : > { %v1615_v52 = vsel %vm1612_vm10, %v12641_v27, %v12640_v41  ;;  %2230 = vmatpush.msra.mxu1 %v1195_v33  ;;  %12646 = vst [vmem:[#allocation65_spill] sm:$0xff] %v8924_v28  ;;  %v12648_v27 = vunpack.i.h.bf16 %v8070_v36  ;;  %v12650_v33 = vunpack.i.h.bf16 %v8546_v13  ;;  %v6106_v36 = vunpack.i.l.bf16 %v8463_v21 }
 0x23b   : > { %2259 = vmatpush.msra.mxu2 %v1615_v52  ;;  %v639_v18 = vsel %vm637_vm1, %v12645_v15, %v12643_v16  ;;  %v12311_v15 = vunpack.i.h.bf16 %v8924_v28  ;;  %v8940_v16 = vpop.permute.xlu2 %6274  ;;  %v12653_v13 = vunpack.i.l.bf16 %v12635_v4  ;;  %v12655_v21 = vunpack.i.h.bf16 %v12573_v44 }
 0x23c   : > { %2046 = vmatpush.msrb.mxu3 %v639_v18  ;;  %v1154_v41 = vsel %vm12341_vm14, %v12648_v27, %v12647_v23  ;;  %v1574_v52 = vsel %vm12348_vm9, %v12650_v33, %v12649_v14  ;;  %12651 = vst [vmem:[#allocation54_spill] sm:$0xff] %v8940_v16  ;;  %v8942_v18 = vpop.permute.xlu0 %6219  ;;  %v12652_v23 = vunpack.i.h.bf16 %v12635_v4  ;;  %v12654_v27 = vld [vmem:[#allocation45_spill] sm:$0xff]  ;;  %v12658_v20 = vunpack.i.l.bf16 %v8405_v43 }
 0x23d   : > { %2231 = vmatpush.msra.mxu1 %v1154_v41  ;;  %2260 = vmatpush.msra.mxu2 %v1574_v52  ;;  %v12656_v41 = vunpack.i.l.bf16 %v12573_v44  ;;  %v12659_v33 = vunpack.i.l.bf16 %v8512_v26 }
 0x23e   : > { %v578_v14 = vsel %vm572_vm2, %v12653_v13, %v12652_v23  ;;  %v8965_v23 = vsel %vm417_vm5, %v12311_v15, %v6231_v34  ;;  %v6092_v13 = vunpack.i.h.bf16 %v8442_v55  ;;  %v1570_v42 = vsel %vm12348_vm9, %v12658_v20, %v12312_v19  ;;  %v12663_v15 = vld [vmem:[#allocation41_spill] sm:$0xff]  ;;  %v12665_v20 = vld [vmem:[#allocation34_spill] sm:$0xff]  ;;  %5370 = vmatmul.msk.f32.vlgmr.msrb.gmra.mxu2 %vm12362_vm0, %v8860_v50 }
 0x23f   : > { %v1150_v52 = vsel %vm12341_vm14, %v12656_v41, %v12655_v21  ;;  %12657 = vst [vmem:[#allocation40_spill] sm:$0xff] %v8965_v23  ;;  %2047 = vmatpush.msrb.mxu3 %v578_v14  ;;  %v1510_v29 = vsel %vm1502_vm15, %v12659_v33, %v6117_v30  ;;  %v12660_v21 = vunpack.i.l.bf16 %v8924_v28  ;;  %v12661_v41 = vunpack.i.h.bf16 %v8942_v18  ;;  %2261 = vmatpush.msra.mxu2 %v1570_v42  ;;  %v12667_v33 = vld [vmem:[#allocation38_spill] sm:$0xff] }
 0x240   : > { %2232 = vmatpush.msra.mxu1 %v1150_v52  ;;  %v12315_v14 = vunpack.i.l.bf16 %v12663_v15  ;;  %v6181_v52 = vunpack.i.l.bf16 %v8685_v51  ;;  %v12664_v23 = vunpack.i.l.bf16 %v12642_v9  ;;  %v12666_v19 = vunpack.i.h.bf16 %v12665_v20  ;;  %v12672_v20 = vld [vmem:[#allocation25_spill] sm:$0xff]  ;;  %6454 = vrot.lane.b32.xlu2 %v8659_v59, %s7254_s0 }
 0x241   : > { %v8981_v34 = vsel %vm417_vm5, %v12661_v41, %v12660_v21  ;;  %v8992_v30 = vpack.i.bf16 %v8472_v5, %v8690_v7  ;;  %v12319_v28 = vunpack.i.h.bf16 %v12667_v33  ;;  %v12668_v21 = vunpack.i.h.bf16 %v8469_v38  ;;  %2233 = vmatmul.f32.vlgmr.msra.gmra.mxu1 %v8649_v39 }
 0x242   : > { %12662 = vst [vmem:[#allocation62_spill] sm:$0xff] %v8981_v34  ;;  %2333 = vmatpush.msrb.mxu1 %v1510_v29  ;;  %v574_v26 = vsel %vm572_vm2, %v12666_v19, %v12664_v23  ;;  %v6081_v51 = vunpack.i.l.bf16 %v8314_v24  ;;  %v12669_v29 = vunpack.i.h.bf16 %v12654_v27  ;;  %v12670_v19 = vunpack.i.l.bf16 %v12654_v27 }
 0x243   : > { %2048 = vmatpush.msrb.mxu3 %v574_v26  ;;  %v1506_v41 = vsel %vm1502_vm15, %v12668_v21, %v6106_v36  ;;  %v12671_v42 = vunpack.i.l.bf16 %v8766_v62  ;;  %v6443_v36 = vpack.i.bf16 %v8690_v7, %v8641_v40  ;;  %v6167_v24 = vunpack.i.h.bf16 %v8629_v31  ;;  %v12675_v40 = vld [vmem:[#allocation42_spill] sm:$0xff]  ;;  %6449 = vrot.lane.b32.xlu1 %v8992_v30, %s7254_s0 }
 0x244   : > { %2334 = vmatpush.msrb.mxu1 %v1506_v41  ;;  %v533_v23 = vsel %vm527_vm3, %v12670_v19, %v12669_v29  ;;  %v6232_v21 = vunpack.i.h.bf16 %v8687_v8  ;;  %v12673_v41 = vunpack.i.l.bf16 %v8442_v55  ;;  %v9018_v19 = vpop.permute.xlu1 %6239  ;;  %v6067_v62 = vunpack.i.h.bf16 %v8278_v56 }
 0x245   : > { %v1665_v38 = vsel %vm12316_vm13, %v12671_v42, %v6192_v1  ;;  %2049 = vmatpush.msrb.mxu3 %v533_v23  ;;  %12674 = vst [vmem:[#allocation37_spill] sm:$0xff] %v9018_v19  ;;  %v12676_v7 = vunpack.i.h.bf16 %v12675_v40  ;;  %v12677_v42 = vunpack.i.h.bf16 %v8699_v45  ;;  %v12317_v55 = vunpack.i.l.bf16 %v9018_v19  ;;  %v9034_v23 = vpop.permute.xlu0 %6234  ;;  %v9040_v40 = vld [vmem:[#allocation7 + $0x38] sm:$0xff]  ;;  %6444 = vrot.lane.b32.xlu0 %v6443_v36, %s7250_s16  ;;  %v9060_v45 = vld [vmem:[%s7431_s8 + $0x30] sm:$0xff] }
 0x246   : > { %2372 = vmatpush.msrb.mxu2 %v1665_v38  ;;  %v1465_v29 = vsel %vm1457_vm11, %v12673_v41, %v6092_v13  ;;  %v9032_v13 = vpop.permute.xlu2 %6289  ;;  %v12679_v38 = vld [vmem:[#allocation24_spill] sm:$0xff]  ;;  %5367 = vmatmul.msk.f32.gmra.mxu3 %vm12362_vm0, %v9040_v40 }
 0x247   : > { %2335 = vmatpush.msrb.mxu1 %v1465_v29  ;;  %v529_v1 = vsel %vm527_vm3, %v12676_v7, %v12315_v14  ;;  %v1661_v8 = vsel %vm12316_vm13, %v12677_v42, %v6181_v52  ;;  %12678 = vst [vmem:[#allocation48_spill] sm:$0xff] %v9032_v13  ;;  %v6156_v29 = vunpack.i.l.bf16 %v8465_v61  ;;  %v12318_v52 = vunpack.i.l.bf16 %v9034_v23  ;;  %v12680_v7 = vld [vmem:[#allocation33_spill] sm:$0xff]  ;;  %5371 = vmatmul.msk.f32.gmra.mxu2 %vm12362_vm0, %v9040_v40 }
 0x248   : > { %2050 = vmatpush.msrb.mxu3 %v529_v1  ;;  %2373 = vmatpush.msrb.mxu2 %v1661_v8  ;;  %v6056_v14 = vunpack.i.l.bf16 %v8386_v57  ;;  %v12681_v61 = vunpack.i.h.bf16 %v8415_v6  ;;  %v12682_v8 = vunpack.i.l.bf16 %v12667_v33  ;;  %v6142_v42 = vunpack.i.h.bf16 %v8433_v47 }
 0x249   : > { %v12683_v57 = vunpack.i.l.bf16 %v8629_v31  ;;  %v9065_v6 = vsel %vm417_vm5, %v6232_v21, %v12318_v52  ;;  %v12686_v31 = vunpack.i.l.bf16 %v8278_v56  ;;  %vm12687_vm13 = vcmask 375808   ;;  %2236 = vmatmul.f32.gmra.mxu1 %v8704_v2 }
 0x24a   : > { %v1461_v1 = vsel %vm1457_vm11, %v12681_v61, %v6081_v51  ;;  %v488_v41 = vsel %vm482_vm4, %v12682_v8, %v12319_v28  ;;  %v12684_v51 = vunpack.i.h.bf16 %v9034_v23  ;;  %v12688_v61 = vunpack.i.l.bf16 %v12672_v20  ;;  %v12695_v28 = vld [vmem:[#allocation67_spill] sm:$0xff] }
 0x24b   : > { %2336 = vmatpush.msrb.mxu1 %v1461_v1  ;;  %2051 = vmatpush.msrb.mxu3 %v488_v41  ;;  %v1620_v26 = vsel %vm1612_vm10, %v12683_v57, %v6167_v24  ;;  %v6042_v41 = vunpack.i.h.bf16 %v8356_v37  ;;  %v1420_v24 = vsel %vm12687_vm13, %v12686_v31, %v6067_v62  ;;  %v12689_v1 = vld [vmem:[#allocation35_spill] sm:$0xff]  ;;  %v9084_v57 = vld [vmem:[%s7431_s8 + $0x80] sm:$0xff]  ;;  %v6131_v52 = vunpack.i.l.bf16 %v8551_v10 }
 0x24c   : > { %v9072_v36 = vsel %vm417_vm5, %v12684_v51, %v12317_v55  ;;  %2374 = vmatpush.msrb.mxu2 %v1620_v26  ;;  %v12690_v8 = vunpack.i.h.bf16 %v12689_v1  ;;  %v12691_v51 = vld [vmem:[#allocation29_spill] sm:$0xff]  ;;  %v12692_v56 = vunpack.i.h.bf16 %v8588_v46  ;;  %v12693_v62 = vunpack.i.h.bf16 %v12679_v38  ;;  %6464 = vrot.lane.b32.xlu1 %v8992_v30, %s7253_s11 }
 0x24d   : > { %12685 = vst [vmem:[#allocation49_spill] sm:$0xff] %v9072_v36  ;;  %2337 = vmatpush.msrb.mxu1 %v1420_v24  ;;  %v12694_v31 = vunpack.i.l.bf16 %v12679_v38  ;;  %v6031_v1 = vunpack.i.l.bf16 %v8319_v11  ;;  %v12696_v55 = vunpack.i.h.bf16 %v12695_v28  ;;  %v12697_v24 = vld [vmem:[#allocation70_spill] sm:$0xff] }
 0x24e   : > { %v484_v21 = vsel %vm482_vm4, %v12690_v8, %v12688_v61  ;;  %v1616_v26 = vsel %vm1612_vm10, %v12692_v56, %v6156_v29  ;;  %v9105_v46 = vpack.i.bf16 %v9060_v45, %v12697_v24  ;;  %v12699_v56 = vunpack.i.l.bf16 %v12680_v7 }
 0x24f   : > { %2052 = vmatpush.msrb.mxu3 %v484_v21  ;;  %v423_v61 = vsel %vm417_vm5, %v12694_v31, %v12693_v62  ;;  %2375 = vmatpush.msrb.mxu2 %v1616_v26  ;;  %v1416_v10 = vsel %vm12687_vm13, %v12696_v55, %v6056_v14  ;;  %v12698_v21 = vunpack.i.l.bf16 %v8433_v47  ;;  %v12700_v26 = vld [vmem:[#allocation23_spill] sm:$0xff]  ;;  %v9119_v55 = vpack.i.bf16 %v9084_v57, %v8472_v5  ;;  %v6255_v62 = vpop.permute.xlu1 %6254  ;;  %v12702_v31 = vld [vmem:[#allocation68_spill] sm:$0xff] }
 0x250   : > { %2338 = vmatpush.msrb.mxu1 %v1416_v10  ;;  %v12701_v28 = vunpack.i.h.bf16 %v12700_v26  ;;  %v6017_v24 = vunpack.i.h.bf16 %v12702_v31  ;;  %vm12704_vm13 = vcmask 441344   ;;  %v6256_v10 = vunpack.i.l.bf16 %v6255_v62  ;;  %v12706_v26 = vld [vmem:[#allocation30_spill] sm:$0xff]  ;;  %6469 = vrot.lane.b32.xlu2 %v9105_v46, %s7262_s15 }
 0x251   : > { %2053 = vmatpush.msrb.mxu3 %v423_v61  ;;  %v1575_v11 = vsel %vm12348_vm9, %v12698_v21, %v6142_v42  ;;  %v12703_v61 = vunpack.i.l.bf16 %v8356_v37  ;;  %v6257_v42 = vunpack.i.h.bf16 %v6255_v62  ;;  %v9127_v21 = vpop.permute.xlu2 %6304  ;;  %v12709_v62 = vld [vmem:[#allocation69_spill] sm:$0xff]  ;;  %6459 = vrot.lane.b32.xlu0 %v9119_v55, %s7262_s15 }
 0x252   : > { %v419_v14 = vsel %vm417_vm5, %v12701_v28, %v12699_v56  ;;  %2376 = vmatpush.msrb.mxu2 %v1575_v11  ;;  %v9129_v56 = vpop.permute.xlu0 %6249  ;;  %v12707_v28 = vunpack.i.h.bf16 %v8405_v43  ;;  %v12710_v8 = vunpack.i.h.bf16 %v12709_v62  ;;  %v12711_v43 = vunpack.i.l.bf16 %v8844_v58  ;;  %2239 = vmatmul.f32.gmra.mxu1 %v8781_v22 }
 0x253   : > { %v1355_v47 = vsel %vm12704_vm13, %v12703_v61, %v6042_v41  ;;  %12705 = vst [vmem:[#allocation45_spill] sm:$0xff] %v9129_v56  ;;  %2054 = vmatpush.msrb.mxu3 %v419_v14  ;;  %v12321_v37 = vunpack.i.h.bf16 %v9129_v56  ;;  %v12320_v41 = vunpack.i.l.bf16 %v9129_v56  ;;  %v12708_v61 = vld [vmem:[#allocation63_spill] sm:$0xff]  ;;  %v12712_v14 = vunpack.i.h.bf16 %v12691_v51 }
 0x254   : > { %2339 = vmatpush.msrb.mxu1 %v1355_v47  ;;  %v1571_v11 = vsel %vm12348_vm9, %v12707_v28, %v6131_v52  ;;  %v6006_v29 = vunpack.i.l.bf16 %v12708_v61  ;;  %v1351_v5 = vsel %vm12704_vm13, %v12710_v8, %v6031_v1  ;;  %v9143_v47 = vld [vmem:[#allocation7 + $0x58] sm:$0xff]  ;;  %v9148_v52 = vsel %vm482_vm4, %v6257_v42, %v12711_v43  ;;  %6479 = vrot.lane.b32.xlu1 %v9119_v55, %s7261_s17 }
 0x255   : > { %2377 = vmatpush.msrb.mxu2 %v1571_v11  ;;  %v12713_v28 = vunpack.i.l.bf16 %v12691_v51  ;;  %v12714_v1 = vunpack.i.h.bf16 %v8759_v32  ;;  %v9167_v42 = vsel %vm482_vm4, %v12321_v37, %v6256_v10  ;;  %v12716_v61 = vunpack.i.l.bf16 %v12702_v31  ;;  %5368 = vmatmul.msk.f32.gmra.mxu3 %vm12362_vm0, %v9143_v47  ;;  %v12720_v10 = vld [vmem:[#allocation55_spill] sm:$0xff]  ;;  %v6976_v31 = vld [vmem:[%s7431_s8 + $0x8] sm:$0xff] }
 0x256   : > { %2340 = vmatpush.msrb.mxu1 %v1351_v5  ;;  %12715 = vst [vmem:[#allocation41_spill] sm:$0xff] %v9167_v42  ;;  %v5992_v5 = vunpack.i.h.bf16 %v12586_v49  ;;  %v12717_v43 = vunpack.i.l.bf16 %v12706_v26  ;;  %vm12730_vm13 = vcmask 875520   ;;  %5372 = vmatmul.msk.f32.gmra.mxu2 %vm12362_vm0, %v9143_v47  ;;  %v12772_v56 = vunpack.i.l.bf16 %v12672_v20 }
 0x257   : > { %v378_v11 = vsel %vm372_vm6, %v12713_v28, %v12712_v14  ;;  %v9162_v8 = vsel %vm482_vm4, %v12714_v1, %v12320_v41  ;;  %v1310_v62 = vsel %vm1302_vm8, %v12716_v61, %v6017_v24  ;;  %v12718_v14 = vld [vmem:[#allocation27_spill] sm:$0xff]  ;;  %v12721_v24 = vunpack.i.h.bf16 %v8246_v53 }
 0x258   : > { %2055 = vmatpush.msrb.mxu3 %v378_v11  ;;  %2341 = vmatpush.msrb.mxu1 %v1310_v62  ;;  %v12719_v28 = vunpack.i.h.bf16 %v12718_v14  ;;  %v12722_v41 = vld [vmem:[#allocation71_spill] sm:$0xff]  ;;  %v12723_v62 = vld [vmem:[#allocation66_spill] sm:$0xff]  ;;  %v6975_v11 = vld [vmem:[%s7431_s8 + $0x58] sm:$0xff] }
 0x259   : > { %v1306_v61 = vsel %vm1302_vm8, %v12721_v24, %v6006_v29  ;;  %2210 = vmatmul.f32.gmra.mxu0 %v12722_v41  ;;  %v5981_v37 = vunpack.i.l.bf16 %v12723_v62  ;;  %v9200_v24 = vpop.permute.xlu2 %6319  ;;  %v12726_v14 = vld [vmem:[#allocation43_spill] sm:$0xff]  ;;  %6484 = vrot.lane.b32.xlu2 %v8992_v30, %s12727_s24  ;;  %v12731_v29 = vunpack.i.l.bf16 %v8940_v16 }
 0x25a   : > { %v374_v1 = vsel %vm372_vm6, %v12719_v28, %v12717_v43  ;;  %2342 = vmatpush.msrb.mxu1 %v1306_v61  ;;  %v9190_v43 = vpop.permute.xlu1 %6269  ;;  %v9202_v62 = vpop.permute.xlu0 %6264  ;;  %v5967_v61 = vunpack.i.h.bf16 %v12611_v25  ;;  %v12733_v28 = vld [vmem:[#allocation64_spill] sm:$0xff]  ;;  %6474 = vrot.lane.b32.xlu0 %v8659_v59, %s7253_s11 }
 0x25b   : > { %2056 = vmatpush.msrb.mxu3 %v374_v1  ;;  %v12724_v1 = vunpack.i.l.bf16 %v12586_v49  ;;  %12725 = vst [vmem:[#allocation34_spill] sm:$0xff] %v9202_v62  ;;  %v12728_v49 = vunpack.i.l.bf16 %v12720_v10  ;;  %v12732_v42 = vunpack.i.h.bf16 %v9190_v43  ;;  %2242 = vmatmul.f32.gmra.mxu1 %v8875_v12 }
 0x25c   : > { %6494 = vrot.lane.b32.xlu1 %v8659_v59, %s12727_s24 }
 0x25d   : > { %2057 = vmatpush.msrb.mxu3 %v6975_v11  ;;  %v1265_v53 = vsel %vm1257_vm7, %v12724_v1, %v5992_v5  ;;  %v12729_v5 = vunpack.i.h.bf16 %v12601_v63  ;;  %v5956_v11 = vunpack.i.l.bf16 %v12733_v28  ;;  %v9228_v63 = vld [vmem:[#allocation7 + $0x78] sm:$0xff]  ;;  %v12738_v28 = vunpack.i.h.bf16 %v12600_v48 }
 0x25e   : > { %2343 = vmatpush.msrb.mxu1 %v1265_v53  ;;  %v9220_v53 = vsel %vm527_vm3, %v12732_v42, %v12731_v29  ;;  %v12739_v29 = vunpack.i.l.bf16 %v12600_v48  ;;  %v12743_v42 = vunpack.i.h.bf16 %v12608_v35  ;;  %5369 = vmatmul.msk.f32.gmra.mxu3 %vm12362_vm0, %v9228_v63 }
 0x25f   : > { %2058 = vmatpush.msrb.mxu3 %v6976_v31  ;;  %v689_v1 = vsel %vm12730_vm13, %v12729_v5, %v12728_v49  ;;  %v12734_v31 = vunpack.i.h.bf16 %v8025_v54  ;;  %v12735_v49 = vunpack.i.l.bf16 %v9202_v62  ;;  %v12736_v5 = vunpack.i.h.bf16 %v8844_v58  ;;  %v12746_v62 = vld [vmem:[#allocation72_spill] sm:$0xff]  ;;  %5373 = vmatmul.msk.f32.gmra.mxu2 %vm12362_vm0, %v9228_v63 }
 0x260   : > { %v685_v54 = vsel %vm12730_vm13, %v12739_v29, %v12738_v28  ;;  %v12744_v29 = vld [vmem:[#allocation57_spill] sm:$0xff] }
 0x261   : > { %2159 = vmatpush.msra.mxu3 %v689_v1  ;;  %v1261_v19 = vsel %vm1257_vm7, %v12734_v31, %v5981_v37  ;;  %v9235_v36 = vsel %vm482_vm4, %v12736_v5, %v12735_v49  ;;  %v5942_v37 = vunpack.i.h.bf16 %v12632_v0  ;;  %v12740_v1 = vunpack.i.l.bf16 %v12611_v25  ;;  %v12741_v49 = vld [vmem:[#allocation50_spill] sm:$0xff]  ;;  %2213 = vmatmul.f32.gmra.mxu0 %v12746_v62  ;;  %v12750_v25 = vld [vmem:[#allocation44_spill] sm:$0xff] }
 0x262   : > { %12737 = vst [vmem:[#allocation38_spill] sm:$0xff] %v9235_v36  ;;  %2344 = vmatpush.msrb.mxu1 %v1261_v19  ;;  %v12742_v5 = vunpack.i.l.bf16 %v12726_v14  ;;  %v9264_v19 = vpop.permute.xlu1 %6284  ;;  %6499 = vrot.lane.b32.xlu2 %v9119_v55, %s12751_s29 }
 0x263   : > { %2160 = vmatpush.msra.mxu3 %v685_v54  ;;  %v1200_v31 = vsel %vm1192_vm12, %v12740_v1, %v5967_v61  ;;  %v5931_v54 = vunpack.i.l.bf16 %v12744_v29  ;;  %v12745_v1 = vunpack.i.h.bf16 %v8109_v60  ;;  %6489 = vrot.lane.b32.xlu0 %v9105_v46, %s7261_s17  ;;  %v12758_v61 = vunpack.i.h.bf16 %v8940_v16  ;;  %v6980_v16 = vld [vmem:[%s7431_s8 + $0x78] sm:$0xff] }
 0x264   : > { %2345 = vmatpush.msrb.mxu1 %v1200_v31  ;;  %v644_v28 = vsel %vm637_vm1, %v12743_v42, %v12742_v5  ;;  %v12747_v42 = vunpack.i.h.bf16 %v12625_v17  ;;  %v12748_v5 = vunpack.i.l.bf16 %v12625_v17  ;;  %6509 = vrot.lane.b32.xlu1 %v9105_v46, %s12751_s29 }
 0x265   : > { %2161 = vmatpush.msra.mxu3 %v644_v28  ;;  %v1196_v31 = vsel %vm1192_vm12, %v12745_v1, %v5956_v11  ;;  %v9276_v28 = vpop.permute.xlu2 %6334  ;;  %v9278_v11 = vpop.permute.xlu0 %6279  ;;  %v12749_v1 = vunpack.i.l.bf16 %v12632_v0  ;;  %v12754_v0 = vunpack.i.h.bf16 %v12573_v44  ;;  %v12761_v44 = vunpack.i.l.bf16 %v12642_v9 }
 0x266   : > { %2346 = vmatpush.msrb.mxu1 %v1196_v31  ;;  %v640_v29 = vsel %vm637_vm1, %v12748_v5, %v12747_v42  ;;  %v6281_v35 = vunpack.i.l.bf16 %v9278_v11  ;;  %v12752_v42 = vunpack.i.l.bf16 %v12741_v49  ;;  %v12753_v5 = vunpack.i.h.bf16 %v12635_v4 }
 0x267   : > { %2162 = vmatpush.msra.mxu3 %v640_v29  ;;  %v1155_v31 = vsel %vm12341_vm14, %v12749_v1, %v5942_v37  ;;  %v1151_v37 = vsel %vm12341_vm14, %v12754_v0, %v5931_v54  ;;  %v12755_v29 = vunpack.i.l.bf16 %v9032_v13  ;;  %v12756_v1 = vunpack.i.h.bf16 %v9264_v19  ;;  %5374 = vmatmul.msk.f32.vlgmr.msra.gmra.mxu2 %vm12362_vm0, %v8860_v50  ;;  %vm12789_vm14 = vmmov %vm12730_vm13 }
 0x268   : > { %2347 = vmatpush.msrb.mxu1 %v1155_v31  ;;  %v579_v60 = vsel %vm572_vm2, %v12753_v5, %v12752_v42  ;;  %v9307_v4 = vsel %vm527_vm3, %v12758_v61, %v6281_v35  ;;  %v12328_v42 = vunpack.i.h.bf16 %v12663_v15  ;;  %v12762_v5 = vld [vmem:[#allocation28_spill] sm:$0xff]  ;;  %v6306_v61 = vunpack.i.l.bf16 %v9127_v21 }
 0x269   : > { %2163 = vmatpush.msra.mxu3 %v579_v60  ;;  %v9302_v31 = vsel %vm527_vm3, %v12756_v1, %v12755_v29  ;;  %12759 = vst [vmem:[#allocation42_spill] sm:$0xff] %v9307_v4  ;;  %v12760_v60 = vunpack.i.h.bf16 %v12642_v9  ;;  %v12763_v35 = vunpack.i.l.bf16 %v12750_v25  ;;  %v9325_v1 = vld [vmem:[#allocation7] sm:$0xff]  ;;  %v12765_v0 = vunpack.i.l.bf16 %v12663_v15 }
 0x26a   : > { %12757 = vst [vmem:[#allocation25_spill] sm:$0xff] %v9302_v31  ;;  %2348 = vmatpush.msrb.mxu1 %v1151_v37  ;;  %v12764_v37 = vunpack.i.h.bf16 %v12654_v27  ;;  %2059 = vmatmul.f32.vlgmr.msrb.gmra.mxu3 %v9325_v1  ;;  %v12769_v13 = vunpack.i.h.bf16 %v12667_v33  ;;  %v12771_v4 = vunpack.i.h.bf16 %v12672_v20  ;;  %v6979_v33 = vld [vmem:[%s7431_s8 + $0x28] sm:$0xff]  ;;  %v12787_v31 = vld [vmem:[#allocation52_spill] sm:$0xff] }
 0x26b   : > { %v575_v54 = vsel %vm572_vm2, %v12761_v44, %v12760_v60  ;;  %v9328_v60 = vpop.permute.xlu1 %6299  ;;  %v6978_v44 = vld [vmem:[#allocation7 + $0x8] sm:$0xff]  ;;  %v530_v27 = vsel %vm527_vm3, %v12765_v0, %v12328_v42  ;;  %6514 = vrot.lane.b32.xlu2 %v8659_v59, %s12767_s26  ;;  %6504 = vrot.lane.b32.xlu0 %v8992_v30, %s12767_s26 }
 0x26c   : > { %2164 = vmatpush.msra.mxu3 %v575_v54  ;;  %v534_v29 = vsel %vm527_vm3, %v12764_v37, %v12763_v35  ;;  %2320 = vmatmul.f32.vlgmr.msrb.gmra.mxu0 %v6978_v44  ;;  %v12333_v35 = vunpack.i.h.bf16 %v9328_v60  ;;  %v12766_v44 = vld [vmem:[#allocation36_spill] sm:$0xff]  ;;  %v12768_v54 = vunpack.i.l.bf16 %v12762_v5  ;;  %v485_v36 = vsel %vm482_vm4, %v12772_v56, %v12771_v4  ;;  %v6982_v56 = vld [vmem:[#allocation7 + $0x28] sm:$0xff] }
 0x26d   : > { %v9339_v37 = vpop.permute.xlu2 %6349  ;;  %2349 = vmatmul.f32.vlgmr.msrb.gmra.mxu1 %v8649_v39  ;;  %v12777_v39 = vunpack.i.h.bf16 %v12680_v7  ;;  %v12778_v4 = vunpack.i.l.bf16 %v12680_v7 }
 0x26e   : > { %2165 = vmatpush.msra.mxu3 %v534_v29  ;;  %v9341_v29 = vpop.permute.xlu0 %6294  ;;  %v489_v0 = vsel %vm482_vm4, %v12769_v13, %v12768_v54  ;;  %v9354_v42 = vsel %vm572_vm2, %v12333_v35, %v6306_v61  ;;  %v6523_v13 = vpack.i.bf16 %v6979_v33, %v6980_v16  ;;  %v12773_v61 = vld [vmem:[#allocation22_spill] sm:$0xff]  ;;  %v12775_v35 = vunpack.i.h.bf16 %v12679_v38 }
 0x26f   : > { %12770 = vst [vmem:[#allocation24_spill] sm:$0xff] %v9354_v42  ;;  %v12336_v54 = vunpack.i.l.bf16 %v12773_v61  ;;  %v9375_v42 = vld [vmem:[#allocation7 + $0x20] sm:$0xff]  ;;  %v420_v33 = vsel %vm417_vm5, %v12778_v4, %v12777_v39  ;;  %v12783_v4 = vunpack.i.l.bf16 %v12706_v26  ;;  %5375 = vmatmul.msk.f32.gmra.mxu2 %vm12362_vm0, %v9040_v40 }
 0x270   : > { %2166 = vmatpush.msra.mxu3 %v530_v27  ;;  %6524 = vrot.lane.b32.xlu1 %v6523_v13, %s7250_s16 }
 0x272   : > { %2167 = vmatpush.msra.mxu3 %v489_v0  ;;  %v12774_v0 = vunpack.i.l.bf16 %v12766_v44 }
 0x273   : > { %2062 = vmatmul.f32.gmra.mxu3 %v9375_v42  ;;  %v9378_v16 = vpop.permute.xlu1 %6314  ;;  %6529 = vrot.lane.b32.xlu2 %v9105_v46, %s12780_s13 }
 0x274   : > { %2168 = vmatpush.msra.mxu3 %v485_v36  ;;  %v424_v27 = vsel %vm417_vm5, %v12775_v35, %v12774_v0  ;;  %12776 = vst [vmem:[#allocation33_spill] sm:$0xff] %v9378_v16  ;;  %2323 = vmatmul.f32.gmra.mxu0 %v6982_v56  ;;  %v12337_v36 = vunpack.i.h.bf16 %v12706_v26  ;;  %v12334_v38 = vunpack.i.l.bf16 %v9378_v16  ;;  %v12781_v56 = vunpack.i.h.bf16 %v12691_v51  ;;  %v6985_v16 = vld [vmem:[%s7431_s8 + $0x10] sm:$0xff] }
 0x275   : > { %v9388_v35 = vpop.permute.xlu2 %6364  ;;  %6519 = vrot.lane.b32.xlu0 %v9119_v55, %s12780_s13  ;;  %v5717_v51 = vunpack.i.h.bf16 %v12720_v10  ;;  %2352 = vmatmul.f32.gmra.mxu1 %v8704_v2 }
 0x276   : > { %2169 = vmatpush.msra.mxu3 %v424_v27  ;;  %12779 = vst [vmem:[#allocation35_spill] sm:$0xff] %v9388_v35  ;;  %v9390_v0 = vpop.permute.xlu0 %6309  ;;  %v379_v39 = vsel %vm372_vm6, %v12781_v56, %v12336_v54  ;;  %v9418_v56 = vld [vmem:[#allocation7 + $0x40] sm:$0xff]  ;;  %v12788_v35 = vunpack.i.h.bf16 %v12600_v48  ;;  %v12792_v48 = vld [vmem:[#allocation47_spill] sm:$0xff] }
 0x277   : > { %v12335_v27 = vunpack.i.h.bf16 %v9390_v0  ;;  %5376 = vmatmul.msk.f32.gmra.mxu2 %vm12362_vm0, %v9143_v47 }
 0x278   : > { %2170 = vmatpush.msra.mxu3 %v420_v33  ;;  %v375_v33 = vsel %vm372_vm6, %v12783_v4, %v12337_v36  ;;  %6539 = vrot.lane.b32.xlu1 %v9119_v55, %s7265_s6  ;;  %v5692_v36 = vunpack.i.h.bf16 %v12726_v14 }
 0x279   : > { %v9407_v13 = vsel %vm572_vm2, %v12335_v27, %v12334_v38  ;;  %v6984_v27 = vld [vmem:[%s7431_s8 + $0x60] sm:$0xff] }
 0x27a   : > { %2171 = vmatpush.msra.mxu3 %v379_v39  ;;  %12782 = vst [vmem:[#allocation29_spill] sm:$0xff] %v9407_v13  ;;  %v12784_v39 = vld [vmem:[#allocation46_spill] sm:$0xff]  ;;  %v5681_v13 = vunpack.i.l.bf16 %v12787_v31  ;;  %v12791_v31 = vunpack.i.l.bf16 %v12726_v14 }
 0x27b   : > { %2065 = vmatmul.f32.gmra.mxu3 %v9418_v56  ;;  %v5706_v38 = vunpack.i.l.bf16 %v12784_v39  ;;  %v9423_v54 = vpop.permute.xlu1 %6329  ;;  %6544 = vrot.lane.b32.xlu2 %v9105_v46, %s12786_s27 }
 0x27c   : > { %2172 = vmatpush.msra.mxu3 %v375_v33  ;;  %2326 = vmatmul.f32.gmra.mxu0 %v12722_v41  ;;  %v6331_v4 = vunpack.i.l.bf16 %v9423_v54 }
 0x27d   : > { %v9429_v33 = vpop.permute.xlu2 %6379  ;;  %6534 = vrot.lane.b32.xlu0 %v9119_v55, %s12786_s27  ;;  %v686_v34 = vsel %vm12789_vm14, %v12788_v35, %v5706_v38  ;;  %2355 = vmatmul.f32.gmra.mxu1 %v8781_v22  ;;  %v5656_v38 = vunpack.i.l.bf16 %v12792_v48  ;;  %v12361_v35 = vunpack.i.h.bf16 %v9276_v28  ;;  %vm12805_vm14 = vmmov %vm12730_vm13 }
 0x27e   : > { %2173 = vmatpush.msra.mxu3 %v6984_v27  ;;  %v9431_v2 = vpop.permute.xlu0 %6324  ;;  %v12785_v27 = vunpack.i.l.bf16 %v12720_v10 }
 0x27f   : > { %v12342_v41 = vunpack.i.h.bf16 %v9431_v2  ;;  %5377 = vmatmul.msk.f32.gmra.mxu2 %vm12362_vm0, %v9228_v63 }
 0x280   : > { %2174 = vmatpush.msra.mxu3 %v6985_v16  ;;  %v690_v39 = vsel %vm12730_vm13, %v12785_v27, %v5717_v51  ;;  %v3588_v16 = vld [vmem:[%s7431_s8 + $0x28] sm:$0xff]  ;;  %v5667_v51 = vunpack.i.h.bf16 %v12741_v49  ;;  %v645_v27 = vsel %vm637_vm1, %v12791_v31, %v5692_v36  ;;  %6554 = vrot.lane.b32.xlu1 %v9119_v55, %s12794_s28  ;;  %v12795_v36 = vunpack.i.l.bf16 %v12741_v49 }
 0x281   : > { %v9450_v10 = vsel %vm637_vm1, %v12342_v41, %v6331_v4  ;;  %v12793_v4 = vunpack.i.h.bf16 %v12625_v17  ;;  %v5642_v17 = vunpack.i.h.bf16 %v12750_v25  ;;  %vm12811_vm13 = vcmask 228352  }
 0x282   : > { %2275 = vmatpush.msrb.mxu3 %v690_v39  ;;  %12790 = vst [vmem:[#allocation67_spill] sm:$0xff] %v9450_v10  ;;  %v6548_v39 = vpack.i.bf16 %v9060_v45, %v3588_v16  ;;  %v9468_v10 = vld [vmem:[#allocation7 + $0x60] sm:$0xff] }
 0x283   : > { %v9466_v41 = vpop.permute.xlu1 %6344  ;;  %2068 = vmatmul.f32.gmra.mxu3 %v9468_v10  ;;  %6559 = vrot.lane.b32.xlu2 %v9119_v55, %s7264_s23 }
 0x284   : > { %2276 = vmatpush.msrb.mxu3 %v686_v34  ;;  %v641_v34 = vsel %vm637_vm1, %v12793_v4, %v5681_v13  ;;  %2329 = vmatmul.f32.gmra.mxu0 %v12746_v62  ;;  %v580_v13 = vsel %vm572_vm2, %v12795_v36, %v5667_v51  ;;  %v12796_v62 = vld [vmem:[#allocation31_spill] sm:$0xff]  ;;  %v5617_v51 = vunpack.i.h.bf16 %v12762_v5  ;;  %v12798_v4 = vunpack.i.l.bf16 %v12750_v25 }
 0x285   : > { %v9474_v22 = vpop.permute.xlu2 %6394  ;;  %v5631_v31 = vunpack.i.l.bf16 %v12796_v62  ;;  %6549 = vrot.lane.b32.xlu0 %v6548_v39, %s7265_s6  ;;  %2358 = vmatmul.f32.gmra.mxu1 %v8875_v12  ;;  %v12347_v36 = vunpack.i.h.bf16 %v9339_v37  ;;  %v5592_v12 = vunpack.i.h.bf16 %v12766_v44 }
 0x286   : > { %2277 = vmatpush.msrb.mxu3 %v645_v27  ;;  %v9476_v14 = vpop.permute.xlu0 %6339  ;;  %v12797_v27 = vunpack.i.h.bf16 %v12642_v9  ;;  %v12799_v9 = vld [vmem:[#allocation39_spill] sm:$0xff] }
 0x287   : > { %v12345_v16 = vunpack.i.l.bf16 %v9476_v14  ;;  %5378 = vmatmul.msk.f32.vlgmr.msrb.gmra.mxu2 %vm12362_vm0, %v8860_v50  ;;  %v12808_v50 = vunpack.i.l.bf16 %v12773_v61 }
 0x288   : > { %2278 = vmatpush.msrb.mxu3 %v641_v34  ;;  %v576_v48 = vsel %vm572_vm2, %v12797_v27, %v5656_v38  ;;  %v535_v34 = vsel %vm527_vm3, %v12798_v4, %v5642_v17  ;;  %v5606_v38 = vunpack.i.l.bf16 %v12799_v9  ;;  %6569 = vrot.lane.b32.xlu1 %v6548_v39, %s7264_s23  ;;  %v12804_v9 = vunpack.i.h.bf16 %v12672_v20 }
 0x289   : > { %v9495_v49 = vsel %vm637_vm1, %v12361_v35, %v12345_v16  ;;  %v6381_v20 = vunpack.i.l.bf16 %v9429_v33  ;;  %v12350_v16 = vunpack.i.l.bf16 %v9390_v0  ;;  %v6992_v35 = vld [vmem:[%s7431_s8 + $0x20] sm:$0xff] }
 0x28a   : > { %2279 = vmatpush.msrb.mxu3 %v580_v13  ;;  %v12800_v13 = vunpack.i.h.bf16 %v12663_v15  ;;  %v12803_v15 = vld [vmem:[#allocation32_spill] sm:$0xff] }
 0x28b   : > { %v9509_v27 = vpop.permute.xlu1 %6359  ;;  %2175 = vmatmul.f32.vlgmr.msra.gmra.mxu3 %v9325_v1  ;;  %6574 = vrot.lane.b32.xlu2 %v8992_v30, %s12802_s30 }
 0x28c   : > { %2280 = vmatpush.msrb.mxu3 %v576_v48  ;;  %v531_v62 = vsel %vm527_vm3, %v12800_v13, %v5631_v31  ;;  %v12801_v48 = vunpack.i.l.bf16 %v12762_v5  ;;  %v5581_v31 = vunpack.i.l.bf16 %v12803_v15  ;;  %v486_v13 = vsel %vm482_vm4, %v12804_v9, %v5606_v38 }
 0x28d   : > { %v9513_v25 = vpop.permute.xlu2 %6409  ;;  %6564 = vrot.lane.b32.xlu0 %v9105_v46, %s12794_s28 }
 0x28e   : > { %2281 = vmatpush.msrb.mxu3 %v535_v34  ;;  %v6355_v17 = vpop.permute.xlu0 %6354  ;;  %v490_v4 = vsel %vm482_vm4, %v12801_v48, %v5617_v51  ;;  %v5567_v51 = vunpack.i.h.bf16 %v12773_v61  ;;  %v12806_v48 = vunpack.i.l.bf16 %v12766_v44  ;;  %v6411_v38 = vunpack.i.l.bf16 %v9513_v25 }
 0x28f   : > { %v6356_v34 = vunpack.i.l.bf16 %v6355_v17  ;;  %5379 = vmatmul.msk.f32.gmra.mxu2 %vm12362_vm0, %v9040_v40  ;;  %v6382_v40 = vunpack.i.h.bf16 %v9429_v33  ;;  %v6321_v33 = vunpack.i.l.bf16 %v9200_v24 }
 0x290   : > { %2282 = vmatpush.msrb.mxu3 %v531_v62  ;;  %v6412_v62 = vunpack.i.h.bf16 %v9513_v25  ;;  %v425_v46 = vsel %vm417_vm5, %v12806_v48, %v5592_v12  ;;  %v380_v15 = vsel %vm372_vm6, %v12808_v50, %v5567_v51  ;;  %6584 = vrot.lane.b32.xlu1 %v8659_v59, %s12802_s30  ;;  %v12810_v12 = vld [vmem:[#allocation26_spill] sm:$0xff]  ;;  %v6361_v50 = vunpack.i.l.bf16 %v9509_v27 }
 0x291   : > { %v9530_v5 = vsel %vm12805_vm14, %v12347_v36, %v6356_v34  ;;  %v5556_v9 = vunpack.i.l.bf16 %v12810_v12  ;;  %vm12815_vm14 = vcmask 867328   ;;  %v6988_v12 = vld [vmem:[%s7431_s8 + $0x18] sm:$0xff] }
 0x292   : > { %2283 = vmatpush.msrb.mxu3 %v490_v4  ;;  %v12807_v4 = vunpack.i.h.bf16 %v12680_v7  ;;  %v9562_v61 = vsel %vm12811_vm13, %v6411_v38, %v6412_v62  ;;  %vm12817_vm13 = vmmov %vm12815_vm14 }
 0x293   : > { %2178 = vmatmul.f32.gmra.mxu3 %v9375_v42  ;;  %v9550_v44 = vpop.permute.xlu1 %6374  ;;  %6589 = vrot.lane.b32.xlu2 %v6548_v39, %s12812_s9  ;;  %v6357_v39 = vunpack.i.h.bf16 %v6355_v17  ;;  %v6987_v17 = vld [vmem:[%s7431_s8 + $0x68] sm:$0xff] }
 0x294   : > { %2284 = vmatpush.msrb.mxu3 %v486_v13  ;;  %v421_v34 = vsel %vm417_vm5, %v12807_v4, %v5581_v31  ;;  %12809 = vst [vmem:[#allocation70_spill] sm:$0xff] %v9550_v44  ;;  %v12344_v13 = vunpack.i.h.bf16 %v9550_v44  ;;  %v12343_v7 = vunpack.i.l.bf16 %v9550_v44 }
 0x295   : > { %v9565_v31 = vpop.permute.xlu2 %6424  ;;  %6579 = vrot.lane.b32.xlu0 %v9119_v55, %s12812_s9 }
 0x296   : > { %2285 = vmatpush.msrb.mxu3 %v425_v46  ;;  %v9555_v48 = vpop.permute.xlu0 %6369  ;;  %12813 = vst [vmem:[#allocation23_spill] sm:$0xff] %v9565_v31  ;;  %v12814_v46 = vunpack.i.h.bf16 %v12706_v26  ;;  %v12363_v26 = vunpack.i.h.bf16 %v9466_v41 }
 0x297   : > { %v12346_v51 = vunpack.i.h.bf16 %v9555_v48  ;;  %5380 = vmatmul.msk.f32.gmra.mxu2 %vm12362_vm0, %v9143_v47 }
 0x298   : > { %2286 = vmatpush.msrb.mxu3 %v421_v34  ;;  %v376_v4 = vsel %vm372_vm6, %v12814_v46, %v5556_v9  ;;  %v9576_v34 = vsel %vm12815_vm14, %v12344_v13, %v6381_v20  ;;  %v6346_v20 = vunpack.i.l.bf16 %v9466_v41  ;;  %vm12818_vm14 = vcmask 875520  }
 0x299   : > { %12816 = vst [vmem:[#allocation68_spill] sm:$0xff] %v9576_v34  ;;  %v9590_v55 = vsel %vm12817_vm13, %v12346_v51, %v12343_v7  ;;  %v2764_v9 = vsel %vm12818_vm14, %v6357_v39, %v6361_v50  ;;  %vm12821_vm13 = vmmov %vm12818_vm14  ;;  %v6307_v13 = vunpack.i.h.bf16 %v9127_v21  ;;  %v3443_v51 = vld [vmem:[%s7431_s8 + $0x88] sm:$0xff]  ;;  %vm12823_vm14 = vcmask 867328  }
 0x29a   : > { %2287 = vmatpush.msrb.mxu3 %v380_v15  ;;  %v9581_v15 = vpack.i.bf16 %v9060_v45, %v9084_v57  ;;  %v12360_v45 = vunpack.i.l.bf16 %v9276_v28  ;;  %v6332_v57 = vunpack.i.h.bf16 %v9423_v54  ;;  %v2760_v39 = vsel %vm12821_vm13, %v6346_v20, %v12363_v26  ;;  %vm12824_vm13 = vmmov %vm12823_vm14 }
 0x29b   : > { %2181 = vmatmul.f32.gmra.mxu3 %v9418_v56  ;;  %v9605_v46 = vpop.permute.xlu1 %6389  ;;  %6604 = vrot.lane.b32.xlu2 %v8659_v59, %s12820_s10  ;;  %vm12825_vm9 = vmmov %vm12824_vm13 }
 0x29c   : > { %2288 = vmatpush.msrb.mxu3 %v376_v4  ;;  %6599 = vrot.lane.b32.xlu1 %v9581_v15, %s7254_s0  ;;  %12819 = vst [vmem:[#allocation30_spill] sm:$0xff] %v9605_v46  ;;  %v12351_v4 = vunpack.i.h.bf16 %v9200_v24  ;;  %v12349_v54 = vunpack.i.l.bf16 %v9605_v46  ;;  %v2720_v59 = vsel %vm637_vm1, %v6332_v57, %v12360_v45  ;;  %v9990_v46 = vld [vmem:[%s7431_s8 + $0x88] sm:$0xff] }
 0x29d   : > { %6594 = vrot.lane.b32.xlu0 %v8992_v30, %s12820_s10  ;;  %v9621_v36 = vpop.permute.xlu2 %6439 }
 0x29e   : > { %2289 = vmatpush.msrb.mxu3 %v6987_v17  ;;  %v6385_v17 = vpop.permute.xlu0 %6384  ;;  %12822 = vst [vmem:[#allocation63_spill] sm:$0xff] %v9621_v36  ;;  %v2716_v47 = vsel %vm637_vm1, %v6321_v33, %v12351_v4  ;;  %v6271_v33 = vunpack.i.l.bf16 %v9190_v43 }
 0x29f   : > { %v6386_v7 = vunpack.i.l.bf16 %v6385_v17  ;;  %5381 = vmatmul.msk.f32.gmra.mxu2 %vm12362_vm0, %v9228_v63  ;;  %v12356_v63 = vunpack.i.l.bf16 %v9565_v31 }
 0x2a0   : > { %2290 = vmatpush.msrb.mxu3 %v6988_v12  ;;  %v6387_v12 = vunpack.i.h.bf16 %v6385_v17  ;;  %v12359_v17 = vunpack.i.h.bf16 %v9341_v29 }
 0x2a1   : > { %v9629_v20 = vsel %vm12823_vm14, %v6382_v40, %v6386_v7  ;;  %v6282_v40 = vunpack.i.h.bf16 %v9278_v11 }
 0x2a2   : > { %3984 = vmatpush.msra.mxu3 %v2764_v9  ;;  %v3438_v9 = vld [vmem:[%s7431_s8 + $0x38] sm:$0xff]  ;;  %v9632_v21 = vsel %vm12824_vm13, %v6386_v7, %v6387_v12  ;;  %v9637_v30 = vsel %vm12825_vm9, %v6387_v12, %v12349_v54  ;;  %v12355_v7 = vunpack.i.l.bf16 %v9264_v19  ;;  %v2656_v12 = vsel %vm572_vm2, %v6307_v13, %v12350_v16 }
 0x2a3   : > { %12826 = vst [vmem:[#allocation69_spill] sm:$0xff] %v9637_v30  ;;  %v9644_v57 = vpack.i.bf16 %v3438_v9, %v3443_v51  ;;  %2184 = vmatmul.f32.gmra.mxu3 %v9468_v10  ;;  %v12354_v54 = vunpack.i.h.bf16 %v9474_v22  ;;  %vm12828_vm9 = vcmask 228352  }
 0x2a4   : > { %3985 = vmatpush.msra.mxu3 %v2760_v39  ;;  %v6296_v39 = vunpack.i.l.bf16 %v9341_v29  ;;  %6614 = vrot.lane.b32.xlu1 %v9581_v15, %s7253_s11  ;;  %vm12829_vm14 = vmmov %vm12828_vm9 }
 0x2a5   : > { %6619 = vrot.lane.b32.xlu2 %v9644_v57, %s7261_s17  ;;  %6609 = vrot.lane.b32.xlu0 %v9644_v57, %s7262_s15  ;;  %v9672_v4 = vpop.permute.xlu2 %6454  ;;  %vm12831_vm13 = vmmov %vm12828_vm9 }
 0x2a6   : > { %3986 = vmatpush.msra.mxu3 %v2720_v59  ;;  %v6405_v59 = vpop.permute.xlu1 %6404  ;;  %v2652_v11 = vsel %vm572_vm2, %v6296_v39, %v12359_v17  ;;  %v9661_v9 = vpop.permute.xlu0 %6399  ;;  %v2612_v39 = vsel %vm527_vm3, %v6282_v40, %v12355_v7 }
 0x2a7   : > { %v6407_v51 = vunpack.i.h.bf16 %v6405_v59  ;;  %v6406_v13 = vunpack.i.l.bf16 %v6405_v59  ;;  %12827 = vst [vmem:[#allocation27_spill] sm:$0xff] %v9661_v9  ;;  %v9771_v17 = vpop.f32.mrf.mxu2 }
 0x2a8   : > { %3987 = vmatpush.msra.mxu3 %v2716_v47  ;;  %v12353_v47 = vunpack.i.h.bf16 %v9661_v9  ;;  %12843 = vst [vmem:[#allocation50_spill] sm:$0xff] %v9771_v17  ;;  %v12854_v17 = vunpack.i.h.bf16 %v9200_v24 }
 0x2a9   : > { %v9670_v16 = vsel %vm12828_vm9, %v6407_v51, %v6411_v38  ;;  %v6246_v38 = vunpack.i.l.bf16 %v8759_v32  ;;  %v12830_v51 = vunpack.i.h.bf16 %v9190_v43  ;;  %v6221_v43 = vunpack.i.l.bf16 %v8942_v18 }
 0x2aa   : > { %3988 = vmatpush.msra.mxu3 %v2656_v12  ;;  %v12352_v12 = vunpack.i.l.bf16 %v9661_v9  ;;  %v9693_v40 = vsel %vm12831_vm13, %v12353_v47, %v6406_v13  ;;  %v9720_v47 = vld [vmem:[%s7431_s8 + $0x80] sm:$0xff]  ;;  %vm12835_vm9 = vcmask 220160  }
 0x2ab   : > { %12832 = vst [vmem:[#allocation55_spill] sm:$0xff] %v9693_v40  ;;  %2291 = vmatmul.f32.vlgmr.msrb.gmra.mxu3 %v9325_v1  ;;  %vm12847_vm0 = vmmov %vm12835_vm9  ;;  %v9987_v40 = vld [vmem:[%s7431_s8 + $0x38] sm:$0xff] }
 0x2ac   : > { %3989 = vmatpush.msra.mxu3 %v2652_v11  ;;  %v9684_v59 = vsel %vm12829_vm14, %v12354_v54, %v12352_v12  ;;  %v2608_v11 = vsel %vm527_vm3, %v6271_v33, %v12830_v51  ;;  %6629 = vrot.lane.b32.xlu1 %v9644_v57, %s12751_s29  ;;  %v12833_v33 = vunpack.i.h.bf16 %v8759_v32  ;;  %v9717_v12 = vld [vmem:[%s7431_s8 + $0x30] sm:$0xff]  ;;  %vm12837_vm14 = vmmov %vm12831_vm13 }
 0x2ad   : > { %6634 = vrot.lane.b32.xlu2 %v9581_v15, %s12767_s26  ;;  %6624 = vrot.lane.b32.xlu0 %v9581_v15, %s12727_s24  ;;  %v6643_v32 = vpack.i.bf16 %v9717_v12, %v9720_v47  ;;  %vm12844_vm13 = vmmov %vm12835_vm9 }
 0x2ae   : > { %3990 = vmatpush.msra.mxu3 %v2612_v39  ;;  %v2564_v13 = vsel %vm482_vm4, %v6246_v38, %v12833_v33  ;;  %v9706_v39 = vpop.permute.xlu1 %6419  ;;  %v9711_v51 = vpop.permute.xlu0 %6414  ;;  %v6196_v33 = vunpack.i.l.bf16 %v8757_v3 }
 0x2af   : > { %v12358_v1 = vunpack.i.h.bf16 %v9706_v39  ;;  %12834 = vst [vmem:[#allocation71_spill] sm:$0xff] %v9711_v51  ;;  %v9843_v24 = vpop.f32.mrf.mxu2 }
 0x2b0   : > { %3991 = vmatpush.msra.mxu3 %v2608_v11  ;;  %v12357_v11 = vunpack.i.l.bf16 %v9711_v51  ;;  %12861 = vst [vmem:[#allocation36_spill] sm:$0xff] %v9843_v24  ;;  %v12905_v51 = vld [vmem:[#allocation29_spill] sm:$0xff] }
 0x2b1   : > { %v9730_v38 = vsel %vm12835_vm9, %v12358_v1, %v12356_v63  ;;  %v12364_v63 = vunpack.i.l.bf16 %v9621_v36  ;;  %v9769_v1 = vpop.f32.mrf.mxu1 }
 0x2b2   : > { %3992 = vmatpush.msra.mxu3 %v9148_v52  ;;  %v9713_v52 = vpop.permute.xlu2 %6469  ;;  %v9741_v7 = vsel %vm12837_vm14, %v6412_v62, %v12357_v11  ;;  %v9754_v62 = vpop.f32.mrf.mxu0  ;;  %v6991_v11 = vld [vmem:[%s7431_s8 + $0x70] sm:$0xff]  ;;  %12842 = vst [vmem:[#allocation64_spill] sm:$0xff] %v9769_v1  ;;  %vm12846_vm14 = vcmask 875520   ;;  %v12859_v1 = vunpack.i.h.bf16 %v9390_v0 }
 0x2b3   : > { %12838 = vst [vmem:[#allocation66_spill] sm:$0xff] %v9741_v7  ;;  %2294 = vmatmul.f32.gmra.mxu3 %v9375_v42  ;;  %v12366_v42 = vunpack.i.h.bf16 %v9565_v31 }
 0x2b4   : > { %3993 = vmatpush.msra.mxu3 %v2564_v13  ;;  %v12836_v13 = vunpack.i.h.bf16 %v8942_v18  ;;  %6644 = vrot.lane.b32.xlu1 %v6643_v32, %s7250_s16  ;;  %v12840_v18 = vunpack.i.h.bf16 %v8757_v3  ;;  %12841 = vst [vmem:[#allocation43_spill] sm:$0xff] %v9754_v62 }
 0x2b5   : > { %6649 = vrot.lane.b32.xlu2 %v9644_v57, %s12786_s27  ;;  %6639 = vrot.lane.b32.xlu0 %v9644_v57, %s12780_s13 }
 0x2b6   : > { %3994 = vmatpush.msra.mxu3 %v9065_v6  ;;  %v2500_v54 = vsel %vm417_vm5, %v6221_v43, %v12836_v13  ;;  %v12839_v6 = vld [vmem:[#allocation56_spill] sm:$0xff]  ;;  %v2456_v25 = vsel %vm372_vm6, %v6196_v33, %v12840_v18  ;;  %v9752_v43 = vpop.permute.xlu1 %6434  ;;  %v9764_v33 = vpop.permute.xlu0 %6429 }
 0x2b7   : > { %v6437_v32 = vunpack.i.h.bf16 %v9752_v43  ;;  %v12365_v13 = vunpack.i.l.bf16 %v9752_v43  ;;  %v6431_v18 = vunpack.i.l.bf16 %v9764_v33 }
 0x2b8   : > { %3995 = vmatpush.msra.mxu3 %v2500_v54  ;;  %v12368_v54 = vunpack.i.h.bf16 %v9509_v27 }
 0x2b9   : > { %v9781_v45 = vsel %vm12835_vm9, %v6437_v32, %v12364_v63  ;;  %v9792_v26 = vsel %vm12847_vm0, %v12366_v42, %v6431_v18  ;;  %vm12855_vm0 = vcmask 64512  }
 0x2ba   : > { %3996 = vmatpush.msra.mxu3 %v12839_v6  ;;  %v9762_v3 = vpop.permute.xlu2 %6484  ;;  %v12367_v6 = vunpack.i.l.bf16 %v9339_v37  ;;  %12845 = vst [vmem:[#allocation57_spill] sm:$0xff] %v9781_v45  ;;  %vm12857_vm9 = vmmov %vm12855_vm0 }
 0x2bb   : > { %12848 = vst [vmem:[#allocation72_spill] sm:$0xff] %v9792_v26  ;;  %2297 = vmatmul.f32.gmra.mxu3 %v9418_v56 }
 0x2bc   : > { %3997 = vmatpush.msra.mxu3 %v2456_v25  ;;  %v9776_v25 = vsel %vm12844_vm13, %v12365_v13, %v6437_v32  ;;  %6659 = vrot.lane.b32.xlu1 %v9644_v57, %s12794_s28  ;;  %v12370_v32 = vunpack.i.l.bf16 %v9431_v2  ;;  %vm12850_vm13 = vmmov %vm12846_vm14  ;;  %v6456_v13 = vunpack.i.l.bf16 %v9672_v4 }
 0x2bd   : > { %6664 = vrot.lane.b32.xlu2 %v9644_v57, %s7264_s23  ;;  %6654 = vrot.lane.b32.xlu0 %v9644_v57, %s7265_s6 }
 0x2be   : > { %3998 = vmatpush.msra.mxu3 %v6991_v11  ;;  %v2765_v11 = vsel %vm12846_vm14, %v6361_v50, %v12368_v54  ;;  %v9807_v18 = vpop.permute.xlu1 %6449  ;;  %v9822_v54 = vpop.permute.xlu0 %6444  ;;  %v12860_v50 = vunpack.i.l.bf16 %v9390_v0  ;;  %vm12867_vm14 = vcmask 130048  }
 0x2bf   : > { %v12369_v42 = vunpack.i.h.bf16 %v9807_v18 }
 0x2c0   : > { %3999 = vmatpush.msra.mxu3 %v6992_v35  ;;  %v12849_v35 = vunpack.i.h.bf16 %v9466_v41  ;;  %v12852_v41 = vunpack.i.h.bf16 %v9276_v28  ;;  %v2657_v62 = vsel %vm572_vm2, %v12860_v50, %v12859_v1 }
 0x2c2   : > { %4100 = vmatpush.msrb.mxu3 %v2765_v11  ;;  %v2761_v63 = vsel %vm12850_vm13, %v12849_v35, %v12367_v6  ;;  %v9809_v11 = vpop.f32.mrf.mxu0  ;;  %v12853_v35 = vunpack.i.l.bf16 %v9276_v28  ;;  %v9820_v6 = vpop.permute.xlu2 %6499  ;;  %v2717_v28 = vsel %vm637_vm1, %v12854_v17, %v12370_v32  ;;  %v12862_v17 = vunpack.i.l.bf16 %v9328_v60  ;;  %vm12881_vm13 = vmmov %vm12867_vm14 }
 0x2c3   : > { %12851 = vst [vmem:[#allocation44_spill] sm:$0xff] %v9809_v11  ;;  %v9836_v11 = vpop.f32.mrf.mxu1  ;;  %2300 = vmatmul.f32.gmra.mxu3 %v9468_v10 }
 0x2c4   : > { %4101 = vmatpush.msrb.mxu3 %v2761_v63  ;;  %v2721_v56 = vsel %vm637_vm1, %v12853_v35, %v12852_v41  ;;  %v6451_v63 = vunpack.i.l.bf16 %v9807_v18  ;;  %v12856_v35 = vunpack.i.h.bf16 %v9672_v4  ;;  %12858 = vst [vmem:[#allocation28_spill] sm:$0xff] %v9836_v11  ;;  %6674 = vrot.lane.b32.xlu1 %v9644_v57, %s12812_s9 }
 0x2c5   : > { %6679 = vrot.lane.b32.xlu2 %v9581_v15, %s12820_s10  ;;  %6669 = vrot.lane.b32.xlu0 %v9581_v15, %s12802_s30 }
 0x2c6   : > { %4102 = vmatpush.msrb.mxu3 %v2721_v56  ;;  %v3176_v41 = vsel %vm12855_vm0, %v6451_v63, %v12369_v42  ;;  %v3172_v56 = vsel %vm12857_vm9, %v6456_v13, %v12856_v35  ;;  %v12863_v63 = vunpack.i.h.bf16 %v9341_v29  ;;  %v3444_v35 = vld [vmem:[%s7431_s8 + $0x90] sm:$0xff]  ;;  %v9857_v0 = vpop.permute.xlu1 %6464  ;;  %v12865_v29 = vunpack.i.h.bf16 %v9264_v19  ;;  %v9876_v15 = vpop.permute.xlu0 %6459 }
 0x2c7   : > { %4013 = vmatpush.msra.mxu0 %v3176_v41  ;;  %v12373_v41 = vunpack.i.h.bf16 %v9857_v0  ;;  %v6466_v10 = vunpack.i.l.bf16 %v9857_v0  ;;  %v6461_v42 = vunpack.i.l.bf16 %v9876_v15  ;;  %vm12883_vm0 = vcmask 138240  }
 0x2c8   : > { %4103 = vmatpush.msrb.mxu3 %v2717_v28  ;;  %v2653_v13 = vsel %vm572_vm2, %v12863_v63, %v12862_v17  ;;  %v3439_v28 = vld [vmem:[%s7431_s8 + $0x40] sm:$0xff]  ;;  %v6471_v17 = vunpack.i.l.bf16 %v9713_v52  ;;  %vm12888_vm9 = vmmov %vm12883_vm0 }
 0x2c9   : > { %4014 = vmatpush.msra.mxu0 %v3172_v56  ;;  %v12371_v56 = vunpack.i.h.bf16 %v9713_v52 }
 0x2ca   : > { %4104 = vmatpush.msrb.mxu3 %v2657_v62  ;;  %v9859_v1 = vpop.f32.mrf.mxu0  ;;  %v12866_v62 = vunpack.i.l.bf16 %v9264_v19  ;;  %v9872_v63 = vpop.permute.xlu2 %6514  ;;  %v3112_v19 = vsel %vm12867_vm14, %v6466_v10, %v12373_v41  ;;  %vm12892_vm14 = vcmask 875520  }
 0x2cb   : > { %12864 = vst [vmem:[#allocation22_spill] sm:$0xff] %v9859_v1  ;;  %4015 = vmatpush.msra.mxu0 %v3112_v19  ;;  %v9901_v19 = vpop.f32.mrf.mxu1 }
 0x2cc   : > { %4105 = vmatpush.msrb.mxu3 %v2653_v13  ;;  %v2613_v50 = vsel %vm527_vm3, %v12866_v62, %v12865_v29  ;;  %v9874_v13 = vpack.i.bf16 %v3439_v28, %v3444_v35  ;;  %v9881_v29 = vpop.f32.mrf.mxu3  ;;  %v12372_v62 = vunpack.i.h.bf16 %v9876_v15  ;;  %v12869_v28 = vunpack.i.h.bf16 %v8844_v58  ;;  %12871 = vst [vmem:[#allocation52_spill] sm:$0xff] %v9901_v19  ;;  %v9934_v19 = vld [vmem:[#allocation7 + $0x20] sm:$0xff] }
 0x2cd   : > { %12868 = vst [vmem:[#allocation46_spill] sm:$0xff] %v9881_v29  ;;  %v12870_v35 = vunpack.i.l.bf16 %v8844_v58  ;;  %v9904_v58 = vpop.f32.mrf.mxu2  ;;  %6694 = vrot.lane.b32.xlu2 %v9644_v57, %s7253_s11  ;;  %6684 = vrot.lane.b32.xlu0 %v9644_v57, %s7254_s0 }
 0x2ce   : > { %4106 = vmatpush.msrb.mxu3 %v2613_v50  ;;  %v9886_v50 = vld [vmem:[#allocation7] sm:$0xff]  ;;  %v3568_v10 = vsel %vm1502_vm15, %v6461_v42, %v12372_v62  ;;  %6689 = vrot.lane.b32.xlu1 %v9874_v13, %s7262_s15  ;;  %12872 = vst [vmem:[#allocation47_spill] sm:$0xff] %v9904_v58  ;;  %v9909_v42 = vpop.permute.xlu1 %6479  ;;  %v6486_v62 = vunpack.i.l.bf16 %v9762_v3  ;;  %v12876_v58 = vld [vmem:[#allocation62_spill] sm:$0xff] }
 0x2cf   : > { %v2569_v32 = vsel %vm482_vm4, %v12870_v35, %v12869_v28  ;;  %4042 = vmatpush.msra.mxu1 %v3568_v10  ;;  %4000 = vmatmul.f32.vlgmr.msra.gmra.mxu3 %v9886_v50  ;;  %v12374_v35 = vunpack.i.h.bf16 %v9909_v42  ;;  %v6481_v10 = vunpack.i.l.bf16 %v9909_v42 }
 0x2d0   : > { %4107 = vmatpush.msrb.mxu3 %v9220_v53  ;;  %v3564_v53 = vsel %vm1502_vm15, %v6471_v17, %v12371_v56  ;;  %v12874_v17 = vunpack.i.l.bf16 %v9034_v23  ;;  %v12877_v56 = vld [vmem:[#allocation61_spill] sm:$0xff] }
 0x2d1   : > { %4043 = vmatpush.msra.mxu1 %v3564_v53  ;;  %v9926_v53 = vpop.permute.xlu0 %6474  ;;  %v12878_v1 = vunpack.i.h.bf16 %v12877_v56 }
 0x2d2   : > { %4108 = vmatpush.msrb.mxu3 %v2569_v32  ;;  %v12873_v32 = vunpack.i.h.bf16 %v9034_v23  ;;  %v9924_v41 = vpop.permute.xlu2 %6529  ;;  %v3524_v23 = vsel %vm1457_vm11, %v6481_v10, %v12374_v35  ;;  %v6501_v35 = vunpack.i.l.bf16 %v9820_v6 }
 0x2d3   : > { %4044 = vmatpush.msra.mxu1 %v3524_v23 }
 0x2d4   : > { %4109 = vmatpush.msrb.mxu3 %v9162_v8  ;;  %v2505_v28 = vsel %vm417_vm5, %v12874_v17, %v12873_v32  ;;  %v9920_v8 = vpop.f32.mrf.mxu0  ;;  %v12375_v32 = vunpack.i.h.bf16 %v9926_v53  ;;  %v6476_v17 = vunpack.i.l.bf16 %v9926_v53  ;;  %v9941_v24 = vpop.f32.mrf.mxu3 }
 0x2d5   : > { %12875 = vst [vmem:[#allocation31_spill] sm:$0xff] %v9920_v8  ;;  %6709 = vrot.lane.b32.xlu2 %v9874_v13, %s12751_s29  ;;  %6699 = vrot.lane.b32.xlu0 %v9874_v13, %s7261_s17  ;;  %v6994_v8 = vld [vmem:[%s7431_s8 + $0x28] sm:$0xff] }
 0x2d6   : > { %4110 = vmatpush.msrb.mxu3 %v2505_v28  ;;  %v12879_v28 = vunpack.i.l.bf16 %v12877_v56  ;;  %12880 = vst [vmem:[#allocation39_spill] sm:$0xff] %v9941_v24  ;;  %v3108_v10 = vsel %vm12881_vm13, %v6476_v17, %v12375_v32  ;;  %6704 = vrot.lane.b32.xlu1 %v9644_v57, %s12727_s24  ;;  %v12884_v56 = vld [vmem:[#allocation35_spill] sm:$0xff]  ;;  %v9958_v17 = vpop.f32.mrf.mxu1  ;;  %v6993_v32 = vld [vmem:[%s7431_s8 + $0x78] sm:$0xff]  ;;  %vm12895_vm13 = vmmov %vm12892_vm14 }
 0x2d7   : > { %4016 = vmatpush.msra.mxu0 %v3108_v10  ;;  %4003 = vmatmul.f32.gmra.mxu3 %v9934_v19  ;;  %12886 = vst [vmem:[#allocation32_spill] sm:$0xff] %v9958_v17 }
 0x2d8   : > { %4111 = vmatpush.msrb.mxu3 %v12876_v58  ;;  %v2461_v29 = vsel %vm372_vm6, %v12879_v28, %v12878_v1  ;;  %v12882_v58 = vunpack.i.h.bf16 %v9762_v3  ;;  %v12885_v28 = vld [vmem:[#allocation60_spill] sm:$0xff] }
 0x2d9   : > { %v9971_v24 = vpop.permute.xlu0 %6489 }
 0x2da   : > { %4112 = vmatpush.msrb.mxu3 %v2461_v29  ;;  %v3068_v23 = vsel %vm12883_vm0, %v6486_v62, %v12882_v58  ;;  %v9956_v29 = vpop.permute.xlu1 %6494  ;;  %v9964_v58 = vpop.f32.mrf.mxu2  ;;  %v12379_v17 = vunpack.i.h.bf16 %v9971_v24  ;;  %vm12897_vm0 = vcmask 375808  }
 0x2db   : > { %4017 = vmatpush.msra.mxu0 %v3068_v23  ;;  %v12378_v62 = vunpack.i.h.bf16 %v9956_v29  ;;  %v6496_v10 = vunpack.i.l.bf16 %v9956_v29  ;;  %12887 = vst [vmem:[#allocation26_spill] sm:$0xff] %v9964_v58  ;;  %v9969_v1 = vpop.permute.xlu2 %6544  ;;  %v6491_v58 = vunpack.i.l.bf16 %v9971_v24 }
 0x2dc   : > { %4113 = vmatpush.msrb.mxu3 %v12885_v28  ;;  %v9976_v11 = vpop.f32.mrf.mxu0  ;;  %v12890_v28 = vunpack.i.l.bf16 %v12884_v56  ;;  %v6546_v9 = vunpack.i.l.bf16 %v9969_v1 }
 0x2dd   : > { %v3064_v23 = vsel %vm12888_vm9, %v6496_v10, %v12378_v62  ;;  %12889 = vst [vmem:[#allocation56_spill] sm:$0xff] %v9976_v11  ;;  %v6723_v10 = vpack.i.bf16 %v9987_v40, %v9990_v46  ;;  %v9994_v62 = vld [vmem:[#allocation7 + $0x40] sm:$0xff]  ;;  %v12893_v11 = vunpack.i.h.bf16 %v9339_v37  ;;  %6714 = vrot.lane.b32.xlu0 %v9644_v57, %s12767_s26  ;;  %vm12902_vm9 = vmmov %vm12897_vm0 }
 0x2de   : > { %4114 = vmatpush.msrb.mxu3 %v6993_v32  ;;  %v12891_v32 = vunpack.i.h.bf16 %v9509_v27  ;;  %4018 = vmatpush.msra.mxu0 %v3064_v23  ;;  %v12894_v27 = vunpack.i.l.bf16 %v9339_v37  ;;  %v12896_v23 = vunpack.i.h.bf16 %v9820_v6 }
 0x2df   : > { %6719 = vrot.lane.b32.xlu1 %v9874_v13, %s12780_s13  ;;  %6724 = vrot.lane.b32.xlu2 %v6723_v10, %s7250_s16  ;;  %v10024_v10 = vpop.f32.mrf.mxu1 }
 0x2e0   : > { %4115 = vmatpush.msrb.mxu3 %v6994_v8  ;;  %v2766_v34 = vsel %vm12892_vm14, %v12891_v32, %v12890_v28  ;;  %v3520_v8 = vsel %vm1457_vm11, %v6491_v58, %v12379_v17  ;;  %v2762_v28 = vsel %vm12895_vm13, %v12894_v27, %v12893_v11  ;;  %v3480_v32 = vsel %vm12897_vm0, %v6501_v35, %v12896_v23 }
 0x2e1   : > { %4045 = vmatpush.msra.mxu1 %v3520_v8  ;;  %4006 = vmatmul.f32.gmra.mxu3 %v9994_v62  ;;  %v6516_v27 = vunpack.i.l.bf16 %v9872_v63  ;;  %12899 = vst [vmem:[#allocation61_spill] sm:$0xff] %v10024_v10  ;;  %v12900_v23 = vunpack.i.h.bf16 %v9431_v2  ;;  %vm12906_vm14 = vcmask 146432   ;;  %vm12917_vm0 = vcmask 211968  }
 0x2e2   : > { %4216 = vmatpush.msra.mxu3 %v2766_v34  ;;  %v10009_v34 = vpop.f32.mrf.mxu3  ;;  %v10012_v58 = vpop.permute.xlu1 %6509  ;;  %vm12908_vm13 = vmmov %vm12906_vm14 }
 0x2e3   : > { %12898 = vst [vmem:[#allocation62_spill] sm:$0xff] %v10009_v34  ;;  %4046 = vmatpush.msra.mxu1 %v3480_v32  ;;  %v12382_v37 = vunpack.i.h.bf16 %v10012_v58  ;;  %v6511_v11 = vunpack.i.l.bf16 %v10012_v58  ;;  %v10022_v8 = vpop.permute.xlu2 %6559  ;;  %v12901_v32 = vunpack.i.l.bf16 %v9431_v2  ;;  %v10036_v34 = vpop.f32.mrf.mxu2 }
 0x2e4   : > { %4217 = vmatpush.msra.mxu3 %v2762_v28  ;;  %v10026_v28 = vpop.permute.xlu0 %6504  ;;  %12903 = vst [vmem:[#allocation35_spill] sm:$0xff] %v10036_v34  ;;  %v10040_v10 = vpop.f32.mrf.mxu0  ;;  %v12914_v34 = vld [vmem:[#allocation54_spill] sm:$0xff] }
 0x2e5   : > { %v2718_v17 = vsel %vm637_vm1, %v12901_v32, %v12900_v23  ;;  %v3476_v35 = vsel %vm12902_vm9, %v6511_v11, %v12382_v37  ;;  %v6506_v26 = vunpack.i.l.bf16 %v10026_v28  ;;  %12904 = vst [vmem:[#allocation60_spill] sm:$0xff] %v10040_v10  ;;  %v12907_v11 = vunpack.i.h.bf16 %v9872_v63  ;;  %6729 = vrot.lane.b32.xlu0 %v9874_v13, %s12786_s27 }
 0x2e6   : > { %4218 = vmatpush.msra.mxu3 %v9495_v49  ;;  %v12383_v49 = vunpack.i.h.bf16 %v10026_v28  ;;  %4047 = vmatpush.msra.mxu1 %v3476_v35  ;;  %v12909_v32 = vunpack.i.h.bf16 %v9328_v60  ;;  %v12915_v10 = vunpack.i.h.bf16 %v12914_v34  ;;  %vm12921_vm9 = vcmask 441344  }
 0x2e7   : > { %6734 = vrot.lane.b32.xlu1 %v9874_v13, %s7265_s6  ;;  %v3020_v23 = vsel %vm12908_vm13, %v6516_v27, %v12907_v11  ;;  %6739 = vrot.lane.b32.xlu2 %v9874_v13, %s12794_s28  ;;  %v12912_v11 = vld [vmem:[#allocation25_spill] sm:$0xff]  ;;  %v10088_v44 = vpop.f32.mrf.mxu1  ;;  %vm12925_vm13 = vmmov %vm12921_vm9 }
 0x2e8   : > { %4219 = vmatpush.msra.mxu3 %v2718_v17  ;;  %v3024_v2 = vsel %vm12906_vm14, %v6506_v26, %v12383_v49  ;;  %v12910_v17 = vunpack.i.l.bf16 %v9328_v60  ;;  %v6447_v49 = vunpack.i.h.bf16 %v9822_v54  ;;  %12918 = vst [vmem:[#allocation54_spill] sm:$0xff] %v10088_v44  ;;  %vm12923_vm14 = vmmov %vm12917_vm0 }
 0x2e9   : > { %4019 = vmatpush.msra.mxu0 %v3024_v2  ;;  %v6531_v2 = vunpack.i.l.bf16 %v9924_v41 }
 0x2ea   : > { %4220 = vmatpush.msra.mxu3 %v12905_v51  ;;  %v2654_v35 = vsel %vm572_vm2, %v12910_v17, %v12909_v32  ;;  %v10056_v37 = vpop.f32.mrf.mxu3  ;;  %v10060_v26 = vpop.permute.xlu1 %6524  ;;  %v10062_v51 = vld [vmem:[#allocation7 + $0x60] sm:$0xff] }
 0x2eb   : > { %12911 = vst [vmem:[#allocation29_spill] sm:$0xff] %v10056_v37  ;;  %4020 = vmatpush.msra.mxu0 %v3020_v23  ;;  %v12388_v60 = vunpack.i.l.bf16 %v10060_v26  ;;  %v10072_v17 = vpop.permute.xlu2 %6574  ;;  %v12916_v37 = vunpack.i.l.bf16 %v12914_v34  ;;  %4009 = vmatmul.f32.gmra.mxu3 %v10062_v51  ;;  %v6432_v34 = vunpack.i.h.bf16 %v9764_v33  ;;  %v10091_v30 = vpop.f32.mrf.mxu2 }
 0x2ec   : > { %4221 = vmatpush.msra.mxu3 %v2654_v35  ;;  %12913 = vst [vmem:[#allocation25_spill] sm:$0xff] %v10072_v17  ;;  %v10074_v35 = vpop.permute.xlu0 %6519  ;;  %v10113_v44 = vpop.f32.mrf.mxu0 }
 0x2ed   : > { %v2610_v23 = vsel %vm527_vm3, %v12916_v37, %v12915_v10  ;;  %v2960_v27 = vsel %vm12917_vm0, %v6447_v49, %v12388_v60  ;;  %v12389_v32 = vunpack.i.h.bf16 %v10074_v35  ;;  %v6521_v36 = vunpack.i.l.bf16 %v10074_v35  ;;  %12919 = vst [vmem:[#allocation73_spill] sm:$0xff] %v10091_v30  ;;  %v12920_v37 = vld [vmem:[#allocation38_spill] sm:$0xff]  ;;  %6744 = vrot.lane.b32.xlu0 %v9874_v13, %s7264_s23 }
 0x2ee   : > { %4222 = vmatpush.msra.mxu3 %v12912_v11  ;;  %v6446_v11 = vunpack.i.l.bf16 %v9822_v54  ;;  %4021 = vmatpush.msra.mxu0 %v2960_v27  ;;  %v12922_v54 = vunpack.i.h.bf16 %v10060_v26  ;;  %v12924_v27 = vunpack.i.h.bf16 %v9924_v41  ;;  %vm12932_vm0 = vcmask 220160  }
 0x2ef   : > { %v3416_v10 = vsel %vm12921_vm9, %v6521_v36, %v12389_v32  ;;  %6749 = vrot.lane.b32.xlu1 %v9644_v57, %s12802_s30  ;;  %6754 = vrot.lane.b32.xlu2 %v9874_v13, %s12812_s9  ;;  %vm12939_vm9 = vmmov %vm12932_vm0 }
 0x2f0   : > { %4223 = vmatpush.msra.mxu3 %v2610_v23  ;;  %v2956_v49 = vsel %vm12923_vm14, %v6446_v11, %v12922_v54  ;;  %v3412_v33 = vsel %vm12925_vm13, %v6531_v2, %v12924_v27  ;;  %v6421_v23 = vunpack.i.l.bf16 %v9706_v39  ;;  %4048 = vmatpush.msra.mxu1 %v3416_v10  ;;  %v3445_v27 = vld [vmem:[%s7431_s8 + $0x98] sm:$0xff]  ;;  %vm12941_vm14 = vcmask 277504  }
 0x2f1   : > { %4022 = vmatpush.msra.mxu0 %v2956_v49  ;;  %v3440_v49 = vld [vmem:[%s7431_s8 + $0x48] sm:$0xff]  ;;  %vm12951_vm13 = vcmask 228352  }
 0x2f2   : > { %4224 = vmatpush.msra.mxu3 %v12920_v37  ;;  %v12926_v37 = vld [vmem:[#allocation45_spill] sm:$0xff]  ;;  %v10111_v30 = vpop.f32.mrf.mxu3  ;;  %v10117_v2 = vpop.permute.xlu1 %6539  ;;  %4049 = vmatpush.msra.mxu1 %v3412_v33  ;;  %v10150_v11 = vpack.i.bf16 %v3440_v49, %v3445_v27 }
 0x2f3   : > { %v12927_v60 = vunpack.i.h.bf16 %v12926_v37  ;;  %v12928_v36 = vunpack.i.l.bf16 %v12926_v37  ;;  %12929 = vst [vmem:[#allocation38_spill] sm:$0xff] %v10111_v30  ;;  %v6541_v10 = vunpack.i.l.bf16 %v10117_v2  ;;  %v10129_v37 = vpop.permute.xlu2 %6589  ;;  %4116 = vmatmul.f32.vlgmr.msrb.gmra.mxu3 %v9886_v50 }
 0x2f4   : > { %12930 = vst [vmem:[#allocation45_spill] sm:$0xff] %v10113_v44 }
 0x2f5   : > { %v2566_v32 = vsel %vm482_vm4, %v12928_v36, %v12927_v60  ;;  %v12931_v60 = vunpack.i.l.bf16 %v9752_v43  ;;  %v12935_v36 = vld [vmem:[#allocation65_spill] sm:$0xff]  ;;  %v10138_v43 = vpop.permute.xlu0 %6534  ;;  %6759 = vrot.lane.b32.xlu0 %v9644_v57, %s12820_s10  ;;  %v12953_v57 = vunpack.i.l.bf16 %v12884_v56 }
 0x2f6   : > { %4225 = vmatpush.msra.mxu3 %v2566_v32  ;;  %v12933_v32 = vld [vmem:[#allocation49_spill] sm:$0xff]  ;;  %v12936_v44 = vunpack.i.h.bf16 %v12935_v36  ;;  %v12937_v30 = vunpack.i.l.bf16 %v12935_v36  ;;  %v6396_v36 = vunpack.i.l.bf16 %v9474_v22 }
 0x2f7   : > { %v2916_v54 = vsel %vm12932_vm0, %v6432_v34, %v12931_v60  ;;  %12934 = vst [vmem:[#allocation49_spill] sm:$0xff] %v10129_v37  ;;  %v12938_v34 = vunpack.i.h.bf16 %v9706_v39  ;;  %v12942_v39 = vld [vmem:[#allocation53_spill] sm:$0xff]  ;;  %6764 = vrot.lane.b32.xlu1 %v9874_v13, %s7254_s0  ;;  %6769 = vrot.lane.b32.xlu2 %v10150_v11, %s7262_s15  ;;  %vm12954_vm0 = vcmask 875520   ;;  %s11997_s15 = scalar_lea.vmem [#allocation12], %s7442_s1 }
 0x2f8   : > { %4226 = vmatpush.msra.mxu3 %v12933_v32  ;;  %4023 = vmatpush.msra.mxu0 %v2916_v54  ;;  %v2502_v33 = vsel %vm417_vm5, %v12937_v30, %v12936_v44  ;;  %v12940_v32 = vunpack.i.h.bf16 %v10117_v2  ;;  %v12392_v44 = vunpack.i.h.bf16 %v10138_v43  ;;  %v6536_v30 = vunpack.i.l.bf16 %v10138_v43 }
 0x2f9   : > { %v2912_v60 = vsel %vm12939_vm9, %v6421_v23, %v12938_v34  ;;  %v6367_v34 = vunpack.i.h.bf16 %v12884_v56  ;;  %vm12957_vm9 = vcmask 867328  }
 0x2fa   : > { %v3720_v54 = vsel %vm12941_vm14, %v6541_v10, %v12940_v32  ;;  %4227 = vmatpush.msra.mxu3 %v2502_v33  ;;  %4024 = vmatpush.msra.mxu0 %v2912_v60  ;;  %v3372_v23 = vsel %vm1302_vm8, %v6536_v30, %v12392_v44  ;;  %v10157_v10 = vpop.f32.mrf.mxu1  ;;  %v12944_v32 = vld [vmem:[#allocation58_spill] sm:$0xff]  ;;  %v10170_v60 = vpop.f32.mrf.mxu3  ;;  %v6371_v30 = vunpack.i.l.bf16 %v9555_v48 }
 0x2fb   : > { %4081 = vmatpush.msra.mxu2 %v3720_v54  ;;  %12943 = vst [vmem:[#allocation65_spill] sm:$0xff] %v10157_v10  ;;  %4050 = vmatpush.msra.mxu1 %v3372_v23  ;;  %v12945_v7 = vunpack.i.h.bf16 %v12944_v32  ;;  %v12946_v33 = vunpack.i.l.bf16 %v12944_v32  ;;  %v10172_v54 = vpop.f32.mrf.mxu2  ;;  %v10180_v23 = vpop.permute.xlu1 %6554 }
 0x2fc   : > { %4228 = vmatpush.msra.mxu3 %v12942_v39  ;;  %4025 = vmatpush.msra.mxu0 %v9670_v16  ;;  %v12947_v16 = vunpack.i.h.bf16 %v9969_v1  ;;  %12948 = vst [vmem:[#allocation53_spill] sm:$0xff] %v10170_v60  ;;  %v12950_v39 = vunpack.i.h.bf16 %v9474_v22  ;;  %v6556_v32 = vunpack.i.l.bf16 %v10180_v23  ;;  %v12969_v60 = vunpack.i.h.bf16 %v10072_v17 }
 0x2fd   : > { %v2458_v49 = vsel %vm372_vm6, %v12946_v33, %v12945_v7  ;;  %12949 = vst [vmem:[#allocation58_spill] sm:$0xff] %v10172_v54  ;;  %v10186_v33 = vpop.f32.mrf.mxu0  ;;  %4119 = vmatmul.f32.gmra.mxu3 %v9934_v19  ;;  %6774 = vrot.lane.b32.xlu0 %v9874_v13, %s7253_s11  ;;  %v12966_v54 = vld [vmem:[#allocation48_spill] sm:$0xff] }
 0x2fe   : > { %v3368_v27 = vsel %vm1302_vm8, %v6546_v9, %v12947_v16  ;;  %4229 = vmatpush.msra.mxu3 %v2458_v49  ;;  %v2868_v7 = vsel %vm12951_vm13, %v6396_v36, %v12950_v39  ;;  %v12394_v9 = vunpack.i.h.bf16 %v10180_v23  ;;  %12952 = vst [vmem:[#allocation74_spill] sm:$0xff] %v10186_v33  ;;  %v10189_v49 = vpop.permute.xlu2 %6604  ;;  %v6561_v36 = vunpack.i.l.bf16 %v10022_v8  ;;  %v10193_v16 = vpop.permute.xlu0 %6549  ;;  %v12977_v33 = vld [vmem:[#allocation37_spill] sm:$0xff] }
 0x2ff   : > { %4026 = vmatpush.msra.mxu0 %v2868_v7  ;;  %4051 = vmatpush.msra.mxu1 %v3368_v27  ;;  %v2767_v39 = vsel %vm12954_vm0, %v12953_v57, %v6367_v34  ;;  %v10202_v7 = vld [vmem:[#allocation7 + $0x8] sm:$0xff]  ;;  %v12393_v44 = vunpack.i.h.bf16 %v10193_v16  ;;  %v6551_v22 = vunpack.i.l.bf16 %v10193_v16 }
 0x300   : > { %4230 = vmatpush.msra.mxu3 %v9720_v47  ;;  %v3328_v27 = vsel %vm1257_vm7, %v6556_v32, %v12394_v9  ;;  %12955 = vst [vmem:[#allocation75_spill] sm:$0xff] %v10202_v7  ;;  %v6342_v47 = vunpack.i.h.bf16 %v9476_v14  ;;  %v12958_v32 = vunpack.i.h.bf16 %v10022_v8  ;;  %6779 = vrot.lane.b32.xlu1 %v10150_v11, %s7261_s17 }
 0x301   : > { %4027 = vmatpush.msra.mxu0 %v9629_v20  ;;  %v12956_v20 = vunpack.i.h.bf16 %v9555_v48  ;;  %4052 = vmatpush.msra.mxu1 %v3328_v27  ;;  %v3716_v34 = vsel %vm12941_vm14, %v6551_v22, %v12393_v44  ;;  %v12960_v48 = vld [vmem:[#allocation33_spill] sm:$0xff]  ;;  %v10250_v44 = vld [vmem:[#allocation7 + $0x28] sm:$0xff] }
 0x302   : > { %4231 = vmatpush.msra.mxu3 %v9717_v12  ;;  %4082 = vmatpush.msra.mxu2 %v3716_v34  ;;  %v3676_v12 = vsel %vm1612_vm10, %v6561_v36, %v12958_v32  ;;  %v10220_v57 = vpop.f32.mrf.mxu3  ;;  %v10232_v22 = vpop.f32.mrf.mxu1  ;;  %v6576_v34 = vunpack.i.l.bf16 %v10072_v17  ;;  %v12964_v32 = vld [vmem:[#allocation67_spill] sm:$0xff] }
 0x303   : > { %v2804_v56 = vsel %vm12957_vm9, %v6371_v30, %v12956_v20  ;;  %12959 = vst [vmem:[#allocation76_spill] sm:$0xff] %v10220_v57  ;;  %v6317_v30 = vunpack.i.h.bf16 %v12960_v48  ;;  %6784 = vrot.lane.b32.xlu2 %v9874_v13, %s12727_s24  ;;  %v10238_v20 = vpop.f32.mrf.mxu2  ;;  %v12967_v57 = vunpack.i.l.bf16 %v12960_v48  ;;  %v12970_v48 = vld [vmem:[#allocation34_spill] sm:$0xff]  ;;  %vm13001_vm9 = vcmask 130048   ;;  %s5178_s24 = scalar_lea.sflag [#allocation13], %s7428_s12 }
 0x304   : > { %4332 = vmatpush.msrb.mxu3 %v2767_v39  ;;  %4028 = vmatpush.msra.mxu0 %v2804_v56  ;;  %v12961_v39 = vunpack.i.l.bf16 %v9476_v14  ;;  %12962 = vst [vmem:[#allocation33_spill] sm:$0xff] %v10232_v22  ;;  %v6267_v22 = vunpack.i.h.bf16 %v12970_v48  ;;  %v12978_v45 = vunpack.i.l.bf16 %v12970_v48  ;;  %v12981_v48 = vunpack.i.h.bf16 %v10129_v37  ;;  %vm13003_vm14 = vmmov %vm13001_vm9 }
 0x305   : > { %4029 = vmatmul.f32.vlgmr.msra.gmra.mxu0 %v10202_v7  ;;  %12963 = vst [vmem:[#allocation77_spill] sm:$0xff] %v10238_v20  ;;  %4083 = vmatpush.msra.mxu2 %v3676_v12  ;;  %v10252_v9 = vpop.f32.mrf.mxu0  ;;  %v6292_v12 = vunpack.i.h.bf16 %v12966_v54  ;;  %v3264_v20 = vsel %vm1192_vm12, %v6576_v34, %v12969_v60  ;;  %v12980_v7 = vld [vmem:[#allocation41_spill] sm:$0xff] }
 0x306   : > { %4333 = vmatpush.msrb.mxu3 %v9530_v5  ;;  %v2723_v27 = vsel %vm637_vm1, %v12961_v39, %v6342_v47  ;;  %v10230_v5 = vpop.permute.xlu1 %6569  ;;  %v10240_v47 = vpop.permute.xlu2 %6619  ;;  %12965 = vst [vmem:[#allocation67_spill] sm:$0xff] %v10250_v44  ;;  %6789 = vrot.lane.b32.xlu0 %v10150_v11, %s12751_s29  ;;  %vm12979_vm1 = vcmask 293888  }
 0x307   : > { %v12395_v36 = vunpack.i.h.bf16 %v10230_v5  ;;  %v6571_v14 = vunpack.i.l.bf16 %v10230_v5  ;;  %v10245_v39 = vpop.permute.xlu0 %6564  ;;  %4122 = vmatmul.f32.gmra.mxu3 %v9994_v62 }
 0x308   : > { %4334 = vmatpush.msrb.mxu3 %v2723_v27  ;;  %v12396_v10 = vunpack.i.h.bf16 %v10245_v39  ;;  %v6566_v56 = vunpack.i.l.bf16 %v10245_v39  ;;  %6794 = vrot.lane.b32.xlu1 %v9874_v13, %s12767_s26 }
 0x309   : > { %v3672_v27 = vsel %vm1612_vm10, %v6571_v14, %v12395_v36  ;;  %v12968_v36 = vld [vmem:[#allocation24_spill] sm:$0xff] }
 0x30a   : > { %4335 = vmatpush.msrb.mxu3 %v12964_v32  ;;  %v2659_v32 = vsel %vm572_vm2, %v12967_v57, %v6317_v30  ;;  %4084 = vmatpush.msra.mxu2 %v3672_v27  ;;  %v3324_v14 = vsel %vm1257_vm7, %v6566_v56, %v12396_v10  ;;  %v12971_v57 = vunpack.i.l.bf16 %v12966_v54  ;;  %v2234_v27 = vpop.f32.mrf.mxu1  ;;  %vm12982_vm2 = vmmov %vm12979_vm1 }
 0x30b   : > { %4053 = vmatpush.msra.mxu1 %v3324_v14  ;;  %6799 = vrot.lane.b32.xlu2 %v10150_v11, %s12780_s13  ;;  %v12974_v14 = vld [vmem:[#allocation42_spill] sm:$0xff]  ;;  %v10295_v10 = vpop.f32.mrf.mxu2 }
 0x30c   : > { %4336 = vmatpush.msrb.mxu3 %v2659_v32  ;;  %v2615_v30 = vsel %vm527_vm3, %v12971_v57, %v6292_v12  ;;  %v6591_v32 = vunpack.i.l.bf16 %v10129_v37  ;;  %vm12987_vm3 = vcmask 392192  }
 0x30d   : > { %4032 = vmatmul.f32.gmra.mxu0 %v10250_v44  ;;  %4054 = vmatpush.msra.mxu1 %v3264_v20  ;;  %v10297_v20 = vld [vmem:[#allocation7 + $0x48] sm:$0xff]  ;;  %v6997_v44 = vld [vmem:[%s7431_s8 + $0x90] sm:$0xff]  ;;  %vm12999_vm0 = vmmov %vm12987_vm3 }
 0x30e   : > { %4337 = vmatpush.msrb.mxu3 %v12968_v36  ;;  %v10277_v56 = vpop.permute.xlu1 %6584  ;;  %v10279_v36 = vpop.f32.mrf.mxu3  ;;  %12976 = vst [vmem:[#allocation42_spill] sm:$0xff] %v10297_v20 }
 0x30f   : > { %12972 = vst [vmem:[#allocation48_spill] sm:$0xff] %v10277_v56  ;;  %v12401_v60 = vunpack.i.h.bf16 %v10277_v56  ;;  %v6586_v54 = vunpack.i.l.bf16 %v10277_v56  ;;  %v10285_v34 = vpop.permute.xlu2 %6634  ;;  %v10290_v57 = vpop.permute.xlu0 %6579  ;;  %4125 = vmatmul.f32.gmra.mxu3 %v10062_v51 }
 0x310   : > { %12973 = vst [vmem:[#allocation24_spill] sm:$0xff] %v10279_v36  ;;  %4338 = vmatpush.msrb.mxu3 %v2615_v30  ;;  %v6242_v36 = vunpack.i.h.bf16 %v12977_v33  ;;  %v12406_v31 = vunpack.i.h.bf16 %v10290_v57  ;;  %v6581_v12 = vunpack.i.l.bf16 %v10290_v57  ;;  %v2208_v56 = vpop.f32.mrf.mxu0  ;;  %6809 = vrot.lane.b32.xlu1 %v10150_v11, %s12786_s27  ;;  %s7142_s27 = scalar_lea.hbm %s12158_s5, 128 }
 0x311   : > { %12975 = vst [vmem:[#allocation34_spill] sm:$0xff] %v10290_v57  ;;  %v3260_v30 = vsel %vm1192_vm12, %v6586_v54, %v12401_v60  ;;  %v6998_v54 = vld [vmem:[%s7431_s8 + $0x40] sm:$0xff]  ;;  %s5431_s8 = sshll.u32 %s7317_s22, 6 }
 0x312   : > { %4339 = vmatpush.msrb.mxu3 %v12974_v14  ;;  %v2571_v14 = vsel %vm482_vm4, %v12978_v45, %v6267_v22  ;;  %4055 = vmatpush.msra.mxu1 %v3260_v30  ;;  %v6803_v60 = vpack.i.bf16 %v6998_v54, %v6997_v44  ;;  %v3632_v17 = vsel %vm12979_vm1, %v6581_v12, %v12406_v31  ;;  %v12983_v22 = vld [vmem:[#allocation59_spill] sm:$0xff]  ;;  %vm12991_vm4 = vcmask 64512   ;;  %vm13009_vm1 = vmmov %vm12999_vm0 }
 0x313   : > { %4085 = vmatpush.msra.mxu2 %v3632_v17  ;;  %v3628_v45 = vsel %vm12982_vm2, %v6591_v32, %v12981_v48  ;;  %v6217_v30 = vunpack.i.h.bf16 %v12983_v22  ;;  %6814 = vrot.lane.b32.xlu2 %v10150_v11, %s7265_s6  ;;  %vm12998_vm13 = vmmov %vm12991_vm4  ;;  %vm13011_vm2 = vcmask 375808   ;;  %s5206_s6 = sshll.u32 %s11997_s15, 4  ;;  %s12043_s6 = int_to_ptr.vmem [resolvable:$true] %s5206_s6 }
 0x314   : > { %4340 = vmatpush.msrb.mxu3 %v2571_v14  ;;  %v12984_v14 = vunpack.i.l.bf16 %v12977_v33  ;;  %6804 = vrot.lane.b32.xlu0 %v6803_v60, %s7250_s16  ;;  %v12988_v33 = vunpack.i.l.bf16 %v12983_v22  ;;  %v12993_v22 = vunpack.i.h.bf16 %v10189_v49  ;;  %s11991_s16 = scalar_lea.hbm %s12158_s5, %s5431_s8 }
 0x315   : > { %4035 = vmatmul.f32.gmra.mxu0 %v10297_v20  ;;  %4086 = vmatpush.msra.mxu2 %v3628_v45  ;;  %v2237_v45 = vpop.f32.mrf.mxu1  ;;  %s5208_s11 = sshll.u32 %s11991_s16, 4  ;;  %s12045_s11 = int_to_ptr.hbm [resolvable:$true] %s5208_s11 }
 0x316   : > { %4341 = vmatpush.msrb.mxu3 %v12980_v7  ;;  %v2507_v44 = vsel %vm417_vm5, %v12984_v14, %v6242_v36  ;;  %v10324_v12 = vpop.permute.xlu1 %6599  ;;  %v10326_v7 = vld [vmem:[#allocation7 + $0x18] sm:$0xff]  ;;  %v2176_v17 = vpop.f32.mrf.mxu3  ;;  %v6606_v36 = vunpack.i.l.bf16 %v10189_v49  ;;  %v2463_v32 = vsel %vm372_vm6, %v12988_v33, %v6217_v30  ;;  %vm12992_vm5 = vcmask 56320   ;;  %v12995_v33 = vld [vmem:[#allocation51_spill] sm:$0xff]  ;;  %s7136_s29 = sshra.s32 %s12045_s11, 4  ;;  %s7137_s29 = int_to_ptr.hbm [resolvable:$true] %s7136_s29 }
 0x317   : > { %12985 = vst [vmem:[#allocation37_spill] sm:$0xff] %v10326_v7  ;;  %v10332_v54 = vpop.permute.xlu2 %6649  ;;  %v2206_v48 = vadd.f32 %v10252_v9, %v2176_v17  ;;  %v12986_v14 = vld [vmem:[#allocation40_spill] sm:$0xff]  ;;  %v10336_v31 = vpop.permute.xlu0 %6594  ;;  %5382 = vmatmul.msk.f32.vlgmr.msra.gmra.mxu2 %vm12987_vm3, %v10326_v7  ;;  %4232 = vmatmul.f32.vlgmr.msra.gmra.mxu3 %v9886_v50  ;;  %v12989_v17 = vunpack.i.l.bf16 %v10324_v12  ;;  %vm12994_vm6 = vmmov %vm12992_vm5  ;;  %vm13013_vm3 = vcmask 138240   ;;  %s7138_s26 = scalar_lea.hbm %s7137_s29, 64  ;;  %p7143_p2 = scmp.lt.s32.totalorder %s7137_s29, %s12158_s5 }
 0x318   : > { %4342 = vmatpush.msrb.mxu3 %v2507_v44  ;;  %v12413_v60 = vunpack.i.h.bf16 %v10336_v31  ;;  %v6596_v44 = vunpack.i.l.bf16 %v10336_v31  ;;  %v2266_v7 = vpop.f32.mrf.mxu2  ;;  %v3216_v30 = vsel %vm12994_vm6, %v6606_v36, %v12993_v22  ;;  %v2211_v57 = vpop.f32.mrf.mxu0  ;;  %6824 = vrot.lane.b32.xlu1 %v10150_v11, %s7264_s23  ;;  %vm13020_vm6 = vcmask 146432   ;;  %s12070_s23 = scalar_lea.hbm %s12157_s4, %s5431_s8  ;;  %p7139_p4 = scmp.ne.s32.totalorder %s7137_s29, %s7138_s26 }
 0x319   : > { %v2235_v9 = vadd.f32 %v2234_v27, %v2206_v48  ;;  %v12997_v27 = vunpack.i.h.bf16 %v9672_v4  ;;  %v13000_v4 = vunpack.i.h.bf16 %v9857_v0  ;;  %v12416_v0 = vunpack.i.l.bf16 %v10240_v47  ;;  %p7144_p10 = scmp.lt.s32.totalorder %s7142_s27, %s7138_s26 }
 0x31a   : > { %4343 = vmatpush.msrb.mxu3 %v12986_v14  ;;  %v12990_v14 = vunpack.i.h.bf16 %v9807_v18  ;;  %v3220_v37 = vsel %vm12992_vm5, %v6596_v44, %v12413_v60  ;;  %vm13017_vm5 = vmmov %vm13011_vm2  ;;  %p7140_p1 = pnand %p7139_p4, %p7369_p7 }
 0x31b   : > { %4056 = vmatpush.msra.mxu1 %v3220_v37  ;;  %6829 = vrot.lane.b32.xlu2 %v9874_v13, %s12802_s30  ;;  %v12996_v37 = vunpack.i.h.bf16 %v10324_v12  ;;  %v10381_v22 = vadd.f32 %v10295_v10, %v2235_v9  ;;  %v10412_v10 = vld [vmem:[#allocation7 + $0x30] sm:$0xff]  ;;  %p7145_p13 = por %p7144_p10, %p7143_p2 }
 0x31c   : > { %4344 = vmatpush.msrb.mxu3 %v2463_v32  ;;  %v3177_v20 = vsel %vm12991_vm4, %v12990_v14, %v12989_v17  ;;  %v10359_v32 = vld [vmem:[#allocation7 + $0x10] sm:$0xff]  ;;  %v10369_v17 = vld [vmem:[#allocation7 + $0x68] sm:$0xff]  ;;  %6819 = vrot.lane.b32.xlu0 %v10150_v11, %s12794_s28  ;;  %vm13015_vm4 = vmmov %vm13013_vm3  ;;  %p7141_p11 = pneg %p7140_p1 }
 0x31d   : > { %4129 = vmatpush.msrb.mxu0 %v3177_v20  ;;  %v10367_v20 = vld [vmem:[#allocation7 + $0x38] sm:$0xff]  ;;  %4057 = vmatpush.msra.mxu1 %v3216_v30  ;;  %v3173_v36 = vsel %vm12998_vm13, %v12997_v27, %v12996_v37  ;;  %vm13022_vm13 = vmmov %vm13020_vm6 }
 0x31e   : > { %4345 = vmatpush.msrb.mxu3 %v12995_v33  ;;  %v10365_v18 = vpop.permute.xlu1 %6614  ;;  %v2179_v44 = vpop.f32.mrf.mxu3  ;;  %4058 = vmatmul.f32.vlgmr.msra.gmra.mxu1 %v10359_v32  ;;  %p7146_p0 = pnand %p7145_p13, %p7141_p11 }
 0x31f   : > { %v12417_v48 = vunpack.i.h.bf16 %v10365_v18  ;;  %v12414_v14 = vunpack.i.l.bf16 %v10365_v18  ;;  %4130 = vmatpush.msrb.mxu0 %v3173_v36  ;;  %v10384_v33 = vpop.permute.xlu2 %6664  ;;  %v2209_v60 = vadd.f32 %v2208_v56, %v2179_v44  ;;  %v10386_v30 = vpop.permute.xlu0 %6609  ;;  %5383 = vmatmul.msk.f32.gmra.mxu2 %vm12999_vm0, %v10367_v20  ;;  %v13002_v56 = vunpack.i.h.bf16 %v9926_v53 }
 0x320   : > { %4038 = vmatmul.f32.gmra.mxu0 %v10369_v17  ;;  %v6611_v9 = vunpack.i.l.bf16 %v10386_v30  ;;  %4235 = vmatmul.f32.gmra.mxu3 %v9934_v19  ;;  %v13004_v36 = vunpack.i.h.bf16 %v9876_v15  ;;  %v13006_v15 = vunpack.i.h.bf16 %v9713_v52  ;;  %v13007_v52 = vunpack.i.h.bf16 %v9909_v42 }
 0x321   : > { %v3113_v37 = vsel %vm13001_vm9, %v13000_v4, %v12414_v14  ;;  %v3109_v44 = vsel %vm13003_vm14, %v13002_v56, %v12417_v48  ;;  %v2238_v27 = vadd.f32 %v2237_v45, %v2209_v60  ;;  %4346 = vmatpush.msrb.mxu3 %v9990_v46  ;;  %v12415_v14 = vunpack.i.h.bf16 %v10240_v47  ;;  %v2269_v60 = vpop.f32.mrf.mxu2  ;;  %6839 = vrot.lane.b32.xlu1 %v9874_v13, %s12820_s10  ;;  %v10464_v48 = vld [vmem:[#allocation7 + $0x50] sm:$0xff] }
 0x322   : > { %4131 = vmatpush.msrb.mxu0 %v3113_v37  ;;  %v3569_v4 = vsel %vm1502_vm15, %v13004_v36, %v6611_v9  ;;  %v2240_v37 = vpop.f32.mrf.mxu1  ;;  %v13005_v46 = vunpack.i.h.bf16 %v10386_v30  ;;  %vm13024_vm9 = vcmask 211968   ;;  %vm13026_vm14 = vcmask 441344  }
 0x323   : > { %4158 = vmatpush.msrb.mxu1 %v3569_v4  ;;  %v10414_v53 = vadd.f32 %v2266_v7, %v2238_v27  ;;  %4347 = vmatpush.msrb.mxu3 %v9987_v40  ;;  %v2214_v27 = vpop.f32.mrf.mxu0  ;;  %v3525_v4 = vsel %vm1457_vm11, %v13007_v52, %v12416_v0  ;;  %v12421_v0 = vunpack.i.h.bf16 %v10285_v34 }
 0x324   : > { %4132 = vmatpush.msrb.mxu0 %v3109_v44  ;;  %v3565_v45 = vsel %vm1502_vm15, %v13006_v15, %v13005_v46  ;;  %v10426_v44 = vld [vmem:[#allocation7 + $0x58] sm:$0xff]  ;;  %6834 = vrot.lane.b32.xlu0 %v10150_v11, %s12812_s9  ;;  %v13008_v11 = vunpack.i.h.bf16 %v9971_v24 }
 0x325   : > { %4159 = vmatpush.msrb.mxu1 %v3565_v45 }
 0x326   : > { %v10424_v56 = vpop.permute.xlu1 %6629  ;;  %v2182_v36 = vpop.f32.mrf.mxu3  ;;  %4061 = vmatmul.f32.gmra.mxu1 %v10412_v10 }
 0x327   : > { %v12419_v40 = vunpack.i.l.bf16 %v10424_v56  ;;  %v2212_v7 = vadd.f32 %v2211_v57, %v2182_v36  ;;  %v10432_v13 = vpop.permute.xlu2 %6679  ;;  %v10439_v46 = vpop.permute.xlu0 %6624  ;;  %4160 = vmatpush.msrb.mxu1 %v3525_v4  ;;  %v3521_v57 = vsel %vm1457_vm11, %v13008_v11, %v12415_v14  ;;  %5384 = vmatmul.msk.f32.gmra.mxu2 %vm13009_vm1, %v10426_v44  ;;  %v12418_v15 = vunpack.i.h.bf16 %v10424_v56  ;;  %vm13028_vm1 = vmmov %vm13024_vm9 }
 0x328   : > { %v12420_v45 = vunpack.i.h.bf16 %v10439_v46  ;;  %v12423_v42 = vunpack.i.l.bf16 %v10439_v46  ;;  %v13010_v36 = vunpack.i.h.bf16 %v9820_v6  ;;  %4238 = vmatmul.f32.gmra.mxu3 %v9994_v62  ;;  %v12422_v4 = vunpack.i.l.bf16 %v10285_v34 }
 0x329   : > { %4161 = vmatpush.msrb.mxu1 %v3521_v57  ;;  %v2241_v24 = vadd.f32 %v2240_v37, %v2212_v7  ;;  %v13012_v11 = vunpack.i.h.bf16 %v9762_v3  ;;  %v13014_v6 = vunpack.i.h.bf16 %v9956_v29  ;;  %v13016_v7 = vunpack.i.h.bf16 %v10012_v58 }
 0x32a   : > { %v3481_v52 = vsel %vm13011_vm2, %v13010_v36, %v12419_v40  ;;  %v10478_v36 = vld [vmem:[#allocation7 + $0x78] sm:$0xff]  ;;  %v13019_v58 = vunpack.i.h.bf16 %v10026_v28  ;;  %v2272_v40 = vpop.f32.mrf.mxu2  ;;  %vm13030_vm2 = vmmov %vm13026_vm14 }
 0x32b   : > { %v3069_v14 = vsel %vm13013_vm3, %v13012_v11, %v12423_v42  ;;  %4162 = vmatpush.msrb.mxu1 %v3481_v52  ;;  %v3065_v37 = vsel %vm13015_vm4, %v13014_v6, %v12420_v45  ;;  %v3477_v3 = vsel %vm13017_vm5, %v13016_v7, %v12418_v15  ;;  %v2243_v52 = vpop.f32.mrf.mxu1  ;;  %v6652_v42 = vunpack.i.h.bf16 %v10332_v54 }
 0x32c   : > { %4133 = vmatpush.msrb.mxu0 %v3069_v14  ;;  %v10480_v14 = vadd.f32 %v2269_v60, %v2241_v24  ;;  %v3025_v7 = vsel %vm13020_vm6, %v13019_v58, %v12422_v4  ;;  %v13021_v24 = vunpack.i.h.bf16 %v9872_v63  ;;  %v6651_v63 = vunpack.i.l.bf16 %v10332_v54 }
 0x32d   : > { %4163 = vmatpush.msrb.mxu1 %v3477_v3  ;;  %v2321_v3 = vpop.f32.mrf.mxu0  ;;  %vm13035_vm3 = vcmask 277504   ;;  %vm13043_vm5 = vcmask 293888  }
 0x32e   : > { %v10476_v57 = vpop.permute.xlu1 %6644  ;;  %13018 = vst [vmem:[#allocation41_spill] sm:$0xff] %v10480_v14  ;;  %4134 = vmatpush.msrb.mxu0 %v3065_v37  ;;  %v2185_v29 = vpop.f32.mrf.mxu3  ;;  %4064 = vmatmul.f32.gmra.mxu1 %v10464_v48  ;;  %v3021_v37 = vsel %vm13022_vm13, %v13021_v24, %v12421_v0  ;;  %v10515_v0 = vld [vmem:[#allocation7 + $0x70] sm:$0xff]  ;;  %vm13038_vm4 = vmmov %vm13035_vm3 }
 0x32f   : > { %v12424_v11 = vunpack.i.l.bf16 %v10476_v57  ;;  %v10484_v6 = vpop.permute.xlu2 %6694  ;;  %v2215_v15 = vadd.f32 %v2214_v27, %v2185_v29  ;;  %v10491_v60 = vpop.permute.xlu0 %6639  ;;  %5385 = vmatmul.msk.f32.gmra.mxu2 %vm12999_vm0, %v10478_v36  ;;  %v12425_v45 = vunpack.i.h.bf16 %v10476_v57  ;;  %v13023_v29 = vunpack.i.l.bf16 %v10060_v26  ;;  %vm13051_vm6 = vmmov %vm13043_vm5 }
 0x330   : > { %4135 = vmatpush.msrb.mxu0 %v3025_v7  ;;  %v6642_v28 = vunpack.i.h.bf16 %v10491_v60  ;;  %v6641_v27 = vunpack.i.l.bf16 %v10491_v60  ;;  %4241 = vmatmul.f32.gmra.mxu3 %v10062_v51  ;;  %v13025_v7 = vunpack.i.h.bf16 %v10074_v35  ;;  %vm13053_vm13 = vmmov %vm12999_vm0  ;;  %vm13055_vm0 = vcmask 56320  }
 0x331   : > { %v2961_v58 = vsel %vm13024_vm9, %v13023_v29, %v12424_v11  ;;  %v2244_v4 = vadd.f32 %v2243_v52, %v2215_v15  ;;  %v13027_v29 = vunpack.i.h.bf16 %v10060_v26  ;;  %v13029_v11 = vunpack.i.h.bf16 %v9924_v41  ;;  %vm13057_vm9 = vmmov %vm13055_vm0 }
 0x332   : > { %4136 = vmatpush.msrb.mxu0 %v3021_v37  ;;  %v3417_v24 = vsel %vm13026_vm14, %v13025_v7, %v6641_v27  ;;  %vm13059_vm14 = vcmask 64512  }
 0x333   : > { %4164 = vmatpush.msrb.mxu1 %v3417_v24  ;;  %v2957_v37 = vsel %vm13028_vm1, %v13027_v29, %v12425_v45  ;;  %v3413_v35 = vsel %vm13030_vm2, %v13029_v11, %v6642_v28  ;;  %v10531_v52 = vadd.f32 %v2272_v40, %v2244_v4  ;;  %v13031_v24 = vunpack.i.h.bf16 %v10138_v43  ;;  %v2350_v29 = vpop.f32.mrf.mxu1  ;;  %vm13062_vm1 = vmmov %vm13059_vm14 }
 0x334   : > { %4137 = vmatpush.msrb.mxu0 %v2961_v58  ;;  %v13032_v4 = vunpack.i.h.bf16 %v9969_v1  ;;  %v13033_v43 = vunpack.i.h.bf16 %v10180_v23  ;;  %v12427_v1 = vunpack.i.l.bf16 %v10384_v33  ;;  %v13034_v23 = vunpack.i.h.bf16 %v10117_v2 }
 0x335   : > { %4165 = vmatpush.msrb.mxu1 %v3413_v35  ;;  %v3373_v41 = vsel %vm1302_vm8, %v13031_v24, %v6651_v63  ;;  %v2379_v35 = vpop.f32.mrf.mxu2  ;;  %v2324_v24 = vpop.f32.mrf.mxu0  ;;  %vm13066_vm2 = vcmask 130048  }
 0x336   : > { %v10528_v7 = vpop.permute.xlu1 %6659  ;;  %4138 = vmatpush.msrb.mxu0 %v2957_v37  ;;  %v2292_v58 = vpop.f32.mrf.mxu3  ;;  %4067 = vmatmul.f32.gmra.mxu1 %v10515_v0  ;;  %v3369_v37 = vsel %vm1302_vm8, %v13032_v4, %v6652_v42 }
 0x337   : > { %v6661_v15 = vunpack.i.l.bf16 %v10528_v7  ;;  %v10534_v26 = vpop.permute.xlu2 %6709  ;;  %v2322_v11 = vadd.f32 %v2321_v3, %v2292_v58  ;;  %v10541_v45 = vpop.permute.xlu0 %6654  ;;  %4166 = vmatpush.msrb.mxu1 %v3373_v41  ;;  %v12428_v40 = vunpack.i.h.bf16 %v10528_v7 }
 0x338   : > { %4139 = vmatpush.msrb.mxu0 %v9776_v25  ;;  %4348 = vmatmul.f32.vlgmr.msrb.gmra.mxu3 %v9886_v50  ;;  %v6657_v25 = vunpack.i.h.bf16 %v10541_v45  ;;  %v6656_v58 = vunpack.i.l.bf16 %v10541_v45  ;;  %v12426_v50 = vunpack.i.h.bf16 %v10384_v33 }
 0x339   : > { %v3329_v3 = vsel %vm1257_vm7, %v13033_v43, %v6661_v15  ;;  %4167 = vmatpush.msrb.mxu1 %v3369_v37  ;;  %v2351_v43 = vadd.f32 %v2350_v29, %v2322_v11  ;;  %v13040_v11 = vunpack.i.h.bf16 %v10230_v5  ;;  %v13044_v5 = vld [vmem:[#allocation75_spill] sm:$0xff] }
 0x33a   : > { %4140 = vmatpush.msrb.mxu0 %v9730_v38  ;;  %v3721_v41 = vsel %vm13035_vm3, %v13034_v23, %v6656_v58  ;;  %v13036_v38 = vunpack.i.h.bf16 %v10245_v39  ;;  %vm13067_vm3 = vmmov %vm13053_vm13 }
 0x33b   : > { %4168 = vmatpush.msrb.mxu1 %v3329_v3  ;;  %4197 = vmatpush.msrb.mxu2 %v3721_v41  ;;  %v10583_v39 = vadd.f32 %v2379_v35, %v2351_v43  ;;  %v3673_v29 = vsel %vm1612_vm10, %v13040_v11, %v12426_v50  ;;  %v13045_v11 = vld [vmem:[#allocation25_spill] sm:$0xff] }
 0x33c   : > { %4141 = vmatpush.msrb.mxu0 %v9562_v61  ;;  %v3325_v4 = vsel %vm1257_vm7, %v13036_v38, %v12428_v40  ;;  %v13037_v61 = vunpack.i.h.bf16 %v10193_v16  ;;  %v13046_v50 = vunpack.i.h.bf16 %v13045_v11 }
 0x33d   : > { %4169 = vmatpush.msrb.mxu1 %v3325_v4  ;;  %v2353_v4 = vpop.f32.mrf.mxu1 }
 0x33e   : > { %v10572_v37 = vpop.permute.xlu1 %6674  ;;  %4142 = vmatpush.msrb.mxu0 %v9684_v59  ;;  %v3717_v2 = vsel %vm13038_vm4, %v13037_v61, %v6657_v25  ;;  %v2295_v23 = vpop.f32.mrf.mxu3  ;;  %v13039_v59 = vunpack.i.h.bf16 %v10022_v8  ;;  %v13041_v8 = vld [vmem:[#allocation34_spill] sm:$0xff]  ;;  %vm13069_vm4 = vmmov %vm13066_vm2 }
 0x33f   : > { %v12429_v3 = vunpack.i.l.bf16 %v10572_v37  ;;  %4198 = vmatpush.msrb.mxu2 %v3717_v2  ;;  %v10581_v41 = vpop.permute.xlu2 %6724  ;;  %v10585_v38 = vpop.permute.xlu0 %6669  ;;  %v12432_v35 = vunpack.i.h.bf16 %v10572_v37  ;;  %v13042_v61 = vunpack.i.h.bf16 %v13041_v8 }
 0x340   : > { %4143 = vmatpush.msrb.mxu0 %v9632_v21  ;;  %v3677_v16 = vsel %vm1612_vm10, %v13039_v59, %v12427_v1  ;;  %4351 = vmatmul.f32.gmra.mxu3 %v9934_v19  ;;  %v6672_v21 = vunpack.i.h.bf16 %v10585_v38  ;;  %v12430_v43 = vunpack.i.l.bf16 %v10585_v38  ;;  %v2325_v59 = vadd.f32 %v2324_v24, %v2295_v23  ;;  %v13047_v24 = vld [vmem:[#allocation48_spill] sm:$0xff] }
 0x341   : > { %4199 = vmatpush.msrb.mxu2 %v3677_v16  ;;  %v3633_v2 = vsel %vm13043_vm5, %v13042_v61, %v12429_v3  ;;  %v2382_v16 = vpop.f32.mrf.mxu2  ;;  %v12431_v19 = vunpack.i.l.bf16 %v10432_v13  ;;  %v13048_v23 = vunpack.i.h.bf16 %v13047_v24  ;;  %v13049_v3 = vld [vmem:[#allocation49_spill] sm:$0xff]  ;;  %vm13071_vm5 = vcmask 138240  }
 0x342   : > { %4144 = vmatpush.msrb.mxu0 %v9590_v55  ;;  %v3265_v1 = vsel %vm1192_vm12, %v13046_v50, %v12430_v43  ;;  %v2327_v55 = vpop.f32.mrf.mxu0  ;;  %v2354_v8 = vadd.f32 %v2353_v4, %v2325_v59  ;;  %v13050_v11 = vunpack.i.h.bf16 %v13049_v3  ;;  %v13052_v43 = vld [vmem:[#allocation37_spill] sm:$0xff]  ;;  %v13054_v3 = vunpack.i.h.bf16 %v10336_v31 }
 0x343   : > { %4200 = vmatpush.msrb.mxu2 %v3673_v29  ;;  %4145 = vmatmul.f32.vlgmr.msrb.gmra.mxu0 %v13044_v5  ;;  %v12433_v29 = vunpack.i.h.bf16 %v10432_v13  ;;  %v3261_v61 = vsel %vm1192_vm12, %v13048_v23, %v6672_v21 }
 0x344   : > { %4170 = vmatpush.msrb.mxu1 %v3265_v1  ;;  %v3629_v50 = vsel %vm13051_vm6, %v13050_v11, %v12432_v35  ;;  %v10631_v4 = vadd.f32 %v2382_v16, %v2354_v8  ;;  %v3221_v23 = vsel %vm13055_vm0, %v13054_v3, %v12431_v19  ;;  %v13056_v8 = vunpack.i.h.bf16 %v10189_v49  ;;  %v13060_v35 = vld [vmem:[#allocation67_spill] sm:$0xff]  ;;  %vm13075_vm6 = vmmov %vm13071_vm5 }
 0x345   : > { %4201 = vmatpush.msrb.mxu2 %v3633_v2  ;;  %v12435_v19 = vunpack.i.l.bf16 %v10484_v6  ;;  %v2356_v49 = vpop.f32.mrf.mxu1  ;;  %vm13079_vm0 = vcmask 375808  }
 0x346   : > { %v10615_v40 = vpop.permute.xlu1 %6689  ;;  %4171 = vmatpush.msrb.mxu1 %v3261_v61  ;;  %v2298_v59 = vpop.f32.mrf.mxu3 }
 0x347   : > { %v12434_v1 = vunpack.i.l.bf16 %v10615_v40  ;;  %4202 = vmatpush.msrb.mxu2 %v3629_v50  ;;  %v10629_v2 = vpop.permute.xlu2 %6739  ;;  %v10635_v24 = vpop.permute.xlu0 %6684  ;;  %v12436_v16 = vunpack.i.h.bf16 %v10615_v40  ;;  %v3217_v50 = vsel %vm13057_vm9, %v13056_v8, %v12433_v29  ;;  %v2328_v3 = vadd.f32 %v2327_v55, %v2298_v59  ;;  %vm13081_vm9 = vmmov %vm13079_vm0 }
 0x348   : > { %5386 = vmatmul.msk.f32.vlgmr.msrb.gmra.mxu2 %vm13053_vm13, %v13052_v43  ;;  %v12438_v11 = vunpack.i.h.bf16 %v10635_v24  ;;  %v6686_v61 = vunpack.i.l.bf16 %v10635_v24  ;;  %4172 = vmatpush.msrb.mxu1 %v3221_v23  ;;  %v12437_v8 = vunpack.i.h.bf16 %v10484_v6  ;;  %vm13077_vm13 = vmmov %vm13067_vm3 }
 0x349   : > { %4354 = vmatmul.f32.gmra.mxu3 %v9994_v62  ;;  %v3570_v31 = vsel %vm1502_vm15, %v6611_v9, %v12434_v1  ;;  %v13058_v62 = vunpack.i.l.bf16 %v10324_v12  ;;  %v2357_v29 = vadd.f32 %v2356_v49, %v2328_v3  ;;  %v13061_v9 = vunpack.i.h.bf16 %v10324_v12 }
 0x34a   : > { %4173 = vmatpush.msrb.mxu1 %v3217_v50  ;;  %v2385_v50 = vpop.f32.mrf.mxu2  ;;  %v13065_v12 = vunpack.i.l.bf16 %v10365_v18 }
 0x34b   : > { %v3178_v23 = vsel %vm13059_vm14, %v13058_v62, %v6686_v61  ;;  %4148 = vmatmul.f32.gmra.mxu0 %v13060_v35  ;;  %4174 = vmatmul.f32.vlgmr.msrb.gmra.mxu1 %v10359_v32  ;;  %v3174_v55 = vsel %vm13062_vm1, %v13061_v9, %v12438_v11  ;;  %v13063_v62 = vunpack.i.h.bf16 %v10386_v30  ;;  %v10678_v3 = vadd.f32 %v2385_v50, %v2357_v29 }
 0x34c   : > { %4245 = vmatpush.msra.mxu0 %v3178_v23  ;;  %4274 = vmatpush.msra.mxu1 %v3570_v31  ;;  %v2330_v31 = vpop.f32.mrf.mxu0  ;;  %v3114_v9 = vsel %vm13066_vm2, %v13065_v12, %v12435_v19  ;;  %v13068_v29 = vunpack.i.h.bf16 %v10365_v18  ;;  %v13070_v12 = vunpack.i.l.bf16 %v10439_v46  ;;  %v13072_v18 = vunpack.i.l.bf16 %v10240_v47 }
 0x34d   : > { %v3566_v1 = vsel %vm1502_vm15, %v13063_v62, %v12436_v16  ;;  %13064 = vst [vmem:[#allocation59_spill] sm:$0xff] %v10678_v3  ;;  %v12442_v11 = vunpack.i.l.bf16 %v10534_v26  ;;  %vm13082_vm14 = vcmask 441344   ;;  %vm13084_vm1 = vcmask 146432  }
 0x34e   : > { %v10670_v59 = vpop.permute.xlu1 %6704  ;;  %4246 = vmatpush.msra.mxu0 %v3174_v55  ;;  %4275 = vmatpush.msra.mxu1 %v3566_v1  ;;  %v2301_v55 = vpop.f32.mrf.mxu3  ;;  %v3110_v1 = vsel %vm13069_vm4, %v13068_v29, %v12437_v8  ;;  %v13073_v8 = vld [vmem:[#allocation42_spill] sm:$0xff]  ;;  %vm13086_vm2 = vmmov %vm13084_vm1  ;;  %vm13089_vm4 = vcmask 211968  }
 0x34f   : > { %v12440_v23 = vunpack.i.l.bf16 %v10670_v59  ;;  %v10680_v49 = vpop.permute.xlu2 %6754  ;;  %v10689_v30 = vpop.permute.xlu0 %6699  ;;  %v12439_v50 = vunpack.i.h.bf16 %v10670_v59  ;;  %v10703_v16 = vadd.f32 %v2330_v31, %v2301_v55 }
 0x350   : > { %5387 = vmatmul.msk.f32.gmra.mxu2 %vm13067_vm3, %v10367_v20  ;;  %4247 = vmatpush.msra.mxu0 %v3114_v9  ;;  %v6701_v62 = vunpack.i.l.bf16 %v10689_v30  ;;  %v12441_v9 = vunpack.i.h.bf16 %v10689_v30  ;;  %vm13087_vm3 = vmmov %vm13082_vm14 }
 0x351   : > { %v3070_v19 = vsel %vm13071_vm5, %v13070_v12, %v12440_v23  ;;  %4357 = vmatmul.f32.gmra.mxu3 %v10062_v51  ;;  %v13074_v51 = vunpack.i.h.bf16 %v10439_v46  ;;  %v13076_v12 = vunpack.i.h.bf16 %v10240_v47  ;;  %vm13090_vm5 = vmmov %vm13077_vm13 }
 0x352   : > { %4248 = vmatpush.msra.mxu0 %v3110_v1  ;;  %v3526_v29 = vsel %vm1457_vm11, %v13072_v18, %v6701_v62  ;;  %v12450_v1 = vunpack.i.h.bf16 %v10534_v26 }
 0x353   : > { %4151 = vmatmul.f32.gmra.mxu0 %v13073_v8  ;;  %4177 = vmatmul.f32.gmra.mxu1 %v10412_v10  ;;  %v3066_v31 = vsel %vm13075_vm6, %v13074_v51, %v12439_v50  ;;  %v3522_v18 = vsel %vm1457_vm11, %v13076_v12, %v12441_v9  ;;  %v13078_v51 = vunpack.i.l.bf16 %v10424_v56  ;;  %v13080_v50 = vunpack.i.h.bf16 %v10424_v56 }
 0x354   : > { %4249 = vmatpush.msra.mxu0 %v3070_v19  ;;  %4276 = vmatpush.msra.mxu1 %v3526_v29  ;;  %v12445_v56 = vunpack.i.h.bf16 %v10581_v41  ;;  %vm13091_vm6 = vcmask 277504  }
 0x355   : > { %v3478_v23 = vsel %vm13081_vm9, %v13080_v50, %v12450_v1  ;;  %vm13099_vm9 = vcmask 220160   ;;  %v6756_v1 = vunpack.i.l.bf16 %v10680_v49 }
 0x356   : > { %v10720_v55 = vpop.permute.xlu1 %6719  ;;  %4250 = vmatpush.msra.mxu0 %v3066_v31  ;;  %4277 = vmatpush.msra.mxu1 %v3522_v18  ;;  %v3482_v31 = vsel %vm13079_vm0, %v13078_v51, %v12442_v11  ;;  %v12444_v51 = vunpack.i.l.bf16 %v10581_v41  ;;  %vm13094_vm0 = vmmov %vm13091_vm6 }
 0x357   : > { %v12443_v19 = vunpack.i.l.bf16 %v10720_v55  ;;  %v10729_v29 = vpop.permute.xlu2 %6769  ;;  %v10733_v46 = vpop.permute.xlu0 %6714  ;;  %v12446_v18 = vunpack.i.h.bf16 %v10720_v55 }
 0x358   : > { %5388 = vmatmul.msk.f32.gmra.mxu2 %vm13077_vm13, %v10426_v44  ;;  %v6717_v47 = vunpack.i.h.bf16 %v10733_v46  ;;  %v6716_v12 = vunpack.i.l.bf16 %v10733_v46  ;;  %4278 = vmatpush.msra.mxu1 %v3482_v31  ;;  %v13083_v31 = vunpack.i.l.bf16 %v10285_v34  ;;  %vm13093_vm13 = vmmov %vm13089_vm4 }
 0x359   : > { %v3418_v9 = vsel %vm13082_vm14, %v6641_v27, %v12443_v19  ;;  %v13085_v27 = vunpack.i.h.bf16 %v10285_v34  ;;  %v13088_v34 = vunpack.i.l.bf16 %v10476_v57  ;;  %vm13104_vm14 = vcmask 228352  }
 0x35a   : > { %4279 = vmatpush.msra.mxu1 %v3478_v23  ;;  %v3026_v11 = vsel %vm13084_vm1, %v13083_v31, %v6716_v12  ;;  %v3414_v31 = vsel %vm13087_vm3, %v6642_v28, %v12446_v18  ;;  %v12451_v18 = vunpack.i.h.bf16 %v10629_v2  ;;  %vm13112_vm1 = vcmask 867328  }
 0x35b   : > { %4154 = vmatmul.f32.gmra.mxu0 %v10369_v17  ;;  %4180 = vmatmul.f32.gmra.mxu1 %v10464_v48  ;;  %v3022_v23 = vsel %vm13086_vm2, %v13085_v27, %v6717_v47  ;;  %v2962_v27 = vsel %vm13089_vm4, %v13088_v34, %v12444_v51  ;;  %vm13115_vm2 = vcmask 293888   ;;  %vm13118_vm4 = vcmask 64512  }
 0x35c   : > { %4251 = vmatpush.msra.mxu0 %v3026_v11  ;;  %4280 = vmatpush.msra.mxu1 %v3418_v9  ;;  %vm13117_vm3 = vmmov %vm13115_vm2 }
 0x35e   : > { %v10767_v50 = vpop.permute.xlu1 %6734  ;;  %4252 = vmatpush.msra.mxu0 %v3022_v23  ;;  %4281 = vmatpush.msra.mxu1 %v3414_v31  ;;  %v13092_v31 = vunpack.i.h.bf16 %v10476_v57  ;;  %v12449_v57 = vunpack.i.l.bf16 %v10629_v2 }
 0x35f   : > { %v6737_v11 = vunpack.i.h.bf16 %v10767_v50  ;;  %v6736_v19 = vunpack.i.l.bf16 %v10767_v50  ;;  %v10776_v9 = vpop.permute.xlu2 %6784  ;;  %v10785_v23 = vpop.permute.xlu0 %6729  ;;  %v13129_v50 = vunpack.i.h.bf16 %v10615_v40 }
 0x360   : > { %5389 = vmatmul.msk.f32.gmra.mxu2 %vm13090_vm5, %v10478_v36  ;;  %4253 = vmatpush.msra.mxu0 %v2962_v27  ;;  %v12448_v28 = vunpack.i.l.bf16 %v10785_v23  ;;  %v2958_v34 = vsel %vm13093_vm13, %v13092_v31, %v12445_v56  ;;  %v12447_v51 = vunpack.i.h.bf16 %v10785_v23  ;;  %v13096_v31 = vld [vmem:[#allocation23_spill] sm:$0xff]  ;;  %vm13119_vm5 = vmmov %vm13094_vm0  ;;  %vm13122_vm13 = vcmask 56320  }
 0x361   : > { %v3722_v60 = vsel %vm13091_vm6, %v6656_v58, %v6736_v19  ;;  %v3718_v27 = vsel %vm13094_vm0, %v6657_v25, %v6737_v11  ;;  %v13098_v45 = vunpack.i.l.bf16 %v13096_v31  ;;  %vm13120_vm6 = vcmask 392192   ;;  %vm13124_vm0 = vmmov %vm13118_vm4 }
 0x362   : > { %4313 = vmatpush.msra.mxu2 %v3722_v60  ;;  %4254 = vmatpush.msra.mxu0 %v2958_v34  ;;  %v3374_v58 = vsel %vm1302_vm8, %v6651_v63, %v12448_v28  ;;  %v13095_v60 = vld [vmem:[#allocation57_spill] sm:$0xff]  ;;  %v13097_v34 = vunpack.i.h.bf16 %v13096_v31  ;;  %v3370_v63 = vsel %vm1302_vm8, %v6652_v42, %v12447_v51  ;;  %v13100_v31 = vld [vmem:[#allocation66_spill] sm:$0xff]  ;;  %v13101_v42 = vld [vmem:[#allocation27_spill] sm:$0xff] }
 0x363   : > { %4183 = vmatmul.f32.gmra.mxu1 %v10515_v0 }
 0x364   : > { %4314 = vmatpush.msra.mxu2 %v3718_v27  ;;  %4255 = vmatpush.msra.mxu0 %v13095_v60  ;;  %v2914_v25 = vsel %vm13099_vm9, %v13098_v45, %v13097_v34  ;;  %v3330_v34 = vsel %vm1257_vm7, %v6661_v15, %v12449_v57  ;;  %v13106_v57 = vunpack.i.l.bf16 %v10585_v38  ;;  %v13116_v38 = vunpack.i.h.bf16 %v10572_v37  ;;  %vm13126_vm9 = vmmov %vm13122_vm13 }
 0x365   : > { %4282 = vmatpush.msra.mxu1 %v3374_v58 }
 0x366   : > { %v10817_v56 = vpop.permute.xlu1 %6749  ;;  %4256 = vmatpush.msra.mxu0 %v2914_v25  ;;  %v13102_v25 = vunpack.i.h.bf16 %v13101_v42 }
 0x367   : > { %v12452_v27 = vunpack.i.l.bf16 %v10817_v56  ;;  %4283 = vmatpush.msra.mxu1 %v3370_v63  ;;  %v10826_v58 = vpop.permute.xlu2 %6799  ;;  %v10828_v60 = vpop.permute.xlu0 %6744  ;;  %v13103_v63 = vunpack.i.l.bf16 %v13101_v42  ;;  %v6752_v28 = vunpack.i.h.bf16 %v10817_v56  ;;  %v13107_v42 = vunpack.i.l.bf16 %v10384_v33 }
 0x368   : > { %4257 = vmatpush.msra.mxu0 %v13100_v31  ;;  %v6747_v45 = vunpack.i.h.bf16 %v10828_v60  ;;  %v6746_v54 = vunpack.i.l.bf16 %v10828_v60  ;;  %v13105_v31 = vunpack.i.h.bf16 %v10528_v7  ;;  %v13108_v7 = vld [vmem:[#allocation69_spill] sm:$0xff] }
 0x369   : > { %4284 = vmatpush.msra.mxu1 %v3330_v34  ;;  %v2870_v51 = vsel %vm13104_vm14, %v13103_v63, %v13102_v25  ;;  %v3266_v34 = vsel %vm1192_vm12, %v13106_v57, %v12452_v27  ;;  %v6757_v25 = vunpack.i.h.bf16 %v10680_v49  ;;  %v13109_v63 = vld [vmem:[#allocation70_spill] sm:$0xff]  ;;  %vm13127_vm14 = vmmov %vm13119_vm5 }
 0x36a   : > { %4258 = vmatpush.msra.mxu0 %v2870_v51  ;;  %v3326_v15 = vsel %vm1257_vm7, %v13105_v31, %v12451_v18  ;;  %v3678_v51 = vsel %vm1612_vm10, %v13107_v42, %v6746_v54  ;;  %v13110_v31 = vunpack.i.h.bf16 %v13109_v63  ;;  %v13111_v18 = vunpack.i.l.bf16 %v13109_v63 }
 0x36b   : > { %4285 = vmatpush.msra.mxu1 %v3326_v15  ;;  %4315 = vmatpush.msra.mxu2 %v3678_v51  ;;  %v13113_v15 = vunpack.i.h.bf16 %v10384_v33  ;;  %v3262_v42 = vsel %vm1192_vm12, %v6672_v21, %v6752_v28  ;;  %v3630_v21 = vsel %vm13117_vm3, %v13116_v38, %v6757_v25  ;;  %vm13137_vm3 = vcmask 138240  }
 0x36c   : > { %4259 = vmatpush.msra.mxu0 %v13108_v7  ;;  %v2806_v57 = vsel %vm13112_vm1, %v13111_v18, %v13110_v31  ;;  %v13114_v18 = vunpack.i.l.bf16 %v10572_v37  ;;  %v13121_v37 = vunpack.i.l.bf16 %v10432_v13  ;;  %vm13130_vm1 = vmmov %vm13120_vm6 }
 0x36d   : > { %4286 = vmatpush.msra.mxu1 %v3266_v34  ;;  %v3674_v27 = vsel %vm1612_vm10, %v13113_v15, %v6747_v45 }
 0x36e   : > { %4260 = vmatpush.msra.mxu0 %v2806_v57  ;;  %4316 = vmatpush.msra.mxu2 %v3674_v27  ;;  %v6765_v34 = vpop.permute.xlu1 %6764  ;;  %v3634_v33 = vsel %vm13115_vm2, %v13114_v18, %v6756_v1  ;;  %v6771_v18 = vunpack.i.l.bf16 %v10729_v29  ;;  %vm13132_vm2 = vcmask 130048  }
 0x36f   : > { %4287 = vmatpush.msra.mxu1 %v3262_v42  ;;  %v6766_v51 = vunpack.i.l.bf16 %v6765_v34  ;;  %v6815_v7 = vpop.permute.xlu2 %6814  ;;  %4261 = vmatmul.f32.vlgmr.msra.gmra.mxu0 %v13044_v5  ;;  %v6767_v63 = vunpack.i.h.bf16 %v6765_v34  ;;  %v10883_v57 = vpop.permute.xlu0 %6759 }
 0x370   : > { %v6816_v31 = vunpack.i.l.bf16 %v6815_v7  ;;  %4317 = vmatpush.msra.mxu2 %v3634_v33  ;;  %v6817_v27 = vunpack.i.h.bf16 %v6815_v7  ;;  %v6762_v15 = vunpack.i.h.bf16 %v10883_v57  ;;  %v6761_v42 = vunpack.i.l.bf16 %v10883_v57 }
 0x371   : > { %v3179_v5 = vsel %vm13118_vm4, %v6686_v61, %v6766_v51  ;;  %v13123_v61 = vunpack.i.h.bf16 %v10635_v24  ;;  %v6772_v33 = vunpack.i.h.bf16 %v10729_v29  ;;  %v13128_v24 = vunpack.i.l.bf16 %v10615_v40  ;;  %vm13139_vm4 = vmmov %vm13137_vm3 }
 0x372   : > { %4318 = vmatpush.msra.mxu2 %v3630_v21  ;;  %4361 = vmatpush.msrb.mxu0 %v3179_v5  ;;  %v3723_v34 = vsel %vm13119_vm5, %v6736_v19, %v6816_v31  ;;  %v3222_v7 = vsel %vm13122_vm13, %v13121_v37, %v6761_v42  ;;  %v13125_v19 = vunpack.i.h.bf16 %v10432_v13  ;;  %v3719_v38 = vsel %vm13127_vm14, %v6737_v11, %v6817_v27  ;;  %vm13141_vm5 = vmmov %vm13130_vm1 }
 0x373   : > { %5390 = vmatmul.msk.f32.vlgmr.msra.gmra.mxu2 %vm13120_vm6, %v13052_v43  ;;  %4288 = vmatpush.msra.mxu1 %v3222_v7  ;;  %v3175_v51 = vsel %vm13124_vm0, %v13123_v61, %v6767_v63  ;;  %v3571_v63 = vsel %vm1502_vm15, %v13128_v24, %v6771_v18  ;;  %v3567_v11 = vsel %vm1502_vm15, %v13129_v50, %v6772_v33  ;;  %v6786_v18 = vunpack.i.l.bf16 %v10776_v9  ;;  %vm13134_vm15 = vmmov %vm13132_vm2 }
 0x374   : > { %4429 = vmatpush.msrb.mxu2 %v3723_v34  ;;  %v3218_v31 = vsel %vm13126_vm9, %v13125_v19, %v6762_v15  ;;  %4362 = vmatpush.msrb.mxu0 %v3175_v51  ;;  %v6787_v61 = vunpack.i.h.bf16 %v10776_v9  ;;  %v13133_v40 = vunpack.i.h.bf16 %v10484_v6  ;;  %v13135_v33 = vunpack.i.h.bf16 %v10689_v30  ;;  %v4001_v19 = vpop.f32.mrf.mxu3 }
 0x375   : > { %4289 = vmatpush.msra.mxu1 %v3218_v31  ;;  %vm13143_vm6 = vcmask 375808   ;;  %vm13148_vm9 = vcmask 441344  }
 0x376   : > { %4430 = vmatpush.msrb.mxu2 %v3719_v38  ;;  %4290 = vmatmul.f32.vlgmr.msra.gmra.mxu1 %v10359_v32  ;;  %v6780_v29 = vpop.permute.xlu1 %6779  ;;  %v13136_v38 = vunpack.i.l.bf16 %v10670_v59  ;;  %vm13146_vm0 = vmmov %vm13143_vm6 }
 0x377   : > { %4264 = vmatmul.f32.gmra.mxu0 %v13060_v35  ;;  %4390 = vmatpush.msrb.mxu1 %v3571_v63  ;;  %v6781_v13 = vunpack.i.l.bf16 %v6780_v29  ;;  %v6775_v21 = vpop.permute.xlu0 %6774  ;;  %v6782_v5 = vunpack.i.h.bf16 %v6780_v29  ;;  %v13131_v35 = vunpack.i.l.bf16 %v10484_v6  ;;  %v13138_v63 = vunpack.i.h.bf16 %v10670_v59  ;;  %vm13150_vm14 = vmmov %vm13148_vm9 }
 0x378   : > { %v6777_v34 = vunpack.i.h.bf16 %v6775_v21  ;;  %v6776_v37 = vunpack.i.l.bf16 %v6775_v21  ;;  %v3071_v9 = vsel %vm13137_vm3, %v13136_v38, %v6786_v18  ;;  %v13142_v59 = vunpack.i.l.bf16 %v10534_v26 }
 0x379   : > { %4391 = vmatpush.msrb.mxu1 %v3567_v11  ;;  %v3527_v27 = vsel %vm1457_vm11, %v6701_v62, %v6781_v13  ;;  %v3523_v62 = vsel %vm1457_vm11, %v13135_v33, %v6782_v5  ;;  %v3067_v30 = vsel %vm13139_vm4, %v13138_v63, %v6787_v61  ;;  %vm13140_vm11 = vcmask 146432  }
 0x37a   : > { %v3115_v7 = vsel %vm13132_vm2, %v13131_v35, %v6776_v37  ;;  %v3111_v51 = vsel %vm13134_vm15, %v13133_v40, %v6777_v34  ;;  %v6802_v11 = vunpack.i.h.bf16 %v10826_v58  ;;  %vm13144_vm13 = vmmov %vm13140_vm11  ;;  %v13145_v18 = vunpack.i.h.bf16 %v10534_v26 }
 0x37b   : > { %5391 = vmatmul.msk.f32.gmra.mxu2 %vm13130_vm1, %v10367_v20  ;;  %4363 = vmatpush.msrb.mxu0 %v3115_v7  ;;  %v13147_v7 = vunpack.i.l.bf16 %v10720_v55  ;;  %v13149_v33 = vunpack.i.h.bf16 %v10720_v55  ;;  %vm13154_vm2 = vcmask 211968   ;;  %v13155_v55 = vunpack.i.h.bf16 %v10581_v41 }
 0x37c   : > { %4392 = vmatpush.msrb.mxu1 %v3527_v27  ;;  %vm13156_vm15 = vmmov %vm13154_vm2  ;;  %vm13160_vm3 = vcmask 220160   ;;  %vm13169_vm4 = vcmask 867328  }
 0x37d   : > { %4364 = vmatpush.msrb.mxu0 %v3111_v51 }
 0x37e   : > { %4393 = vmatpush.msrb.mxu1 %v3523_v62  ;;  %v6795_v31 = vpop.permute.xlu1 %6794  ;;  %v3415_v62 = vsel %vm13150_vm14, %v13149_v33, %v6802_v11  ;;  %v13165_v33 = vunpack.i.l.bf16 %v10629_v2 }
 0x37f   : > { %4293 = vmatmul.f32.gmra.mxu1 %v10412_v10  ;;  %4267 = vmatmul.f32.gmra.mxu0 %v13073_v8  ;;  %v6796_v24 = vunpack.i.l.bf16 %v6795_v31  ;;  %v6790_v6 = vpop.permute.xlu0 %6789  ;;  %v6797_v13 = vunpack.i.h.bf16 %v6795_v31  ;;  %v6801_v8 = vunpack.i.l.bf16 %v10826_v58  ;;  %v10973_v58 = vpop.f32.mrf.mxu3  ;;  %v13151_v31 = vunpack.i.l.bf16 %v10785_v23 }
 0x380   : > { %4365 = vmatpush.msrb.mxu0 %v3071_v9  ;;  %v6792_v21 = vunpack.i.h.bf16 %v6790_v6  ;;  %v6791_v5 = vunpack.i.l.bf16 %v6790_v6  ;;  %v13152_v9 = vld [vmem:[#allocation63_spill] sm:$0xff]  ;;  %v13153_v6 = vunpack.i.l.bf16 %v10581_v41 }
 0x381   : > { %v3027_v37 = vsel %vm13140_vm11, %v6716_v12, %v6796_v24  ;;  %v3023_v27 = vsel %vm13144_vm13, %v6717_v47, %v6797_v13  ;;  %v3419_v61 = vsel %vm13148_vm9, %v13147_v7, %v6801_v8  ;;  %v6442_v24 = vunpack.i.h.bf16 %v13152_v9  ;;  %vm13179_vm13 = vmmov %vm13130_vm1 }
 0x382   : > { %v4030_v29 = vpop.f32.mrf.mxu0  ;;  %4366 = vmatpush.msrb.mxu0 %v3067_v30  ;;  %v3483_v50 = vsel %vm13143_vm6, %v13142_v59, %v6791_v5  ;;  %v3479_v12 = vsel %vm13146_vm0, %v13145_v18, %v6792_v21  ;;  %v13158_v21 = vld [vmem:[#allocation71_spill] sm:$0xff]  ;;  %v13159_v8 = vunpack.i.l.bf16 %v13152_v9  ;;  %vm13177_vm6 = vmmov %vm13130_vm1 }
 0x383   : > { %v10950_v34 = vadd.f32 %v4030_v29, %v4001_v19  ;;  %5392 = vmatmul.msk.f32.gmra.mxu2 %vm13141_vm5, %v10426_v44  ;;  %4394 = vmatpush.msrb.mxu1 %v3483_v50  ;;  %v13157_v29 = vunpack.i.h.bf16 %v10785_v23  ;;  %v6417_v5 = vunpack.i.h.bf16 %v13158_v21  ;;  %v6830_v50 = vpop.permute.xlu2 %6829  ;;  %vm13176_vm5 = vmmov %vm13130_vm1 }
 0x384   : > { %4367 = vmatpush.msrb.mxu0 %v3027_v37  ;;  %v2919_v59 = vsel %vm13160_vm3, %v13159_v8, %v6442_v24  ;;  %v6832_v9 = vunpack.i.h.bf16 %v6830_v50  ;;  %v13166_v24 = vunpack.i.h.bf16 %v10629_v2  ;;  %vm13180_vm0 = vmmov %vm13130_vm1 }
 0x385   : > { %4395 = vmatpush.msrb.mxu1 %v3479_v12 }
 0x386   : > { %4368 = vmatpush.msrb.mxu0 %v3023_v27  ;;  %v6810_v35 = vpop.permute.xlu1 %6809  ;;  %v3263_v8 = vsel %vm1192_vm12, %v6752_v28, %v6832_v9 }
 0x387   : > { %4296 = vmatmul.f32.gmra.mxu1 %v10464_v48  ;;  %4270 = vmatmul.f32.gmra.mxu0 %v10369_v17  ;;  %v6811_v46 = vunpack.i.l.bf16 %v6810_v35  ;;  %v6805_v40 = vpop.permute.xlu0 %6804  ;;  %v6812_v47 = vunpack.i.h.bf16 %v6810_v35  ;;  %v4007_v12 = vpop.f32.mrf.mxu3  ;;  %v13161_v35 = vld [vmem:[#allocation72_spill] sm:$0xff] }
 0x388   : > { %4396 = vmatpush.msrb.mxu1 %v3419_v61  ;;  %v6807_v26 = vunpack.i.h.bf16 %v6805_v40  ;;  %v6806_v51 = vunpack.i.l.bf16 %v6805_v40  ;;  %v13162_v61 = vld [vmem:[#allocation30_spill] sm:$0xff]  ;;  %v11005_v40 = vpop.f32.mrf.mxu2 }
 0x389   : > { %v3375_v38 = vsel %vm1302_vm8, %v13151_v31, %v6811_v46  ;;  %v3371_v13 = vsel %vm1302_vm8, %v13157_v29, %v6812_v47  ;;  %v6392_v46 = vunpack.i.h.bf16 %v13162_v61  ;;  %v6831_v47 = vunpack.i.l.bf16 %v6830_v50 }
 0x38a   : > { %v10978_v19 = vpop.f32.mrf.mxu0  ;;  %4397 = vmatpush.msrb.mxu1 %v3415_v62  ;;  %v2963_v63 = vsel %vm13154_vm2, %v13153_v6, %v6806_v51  ;;  %v2959_v30 = vsel %vm13156_vm15, %v13155_v55, %v6807_v26  ;;  %v13163_v26 = vunpack.i.l.bf16 %v13158_v21  ;;  %vm13164_vm8 = vcmask 228352  }
 0x38b   : > { %5393 = vmatmul.msk.f32.gmra.mxu2 %vm13130_vm1, %v10478_v36  ;;  %4369 = vmatpush.msrb.mxu0 %v2963_v63  ;;  %v13167_v63 = vld [vmem:[#allocation55_spill] sm:$0xff] }
 0x38c   : > { %4398 = vmatpush.msrb.mxu1 %v3375_v38  ;;  %v2875_v51 = vsel %vm13164_vm8, %v13163_v26, %v6417_v5  ;;  %v11013_v38 = vpop.f32.mrf.mxu1 }
 0x38d   : > { %4370 = vmatpush.msrb.mxu0 %v2959_v30  ;;  %v13168_v30 = vunpack.i.l.bf16 %v13162_v61 }
 0x38e   : > { %4399 = vmatpush.msrb.mxu1 %v3371_v13  ;;  %v6825_v37 = vpop.permute.xlu1 %6824  ;;  %v13170_v13 = vunpack.i.l.bf16 %v10817_v56  ;;  %v4034_v56 = vadd.f32 %v10978_v19, %v10973_v58  ;;  %v7000_v58 = vld [vmem:[#allocation7 + $0x28] sm:$0xff] }
 0x38f   : > { %4299 = vmatmul.f32.gmra.mxu1 %v10515_v0  ;;  %v6827_v11 = vunpack.i.h.bf16 %v6825_v37  ;;  %v6826_v41 = vunpack.i.l.bf16 %v6825_v37  ;;  %v6820_v27 = vpop.permute.xlu0 %6819  ;;  %4371 = vmatpush.msrb.mxu0 %v2919_v59  ;;  %v2811_v29 = vsel %vm13169_vm4, %v13168_v30, %v6392_v46  ;;  %v13171_v59 = vld [vmem:[#allocation68_spill] sm:$0xff]  ;;  %v7001_v46 = vld [vmem:[#allocation7 + $0x48] sm:$0xff] }
 0x390   : > { %v6822_v18 = vunpack.i.h.bf16 %v6820_v27  ;;  %v6821_v23 = vunpack.i.l.bf16 %v6820_v27  ;;  %v3267_v60 = vsel %vm1192_vm12, %v13170_v13, %v6831_v47  ;;  %v6999_v27 = vld [vmem:[#allocation7 + $0x8] sm:$0xff] }
 0x391   : > { %4372 = vmatpush.msrb.mxu0 %v13161_v35  ;;  %v3679_v7 = vsel %vm1612_vm10, %v6746_v54, %v6826_v41  ;;  %v3675_v54 = vsel %vm1612_vm10, %v6747_v45, %v6827_v11  ;;  %vm13173_vm10 = vcmask 293888  }
 0x392   : > { %v3331_v62 = vsel %vm1257_vm7, %v13165_v33, %v6821_v23  ;;  %4431 = vmatpush.msrb.mxu2 %v3679_v7  ;;  %v4036_v31 = vpop.f32.mrf.mxu0  ;;  %v3327_v6 = vsel %vm1257_vm7, %v13166_v24, %v6822_v18  ;;  %vm13172_vm7 = vcmask 56320   ;;  %v4010_v18 = vpop.f32.mrf.mxu3  ;;  %vm13175_vm11 = vmmov %vm13173_vm10 }
 0x393   : > { %4373 = vmatpush.msrb.mxu0 %v2875_v51  ;;  %4400 = vmatpush.msrb.mxu1 %v3331_v62  ;;  %vm13174_vm12 = vmmov %vm13172_vm7 }
 0x394   : > { %4432 = vmatpush.msrb.mxu2 %v3675_v54 }
 0x395   : > { %4374 = vmatpush.msrb.mxu0 %v13167_v63  ;;  %4401 = vmatpush.msrb.mxu1 %v3327_v6 }
 0x396   : > { %v6840_v55 = vpop.permute.xlu1 %6839 }
 0x397   : > { %v6841_v21 = vunpack.i.l.bf16 %v6840_v55  ;;  %v6835_v45 = vpop.permute.xlu0 %6834  ;;  %4375 = vmatpush.msrb.mxu0 %v2811_v29  ;;  %4402 = vmatpush.msrb.mxu1 %v3267_v60  ;;  %v6842_v2 = vunpack.i.h.bf16 %v6840_v55 }
 0x398   : > { %v6837_v5 = vunpack.i.h.bf16 %v6835_v45  ;;  %v6836_v37 = vunpack.i.l.bf16 %v6835_v45 }
 0x399   : > { %4376 = vmatpush.msrb.mxu0 %v13171_v59  ;;  %4403 = vmatpush.msrb.mxu1 %v3263_v8  ;;  %v3223_v50 = vsel %vm13172_vm7, %v6761_v42, %v6841_v21  ;;  %v3219_v42 = vsel %vm13174_vm12, %v6762_v15, %v6842_v2  ;;  %v4037_v15 = vadd.f32 %v4036_v31, %v4007_v12 }
 0x39a   : > { %v3635_v11 = vsel %vm13173_vm10, %v6756_v1, %v6836_v37  ;;  %v4088_v41 = vpop.f32.mrf.mxu2  ;;  %4377 = vmatmul.f32.vlgmr.msrb.gmra.mxu0 %v6999_v27  ;;  %v3631_v1 = vsel %vm13175_vm11, %v6757_v25, %v6837_v5 }
 0x39b   : > { %v4059_v23 = vpop.f32.mrf.mxu1  ;;  %4404 = vmatpush.msrb.mxu1 %v3223_v50  ;;  %4433 = vmatpush.msrb.mxu2 %v3635_v11 }
 0x39c   : > { %v4060_v28 = vadd.f32 %v4059_v23, %v10950_v34 }
 0x39d   : > { %v4039_v35 = vpop.f32.mrf.mxu0  ;;  %4405 = vmatpush.msrb.mxu1 %v3219_v42  ;;  %4434 = vmatpush.msrb.mxu2 %v3631_v1 }
 0x39e   : > { %v4040_v7 = vadd.f32 %v4039_v35, %v4010_v18  ;;  %v11047_v61 = vadd.f32 %v4088_v41, %v4060_v28  ;;  %5394 = vmatmul.msk.f32.vlgmr.msrb.gmra.mxu2 %vm13176_vm5, %v13052_v43  ;;  %4406 = vmatmul.f32.vlgmr.msrb.gmra.mxu1 %v10359_v32 }
 0x3a2   : > { %v4091_v34 = vpop.f32.mrf.mxu2  ;;  %4380 = vmatmul.f32.gmra.mxu0 %v7000_v58 }
 0x3a3   : > { %v4062_v57 = vpop.f32.mrf.mxu1 }
 0x3a4   : > { %v4063_v19 = vadd.f32 %v4062_v57, %v4034_v56 }
 0x3a6   : > { %v11052_v49 = vadd.f32 %v4091_v34, %v4063_v19  ;;  %5395 = vmatmul.msk.f32.gmra.mxu2 %vm13177_vm6, %v10367_v20  ;;  %4409 = vmatmul.f32.gmra.mxu1 %v10412_v10  ;;  %v4117_v10 = vpop.f32.mrf.mxu3 }
 0x3aa   : > { %v4094_v25 = vpop.f32.mrf.mxu2  ;;  %4383 = vmatmul.f32.gmra.mxu0 %v7001_v46 }
 0x3ab   : > { %v4065_v47 = vpop.f32.mrf.mxu1 }
 0x3ac   : > { %v4066_v43 = vadd.f32 %v4065_v47, %v4037_v15 }
 0x3ae   : > { %v11057_v26 = vadd.f32 %v4094_v25, %v4066_v43  ;;  %5396 = vmatmul.msk.f32.gmra.mxu2 %vm13179_vm13, %v10426_v44  ;;  %4412 = vmatmul.f32.gmra.mxu1 %v10464_v48  ;;  %v4120_v31 = vpop.f32.mrf.mxu3 }
 0x3b0   : > { %13178 = vst [vmem:[#allocation40_spill] sm:$0xff] %v11057_v26 }
 0x3b2   : > { %4386 = vmatmul.f32.gmra.mxu0 %v10369_v17  ;;  %v4097_v12 = vpop.f32.mrf.mxu2 }
 0x3b3   : > { %v4068_v32 = vpop.f32.mrf.mxu1 }
 0x3b4   : > { %v4069_v51 = vadd.f32 %v4068_v32, %v4040_v7 }
 0x3b6   : > { %v11063_v20 = vadd.f32 %v4097_v12, %v4069_v51  ;;  %5397 = vmatmul.msk.f32.gmra.mxu2 %vm13180_vm0, %v10478_v36  ;;  %4415 = vmatmul.f32.gmra.mxu1 %v10515_v0  ;;  %v4123_v6 = vpop.f32.mrf.mxu3 }
 0x3be   : > { %v4126_v2 = vpop.f32.mrf.mxu3 }
 0x3c0   : > { %v4146_v33 = vpop.f32.mrf.mxu0 }
 0x3c1   : > { %v4147_v62 = vadd.f32 %v4146_v33, %v4117_v10 }
 0x3c6   : > { %v4233_v37 = vpop.f32.mrf.mxu3 }
 0x3c8   : > { %v4149_v54 = vpop.f32.mrf.mxu0  ;;  %v4175_v44 = vpop.f32.mrf.mxu1 }
 0x3c9   : > { %v4150_v9 = vadd.f32 %v4149_v54, %v4120_v31  ;;  %v4176_v48 = vadd.f32 %v4175_v44, %v4147_v62  ;;  %v13183_v31 = vld [vmem:[#allocation31_spill] sm:$0xff]  ;;  %v13184_v54 = vld [vmem:[#allocation32_spill] sm:$0xff] }
 0x3ca   : > { %v1983_v44 = vadd.f32 %v13184_v54, %v13183_v31 }
 0x3cb   : > { %v4204_v24 = vpop.f32.mrf.mxu2 }
 0x3cc   : > { %v11068_v17 = vadd.f32 %v4204_v24, %v4176_v48  ;;  %v13186_v48 = vld [vmem:[#allocation74_spill] sm:$0xff] }
 0x3ce   : > { %v4236_v41 = vpop.f32.mrf.mxu3 }
 0x3d0   : > { %v4152_v63 = vpop.f32.mrf.mxu0  ;;  %v4178_v55 = vpop.f32.mrf.mxu1 }
 0x3d1   : > { %v4153_v30 = vadd.f32 %v4152_v63, %v4123_v6  ;;  %v4179_v29 = vadd.f32 %v4178_v55, %v4150_v9  ;;  %v13185_v9 = vld [vmem:[#allocation24_spill] sm:$0xff] }
 0x3d2   : > { %v2099_v24 = vadd.f32 %v13186_v48, %v13185_v9 }
 0x3d3   : > { %v4207_v13 = vpop.f32.mrf.mxu2 }
 0x3d4   : > { %v11070_v36 = vadd.f32 %v4207_v13, %v4179_v29  ;;  %v13188_v13 = vld [vmem:[#allocation33_spill] sm:$0xff] }
 0x3d6   : > { %v4239_v1 = vpop.f32.mrf.mxu3 }
 0x3d8   : > { %v4181_v0 = vpop.f32.mrf.mxu1  ;;  %v4155_v5 = vpop.f32.mrf.mxu0 }
 0x3d9   : > { %v4182_v60 = vadd.f32 %v4181_v0, %v4153_v30  ;;  %v13187_v30 = vld [vmem:[#allocation26_spill] sm:$0xff]  ;;  %v2128_v0 = vadd.f32 %v13188_v13, %v2099_v24 }
 0x3da   : > { %v2012_v29 = vadd.f32 %v13187_v30, %v1983_v44 }
 0x3db   : > { %v4210_v21 = vpop.f32.mrf.mxu2 }
 0x3dc   : > { %v11072_v45 = vadd.f32 %v4210_v21, %v4182_v60  ;;  %v11090_v21 = vld [vmem:[#allocation10] sm:$0xff] }
 0x3dd   : > { %v12455_v13 = vperm.slane %v11090_v21, 5 }
 0x3de   : > { %13181 = vst [vmem:[#allocation51_spill] sm:$0xff] %v11072_v45  ;;  %v4242_v43 = vpop.f32.mrf.mxu3 }
 0x3e0   : > { %v11074_v8 = vpop.f32.mrf.mxu1 }
 0x3e3   : > { %v11076_v11 = vpop.f32.mrf.mxu2 }
 0x3e6   : > { %v4349_v12 = vpop.f32.mrf.mxu3 }
 0x3ec   : > { %v4262_v59 = vpop.f32.mrf.mxu0 }
 0x3ed   : > { %v4263_v50 = vadd.f32 %v4262_v59, %v4233_v37 }
 0x3ee   : > { %v4352_v63 = vpop.f32.mrf.mxu3 }
 0x3f3   : > { %v4291_v27 = vpop.f32.mrf.mxu1 }
 0x3f4   : > { %v4265_v18 = vpop.f32.mrf.mxu0  ;;  %v4292_v23 = vadd.f32 %v4291_v27, %v4263_v50 }
 0x3f5   : > { %v4266_v56 = vadd.f32 %v4265_v18, %v4236_v41  ;;  %v13189_v41 = vld [vmem:[#allocation29_spill] sm:$0xff]  ;;  %v12460_v18 = vperm.slane %v11090_v21, 0 }
 0x3f6   : > { %v4320_v28 = vpop.f32.mrf.mxu2  ;;  %v11095_v27 = vadd.f32 %v13189_v41, %v2012_v29 }
 0x3f7   : > { %v11078_v42 = vadd.f32 %v4320_v28, %v4292_v23  ;;  %v13190_v23 = vld [vmem:[#allocation77_spill] sm:$0xff]  ;;  %v12459_v28 = vperm.slane %v11090_v21, 1 }
 0x3fc   : > { %v4294_v35 = vpop.f32.mrf.mxu1  ;;  %v4268_v7 = vpop.f32.mrf.mxu0 }
 0x3fd   : > { %v4295_v34 = vadd.f32 %v4294_v35, %v4266_v56  ;;  %v4269_v58 = vadd.f32 %v4268_v7, %v4239_v1  ;;  %v11099_v56 = vadd.f32 %v13190_v23, %v2128_v0  ;;  %v4355_v7 = vpop.f32.mrf.mxu3 }
 0x3fe   : > { %v4323_v57 = vpop.f32.mrf.mxu2 }
 0x3ff   : > { %v11080_v15 = vadd.f32 %v4323_v57, %v4295_v34  ;;  %v4970_v34 = vmul.f32 %v12460_v18, %v11095_v27  ;;  %v12458_v57 = vperm.slane %v11090_v21, 2 }
 0x401   : > { %v4987_v54 = vmul.f32 %v4970_v34, %v11095_v27  ;;  %v4972_v9 = vmul.f32 %v12458_v57, %v10531_v52 }
 0x403   : > { %v4989_v30 = vmul.f32 %v4972_v9, %v10531_v52 }
 0x404   : > { %v4297_v19 = vpop.f32.mrf.mxu1  ;;  %v4271_v32 = vpop.f32.mrf.mxu0 }
 0x405   : > { %v4298_v25 = vadd.f32 %v4297_v19, %v4269_v58  ;;  %v4971_v58 = vmul.f32 %v12459_v28, %v11099_v56 }
 0x406   : > { %v4326_v46 = vpop.f32.mrf.mxu2 }
 0x407   : > { %v11082_v47 = vadd.f32 %v4326_v46, %v4298_v25  ;;  %v2360_v25 = vadd.f32 %v11013_v38, %v10703_v16  ;;  %v4156_v46 = vadd.f32 %v4155_v5, %v4126_v2  ;;  %v4988_v44 = vmul.f32 %v4971_v58, %v11099_v56 }
 0x408   : > { %v12457_v16 = vperm.slane %v11090_v21, 3  ;;  %v4978_v5 = vadd.f32 %v4971_v58, %v4970_v34 }
 0x409   : > { %13182 = vst [vmem:[#allocation34_spill] sm:$0xff] %v11082_v47  ;;  %v11119_v24 = vadd.f32 %v11005_v40, %v2360_v25  ;;  %v4185_v38 = vadd.f32 %v11074_v8, %v4156_v46 }
 0x40a   : > { %v4979_v8 = vadd.f32 %v4978_v5, %v4972_v9 }
 0x40b   : > { %v4973_v29 = vmul.f32 %v12457_v16, %v11119_v24  ;;  %v11129_v40 = vadd.f32 %v11076_v11, %v4185_v38 }
 0x40c   : > { %v4300_v51 = vpop.f32.mrf.mxu1 }
 0x40d   : > { %v4990_v11 = vmul.f32 %v4973_v29, %v11119_v24 }
 0x40e   : > { %v4329_v62 = vpop.f32.mrf.mxu2 }
 0x417   : > { %v4378_v10 = vpop.f32.mrf.mxu0 }
 0x418   : > { %v4379_v33 = vadd.f32 %v4378_v10, %v4349_v12 }
 0x41b   : > { %v4407_v6 = vpop.f32.mrf.mxu1 }
 0x41c   : > { %v4408_v55 = vadd.f32 %v4407_v6, %v4379_v33  ;;  %v4272_v33 = vadd.f32 %v4271_v32, %v4242_v43  ;;  %v12456_v43 = vperm.slane %v11090_v21, 4  ;;  %v4995_v6 = vadd.f32 %v4988_v44, %v4987_v54 }
 0x41e   : > { %v4301_v32 = vadd.f32 %v4300_v51, %v4272_v33  ;;  %v4974_v0 = vmul.f32 %v12456_v43, %v11063_v20 }
 0x41f   : > { %v4381_v60 = vpop.f32.mrf.mxu0 }
 0x420   : > { %v4382_v37 = vadd.f32 %v4381_v60, %v4352_v63  ;;  %v4358_v63 = vpop.f32.mrf.mxu3  ;;  %v11135_v60 = vadd.f32 %v4329_v62, %v4301_v32  ;;  %v4991_v34 = vmul.f32 %v4974_v0, %v11063_v20 }
 0x421   : > { %v4436_v59 = vpop.f32.mrf.mxu2 }
 0x422   : > { %v11092_v50 = vadd.f32 %v4436_v59, %v4408_v55 }
 0x423   : > { %v4410_v1 = vpop.f32.mrf.mxu1 }
 0x424   : > { %v4411_v35 = vadd.f32 %v4410_v1, %v4382_v37  ;;  %v12454_v37 = vperm.slane %v11090_v21, 6  ;;  %v4996_v1 = vadd.f32 %v4995_v6, %v4989_v30  ;;  %v13193_v30 = vld [vmem:[#allocation64_spill] sm:$0xff]  ;;  %v5405_v43 = vmul.f32 -1.442695, %v11092_v50 }
 0x426   : > { %v4976_v62 = vmul.f32 %v12454_v37, %v11135_v60 }
 0x427   : > { %v4384_v19 = vpop.f32.mrf.mxu0 }
 0x428   : > { %v4385_v12 = vadd.f32 %v4384_v19, %v4355_v7  ;;  %v4980_v7 = vadd.f32 %v4979_v8, %v4973_v29  ;;  %v4997_v19 = vadd.f32 %v4996_v1, %v4990_v11  ;;  %v4993_v44 = vmul.f32 %v4976_v62, %v11135_v60  ;;  %v13194_v8 = vld [vmem:[#allocation44_spill] sm:$0xff] }
 0x429   : > { %v4439_v10 = vpop.f32.mrf.mxu2  ;;  %v13197_v1 = vld [vmem:[#allocation36_spill] sm:$0xff] }
 0x42a   : > { %v11111_v31 = vadd.f32 %v4439_v10, %v4411_v35  ;;  %v4975_v35 = vmul.f32 %v12455_v13, %v11129_v40  ;;  %v4981_v25 = vadd.f32 %v4980_v7, %v4974_v0  ;;  %v4998_v33 = vadd.f32 %v4997_v19, %v4991_v34  ;;  %v13195_v0 = vld [vmem:[#allocation28_spill] sm:$0xff]  ;;  %v13199_v34 = vld [vmem:[#allocation53_spill] sm:$0xff]  ;;  %v13201_v19 = vld [vmem:[#allocation39_spill] sm:$0xff] }
 0x42b   : > { %v4413_v48 = vpop.f32.mrf.mxu1 }
 0x42c   : > { %v4414_v2 = vadd.f32 %v4413_v48, %v4385_v12  ;;  %v4992_v46 = vmul.f32 %v4975_v35, %v11129_v40  ;;  %v12453_v12 = vperm.slane %v11090_v21, 7  ;;  %v4982_v54 = vadd.f32 %v4981_v25, %v4975_v35  ;;  %v13198_v35 = vld [vmem:[#allocation46_spill] sm:$0xff] }
 0x42e   : > { %v4999_v48 = vadd.f32 %v4998_v33, %v4992_v46  ;;  %v13203_v33 = vld [vmem:[#allocation56_spill] sm:$0xff] }
 0x42f   : > { %v4387_v55 = vpop.f32.mrf.mxu0 }
 0x430   : > { %v4388_v41 = vadd.f32 %v4387_v55, %v4358_v63  ;;  %v5000_v6 = vadd.f32 %v4999_v48, %v4993_v44  ;;  %v13192_v55 = vld [vmem:[#allocation43_spill] sm:$0xff]  ;;  %v13204_v44 = vld [vmem:[#allocation54_spill] sm:$0xff] }
 0x431   : > { %v4442_v51 = vpop.f32.mrf.mxu2  ;;  %v1974_v29 = vadd.f32 %v13193_v30, %v13192_v55 }
 0x432   : > { %v11138_v59 = vadd.f32 %v4442_v51, %v4414_v2  ;;  %v4983_v2 = vadd.f32 %v4982_v54, %v4976_v62  ;;  %v1977_v51 = vadd.f32 %v13195_v0, %v13194_v8  ;;  %v13200_v62 = vld [vmem:[#allocation60_spill] sm:$0xff] }
 0x433   : > { %v4416_v23 = vpop.f32.mrf.mxu1 }
 0x434   : > { %13191 = vst [vmem:[#allocation75_spill] sm:$0xff] %v11138_v59  ;;  %v4417_v58 = vadd.f32 %v4416_v23, %v4388_v41  ;;  %v13196_v41 = vld [vmem:[#allocation50_spill] sm:$0xff]  ;;  %v2006_v11 = vadd.f32 %v13197_v1, %v1977_v51  ;;  %v5408_v1 = vmul.f32 -1.442695, %v10414_v53 }
 0x435   : > { %v2003_v23 = vadd.f32 %v13196_v41, %v1974_v29 }
 0x436   : > { %v2035_v25 = vadd.f32 %v13201_v19, %v2006_v11 }
 0x437   : > { %v2032_v7 = vadd.f32 %v13198_v35, %v2003_v23  ;;  %v5400_v23 = vmul.f32 -1.442695, %v10381_v22  ;;  %v5409_v22 = vmul.f32 -1.442695, %v10631_v4  ;;  %v5410_v4 = vmul.f32 -1.442695, %v11052_v49 }
 0x438   : > { %v5411_v49 = vmul.f32 -1.442695, %v11070_v36 }
 0x439   : > { %v4445_v10 = vpop.f32.mrf.mxu2  ;;  %v5398_v46 = vmul.f32 -1.442695, %v2032_v7 }
 0x43a   : > { %v11151_v9 = vadd.f32 %v4445_v10, %v4417_v58  ;;  %v2093_v58 = vadd.f32 %v13200_v62, %v13199_v34  ;;  %v13202_v10 = vld [vmem:[#allocation38_spill] sm:$0xff] }
 0x43b   : > { %v2090_v54 = vadd.f32 %v13203_v33, %v13202_v10  ;;  %6843 = vpow2.f32 %v5398_v46 }
 0x43c   : > { %v4977_v38 = vmul.f32 %v12453_v12, %v11151_v9  ;;  %v2122_v48 = vadd.f32 %v13204_v44, %v2093_v58 }
 0x43e   : > { %v4994_v5 = vmul.f32 %v4977_v38, %v11151_v9  ;;  %v4984_v32 = vadd.f32 %v4983_v2, %v4977_v38  ;;  %v5406_v38 = vmul.f32 -1.442695, %v2035_v25  ;;  %v13205_v2 = vld [vmem:[#allocation61_spill] sm:$0xff]  ;;  %v5401_v25 = vmul.f32 -1.442695, %v10583_v39 }
 0x440   : > { %4985 = vadd.xlane.f32.xlu2 %v4984_v32  ;;  %v5001_v63 = vadd.f32 %v5000_v6, %v4994_v5  ;;  %v2119_v5 = vadd.f32 %v13205_v2, %v2090_v54  ;;  %v13206_v32 = vld [vmem:[#allocation73_spill] sm:$0xff]  ;;  %6845 = vpow2.f32 %v5406_v38 }
 0x441   : > { %v2151_v6 = vadd.f32 %v13206_v32, %v2122_v48  ;;  %v6844_v29 = vpop.eup %6843  ;;  %v5402_v32 = vmul.f32 -1.442695, %v11047_v61  ;;  %v5403_v61 = vmul.f32 -1.442695, %v11068_v17 }
 0x442   : > { %5002 = vadd.xlane.f32.xlu0 %v5001_v63  ;;  %v13207_v63 = vld [vmem:[#allocation35_spill] sm:$0xff]  ;;  %v11173_v51 = vadd.f32 1.0, %v6844_v29 }
 0x443   : > { %v2148_v55 = vadd.f32 %v13207_v63, %v2119_v5  ;;  %v5407_v30 = vmul.f32 -1.442695, %v2151_v6 }
 0x444   : > { %vm4598_vm9 = vweird.f32 %v11173_v51 }
 0x445   : > { %v5399_v8 = vmul.f32 -1.442695, %v2148_v55  ;;  %6847 = vpow2.f32 %v5407_v30  ;;  %v4602_v55 = vand.u32 2147483647, %v11173_v51  ;;  %v4604_v30 = vand.u32 2147483648, %v11173_v51 }
 0x446   : > { %v6846_v0 = vpop.eup %6845 }
 0x447   : > { %v11175_v41 = vadd.f32 1.0, %v6846_v0  ;;  %6849 = vpow2.f32 %v5399_v8  ;;  %vm11242_vm3 = vcmp.eq.f32.partialorder %v4602_v55, 8.507059e+37 }
 0x448   : > { %6851 = vrcp.f32 %v11173_v51 }
 0x449   : > { %6853 = vrcp.f32 %v11175_v41  ;;  %vm4718_vm1 = vweird.f32 %v11175_v41 }
 0x44a   : > { %6855 = vpow2.f32 %v5400_v23 }
 0x44b   : > { %v6848_v11 = vpop.eup %6847  ;;  %6857 = vpow2.f32 %v5408_v1 }
 0x44c   : > { %v11181_v7 = vadd.f32 1.0, %v6848_v11  ;;  %v4722_v11 = vand.u32 2147483647, %v11175_v41 }
 0x44d   : > { %v6850_v35 = vpop.eup %6849 }
 0x44e   : > { %v11183_v34 = vpop.eup %6851  ;;  %v11185_v62 = vadd.f32 1.0, %v6850_v35  ;;  %6859 = vrcp.f32 %v11181_v7  ;;  %v4724_v35 = vand.u32 2147483648, %v11175_v41  ;;  %vm11258_vm4 = vcmp.eq.f32.partialorder %v4722_v11, 8.507059e+37 }
 0x44f   : > { %v11187_v58 = vpop.eup %6853  ;;  %v4594_v19 = vmul.f32 %v11183_v34, %v11173_v51  ;;  %vm4599_vm14 = vweird.f32 %v11183_v34  ;;  %vm4733_vm7 = vweird.f32 %v11181_v7  ;;  %v4737_v55 = vand.u32 2147483647, %v11181_v7 }
 0x450   : > { %v6856_v53 = vpop.eup %6855  ;;  %v4714_v10 = vmul.f32 %v11187_v58, %v11175_v41  ;;  %6861 = vrcp.f32 %v11185_v62  ;;  %vm4719_vm2 = vweird.f32 %v11187_v58  ;;  %vm11222_vm15 = vmor %vm4598_vm9, %vm4599_vm14  ;;  %vm4613_vm11 = vweird.f32 %v11185_v62 }
 0x451   : > { %v6858_v46 = vpop.eup %6857  ;;  %v4595_v33 = vsub.f32 1.0, %v4594_v19  ;;  %v11197_v54 = vadd.f32 1.0, %v6856_v53  ;;  %6863 = vpow2.f32 %v5409_v22  ;;  %vm11250_vm8 = vmor %vm4718_vm1, %vm4719_vm2  ;;  %vm11298_vm6 = vcmp.eq.f32.partialorder %v4737_v55, 8.507059e+37 }
 0x452   : > { %v11199_v44 = vadd.f32 1.0, %v6858_v46  ;;  %6865 = vpow2.f32 %v5401_v25  ;;  %v4715_v38 = vsub.f32 1.0, %v4714_v10  ;;  %v4605_v10 = vor.u32 1.1754944e-38, %v4604_v30 }
 0x453   : > { %v4596_v39 = vmul.f32 %v11183_v34, %v4595_v33  ;;  %6867 = vrcp.f32 %v11197_v54  ;;  %v4739_v30 = vand.u32 2147483648, %v11181_v7  ;;  %v5412_v33 = vmul.f32 -1.442695, %v11080_v15  ;;  %v5043_v15 = vld [vmem:[%s7445_s3] sm:$0xff] }
 0x454   : > { %v11201_v48 = vpop.eup %6859  ;;  %6869 = vrcp.f32 %v11199_v44  ;;  %v4716_v29 = vmul.f32 %v11187_v58, %v4715_v38  ;;  %vm4628_vm13 = vweird.f32 %v11197_v54  ;;  %vm4748_vm14 = vweird.f32 %v11199_v44 }
 0x455   : > { %v4729_v5 = vmul.f32 %v11201_v48, %v11181_v7  ;;  %6871 = vpow2.f32 %v5410_v4  ;;  %v4597_v8 = vadd.f32 %v11183_v34, %v4596_v39  ;;  %vm4734_vm10 = vweird.f32 %v11201_v48 }
 0x456   : > { %v11206_v2 = vpop.eup %6861  ;;  %6873 = vpow2.f32 %v5402_v32  ;;  %v4717_v22 = vadd.f32 %v11187_v58, %v4716_v29  ;;  %vm11282_vm12 = vmor %vm4733_vm7, %vm4734_vm10  ;;  %v4632_v12 = vand.u32 2147483647, %v11197_v54  ;;  %v13232_v59 = vand.u32 2147483647, %v11185_v62 }
 0x457   : > { %v6864_v6 = vpop.eup %6863  ;;  %v4609_v36 = vmul.f32 %v11206_v2, %v11185_v62  ;;  %v4730_v23 = vsub.f32 1.0, %v4729_v5  ;;  %6875 = vpow2.f32 %v5411_v49  ;;  %v4601_v25 = vsel %vm11222_vm15, %v11183_v34, %v4597_v8 }
 0x458   : > { %v6866_v63 = vpop.eup %6865  ;;  %v11228_v1 = vadd.f32 1.0, %v6864_v6  ;;  %6877 = vpow2.f32 %v5403_v61  ;;  %v4725_v5 = vor.u32 1.1754944e-38, %v4724_v35  ;;  %v4721_v6 = vsel %vm11250_vm8, %v11187_v58, %v4717_v22 }
 0x459   : > { %v11230_v51 = vpop.eup %6867  ;;  %v11234_v19 = vadd.f32 1.0, %v6866_v63  ;;  %v4610_v4 = vsub.f32 1.0, %v4609_v36  ;;  %v4731_v38 = vmul.f32 %v11201_v48, %v4730_v23  ;;  %v11278_v58 = vsel %vm11242_vm3, %v4605_v10, %v4601_v25 }
 0x45a   : > { %v11236_v17 = vpop.eup %6869  ;;  %v4624_v34 = vmul.f32 %v11230_v51, %v11197_v54  ;;  %6879 = vrcp.f32 %v11228_v1  ;;  %v4726_v36 = vsel %vm11258_vm4, %v4725_v5, %v4721_v6  ;;  %v4619_v22 = vand.u32 2147483648, %v11185_v62 }
 0x45b   : > { %v6872_v53 = vpop.eup %6871  ;;  %v4744_v41 = vmul.f32 %v11236_v17, %v11199_v44  ;;  %6881 = vrcp.f32 %v11234_v19  ;;  %v4611_v29 = vmul.f32 %v11206_v2, %v4610_v4  ;;  %v4732_v8 = vadd.f32 %v11201_v48, %v4731_v38 }
 0x45c   : > { %v6874_v32 = vpop.eup %6873  ;;  %v11270_v49 = vadd.f32 1.0, %v6872_v53  ;;  %v4625_v61 = vsub.f32 1.0, %v4624_v34  ;;  %vm4614_vm5 = vweird.f32 %v11206_v2  ;;  %v4740_v10 = vor.u32 1.1754944e-38, %v4739_v30 }
 0x45d   : > { %v6876_v63 = vpop.eup %6875  ;;  %v4745_v11 = vsub.f32 1.0, %v4744_v41  ;;  %v11286_v35 = vadd.f32 1.0, %v6874_v32  ;;  %v11304_v4 = vadd.f32 %v11206_v2, %v4611_v29  ;;  %v4736_v38 = vsel %vm11282_vm12, %v11201_v48, %v4732_v8  ;;  %vm11327_vm9 = vmor %vm4613_vm11, %vm4614_vm5 }
 0x45e   : > { %v6878_v0 = vpop.eup %6877  ;;  %6883 = vrcp.f32 %v11270_v49  ;;  %v11293_v53 = vadd.f32 1.0, %v6876_v63  ;;  %v4626_v34 = vmul.f32 %v11230_v51, %v4625_v61  ;;  %vm4629_vm0 = vweird.f32 %v11230_v51 }
 0x45f   : > { %v11310_v39 = vadd.f32 1.0, %v6878_v0  ;;  %v4746_v5 = vmul.f32 %v11236_v17, %v4745_v11  ;;  %6885 = vrcp.f32 %v11286_v35  ;;  %v4634_v32 = vand.u32 2147483648, %v11197_v54  ;;  %vm11349_vm2 = vmor %vm4628_vm13, %vm4629_vm0 }
 0x460   : > { %v11288_v7 = vpop.eup %6879  ;;  %6887 = vrcp.f32 %v11293_v53  ;;  %vm4749_vm1 = vweird.f32 %v11236_v17  ;;  %v5404_v63 = vmul.f32 -1.442695, %v11078_v42  ;;  %v11337_v30 = vadd.f32 %v11230_v51, %v4626_v34 }
 0x461   : > { %v11295_v25 = vpop.eup %6881  ;;  %v4759_v41 = vmul.f32 %v11288_v7, %v11228_v1  ;;  %6889 = vpow2.f32 %v5412_v33  ;;  %v4752_v29 = vand.u32 2147483647, %v11199_v44  ;;  %v4754_v8 = vand.u32 2147483648, %v11199_v44  ;;  %vm11368_vm15 = vmor %vm4748_vm14, %vm4749_vm1 }
 0x462   : > { %v4639_v48 = vmul.f32 %v11295_v25, %v11234_v19  ;;  %6891 = vrcp.f32 %v11310_v39  ;;  %v11342_v61 = vmul.f32 %v5043_v15, %v4726_v36  ;;  %v4747_v23 = vadd.f32 %v11236_v17, %v4746_v5 }
 0x463   : > { %v4760_v11 = vsub.f32 1.0, %v4759_v41  ;;  %v11358_v36 = vor.u32 1.1754944e-38, %v4619_v22  ;;  %v11362_v34 = vsel %vm11298_vm6, %v4740_v10, %v4736_v38  ;;  %v11375_v37 = vor.u32 1.1754944e-38, %v4634_v32 }
 0x464   : > { %v11334_v55 = vpop.eup %6883  ;;  %v4640_v5 = vsub.f32 1.0, %v4639_v48  ;;  %6893 = vpow2.f32 %v5404_v63  ;;  %vm11385_vm3 = vcmp.eq.f32.partialorder %v4752_v29, 8.507059e+37  ;;  %v4755_v38 = vor.u32 1.1754944e-38, %v4754_v8 }
 0x465   : > { %v11372_v41 = vpop.eup %6885  ;;  %v4774_v22 = vmul.f32 %v11334_v55, %v11270_v49  ;;  %v5413_v54 = vmul.f32 -1.442695, %v11111_v31  ;;  %v4751_v48 = vsel %vm11368_vm15, %v11236_v17, %v4747_v23  ;;  %v4649_v63 = vand.u32 2147483648, %v11234_v19 }
 0x466   : > { %v11379_v46 = vpop.eup %6887  ;;  %v4761_v13 = vmul.f32 %v11288_v7, %v4760_v11  ;;  %v4641_v29 = vmul.f32 %v11295_v25, %v4640_v5  ;;  %vm4763_vm8 = vweird.f32 %v11228_v1  ;;  %v4767_v8 = vand.u32 2147483647, %v11228_v1 }
 0x467   : > { %v6890_v32 = vpop.eup %6889  ;;  %v4769_v31 = vand.u32 2147483648, %v11228_v1  ;;  %vm4764_vm4 = vweird.f32 %v11288_v7  ;;  %v4654_v17 = vmul.f32 %v11372_v41, %v11286_v35  ;;  %v4775_v23 = vsub.f32 1.0, %v4774_v22 }
 0x468   : > { %v11396_v16 = vpop.eup %6891  ;;  %v4789_v11 = vmul.f32 %v11379_v46, %v11293_v53  ;;  %v11409_v50 = vsel %vm11385_vm3, %v4755_v38, %v4751_v48  ;;  %vm4643_vm7 = vweird.f32 %v11234_v19  ;;  %v11412_v15 = vadd.f32 1.0, %v6890_v32  ;;  %vm11427_vm12 = vmor %vm4763_vm8, %vm4764_vm4 }
 0x469   : > { %6895 = vpow2.f32 %v5413_v54  ;;  %v4647_v57 = vand.u32 2147483647, %v11234_v19  ;;  %v11416_v28 = vadd.f32 %v11288_v7, %v4761_v13  ;;  %v4669_v22 = vmul.f32 %v11396_v16, %v11310_v39 }
 0x46a   : > { %v6894_v5 = vpop.eup %6893  ;;  %6897 = vpow2.f32 %v5405_v43  ;;  %vm4644_vm10 = vweird.f32 %v11295_v25  ;;  %v11421_v10 = vor.u32 1.1754944e-38, %v4649_v63  ;;  %v4770_v54 = vor.u32 1.1754944e-38, %v4769_v31  ;;  %v5045_v43 = vld [vmem:[%s7445_s3 + $0x10] sm:$0xff] }
 0x46b   : > { %v11434_v32 = vadd.f32 %v11295_v25, %v4641_v29  ;;  %vm11436_vm11 = vcmp.eq.f32.partialorder %v4767_v8, 8.507059e+37  ;;  %v4655_v48 = vsub.f32 1.0, %v4654_v17  ;;  %v4776_v63 = vmul.f32 %v11334_v55, %v4775_v23  ;;  %vm11501_vm5 = vmor %vm4643_vm7, %vm4644_vm10 }
 0x46c   : > { %v4790_v44 = vsub.f32 1.0, %v4789_v11  ;;  %v11441_v1 = vadd.f32 1.0, %v6894_v5  ;;  %6899 = vrcp.f32 %v11412_v15  ;;  %v4766_v29 = vsel %vm11427_vm12, %v11288_v7, %v11416_v28 }
 0x46d   : > { %v4662_v8 = vand.u32 2147483647, %v11286_v35  ;;  %v4670_v31 = vsub.f32 1.0, %v4669_v22  ;;  %vm4659_vm6 = vweird.f32 %v11372_v41  ;;  %v4664_v23 = vand.u32 2147483648, %v11286_v35 }
 0x46e   : > { %vm11457_vm13 = vcmp.eq.f32.partialorder %v13232_v59, 8.507059e+37  ;;  %vm11461_vm0 = vcmp.eq.f32.partialorder %v4632_v12, 8.507059e+37  ;;  %vm4778_vm14 = vweird.f32 %v11270_v49  ;;  %vm4779_vm1 = vweird.f32 %v11334_v55 }
 0x46f   : > { %v6896_v17 = vpop.eup %6895  ;;  %v4784_v7 = vand.u32 2147483648, %v11270_v49  ;;  %v4791_v22 = vmul.f32 %v11379_v46, %v4790_v44  ;;  %vm11469_vm15 = vcmp.eq.f32.partialorder %v4647_v57, 8.507059e+37  ;;  %v4656_v59 = vmul.f32 %v11372_v41, %v4655_v48  ;;  %vm11485_vm4 = vmor %vm4778_vm14, %vm4779_vm1 }
 0x470   : > { %v6898_v5 = vpop.eup %6897  ;;  %v4777_v62 = vadd.f32 %v11334_v55, %v4776_v63  ;;  %6901 = vrcp.f32 %v11441_v1  ;;  %v4671_v38 = vmul.f32 %v11396_v16, %v4670_v31  ;;  %vm4793_vm3 = vweird.f32 %v11293_v53 }
 0x471   : > { %vm4794_vm8 = vweird.f32 %v11379_v46  ;;  %v4799_v63 = vand.u32 2147483648, %v11293_v53  ;;  %vm4674_vm1 = vweird.f32 %v11396_v16  ;;  %v4677_v45 = vand.u32 2147483647, %v11310_v39 }
 0x472   : > { %v11483_v57 = vpop.eup %6899  ;;  %v4679_v19 = vand.u32 2147483648, %v11310_v39  ;;  %vm11516_vm7 = vmor %vm4793_vm3, %vm4794_vm8  ;;  %vm13247_vm10 = vweird.f32 %v11286_v35  ;;  %v4646_v35 = vsel %vm11501_vm5, %v11295_v25, %v11434_v32  ;;  %v4771_v44 = vsel %vm11436_vm11, %v4770_v54, %v4766_v29  ;;  %v5046_v29 = vld [vmem:[%s7445_s3 + $0x18] sm:$0xff] }
 0x473   : > { %vm11524_vm14 = vmor %vm13247_vm10, %vm4659_vm6  ;;  %vm13250_vm6 = vweird.f32 %v11310_v39  ;;  %vm11553_vm8 = vcmp.eq.f32.partialorder %v4662_v8, 8.507059e+37  ;;  %v4665_v25 = vor.u32 1.1754944e-38, %v4664_v23  ;;  %vm11571_vm5 = vcmp.eq.f32.partialorder %v4677_v45, 8.507059e+37 }
 0x474   : > { %vm11547_vm3 = vmor %vm13250_vm6, %vm4674_vm1  ;;  %v4680_v26 = vor.u32 1.1754944e-38, %v4679_v19  ;;  %v13259_v45 = vsel %vm11327_vm9, %v11206_v2, %v11304_v4  ;;  %v5048_v4 = vld [vmem:[%s7445_s3 + $0x28] sm:$0xff]  ;;  %v11616_v42 = vsel %vm11469_vm15, %v11421_v10, %v4646_v35  ;;  %v4812_v28 = vand.u32 2147483647, %v11412_v15 }
 0x475   : > { %vm4688_vm9 = vweird.f32 %v11441_v1  ;;  %v4692_v35 = vand.u32 2147483647, %v11441_v1 }
 0x476   : > { %v11535_v3 = vpop.eup %6901 }
 0x477   : > { %v4684_v31 = vmul.f32 %v11535_v3, %v11441_v1  ;;  %vm4689_vm15 = vweird.f32 %v11535_v3  ;;  %vm11688_vm10 = vcmp.eq.f32.partialorder %v4692_v35, 8.507059e+37 }
 0x4b3   : > { %v4986_v18 = vpop.xlane.xlu2 %4985 }
 0x4b4   : > { %v11431_v13 = vmul.f32 0.00390625, %v4986_v18 }
 0x4b5   : > { %v5003_v33 = vpop.xlane.xlu0 %5002 }
 0x4b6   : > { %v5005_v0 = vmul.f32 0.00390625, %v5003_v33  ;;  %v5006_v18 = vmul.f32 %v11431_v13, %v11431_v13  ;;  %v4782_v33 = vand.u32 2147483647, %v11270_v49  ;;  %v11481_v49 = vadd.f32 1.0, %v6896_v17 }
 0x4b7   : > { %v4792_v17 = vadd.f32 %v11379_v46, %v4791_v22  ;;  %v5047_v22 = vld [vmem:[%s7445_s3 + $0x20] sm:$0xff]  ;;  %v5008_v39 = vsub.f32 %v11095_v27, %v11431_v13  ;;  %v5011_v23 = vsub.f32 %v11119_v24, %v11431_v13 }
 0x4b8   : > { %v5007_v11 = vsub.f32 %v5005_v0, %v5006_v18  ;;  %vm11489_vm12 = vcmp.eq.f32.partialorder %v4782_v33, 8.507059e+37  ;;  %v11494_v18 = vadd.f32 1.0, %v6898_v5  ;;  %v4797_v33 = vand.u32 2147483647, %v11293_v53 }
 0x4b9   : > { %v4785_v5 = vor.u32 1.1754944e-38, %v4784_v7  ;;  %v4781_v7 = vsel %vm11485_vm4, %v11334_v55, %v4777_v62  ;;  %v4804_v53 = vmul.f32 %v11483_v57, %v11412_v15  ;;  %v4800_v62 = vor.u32 1.1754944e-38, %v4799_v63 }
 0x4ba   : > { %v11476_v12 = vadd.f32 1e-05, %v5007_v11  ;;  %v4657_v11 = vadd.f32 %v11372_v41, %v4656_v59  ;;  %v4672_v59 = vadd.f32 %v11396_v16, %v4671_v38  ;;  %v5044_v38 = vld [vmem:[%s7445_s3 + $0x8] sm:$0xff]  ;;  %v4796_v54 = vsel %vm11516_vm7, %v11379_v46, %v4792_v17  ;;  %vm11678_vm7 = vmor %vm4688_vm9, %vm4689_vm15 }
 0x4bb   : > { %vm11560_vm11 = vcmp.eq.f32.partialorder %v4797_v33, 8.507059e+37  ;;  %v4786_v63 = vsel %vm11489_vm12, %v4785_v5, %v4781_v7  ;;  %v4805_v17 = vsub.f32 1.0, %v4804_v53  ;;  %v11593_v48 = vmul.f32 %v5044_v38, %v11362_v34 }
 0x4bc   : > { %6903 = vrsqrt.f32 %v11476_v12  ;;  %v4661_v8 = vsel %vm11524_vm14, %v11372_v41, %v4657_v11  ;;  %v4676_v46 = vsel %vm11547_vm3, %v11396_v16, %v4672_v59  ;;  %v11590_v41 = vsel %vm11457_vm13, %v11358_v36, %v13259_v45 }
 0x4bd   : > { %6905 = vrcp.f32 %v11481_v49  ;;  %v13260_v16 = vsel %vm11349_vm2, %v11230_v51, %v11337_v30  ;;  %v4801_v2 = vsel %vm11560_vm11, %v4800_v62, %v4796_v54  ;;  %v11611_v36 = vmul.f32 %v5045_v43, %v11409_v50 }
 0x4be   : > { %6907 = vrcp.f32 %v11494_v18  ;;  %v11603_v6 = vsel %vm11461_vm0, %v11375_v37, %v13260_v16  ;;  %v11618_v51 = vmul.f32 %v5046_v29, %v4771_v44  ;;  %v11624_v37 = vsel %vm11553_vm8, %v4665_v25, %v4661_v8 }
 0x4bf   : > { %v11629_v50 = vsel %vm11571_vm5, %v4680_v26, %v4676_v46  ;;  %v11631_v11 = vmul.f32 %v5047_v22, %v4786_v63  ;;  %v4685_v0 = vsub.f32 1.0, %v4684_v31  ;;  %v4806_v10 = vmul.f32 %v11483_v57, %v4805_v17 }
 0x4c0   : > { %v11634_v19 = vmul.f32 %v5048_v4, %v4801_v2  ;;  %vm4808_vm2 = vweird.f32 %v11412_v15  ;;  %vm4809_vm13 = vweird.f32 %v11483_v57  ;;  %v4814_v7 = vand.u32 2147483648, %v11412_v15 }
 0x4c1   : > { %v4694_v44 = vand.u32 2147483648, %v11441_v1  ;;  %vm11647_vm4 = vcmp.eq.f32.partialorder %v4812_v28, 8.507059e+37  ;;  %v4686_v62 = vmul.f32 %v11535_v3, %v4685_v0  ;;  %v4807_v38 = vadd.f32 %v11483_v57, %v4806_v10  ;;  %vm11653_vm12 = vmor %vm4808_vm2, %vm4809_vm13  ;;  %v5049_v10 = vld [vmem:[%s7445_s3 + $0x30] sm:$0xff] }
 0x4c2   : > { %v6904_v32 = vpop.eup %6903  ;;  %vm5023_vm14 = vweird.f32 %v11476_v12  ;;  %v5009_v43 = vsub.f32 %v11099_v56, %v11431_v13  ;;  %v5010_v29 = vsub.f32 %v10531_v52, %v11431_v13  ;;  %v4815_v8 = vor.u32 1.1754944e-38, %v4814_v7 }
 0x4c3   : > { %v5018_v33 = vmul.f32 %v6904_v32, %v11476_v12  ;;  %v11608_v47 = vpop.eup %6905  ;;  %vm5024_vm0 = vweird.f32 %v6904_v32  ;;  %v5012_v17 = vsub.f32 %v11063_v20, %v11431_v13  ;;  %v4687_v27 = vadd.f32 %v11535_v3, %v4686_v62 }
 0x4c4   : > { %v11620_v34 = vpop.eup %6907  ;;  %v4819_v14 = vmul.f32 %v11608_v47, %v11481_v49  ;;  %vm5025_vm1 = vmor %vm5023_vm14, %vm5024_vm0  ;;  %v4811_v52 = vsel %vm11653_vm12, %v11483_v57, %v4807_v38  ;;  %v5013_v56 = vsub.f32 %v11129_v40, %v11431_v13  ;;  %v5015_v40 = vsub.f32 %v11151_v9, %v11431_v13 }
 0x4c5   : > { %v5019_v30 = vmul.f32 %v6904_v32, %v5018_v33  ;;  %v4699_v59 = vmul.f32 %v11620_v34, %v11494_v18  ;;  %v4695_v16 = vor.u32 1.1754944e-38, %v4694_v44  ;;  %v4816_v4 = vsel %vm11647_vm4, %v4815_v8, %v4811_v52 }
 0x4c6   : > { %v4820_v54 = vsub.f32 1.0, %v4819_v14  ;;  %v4709_v9 = vand.u32 2147483648, %v11494_v18  ;;  %vm4824_vm6 = vweird.f32 %v11608_v47  ;;  %vm4704_vm3 = vweird.f32 %v11620_v34 }
 0x4c7   : > { %v5020_v5 = vmul.f32 0.5, %v5019_v30  ;;  %v4700_v63 = vsub.f32 1.0, %v4699_v59  ;;  %v4829_v28 = vand.u32 2147483648, %v11481_v49  ;;  %vm4823_vm8 = vweird.f32 %v11481_v49 }
 0x4c8   : > { %v4821_v20 = vmul.f32 %v11608_v47, %v4820_v54  ;;  %v4827_v14 = vand.u32 2147483647, %v11481_v49  ;;  %vm4703_vm11 = vweird.f32 %v11494_v18  ;;  %vm11710_vm5 = vmor %vm4823_vm8, %vm4824_vm6  ;;  %v5057_v62 = vmul.f32 %v5049_v10, %v4816_v4 }
 0x4c9   : > { %v5021_v53 = vsub.f32 1.5, %v5020_v5  ;;  %v4701_v57 = vmul.f32 %v11620_v34, %v4700_v63  ;;  %v4707_v5 = vand.u32 2147483647, %v11494_v18  ;;  %vm11719_vm9 = vmor %vm4703_vm11, %vm4704_vm3  ;;  %v4710_v18 = vor.u32 1.1754944e-38, %v4709_v9  ;;  %v5050_v63 = vld [vmem:[%s7445_s3 + $0x38] sm:$0xff] }
 0x4ca   : > { %vm4828_vm13 = vcmp.eq.f32.partialorder %v4827_v14, 8.507059e+37  ;;  %v13280_v14 = vperm.slane %v11090_v21, 7 }
 0x4cb   : > { %v5022_v25 = vmul.f32 %v6904_v32, %v5021_v53  ;;  %v4702_v0 = vadd.f32 %v11620_v34, %v4701_v57  ;;  %vm4708_vm2 = vcmp.eq.f32.partialorder %v4707_v5, 8.507059e+37 }
 0x4cd   : > { %v5026_v26 = vsel %vm5025_vm1, %v6904_v32, %v5022_v25  ;;  %v5014_v32 = vsub.f32 %v11135_v60, %v11431_v13  ;;  %v4691_v60 = vsel %vm11678_vm7, %v11535_v3, %v4687_v27  ;;  %v4822_v13 = vadd.f32 %v11608_v47, %v4821_v20 }
 0x4ce   : > { %v5027_v46 = vmul.f32 %v5026_v26, %v5008_v39  ;;  %v5028_v31 = vmul.f32 %v5026_v26, %v5009_v43  ;;  %v5029_v12 = vmul.f32 %v5026_v26, %v5010_v29  ;;  %v5030_v33 = vmul.f32 %v5026_v26, %v5011_v23 }
 0x4cf   : > { %v5031_v22 = vmul.f32 %v5026_v26, %v5012_v17  ;;  %v5032_v45 = vmul.f32 %v5026_v26, %v5013_v56  ;;  %v5033_v2 = vmul.f32 %v5026_v26, %v5014_v32  ;;  %v5034_v30 = vmul.f32 %v5026_v26, %v5015_v40 }
 0x4d0   : > { %6909 = vtanh.f32 %v5027_v46  ;;  %v4696_v53 = vsel %vm11688_vm10, %v4695_v16, %v4691_v60  ;;  %v4826_v55 = vsel %vm11710_vm5, %v11608_v47, %v4822_v13  ;;  %v4830_v25 = vor.u32 1.1754944e-38, %v4829_v28 }
 0x4d1   : > { %6911 = vtanh.f32 %v5028_v31  ;;  %v13275_v27 = vperm.slane %v11090_v21, 2  ;;  %v13276_v32 = vperm.slane %v11090_v21, 3  ;;  %v13278_v60 = vperm.slane %v11090_v21, 5 }
 0x4d2   : > { %6913 = vtanh.f32 %v5029_v12  ;;  %v4831_v8 = vsel %vm4828_vm13, %v4830_v25, %v4826_v55  ;;  %v13279_v28 = vperm.slane %v11090_v21, 6  ;;  %v13282_v25 = vld [vmem:[#allocation52_spill] sm:$0xff] }
 0x4d3   : > { %6915 = vtanh.f32 %v5030_v33  ;;  %v5058_v56 = vmul.f32 %v5050_v63, %v4831_v8  ;;  %v13286_v8 = vld [vmem:[#allocation65_spill] sm:$0xff] }
 0x4d4   : > { %6917 = vtanh.f32 %v5031_v22 }
 0x4d5   : > { %6919 = vtanh.f32 %v5032_v45  ;;  %v13277_v45 = vperm.slane %v11090_v21, 4 }
 0x4d6   : > { %v6910_v3 = vpop.eup %6909  ;;  %6921 = vtanh.f32 %v5033_v2 }
 0x4d7   : > { %v6912_v7 = vpop.eup %6911  ;;  %6923 = vtanh.f32 %v5034_v30  ;;  %v5059_v35 = vmul.f32 %v6910_v3, %v11278_v58  ;;  %v4706_v58 = vsel %vm11719_vm9, %v11620_v34, %v4702_v0 }
 0x4d8   : > { %v6914_v44 = vpop.eup %6913  ;;  %v5060_v38 = vmul.f32 %v6912_v7, %v11590_v41  ;;  %v4711_v46 = vsel %vm4708_vm2, %v4710_v18, %v4706_v58 }
 0x4d9   : > { %v6916_v15 = vpop.eup %6915  ;;  %v5061_v54 = vmul.f32 %v6914_v44, %v11603_v6  ;;  %v11732_v39 = vadd.f32 %v5059_v35, %v11342_v61  ;;  %v13273_v6 = vperm.slane %v11090_v21, 0 }
 0x4da   : > { %v6918_v43 = vpop.eup %6917  ;;  %v5062_v29 = vmul.f32 %v6916_v15, %v11616_v42  ;;  %v11736_v47 = vadd.f32 %v5060_v38, %v11593_v48  ;;  %v13274_v48 = vperm.slane %v11090_v21, 1  ;;  %v13281_v15 = vld [vmem:[#allocation22_spill] sm:$0xff]  ;;  %v13283_v21 = vld [vmem:[#allocation76_spill] sm:$0xff] }
 0x4db   : > { %v6920_v41 = vpop.eup %6919  ;;  %v5063_v23 = vmul.f32 %v6918_v43, %v11624_v37  ;;  %v11741_v34 = vadd.f32 %v5061_v54, %v11611_v36  ;;  %v5075_v61 = vmul.f32 %v11732_v39, %v13273_v6  ;;  %v1980_v58 = vadd.f32 %v13282_v25, %v13281_v15  ;;  %v13284_v54 = vld [vmem:[#allocation45_spill] sm:$0xff] }
 0x4dc   : > { %v6922_v26 = vpop.eup %6921  ;;  %v5064_v31 = vmul.f32 %v6920_v41, %v11629_v50  ;;  %v11748_v42 = vadd.f32 %v5062_v29, %v11618_v51  ;;  %v5076_v12 = vmul.f32 %v11736_v47, %v13274_v48  ;;  %v2096_v43 = vadd.f32 %v13284_v54, %v13283_v21  ;;  %v13285_v29 = vld [vmem:[#allocation47_spill] sm:$0xff]  ;;  %v13289_v48 = vld [vmem:[#allocation41_spill] sm:$0xff] }
 0x4dd   : > { %v6924_v17 = vpop.eup %6923  ;;  %v5065_v37 = vmul.f32 %v6922_v26, %v4696_v53  ;;  %v11754_v36 = vadd.f32 %v5063_v23, %v11631_v11  ;;  %v5077_v33 = vmul.f32 %v11741_v34, %v13275_v27  ;;  %v5092_v52 = vmul.f32 %v5075_v61, %v11732_v39  ;;  %v13287_v23 = vld [vmem:[#allocation62_spill] sm:$0xff] }
 0x4de   : > { %v5066_v50 = vmul.f32 %v6924_v17, %v4711_v46  ;;  %v11761_v51 = vadd.f32 %v5064_v31, %v11634_v19  ;;  %v5083_v24 = vadd.f32 %v5076_v12, %v5075_v61  ;;  %v5078_v22 = vmul.f32 %v11748_v42, %v13276_v32  ;;  %v13288_v61 = vld [vmem:[#allocation58_spill] sm:$0xff]  ;;  %v13290_v17 = vld [vmem:[#allocation59_spill] sm:$0xff] }
 0x4df   : > { %v11763_v20 = vadd.f32 %v5065_v37, %v5057_v62  ;;  %v5093_v11 = vmul.f32 %v5076_v12, %v11736_v47  ;;  %v5079_v1 = vmul.f32 %v11754_v36, %v13277_v45  ;;  %v5094_v16 = vmul.f32 %v5077_v33, %v11741_v34 }
 0x4e0   : > { %v11769_v57 = vadd.f32 %v5066_v50, %v5058_v56  ;;  %v5084_v40 = vadd.f32 %v5083_v24, %v5077_v33  ;;  %v5080_v4 = vmul.f32 %v11761_v51, %v13278_v60  ;;  %v5095_v30 = vmul.f32 %v5078_v22, %v11748_v42  ;;  %v13291_v24 = vld [vmem:[#allocation40_spill] sm:$0xff] }
 0x4e1   : > { %v5100_v19 = vadd.f32 %v5093_v11, %v5092_v52  ;;  %v5081_v0 = vmul.f32 %v11763_v20, %v13279_v28  ;;  %v5096_v10 = vmul.f32 %v5079_v1, %v11754_v36  ;;  %v2009_v41 = vadd.f32 %v13285_v29, %v1980_v58 }
 0x4e2   : > { %v5085_v2 = vadd.f32 %v5084_v40, %v5078_v22  ;;  %v5082_v7 = vmul.f32 %v11769_v57, %v13280_v14  ;;  %v5097_v59 = vmul.f32 %v5080_v4, %v11761_v51  ;;  %v2125_v63 = vadd.f32 %v13286_v8, %v2096_v43  ;;  %v13292_v40 = vld [vmem:[#allocation51_spill] sm:$0xff] }
 0x4e3   : > { %v5101_v9 = vadd.f32 %v5100_v19, %v5094_v16  ;;  %v5098_v44 = vmul.f32 %v5081_v0, %v11763_v20  ;;  %v2038_v6 = vadd.f32 %v13287_v23, %v2009_v41  ;;  %v5416_v12 = vmul.f32 -1.442695, %v13289_v48 }
 0x4e4   : > { %v5086_v13 = vadd.f32 %v5085_v2, %v5079_v1  ;;  %v5099_v55 = vmul.f32 %v5082_v7, %v11769_v57  ;;  %v2154_v26 = vadd.f32 %v13288_v61, %v2125_v63  ;;  %v5417_v37 = vmul.f32 -1.442695, %v13290_v17  ;;  %v13293_v2 = vld [vmem:[#allocation34_spill] sm:$0xff] }
 0x4e5   : > { %v5102_v3 = vadd.f32 %v5101_v9, %v5095_v30  ;;  %v5414_v46 = vmul.f32 -1.442695, %v2038_v6  ;;  %v5418_v32 = vmul.f32 -1.442695, %v13291_v24  ;;  %v5419_v45 = vmul.f32 -1.442695, %v13292_v40 }
 0x4e6   : > { %v5087_v5 = vadd.f32 %v5086_v13, %v5080_v4  ;;  %v5415_v31 = vmul.f32 -1.442695, %v2154_v26  ;;  %v5420_v60 = vmul.f32 -1.442695, %v13293_v2  ;;  %v13294_v30 = vld [vmem:[#allocation75_spill] sm:$0xff] }
 0x4e7   : > { %v5103_v53 = vadd.f32 %v5102_v3, %v5096_v10  ;;  %6925 = vpow2.f32 %v5414_v46  ;;  %v5421_v9 = vmul.f32 -1.442695, %v13294_v30 }
 0x4e8   : > { %v5088_v35 = vadd.f32 %v5087_v5, %v5081_v0  ;;  %6927 = vpow2.f32 %v5415_v31 }
 0x4e9   : > { %v5104_v49 = vadd.f32 %v5103_v53, %v5097_v59  ;;  %6929 = vpow2.f32 %v5416_v12 }
 0x4ea   : > { %v5089_v18 = vadd.f32 %v5088_v35, %v5082_v7  ;;  %6931 = vpow2.f32 %v5417_v37 }
 0x4eb   : > { %v5105_v62 = vadd.f32 %v5104_v49, %v5098_v44 }
 0x4ec   : > { %5090 = vadd.xlane.f32.xlu1 %v5089_v18 }
 0x4ed   : > { %v5106_v38 = vadd.f32 %v5105_v62, %v5099_v55  ;;  %v6926_v27 = vpop.eup %6925 }
 0x4ee   : > { %v6928_v33 = vpop.eup %6927  ;;  %v11799_v52 = vadd.f32 1.0, %v6926_v27 }
 0x4ef   : > { %5107 = vadd.xlane.f32.xlu2 %v5106_v38  ;;  %v6930_v56 = vpop.eup %6929  ;;  %v11801_v50 = vadd.f32 1.0, %v6928_v33 }
 0x4f0   : > { %6933 = vrcp.f32 %v11799_v52  ;;  %v11805_v22 = vadd.f32 1.0, %v6930_v56  ;;  %v6932_v11 = vpop.eup %6931  ;;  %vm4838_vm0 = vweird.f32 %v11799_v52  ;;  %v4842_v61 = vand.u32 2147483647, %v11799_v52 }
 0x4f1   : > { %6935 = vrcp.f32 %v11801_v50  ;;  %v11810_v1 = vadd.f32 1.0, %v6932_v11  ;;  %vm4853_vm4 = vweird.f32 %v11801_v50  ;;  %v4844_v26 = vand.u32 2147483648, %v11799_v52 }
 0x4f2   : > { %6937 = vpow2.f32 %v5418_v32  ;;  %v4857_v46 = vand.u32 2147483647, %v11801_v50  ;;  %v4859_v12 = vand.u32 2147483648, %v11801_v50  ;;  %vm4868_vm1 = vweird.f32 %v11805_v22 }
 0x4f3   : > { %6939 = vrcp.f32 %v11805_v22  ;;  %v4872_v37 = vand.u32 2147483647, %v11805_v22  ;;  %v4874_v27 = vand.u32 2147483648, %v11805_v22  ;;  %vm11894_vm6 = vcmp.eq.f32.partialorder %v4842_v61, 8.507059e+37 }
 0x4f4   : > { %6941 = vpow2.f32 %v5419_v45  ;;  %v4845_v11 = vor.u32 1.1754944e-38, %v4844_v26  ;;  %vm11898_vm3 = vcmp.eq.f32.partialorder %v4857_v46, 8.507059e+37  ;;  %vm4883_vm11 = vweird.f32 %v11810_v1 }
 0x4f5   : > { %6943 = vrcp.f32 %v11810_v1  ;;  %vm4873_vm9 = vcmp.eq.f32.partialorder %v4872_v37, 8.507059e+37 }
 0x4f6   : > { %v11812_v16 = vpop.eup %6933  ;;  %6945 = vpow2.f32 %v5420_v60  ;;  %v4860_v60 = vor.u32 1.1754944e-38, %v4859_v12 }
 0x4f7   : > { %v11814_v19 = vpop.eup %6935  ;;  %v4834_v28 = vmul.f32 %v11812_v16, %v11799_v52  ;;  %6947 = vpow2.f32 %v5421_v9  ;;  %vm4839_vm15 = vweird.f32 %v11812_v16 }
 0x4f8   : > { %v6938_v4 = vpop.eup %6937  ;;  %v4849_v0 = vmul.f32 %v11814_v19, %v11801_v50  ;;  %vm4854_vm12 = vweird.f32 %v11814_v19  ;;  %vm11865_vm14 = vmor %vm4838_vm0, %vm4839_vm15 }
 0x4f9   : > { %v11819_v13 = vpop.eup %6939  ;;  %v11825_v10 = vadd.f32 1.0, %v6938_v4  ;;  %v4835_v53 = vsub.f32 1.0, %v4834_v28  ;;  %vm11877_vm10 = vmor %vm4853_vm4, %vm4854_vm12  ;;  %v4875_v4 = vor.u32 1.1754944e-38, %v4874_v27 }
 0x4fa   : > { %v6942_v14 = vpop.eup %6941  ;;  %v4864_v7 = vmul.f32 %v11819_v13, %v11805_v22  ;;  %v4850_v49 = vsub.f32 1.0, %v4849_v0  ;;  %vm4869_vm7 = vweird.f32 %v11819_v13  ;;  %v4889_v0 = vand.u32 2147483648, %v11810_v1 }
 0x4fb   : > { %v11831_v59 = vpop.eup %6943  ;;  %6949 = vrcp.f32 %v11825_v10  ;;  %v11836_v55 = vadd.f32 1.0, %v6942_v14  ;;  %v4836_v21 = vmul.f32 %v11812_v16, %v4835_v53  ;;  %vm11904_vm8 = vmor %vm4868_vm1, %vm4869_vm7  ;;  %vm4898_vm0 = vweird.f32 %v11825_v10 }
 0x4fc   : > { %v6946_v62 = vpop.eup %6945  ;;  %v4865_v38 = vsub.f32 1.0, %v4864_v7  ;;  %v4879_v15 = vmul.f32 %v11831_v59, %v11810_v1  ;;  %v4851_v54 = vmul.f32 %v11814_v19, %v4850_v49  ;;  %vm4884_vm5 = vweird.f32 %v11831_v59 }
 0x4fd   : > { %v6948_v58 = vpop.eup %6947  ;;  %6951 = vrcp.f32 %v11836_v55  ;;  %v11849_v29 = vadd.f32 1.0, %v6946_v62  ;;  %v4837_v6 = vadd.f32 %v11812_v16, %v4836_v21  ;;  %vm11925_vm2 = vmor %vm4883_vm11, %vm4884_vm5  ;;  %vm4913_vm4 = vweird.f32 %v11836_v55 }
 0x4fe   : > { %v4866_v8 = vmul.f32 %v11819_v13, %v4865_v38  ;;  %v4880_v63 = vsub.f32 1.0, %v4879_v15  ;;  %v11854_v23 = vadd.f32 1.0, %v6948_v58  ;;  %v4852_v48 = vadd.f32 %v11814_v19, %v4851_v54 }
 0x4ff   : > { %v4841_v24 = vsel %vm11865_vm14, %v11812_v16, %v4837_v6  ;;  %v4887_v38 = vand.u32 2147483647, %v11810_v1  ;;  %v11947_v15 = vor.u32 1.1754944e-38, %v4889_v0  ;;  %v4904_v1 = vand.u32 2147483648, %v11825_v10 }
 0x500   : > { %v4867_v52 = vadd.f32 %v11819_v13, %v4866_v8  ;;  %v4881_v56 = vmul.f32 %v11831_v59, %v4880_v63  ;;  %v4856_v16 = vsel %vm11877_vm10, %v11814_v19, %v4852_v48  ;;  %v4902_v8 = vand.u32 2147483647, %v11825_v10 }
 0x501   : > { %v11851_v41 = vpop.eup %6949  ;;  %vm11972_vm1 = vcmp.eq.f32.partialorder %v4887_v38, 8.507059e+37 }
 0x502   : > { %v4894_v33 = vmul.f32 %v11851_v41, %v11825_v10  ;;  %v4871_v22 = vsel %vm11904_vm8, %v11819_v13, %v4867_v52  ;;  %v11918_v28 = vadd.f32 %v11831_v59, %v4881_v56  ;;  %v11933_v13 = vsel %vm11894_vm6, %v4845_v11, %v4841_v24 }
 0x503   : > { %v11889_v50 = vpop.eup %6951  ;;  %vm4899_vm15 = vweird.f32 %v11851_v41  ;;  %vm11978_vm7 = vcmp.eq.f32.partialorder %v4902_v8, 8.507059e+37  ;;  %v4917_v52 = vand.u32 2147483647, %v11836_v55 }
 0x504   : > { %v4895_v30 = vsub.f32 1.0, %v4894_v33  ;;  %v4909_v19 = vmul.f32 %v11889_v50, %v11836_v55  ;;  %v4886_v62 = vsel %vm11925_vm2, %v11831_v59, %v11918_v28  ;;  %vm4914_vm10 = vweird.f32 %v11889_v50  ;;  %vm12004_vm6 = vmor %vm4898_vm0, %vm4899_vm15 }
 0x505   : > { %vm12030_vm11 = vmor %vm4913_vm4, %vm4914_vm10  ;;  %vm12036_vm5 = vcmp.eq.f32.partialorder %v4917_v52, 8.507059e+37  ;;  %vm4943_vm0 = vweird.f32 %v11854_v23 }
 0x506   : > { %v4896_v49 = vmul.f32 %v11851_v41, %v4895_v30 }
 0x508   : > { %v11958_v63 = vadd.f32 %v11851_v41, %v4896_v49 }
 0x55f   : > { %v5091_v3 = vpop.xlane.xlu1 %5090 }
 0x560   : > { %v11827_v5 = vmul.f32 0.00390625, %v5091_v3 }
 0x562   : > { %v5108_v35 = vpop.xlane.xlu2 %5107  ;;  %v5111_v44 = vmul.f32 %v11827_v5, %v11827_v5  ;;  %v5113_v26 = vsub.f32 %v11732_v39, %v11827_v5  ;;  %v5114_v46 = vsub.f32 %v11736_v47, %v11827_v5  ;;  %v5115_v31 = vsub.f32 %v11741_v34, %v11827_v5 }
 0x563   : > { %v5110_v18 = vmul.f32 0.00390625, %v5108_v35  ;;  %v11937_v35 = vsel %vm11898_vm3, %v4860_v60, %v4856_v16  ;;  %v5116_v17 = vsub.f32 %v11748_v42, %v11827_v5  ;;  %v5117_v39 = vsub.f32 %v11754_v36, %v11827_v5 }
 0x564   : > { %v4919_v42 = vand.u32 2147483648, %v11836_v55  ;;  %v5118_v56 = vsub.f32 %v11761_v51, %v11827_v5  ;;  %v5119_v36 = vsub.f32 %v11763_v20, %v11827_v5  ;;  %v5120_v11 = vsub.f32 %v11769_v57, %v11827_v5 }
 0x565   : > { %v5112_v25 = vsub.f32 %v5110_v18, %v5111_v44  ;;  %v11939_v44 = vsel %vm4873_vm9, %v4875_v4, %v4871_v22  ;;  %vm4928_vm3 = vweird.f32 %v11849_v29  ;;  %v4901_v5 = vsel %vm12004_vm6, %v11851_v41, %v11958_v63 }
 0x566   : > { %v4905_v16 = vor.u32 1.1754944e-38, %v4904_v1  ;;  %v4934_v4 = vand.u32 2147483648, %v11849_v29  ;;  %v4920_v22 = vor.u32 1.1754944e-38, %v4919_v42 }
 0x567   : > { %v11844_v43 = vadd.f32 1e-05, %v5112_v25  ;;  %v4910_v25 = vsub.f32 1.0, %v4909_v19 }
 0x569   : > { %6953 = vrsqrt.f32 %v11844_v43  ;;  %vm5128_vm12 = vweird.f32 %v11844_v43  ;;  %v4911_v61 = vmul.f32 %v11889_v50, %v4910_v25  ;;  %v4935_v25 = vor.u32 1.1754944e-38, %v4934_v4 }
 0x56a   : > { %6955 = vrcp.f32 %v11849_v29 }
 0x56b   : > { %6957 = vrcp.f32 %v11854_v23  ;;  %v12013_v45 = vadd.f32 %v11889_v50, %v4911_v61 }
 0x56d   : > { %v4916_v49 = vsel %vm12030_vm11, %v11889_v50, %v12013_v45 }
 0x56f   : > { %v6954_v2 = vpop.eup %6953 }
 0x570   : > { %v5123_v9 = vmul.f32 %v6954_v2, %v11844_v43  ;;  %v11923_v3 = vpop.eup %6955  ;;  %vm5129_vm13 = vweird.f32 %v6954_v2 }
 0x571   : > { %v11929_v53 = vpop.eup %6957  ;;  %v4924_v58 = vmul.f32 %v11923_v3, %v11849_v29  ;;  %vm5130_vm14 = vmor %vm5128_vm12, %vm5129_vm13  ;;  %vm4929_vm8 = vweird.f32 %v11923_v3 }
 0x572   : > { %v5124_v7 = vmul.f32 %v6954_v2, %v5123_v9  ;;  %v4939_v21 = vmul.f32 %v11929_v53, %v11854_v23  ;;  %v4932_v9 = vand.u32 2147483647, %v11849_v29  ;;  %vm12051_vm9 = vmor %vm4928_vm3, %vm4929_vm8  ;;  %vm4944_vm13 = vweird.f32 %v11929_v53 }
 0x573   : > { %v4925_v48 = vsub.f32 1.0, %v4924_v58  ;;  %v4949_v29 = vand.u32 2147483648, %v11854_v23  ;;  %v4947_v58 = vand.u32 2147483647, %v11854_v23 }
 0x574   : > { %v5125_v18 = vmul.f32 0.5, %v5124_v7  ;;  %v4940_v12 = vsub.f32 1.0, %v4939_v21 }
 0x575   : > { %v4926_v20 = vmul.f32 %v11923_v3, %v4925_v48 }
 0x576   : > { %v5126_v54 = vsub.f32 1.5, %v5125_v18 }
 0x577   : > { %v4927_v41 = vadd.f32 %v11923_v3, %v4926_v20 }
 0x578   : > { %v5127_v6 = vmul.f32 %v6954_v2, %v5126_v54 }
 0x57a   : > { %v5131_v43 = vsel %vm5130_vm14, %v6954_v2, %v5127_v6  ;;  %v4941_v2 = vmul.f32 %v11929_v53, %v4940_v12 }
 0x57b   : > { %v5132_v47 = vmul.f32 %v5131_v43, %v5113_v26  ;;  %v5133_v27 = vmul.f32 %v5131_v43, %v5114_v46  ;;  %v5134_v34 = vmul.f32 %v5131_v43, %v5115_v31  ;;  %v5135_v24 = vmul.f32 %v5131_v43, %v5116_v17 }
 0x57c   : > { %v5136_v32 = vmul.f32 %v5131_v43, %v5117_v39  ;;  %v5137_v40 = vmul.f32 %v5131_v43, %v5118_v56  ;;  %v5138_v10 = vmul.f32 %v5131_v43, %v5119_v36  ;;  %v5139_v57 = vmul.f32 %v5131_v43, %v5120_v11 }
 0x57d   : > { %6959 = vtanh.f32 %v5132_v47  ;;  %5164 = vst [vmem:[%s11997_s15] sm:$0xff] %v5132_v47  ;;  %v4942_v19 = vadd.f32 %v11929_v53, %v4941_v2 }
 0x57e   : > { %6961 = vtanh.f32 %v5133_v27  ;;  %5165 = vst [vmem:[%s11997_s15 + $0x8] sm:$0xff] %v5133_v27 }
 0x57f   : > { %6963 = vtanh.f32 %v5134_v34  ;;  %5166 = vst [vmem:[%s11997_s15 + $0x10] sm:$0xff] %v5134_v34 }
 0x580   : > { %6965 = vtanh.f32 %v5135_v24  ;;  %5167 = vst [vmem:[%s11997_s15 + $0x18] sm:$0xff] %v5135_v24 }
 0x581   : > { %6967 = vtanh.f32 %v5136_v32  ;;  %5168 = vst [vmem:[%s11997_s15 + $0x20] sm:$0xff] %v5136_v32 }
 0x582   : > { %6969 = vtanh.f32 %v5137_v40  ;;  %5169 = vst [vmem:[%s11997_s15 + $0x28] sm:$0xff] %v5137_v40 }
 0x583   : > { %v6960_v55 = vpop.eup %6959  ;;  %6971 = vtanh.f32 %v5138_v10  ;;  %5170 = vst [vmem:[%s11997_s15 + $0x30] sm:$0xff] %v5138_v10 }
 0x584   : > { %v6962_v7 = vpop.eup %6961  ;;  %6973 = vtanh.f32 %v5139_v57  ;;  %v5148_v18 = vmul.f32 %v6960_v55, %v11933_v13  ;;  %5171 = vst [vmem:[%s11997_s15 + $0x38] sm:$0xff] %v5139_v57 }
 0x585   : > { %v6964_v38 = vpop.eup %6963  ;;  %v5149_v50 = vmul.f32 %v6962_v7, %v11937_v35 }
 0x586   : > { %7149 = shalt.err (!%p7146_p0)
}
 0x587   : > { %5449 = dma.vmem_to_hbm [thread:$0]  (%p7369_p7), %s12043_s6, 1024, %s12045_s11, %s5178_s24   ;;  %v6966_v13 = vpop.eup %6965  ;;  %v4891_v35 = vsel %vm11972_vm1, %v11947_v15, %v4886_v62  ;;  %v4931_v21 = vsel %vm12051_vm9, %v11923_v3, %v4927_v41  ;;  %vm12100_vm15 = vcmp.eq.f32.partialorder %v4932_v9, 8.507059e+37  ;;  %vm12108_vm4 = vmor %vm4943_vm0, %vm4944_vm13  ;;  %v5150_v59 = vmul.f32 %v6964_v38, %v11939_v44 }
 0x588   : > { %s316_s9 = scalar_lea.vmem [#allocation11], %s7442_s1  ;;  %v6968_v28 = vpop.eup %6967  ;;  %v4906_v3 = vsel %vm11978_vm7, %v4905_v16, %v4901_v5  ;;  %v4946_v62 = vsel %vm12108_vm4, %v11929_v53, %v4942_v19  ;;  %v5151_v15 = vmul.f32 %v6966_v13, %v4891_v35  ;;  %v4921_v8 = vsel %vm12036_vm5, %v4920_v22, %v4916_v49  ;;  %s5193_s1 = sshll.u32 %s12070_s23, 4  ;;  %s5194_s1 = int_to_ptr.hbm [resolvable:$true] %s5193_s1 }
 0x589   : > { %5156 = vst [vmem:[%s316_s9] sm:$0xff] %v5148_v18  ;;  %v6970_v23 = vpop.eup %6969  ;;  %v4950_v1 = vor.u32 1.1754944e-38, %v4949_v29  ;;  %v5152_v63 = vmul.f32 %v6968_v28, %v4906_v3  ;;  %s5191_s10 = sshll.u32 %s316_s9, 4  ;;  %v4936_v6 = vsel %vm12100_vm15, %v4935_v25, %v4931_v21  ;;  %vm4948_vm2 = vcmp.eq.f32.partialorder %v4947_v58, 8.507059e+37  ;;  %s5173_s8 = scalar_lea.sflag [#allocation6], %s7428_s12  ;;  %s5192_s10 = int_to_ptr.vmem [resolvable:$true] %s5191_s10 }
 0x58a   : > { %5157 = vst [vmem:[%s316_s9 + $0x8] sm:$0xff] %v5149_v50  ;;  %v6972_v44 = vpop.eup %6971  ;;  %v5153_v61 = vmul.f32 %v6970_v23, %v4921_v8  ;;  %s7164_s3 = sshra.s32 %s5194_s1, 4  ;;  %s7170_s6 = scalar_lea.hbm %s12157_s4, 128  ;;  %s7165_s3 = int_to_ptr.hbm [resolvable:$true] %s7164_s3 }
 0x58b   : > { %5158 = vst [vmem:[%s316_s9 + $0x10] sm:$0xff] %v5150_v59  ;;  %v6974_v53 = vpop.eup %6973  ;;  %v4951_v26 = vsel %vm4948_vm2, %v4950_v1, %v4946_v62  ;;  %v5154_v46 = vmul.f32 %v6972_v44, %v4936_v6  ;;  %s7166_s7 = scalar_lea.hbm %s7165_s3, 64  ;;  %p7171_p12 = scmp.lt.s32.totalorder %s7165_s3, %s12157_s4 }
 0x58c   : > { %5159 = vst [vmem:[%s316_s9 + $0x18] sm:$0xff] %v5151_v15  ;;  %v5155_v31 = vmul.f32 %v6974_v53, %v4951_v26  ;;  %p7167_p3 = scmp.ne.s32.totalorder %s7165_s3, %s7166_s7  ;;  %p7172_p5 = scmp.lt.s32.totalorder %s7170_s6, %s7166_s7 }
 0x58d   : > { %5160 = vst [vmem:[%s316_s9 + $0x20] sm:$0xff] %v5152_v63 }
 0x58e   : > { %5161 = vst [vmem:[%s316_s9 + $0x28] sm:$0xff] %v5153_v61  ;;  %p7168_p9 = pnand %p7167_p3, %p7369_p7  ;;  %p7173_p4 = por %p7172_p5, %p7171_p12 }
 0x58f   : > { %5162 = vst [vmem:[%s316_s9 + $0x30] sm:$0xff] %v5154_v46 }
 0x590   : > { %5163 = vst [vmem:[%s316_s9 + $0x38] sm:$0xff] %v5155_v31  ;;  %p7169_p8 = pneg %p7168_p9 }
 0x592   : > { %p7174_p1 = pnand %p7173_p4, %p7169_p8 }
 0x594   : > { %7177 = shalt.err (!%p7174_p1)
}
 0x595   : > { %5448 = dma.vmem_to_hbm [thread:$0]  (%p7369_p7), %s5192_s10, 1024, %s5194_s1, %s5173_s8  }
 0x596 PF: > { %s5220_s12 = sand.u32 1, %s7220_s18   ;;  %p13323_p11 = scmp.ge.s32.totalorder %s7232_s21, 2 }
 0x597   : > { %s5221_s17 = scalar_lea.sflag [#allocation6], %s5220_s12 }
 0x598   : > { %p5467_p2 = pnand %p13323_p11, %p7331_p6 }
 0x59a   : > { %p5468_p10 = pneg %p5467_p2 }
 0x59c   : > { %7211 = dma.done.wait (%p5468_p10), %s5221_s17, 1024  }
 0x59d   : > { %7213 = vsyncadd (%p5468_p10), %s5221_s17, 4294966272  ;;  %s5231_s23 = scalar_lea.sflag [#allocation13], %s5220_s12 }
 0x59e   : > { %7215 = dma.done.wait (%p5468_p10), %s5231_s23, 1024  }
 0x59f   : > { %7217 = vsyncadd (%p5468_p10), %s5231_s23, 4294966272  ;;  %s13324_s21 = sld [smem:[#allocation20_spill]]  ;;  %s13326_s18 = smov %s7224_s19 }
 0x5a0   : > { %s13325_s14 = sld [smem:[#allocation21_spill]]  ;;  %s13327_s19 = smov %s7228_s20 }
 0x5a5   : > { %p23_p7 = scmp.ge.s32.totalorder %s13324_s21, 4  }
 0x5a6   : > { %s13328_s20 = smov %s13325_s14 }
 0x5a7   :  { %25 = sbr.rel (!%p23_p7) target bundleno = 12 (0xc), region = 118 }
 0x5ac   :  { %5237 = vsyncpa [#allocation5], 1 }
 0x5ad   :  { %5239 = vsyncpa [#allocation5 + $0x1], 1 }
 0x5ae   :  { %5240 = vsyncpa [#allocation8], 1 }
 0x5af   :  { %5241 = vsyncpa [#allocation6], 1 }
 0x5b0   :  { %5243 = vsyncpa [#allocation6 + $0x1], 1 }
 0x5b1   :  { %5244 = vsyncpa [#allocation13], 1 }
 0x5b2   :  { %5246 = vsyncpa [#allocation13 + $0x1], 1 }

</bundles_post_ra>
